<compile_context>
chip_gen: v7x
topology: tpu7x:2x2x1
jax: 0.10.0
libtpu: 0.0.40
codegen_flags: <defaults>
</compile_context>

<pallas_src>
import functools

import jax
import jax.numpy as jnp
from jax.experimental import pallas as pl
from jax.experimental.pallas import tpu as pltpu


MAX_PAD = 3  # largest halo among the dilated 3x3 branches (dilation = 3)


def _head_kernel(xp_ref, w1_ref, w2_ref, w3_ref, w4_ref, w5_ref, w6_ref,
                 o_ref, ypad_ref, *, H, W, Cin, C3):
    """Fully fused Head forward for ONE batch element (one grid step).

    xp_ref   : (1, H+6, W+6, Cin) input, zero-padded once to the max halo
    w1..w3   : (9, Cin, C3)       dilated 3x3 branch weights, each embedded in
                                  its own C3 column block (sum == concat)
    w4_ref   : (Cin, C3)          stage4 1x1 projection
    w5_ref   : (9, C3, 96)        res[0] 3x3 conv
    w6_ref   : (96, 1)            res[1] 1x1 conv (no relu)
    o_ref    : (1, H, W, 1)       output tile
    ypad_ref : (H+2, W+2, C3)     VMEM scratch: zero-padded intermediate y
    """
    HW = H * W

    def dilated3x3(w_ref, d):
        # Whole-image matmul per filter tap: (H*W, Cin) @ (Cin, C3).
        acc = jnp.zeros((HW, C3), jnp.float32)
        for t in range(9):                       # static unrolled tap loop
            ky, kx = t // 3, t % 3
            rs = MAX_PAD + (ky - 1) * d
            cs = MAX_PAD + (kx - 1) * d
            win = xp_ref[0, rs:rs + H, cs:cs + W, :]
            acc = acc + jnp.dot(win.reshape(HW, Cin), w_ref[t],
                                preferred_element_type=jnp.float32)
        return jnp.maximum(acc, 0.0)             # per-branch relu

    # stage4: 1x1 conv + relu on the unpadded interior — a single MXU matmul.
    xin = xp_ref[0, MAX_PAD:MAX_PAD + H, MAX_PAD:MAX_PAD + W, :]
    y4 = jnp.maximum(
        jnp.dot(xin.reshape(HW, Cin), w4_ref[...],
                preferred_element_type=jnp.float32), 0.0)

    # stages 1-3 (d = 1, 2, 3); branch weights live in disjoint column blocks
    # of C3, so summing the relu'd branch outputs == channel concatenation.
    y = dilated3x3(w1_ref, 1) + dilated3x3(w2_ref, 2) + dilated3x3(w3_ref, 3)
    y = y + y4                                   # residual add, (HW, C3)

    # Zero-pad y by 1 inside VMEM for the res[0] 3x3 conv (no HBM round trip).
    ypad_ref[...] = jnp.zeros_like(ypad_ref)
    ypad_ref[1:1 + H, 1:1 + W, :] = y.reshape(H, W, C3)

    # res[0]: 3x3 conv -> 96 channels, relu.
    acc5 = jnp.zeros((HW, 96), jnp.float32)
    for t in range(9):
        ky, kx = t // 3, t % 3
        win = ypad_ref[ky:ky + H, kx:kx + W, :]
        acc5 = acc5 + jnp.dot(win.reshape(HW, C3), w5_ref[t],
                              preferred_element_type=jnp.float32)
    y5 = jnp.maximum(acc5, 0.0)

    # res[1]: 1x1 conv -> 1 channel, no relu; single lane-dense store.
    z = jnp.dot(y5, w6_ref[...], preferred_element_type=jnp.float32)  # (HW,1)
    o_ref[...] = z.reshape(1, H, W, 1).astype(o_ref.dtype)


def head_forward(x_nchw, p):
    """Forward pass of Head.  Input (N, C, H, W) -> output (N, 1, H, W)."""
    x = jnp.transpose(x_nchw, (0, 2, 3, 1))      # NCHW -> NHWC (layout glue)
    N, H, W, Cin = x.shape
    C2 = Cin // 2
    C3 = 3 * C2

    # Pad ONCE to the maximum halo; all three dilations index into it.
    xp = jnp.pad(x, ((0, 0), (MAX_PAD, MAX_PAD), (MAX_PAD, MAX_PAD), (0, 0)))
    Hp, Wp = H + 2 * MAX_PAD, W + 2 * MAX_PAD

    def embed(w, blk):
        # (3,3,Cin,C2) -> (9,Cin,C3) placed in its disjoint column block.
        wf = w.reshape(9, Cin, C2)
        z = jnp.zeros((9, Cin, C3), w.dtype)
        return z.at[:, :, blk * C2:(blk + 1) * C2].set(wf)

    w1e = embed(p["w1"], 0)
    w2e = embed(p["w2"], 1)
    w3e = embed(p["w3"], 2)
    w4f = p["w4"].reshape(Cin, C3)
    w5f = p["w5"].reshape(9, C3, 96)
    w6f = p["w6"].reshape(96, 1)

    kernel = functools.partial(_head_kernel, H=H, W=W, Cin=Cin, C3=C3)

    out = pl.pallas_call(
        kernel,
        out_shape=jax.ShapeDtypeStruct((N, H, W, 1), x.dtype),
        grid=(N,),
        in_specs=[
            pl.BlockSpec((1, Hp, Wp, Cin), lambda n: (n, 0, 0, 0)),
            pl.BlockSpec((9, Cin, C3), lambda n: (0, 0, 0)),
            pl.BlockSpec((9, Cin, C3), lambda n: (0, 0, 0)),
            pl.BlockSpec((9, Cin, C3), lambda n: (0, 0, 0)),
            pl.BlockSpec((Cin, C3), lambda n: (0, 0)),
            pl.BlockSpec((9, C3, 96), lambda n: (0, 0, 0)),
            pl.BlockSpec((96, 1), lambda n: (0, 0)),
        ],
        out_specs=pl.BlockSpec((1, H, W, 1), lambda n: (n, 0, 0, 0)),
        scratch_shapes=[pltpu.VMEM((H + 2, W + 2, C3), jnp.float32)],
        compiler_params=pltpu.CompilerParams(
            dimension_semantics=("parallel",)),
    )(xp, w1e, w2e, w3e, w4f, w5f, w6f)

    return jnp.transpose(out, (0, 3, 1, 2))      # NHWC(…,1) -> NCHW


def init_head_params(key, in_dim):
    """Deterministic kaiming_normal(mode='fan_out', relu) init, HWIO layout."""
    c2 = in_dim // 2
    c3 = in_dim * 3 // 2
    shapes = {
        "w1": (3, 3, in_dim, c2),   # stage1: 3x3, d=1
        "w2": (3, 3, in_dim, c2),   # stage2: 3x3, d=2
        "w3": (3, 3, in_dim, c2),   # stage3: 3x3, d=3
        "w4": (1, 1, in_dim, c3),   # stage4: 1x1
        "w5": (3, 3, c3, 96),       # res[0]: 3x3
        "w6": (1, 1, 96, 1),        # res[1]: 1x1, no relu
    }
    params = {}
    keys = jax.random.split(key, len(shapes))
    for k_, (name, shp) in zip(keys, shapes.items()):
        kh, kw, _, cout = shp
        std = (2.0 / (kh * kw * cout)) ** 0.5    # fan_out = Cout*kh*kw
        params[name] = std * jax.random.normal(k_, shp, jnp.float32)
    return params


# ------------------------- pure-JAX reference -------------------------------
def _conv_ref(x, w, dilation, relu):
    kh = w.shape[0]
    pad = dilation * (kh // 2)
    y = jax.lax.conv_general_dilated(
        x, w, window_strides=(1, 1),
        padding=[(pad, pad), (pad, pad)],
        rhs_dilation=(dilation, dilation),
        dimension_numbers=("NHWC", "HWIO", "NHWC"))
    return jnp.maximum(y, 0.0) if relu else y


def head_ref(x_nchw, p):
    x = jnp.transpose(x_nchw, (0, 2, 3, 1))
    y1 = _conv_ref(x, p["w1"], 1, True)
    y2 = _conv_ref(x, p["w2"], 2, True)
    y3 = _conv_ref(x, p["w3"], 3, True)
    y4 = _conv_ref(x, p["w4"], 1, True)
    y = jnp.concatenate([y1, y2, y3], axis=-1) + y4
    y = _conv_ref(y, p["w5"], 1, True)
    y = _conv_ref(y, p["w6"], 1, False)
    return jnp.transpose(y, (0, 3, 1, 2))


if __name__ == "__main__":
    key = jax.random.PRNGKey(0)
    k_x, k_p = jax.random.split(key)

    in_dim, N, H, W = 8, 2, 16, 16
    x = jax.random.normal(k_x, (N, in_dim, H, W), jnp.float32)  # NCHW, torch-like
    params = init_head_params(k_p, in_dim)

    out = jax.block_until_ready(head_forward(x, params))
    ref = jax.block_until_ready(head_ref(x, params))

    assert out.shape == (N, 1, H, W), out.shape
    assert jnp.allclose(out, ref, atol=1e-3, rtol=1e-3), \
        float(jnp.max(jnp.abs(out - ref)))
    print("KERNEL_OK")
</pallas_src>

<mosaic_0001>
module attributes {stable_mosaic.version = 11 : i64} {
  func.func @_head_kernel(%arg0: i32, %arg1: memref<1x22x22x8xf32, #tpu.memory_space<vmem>>, %arg2: memref<9x8x12xf32, #tpu.memory_space<vmem>>, %arg3: memref<9x8x12xf32, #tpu.memory_space<vmem>>, %arg4: memref<9x8x12xf32, #tpu.memory_space<vmem>>, %arg5: memref<8x12xf32, #tpu.memory_space<vmem>>, %arg6: memref<9x12x96xf32, #tpu.memory_space<vmem>>, %arg7: memref<96x1xf32, #tpu.memory_space<vmem>>, %arg8: memref<1x16x16x1xf32, #tpu.memory_space<vmem>>, %arg9: memref<18x18x12xf32, #tpu.memory_space<vmem>>) attributes {dimension_semantics = [#tpu.dimension_semantics<parallel>], iteration_bounds = array<i64: 2>, scalar_prefetch = 0 : i64, scratch_operands = 1 : i64, tpu.core_type = #tpu.core_type<tc>, window_params = [{transform_indices = @transform_0, window_bounds = array<i64: 1, 22, 22, 8>}, {pipeline_mode = #tpu.pipeline_mode<synchronous>, transform_indices = @transform_1, window_bounds = array<i64: 9, 8, 12>}, {pipeline_mode = #tpu.pipeline_mode<synchronous>, transform_indices = @transform_2, window_bounds = array<i64: 9, 8, 12>}, {pipeline_mode = #tpu.pipeline_mode<synchronous>, transform_indices = @transform_3, window_bounds = array<i64: 9, 8, 12>}, {pipeline_mode = #tpu.pipeline_mode<synchronous>, transform_indices = @transform_4, window_bounds = array<i64: 8, 12>}, {pipeline_mode = #tpu.pipeline_mode<synchronous>, transform_indices = @transform_5, window_bounds = array<i64: 9, 12, 96>}, {pipeline_mode = #tpu.pipeline_mode<synchronous>, transform_indices = @transform_6, window_bounds = array<i64: 96, 1>}, {transform_indices = @transform_7, window_bounds = array<i64: 1, 16, 16, 1>}]} {
    %c0 = arith.constant 0 : index
    %c3 = arith.constant 3 : index
    %c3_0 = arith.constant 3 : index
    %c0_1 = arith.constant 0 : index
    %0 = vector.load %arg1[%c0, %c3, %c3_0, %c0_1] : memref<1x22x22x8xf32, #tpu.memory_space<vmem>>, vector<1x16x16x8xf32>
    %1 = vector.shape_cast %0 : vector<1x16x16x8xf32> to vector<16x16x8xf32>
    %2 = vector.shape_cast %1 : vector<16x16x8xf32> to vector<256x8xf32>
    %c0_2 = arith.constant 0 : index
    %c0_3 = arith.constant 0 : index
    %3 = vector.load %arg5[%c0_2, %c0_3] : memref<8x12xf32, #tpu.memory_space<vmem>>, vector<8x12xf32>
    %cst = arith.constant dense<0.000000e+00> : vector<256x12xf32>
    %4 = tpu.matmul %2, %3, %cst {dimension_numbers = #tpu.dot_dimension_numbers<[1], [0], [0], [1], [0, 0, 1, 1], [], []>} : vector<256x8xf32>, vector<8x12xf32>, vector<256x12xf32> -> vector<256x12xf32>
    %cst_4 = arith.constant 0.000000e+00 : f32
    %5 = vector.broadcast %cst_4 : f32 to vector<256x12xf32>
    %6 = arith.maximumf %4, %5 : vector<256x12xf32>
    %cst_5 = arith.constant 0.000000e+00 : f32
    %7 = vector.broadcast %cst_5 : f32 to vector<256x12xf32>
    %c0_6 = arith.constant 0 : index
    %c2 = arith.constant 2 : index
    %c2_7 = arith.constant 2 : index
    %c0_8 = arith.constant 0 : index
    %8 = vector.load %arg1[%c0_6, %c2, %c2_7, %c0_8] : memref<1x22x22x8xf32, #tpu.memory_space<vmem>>, vector<1x16x16x8xf32>
    %9 = vector.shape_cast %8 : vector<1x16x16x8xf32> to vector<16x16x8xf32>
    %10 = vector.shape_cast %9 : vector<16x16x8xf32> to vector<256x8xf32>
    %c0_9 = arith.constant 0 : index
    %c0_10 = arith.constant 0 : index
    %c0_11 = arith.constant 0 : index
    %11 = vector.load %arg2[%c0_9, %c0_10, %c0_11] : memref<9x8x12xf32, #tpu.memory_space<vmem>>, vector<1x8x12xf32>
    %12 = vector.shape_cast %11 : vector<1x8x12xf32> to vector<8x12xf32>
    %cst_12 = arith.constant dense<0.000000e+00> : vector<256x12xf32>
    %13 = tpu.matmul %10, %12, %cst_12 {dimension_numbers = #tpu.dot_dimension_numbers<[1], [0], [0], [1], [0, 0, 1, 1], [], []>} : vector<256x8xf32>, vector<8x12xf32>, vector<256x12xf32> -> vector<256x12xf32>
    %14 = arith.addf %7, %13 : vector<256x12xf32>
    %c0_13 = arith.constant 0 : index
    %c2_14 = arith.constant 2 : index
    %c3_15 = arith.constant 3 : index
    %c0_16 = arith.constant 0 : index
    %15 = vector.load %arg1[%c0_13, %c2_14, %c3_15, %c0_16] : memref<1x22x22x8xf32, #tpu.memory_space<vmem>>, vector<1x16x16x8xf32>
    %16 = vector.shape_cast %15 : vector<1x16x16x8xf32> to vector<16x16x8xf32>
    %17 = vector.shape_cast %16 : vector<16x16x8xf32> to vector<256x8xf32>
    %c1 = arith.constant 1 : index
    %c0_17 = arith.constant 0 : index
    %c0_18 = arith.constant 0 : index
    %18 = vector.load %arg2[%c1, %c0_17, %c0_18] : memref<9x8x12xf32, #tpu.memory_space<vmem>>, vector<1x8x12xf32>
    %19 = vector.shape_cast %18 : vector<1x8x12xf32> to vector<8x12xf32>
    %cst_19 = arith.constant dense<0.000000e+00> : vector<256x12xf32>
    %20 = tpu.matmul %17, %19, %cst_19 {dimension_numbers = #tpu.dot_dimension_numbers<[1], [0], [0], [1], [0, 0, 1, 1], [], []>} : vector<256x8xf32>, vector<8x12xf32>, vector<256x12xf32> -> vector<256x12xf32>
    %21 = arith.addf %14, %20 : vector<256x12xf32>
    %c0_20 = arith.constant 0 : index
    %c2_21 = arith.constant 2 : index
    %c4 = arith.constant 4 : index
    %c0_22 = arith.constant 0 : index
    %22 = vector.load %arg1[%c0_20, %c2_21, %c4, %c0_22] : memref<1x22x22x8xf32, #tpu.memory_space<vmem>>, vector<1x16x16x8xf32>
    %23 = vector.shape_cast %22 : vector<1x16x16x8xf32> to vector<16x16x8xf32>
    %24 = vector.shape_cast %23 : vector<16x16x8xf32> to vector<256x8xf32>
    %c2_23 = arith.constant 2 : index
    %c0_24 = arith.constant 0 : index
    %c0_25 = arith.constant 0 : index
    %25 = vector.load %arg2[%c2_23, %c0_24, %c0_25] : memref<9x8x12xf32, #tpu.memory_space<vmem>>, vector<1x8x12xf32>
    %26 = vector.shape_cast %25 : vector<1x8x12xf32> to vector<8x12xf32>
    %cst_26 = arith.constant dense<0.000000e+00> : vector<256x12xf32>
    %27 = tpu.matmul %24, %26, %cst_26 {dimension_numbers = #tpu.dot_dimension_numbers<[1], [0], [0], [1], [0, 0, 1, 1], [], []>} : vector<256x8xf32>, vector<8x12xf32>, vector<256x12xf32> -> vector<256x12xf32>
    %28 = arith.addf %21, %27 : vector<256x12xf32>
    %c0_27 = arith.constant 0 : index
    %c3_28 = arith.constant 3 : index
    %c2_29 = arith.constant 2 : index
    %c0_30 = arith.constant 0 : index
    %29 = vector.load %arg1[%c0_27, %c3_28, %c2_29, %c0_30] : memref<1x22x22x8xf32, #tpu.memory_space<vmem>>, vector<1x16x16x8xf32>
    %30 = vector.shape_cast %29 : vector<1x16x16x8xf32> to vector<16x16x8xf32>
    %31 = vector.shape_cast %30 : vector<16x16x8xf32> to vector<256x8xf32>
    %c3_31 = arith.constant 3 : index
    %c0_32 = arith.constant 0 : index
    %c0_33 = arith.constant 0 : index
    %32 = vector.load %arg2[%c3_31, %c0_32, %c0_33] : memref<9x8x12xf32, #tpu.memory_space<vmem>>, vector<1x8x12xf32>
    %33 = vector.shape_cast %32 : vector<1x8x12xf32> to vector<8x12xf32>
    %cst_34 = arith.constant dense<0.000000e+00> : vector<256x12xf32>
    %34 = tpu.matmul %31, %33, %cst_34 {dimension_numbers = #tpu.dot_dimension_numbers<[1], [0], [0], [1], [0, 0, 1, 1], [], []>} : vector<256x8xf32>, vector<8x12xf32>, vector<256x12xf32> -> vector<256x12xf32>
    %35 = arith.addf %28, %34 : vector<256x12xf32>
    %c0_35 = arith.constant 0 : index
    %c3_36 = arith.constant 3 : index
    %c3_37 = arith.constant 3 : index
    %c0_38 = arith.constant 0 : index
    %36 = vector.load %arg1[%c0_35, %c3_36, %c3_37, %c0_38] : memref<1x22x22x8xf32, #tpu.memory_space<vmem>>, vector<1x16x16x8xf32>
    %37 = vector.shape_cast %36 : vector<1x16x16x8xf32> to vector<16x16x8xf32>
    %38 = vector.shape_cast %37 : vector<16x16x8xf32> to vector<256x8xf32>
    %c4_39 = arith.constant 4 : index
    %c0_40 = arith.constant 0 : index
    %c0_41 = arith.constant 0 : index
    %39 = vector.load %arg2[%c4_39, %c0_40, %c0_41] : memref<9x8x12xf32, #tpu.memory_space<vmem>>, vector<1x8x12xf32>
    %40 = vector.shape_cast %39 : vector<1x8x12xf32> to vector<8x12xf32>
    %cst_42 = arith.constant dense<0.000000e+00> : vector<256x12xf32>
    %41 = tpu.matmul %38, %40, %cst_42 {dimension_numbers = #tpu.dot_dimension_numbers<[1], [0], [0], [1], [0, 0, 1, 1], [], []>} : vector<256x8xf32>, vector<8x12xf32>, vector<256x12xf32> -> vector<256x12xf32>
    %42 = arith.addf %35, %41 : vector<256x12xf32>
    %c0_43 = arith.constant 0 : index
    %c3_44 = arith.constant 3 : index
    %c4_45 = arith.constant 4 : index
    %c0_46 = arith.constant 0 : index
    %43 = vector.load %arg1[%c0_43, %c3_44, %c4_45, %c0_46] : memref<1x22x22x8xf32, #tpu.memory_space<vmem>>, vector<1x16x16x8xf32>
    %44 = vector.shape_cast %43 : vector<1x16x16x8xf32> to vector<16x16x8xf32>
    %45 = vector.shape_cast %44 : vector<16x16x8xf32> to vector<256x8xf32>
    %c5 = arith.constant 5 : index
    %c0_47 = arith.constant 0 : index
    %c0_48 = arith.constant 0 : index
    %46 = vector.load %arg2[%c5, %c0_47, %c0_48] : memref<9x8x12xf32, #tpu.memory_space<vmem>>, vector<1x8x12xf32>
    %47 = vector.shape_cast %46 : vector<1x8x12xf32> to vector<8x12xf32>
    %cst_49 = arith.constant dense<0.000000e+00> : vector<256x12xf32>
    %48 = tpu.matmul %45, %47, %cst_49 {dimension_numbers = #tpu.dot_dimension_numbers<[1], [0], [0], [1], [0, 0, 1, 1], [], []>} : vector<256x8xf32>, vector<8x12xf32>, vector<256x12xf32> -> vector<256x12xf32>
    %49 = arith.addf %42, %48 : vector<256x12xf32>
    %c0_50 = arith.constant 0 : index
    %c4_51 = arith.constant 4 : index
    %c2_52 = arith.constant 2 : index
    %c0_53 = arith.constant 0 : index
    %50 = vector.load %arg1[%c0_50, %c4_51, %c2_52, %c0_53] : memref<1x22x22x8xf32, #tpu.memory_space<vmem>>, vector<1x16x16x8xf32>
    %51 = vector.shape_cast %50 : vector<1x16x16x8xf32> to vector<16x16x8xf32>
    %52 = vector.shape_cast %51 : vector<16x16x8xf32> to vector<256x8xf32>
    %c6 = arith.constant 6 : index
    %c0_54 = arith.constant 0 : index
    %c0_55 = arith.constant 0 : index
    %53 = vector.load %arg2[%c6, %c0_54, %c0_55] : memref<9x8x12xf32, #tpu.memory_space<vmem>>, vector<1x8x12xf32>
    %54 = vector.shape_cast %53 : vector<1x8x12xf32> to vector<8x12xf32>
    %cst_56 = arith.constant dense<0.000000e+00> : vector<256x12xf32>
    %55 = tpu.matmul %52, %54, %cst_56 {dimension_numbers = #tpu.dot_dimension_numbers<[1], [0], [0], [1], [0, 0, 1, 1], [], []>} : vector<256x8xf32>, vector<8x12xf32>, vector<256x12xf32> -> vector<256x12xf32>
    %56 = arith.addf %49, %55 : vector<256x12xf32>
    %c0_57 = arith.constant 0 : index
    %c4_58 = arith.constant 4 : index
    %c3_59 = arith.constant 3 : index
    %c0_60 = arith.constant 0 : index
    %57 = vector.load %arg1[%c0_57, %c4_58, %c3_59, %c0_60] : memref<1x22x22x8xf32, #tpu.memory_space<vmem>>, vector<1x16x16x8xf32>
    %58 = vector.shape_cast %57 : vector<1x16x16x8xf32> to vector<16x16x8xf32>
    %59 = vector.shape_cast %58 : vector<16x16x8xf32> to vector<256x8xf32>
    %c7 = arith.constant 7 : index
    %c0_61 = arith.constant 0 : index
    %c0_62 = arith.constant 0 : index
    %60 = vector.load %arg2[%c7, %c0_61, %c0_62] : memref<9x8x12xf32, #tpu.memory_space<vmem>>, vector<1x8x12xf32>
    %61 = vector.shape_cast %60 : vector<1x8x12xf32> to vector<8x12xf32>
    %cst_63 = arith.constant dense<0.000000e+00> : vector<256x12xf32>
    %62 = tpu.matmul %59, %61, %cst_63 {dimension_numbers = #tpu.dot_dimension_numbers<[1], [0], [0], [1], [0, 0, 1, 1], [], []>} : vector<256x8xf32>, vector<8x12xf32>, vector<256x12xf32> -> vector<256x12xf32>
    %63 = arith.addf %56, %62 : vector<256x12xf32>
    %c0_64 = arith.constant 0 : index
    %c4_65 = arith.constant 4 : index
    %c4_66 = arith.constant 4 : index
    %c0_67 = arith.constant 0 : index
    %64 = vector.load %arg1[%c0_64, %c4_65, %c4_66, %c0_67] : memref<1x22x22x8xf32, #tpu.memory_space<vmem>>, vector<1x16x16x8xf32>
    %65 = vector.shape_cast %64 : vector<1x16x16x8xf32> to vector<16x16x8xf32>
    %66 = vector.shape_cast %65 : vector<16x16x8xf32> to vector<256x8xf32>
    %c8 = arith.constant 8 : index
    %c0_68 = arith.constant 0 : index
    %c0_69 = arith.constant 0 : index
    %67 = vector.load %arg2[%c8, %c0_68, %c0_69] : memref<9x8x12xf32, #tpu.memory_space<vmem>>, vector<1x8x12xf32>
    %68 = vector.shape_cast %67 : vector<1x8x12xf32> to vector<8x12xf32>
    %cst_70 = arith.constant dense<0.000000e+00> : vector<256x12xf32>
    %69 = tpu.matmul %66, %68, %cst_70 {dimension_numbers = #tpu.dot_dimension_numbers<[1], [0], [0], [1], [0, 0, 1, 1], [], []>} : vector<256x8xf32>, vector<8x12xf32>, vector<256x12xf32> -> vector<256x12xf32>
    %70 = arith.addf %63, %69 : vector<256x12xf32>
    %cst_71 = arith.constant 0.000000e+00 : f32
    %71 = vector.broadcast %cst_71 : f32 to vector<256x12xf32>
    %72 = arith.maximumf %70, %71 : vector<256x12xf32>
    %cst_72 = arith.constant 0.000000e+00 : f32
    %73 = vector.broadcast %cst_72 : f32 to vector<256x12xf32>
    %c0_73 = arith.constant 0 : index
    %c1_74 = arith.constant 1 : index
    %c1_75 = arith.constant 1 : index
    %c0_76 = arith.constant 0 : index
    %74 = vector.load %arg1[%c0_73, %c1_74, %c1_75, %c0_76] : memref<1x22x22x8xf32, #tpu.memory_space<vmem>>, vector<1x16x16x8xf32>
    %75 = vector.shape_cast %74 : vector<1x16x16x8xf32> to vector<16x16x8xf32>
    %76 = vector.shape_cast %75 : vector<16x16x8xf32> to vector<256x8xf32>
    %c0_77 = arith.constant 0 : index
    %c0_78 = arith.constant 0 : index
    %c0_79 = arith.constant 0 : index
    %77 = vector.load %arg3[%c0_77, %c0_78, %c0_79] : memref<9x8x12xf32, #tpu.memory_space<vmem>>, vector<1x8x12xf32>
    %78 = vector.shape_cast %77 : vector<1x8x12xf32> to vector<8x12xf32>
    %cst_80 = arith.constant dense<0.000000e+00> : vector<256x12xf32>
    %79 = tpu.matmul %76, %78, %cst_80 {dimension_numbers = #tpu.dot_dimension_numbers<[1], [0], [0], [1], [0, 0, 1, 1], [], []>} : vector<256x8xf32>, vector<8x12xf32>, vector<256x12xf32> -> vector<256x12xf32>
    %80 = arith.addf %73, %79 : vector<256x12xf32>
    %c0_81 = arith.constant 0 : index
    %c1_82 = arith.constant 1 : index
    %c3_83 = arith.constant 3 : index
    %c0_84 = arith.constant 0 : index
    %81 = vector.load %arg1[%c0_81, %c1_82, %c3_83, %c0_84] : memref<1x22x22x8xf32, #tpu.memory_space<vmem>>, vector<1x16x16x8xf32>
    %82 = vector.shape_cast %81 : vector<1x16x16x8xf32> to vector<16x16x8xf32>
    %83 = vector.shape_cast %82 : vector<16x16x8xf32> to vector<256x8xf32>
    %c1_85 = arith.constant 1 : index
    %c0_86 = arith.constant 0 : index
    %c0_87 = arith.constant 0 : index
    %84 = vector.load %arg3[%c1_85, %c0_86, %c0_87] : memref<9x8x12xf32, #tpu.memory_space<vmem>>, vector<1x8x12xf32>
    %85 = vector.shape_cast %84 : vector<1x8x12xf32> to vector<8x12xf32>
    %cst_88 = arith.constant dense<0.000000e+00> : vector<256x12xf32>
    %86 = tpu.matmul %83, %85, %cst_88 {dimension_numbers = #tpu.dot_dimension_numbers<[1], [0], [0], [1], [0, 0, 1, 1], [], []>} : vector<256x8xf32>, vector<8x12xf32>, vector<256x12xf32> -> vector<256x12xf32>
    %87 = arith.addf %80, %86 : vector<256x12xf32>
    %c0_89 = arith.constant 0 : index
    %c1_90 = arith.constant 1 : index
    %c5_91 = arith.constant 5 : index
    %c0_92 = arith.constant 0 : index
    %88 = vector.load %arg1[%c0_89, %c1_90, %c5_91, %c0_92] : memref<1x22x22x8xf32, #tpu.memory_space<vmem>>, vector<1x16x16x8xf32>
    %89 = vector.shape_cast %88 : vector<1x16x16x8xf32> to vector<16x16x8xf32>
    %90 = vector.shape_cast %89 : vector<16x16x8xf32> to vector<256x8xf32>
    %c2_93 = arith.constant 2 : index
    %c0_94 = arith.constant 0 : index
    %c0_95 = arith.constant 0 : index
    %91 = vector.load %arg3[%c2_93, %c0_94, %c0_95] : memref<9x8x12xf32, #tpu.memory_space<vmem>>, vector<1x8x12xf32>
    %92 = vector.shape_cast %91 : vector<1x8x12xf32> to vector<8x12xf32>
    %cst_96 = arith.constant dense<0.000000e+00> : vector<256x12xf32>
    %93 = tpu.matmul %90, %92, %cst_96 {dimension_numbers = #tpu.dot_dimension_numbers<[1], [0], [0], [1], [0, 0, 1, 1], [], []>} : vector<256x8xf32>, vector<8x12xf32>, vector<256x12xf32> -> vector<256x12xf32>
    %94 = arith.addf %87, %93 : vector<256x12xf32>
    %c0_97 = arith.constant 0 : index
    %c3_98 = arith.constant 3 : index
    %c1_99 = arith.constant 1 : index
    %c0_100 = arith.constant 0 : index
    %95 = vector.load %arg1[%c0_97, %c3_98, %c1_99, %c0_100] : memref<1x22x22x8xf32, #tpu.memory_space<vmem>>, vector<1x16x16x8xf32>
    %96 = vector.shape_cast %95 : vector<1x16x16x8xf32> to vector<16x16x8xf32>
    %97 = vector.shape_cast %96 : vector<16x16x8xf32> to vector<256x8xf32>
    %c3_101 = arith.constant 3 : index
    %c0_102 = arith.constant 0 : index
    %c0_103 = arith.constant 0 : index
    %98 = vector.load %arg3[%c3_101, %c0_102, %c0_103] : memref<9x8x12xf32, #tpu.memory_space<vmem>>, vector<1x8x12xf32>
    %99 = vector.shape_cast %98 : vector<1x8x12xf32> to vector<8x12xf32>
    %cst_104 = arith.constant dense<0.000000e+00> : vector<256x12xf32>
    %100 = tpu.matmul %97, %99, %cst_104 {dimension_numbers = #tpu.dot_dimension_numbers<[1], [0], [0], [1], [0, 0, 1, 1], [], []>} : vector<256x8xf32>, vector<8x12xf32>, vector<256x12xf32> -> vector<256x12xf32>
    %101 = arith.addf %94, %100 : vector<256x12xf32>
    %c0_105 = arith.constant 0 : index
    %c3_106 = arith.constant 3 : index
    %c3_107 = arith.constant 3 : index
    %c0_108 = arith.constant 0 : index
    %102 = vector.load %arg1[%c0_105, %c3_106, %c3_107, %c0_108] : memref<1x22x22x8xf32, #tpu.memory_space<vmem>>, vector<1x16x16x8xf32>
    %103 = vector.shape_cast %102 : vector<1x16x16x8xf32> to vector<16x16x8xf32>
    %104 = vector.shape_cast %103 : vector<16x16x8xf32> to vector<256x8xf32>
    %c4_109 = arith.constant 4 : index
    %c0_110 = arith.constant 0 : index
    %c0_111 = arith.constant 0 : index
    %105 = vector.load %arg3[%c4_109, %c0_110, %c0_111] : memref<9x8x12xf32, #tpu.memory_space<vmem>>, vector<1x8x12xf32>
    %106 = vector.shape_cast %105 : vector<1x8x12xf32> to vector<8x12xf32>
    %cst_112 = arith.constant dense<0.000000e+00> : vector<256x12xf32>
    %107 = tpu.matmul %104, %106, %cst_112 {dimension_numbers = #tpu.dot_dimension_numbers<[1], [0], [0], [1], [0, 0, 1, 1], [], []>} : vector<256x8xf32>, vector<8x12xf32>, vector<256x12xf32> -> vector<256x12xf32>
    %108 = arith.addf %101, %107 : vector<256x12xf32>
    %c0_113 = arith.constant 0 : index
    %c3_114 = arith.constant 3 : index
    %c5_115 = arith.constant 5 : index
    %c0_116 = arith.constant 0 : index
    %109 = vector.load %arg1[%c0_113, %c3_114, %c5_115, %c0_116] : memref<1x22x22x8xf32, #tpu.memory_space<vmem>>, vector<1x16x16x8xf32>
    %110 = vector.shape_cast %109 : vector<1x16x16x8xf32> to vector<16x16x8xf32>
    %111 = vector.shape_cast %110 : vector<16x16x8xf32> to vector<256x8xf32>
    %c5_117 = arith.constant 5 : index
    %c0_118 = arith.constant 0 : index
    %c0_119 = arith.constant 0 : index
    %112 = vector.load %arg3[%c5_117, %c0_118, %c0_119] : memref<9x8x12xf32, #tpu.memory_space<vmem>>, vector<1x8x12xf32>
    %113 = vector.shape_cast %112 : vector<1x8x12xf32> to vector<8x12xf32>
    %cst_120 = arith.constant dense<0.000000e+00> : vector<256x12xf32>
    %114 = tpu.matmul %111, %113, %cst_120 {dimension_numbers = #tpu.dot_dimension_numbers<[1], [0], [0], [1], [0, 0, 1, 1], [], []>} : vector<256x8xf32>, vector<8x12xf32>, vector<256x12xf32> -> vector<256x12xf32>
    %115 = arith.addf %108, %114 : vector<256x12xf32>
    %c0_121 = arith.constant 0 : index
    %c5_122 = arith.constant 5 : index
    %c1_123 = arith.constant 1 : index
    %c0_124 = arith.constant 0 : index
    %116 = vector.load %arg1[%c0_121, %c5_122, %c1_123, %c0_124] : memref<1x22x22x8xf32, #tpu.memory_space<vmem>>, vector<1x16x16x8xf32>
    %117 = vector.shape_cast %116 : vector<1x16x16x8xf32> to vector<16x16x8xf32>
    %118 = vector.shape_cast %117 : vector<16x16x8xf32> to vector<256x8xf32>
    %c6_125 = arith.constant 6 : index
    %c0_126 = arith.constant 0 : index
    %c0_127 = arith.constant 0 : index
    %119 = vector.load %arg3[%c6_125, %c0_126, %c0_127] : memref<9x8x12xf32, #tpu.memory_space<vmem>>, vector<1x8x12xf32>
    %120 = vector.shape_cast %119 : vector<1x8x12xf32> to vector<8x12xf32>
    %cst_128 = arith.constant dense<0.000000e+00> : vector<256x12xf32>
    %121 = tpu.matmul %118, %120, %cst_128 {dimension_numbers = #tpu.dot_dimension_numbers<[1], [0], [0], [1], [0, 0, 1, 1], [], []>} : vector<256x8xf32>, vector<8x12xf32>, vector<256x12xf32> -> vector<256x12xf32>
    %122 = arith.addf %115, %121 : vector<256x12xf32>
    %c0_129 = arith.constant 0 : index
    %c5_130 = arith.constant 5 : index
    %c3_131 = arith.constant 3 : index
    %c0_132 = arith.constant 0 : index
    %123 = vector.load %arg1[%c0_129, %c5_130, %c3_131, %c0_132] : memref<1x22x22x8xf32, #tpu.memory_space<vmem>>, vector<1x16x16x8xf32>
    %124 = vector.shape_cast %123 : vector<1x16x16x8xf32> to vector<16x16x8xf32>
    %125 = vector.shape_cast %124 : vector<16x16x8xf32> to vector<256x8xf32>
    %c7_133 = arith.constant 7 : index
    %c0_134 = arith.constant 0 : index
    %c0_135 = arith.constant 0 : index
    %126 = vector.load %arg3[%c7_133, %c0_134, %c0_135] : memref<9x8x12xf32, #tpu.memory_space<vmem>>, vector<1x8x12xf32>
    %127 = vector.shape_cast %126 : vector<1x8x12xf32> to vector<8x12xf32>
    %cst_136 = arith.constant dense<0.000000e+00> : vector<256x12xf32>
    %128 = tpu.matmul %125, %127, %cst_136 {dimension_numbers = #tpu.dot_dimension_numbers<[1], [0], [0], [1], [0, 0, 1, 1], [], []>} : vector<256x8xf32>, vector<8x12xf32>, vector<256x12xf32> -> vector<256x12xf32>
    %129 = arith.addf %122, %128 : vector<256x12xf32>
    %c0_137 = arith.constant 0 : index
    %c5_138 = arith.constant 5 : index
    %c5_139 = arith.constant 5 : index
    %c0_140 = arith.constant 0 : index
    %130 = vector.load %arg1[%c0_137, %c5_138, %c5_139, %c0_140] : memref<1x22x22x8xf32, #tpu.memory_space<vmem>>, vector<1x16x16x8xf32>
    %131 = vector.shape_cast %130 : vector<1x16x16x8xf32> to vector<16x16x8xf32>
    %132 = vector.shape_cast %131 : vector<16x16x8xf32> to vector<256x8xf32>
    %c8_141 = arith.constant 8 : index
    %c0_142 = arith.constant 0 : index
    %c0_143 = arith.constant 0 : index
    %133 = vector.load %arg3[%c8_141, %c0_142, %c0_143] : memref<9x8x12xf32, #tpu.memory_space<vmem>>, vector<1x8x12xf32>
    %134 = vector.shape_cast %133 : vector<1x8x12xf32> to vector<8x12xf32>
    %cst_144 = arith.constant dense<0.000000e+00> : vector<256x12xf32>
    %135 = tpu.matmul %132, %134, %cst_144 {dimension_numbers = #tpu.dot_dimension_numbers<[1], [0], [0], [1], [0, 0, 1, 1], [], []>} : vector<256x8xf32>, vector<8x12xf32>, vector<256x12xf32> -> vector<256x12xf32>
    %136 = arith.addf %129, %135 : vector<256x12xf32>
    %cst_145 = arith.constant 0.000000e+00 : f32
    %137 = vector.broadcast %cst_145 : f32 to vector<256x12xf32>
    %138 = arith.maximumf %136, %137 : vector<256x12xf32>
    %139 = arith.addf %72, %138 : vector<256x12xf32>
    %cst_146 = arith.constant 0.000000e+00 : f32
    %140 = vector.broadcast %cst_146 : f32 to vector<256x12xf32>
    %c0_147 = arith.constant 0 : index
    %c0_148 = arith.constant 0 : index
    %c0_149 = arith.constant 0 : index
    %c0_150 = arith.constant 0 : index
    %141 = vector.load %arg1[%c0_147, %c0_148, %c0_149, %c0_150] : memref<1x22x22x8xf32, #tpu.memory_space<vmem>>, vector<1x16x16x8xf32>
    %142 = vector.shape_cast %141 : vector<1x16x16x8xf32> to vector<16x16x8xf32>
    %143 = vector.shape_cast %142 : vector<16x16x8xf32> to vector<256x8xf32>
    %c0_151 = arith.constant 0 : index
    %c0_152 = arith.constant 0 : index
    %c0_153 = arith.constant 0 : index
    %144 = vector.load %arg4[%c0_151, %c0_152, %c0_153] : memref<9x8x12xf32, #tpu.memory_space<vmem>>, vector<1x8x12xf32>
    %145 = vector.shape_cast %144 : vector<1x8x12xf32> to vector<8x12xf32>
    %cst_154 = arith.constant dense<0.000000e+00> : vector<256x12xf32>
    %146 = tpu.matmul %143, %145, %cst_154 {dimension_numbers = #tpu.dot_dimension_numbers<[1], [0], [0], [1], [0, 0, 1, 1], [], []>} : vector<256x8xf32>, vector<8x12xf32>, vector<256x12xf32> -> vector<256x12xf32>
    %147 = arith.addf %140, %146 : vector<256x12xf32>
    %c0_155 = arith.constant 0 : index
    %c0_156 = arith.constant 0 : index
    %c3_157 = arith.constant 3 : index
    %c0_158 = arith.constant 0 : index
    %148 = vector.load %arg1[%c0_155, %c0_156, %c3_157, %c0_158] : memref<1x22x22x8xf32, #tpu.memory_space<vmem>>, vector<1x16x16x8xf32>
    %149 = vector.shape_cast %148 : vector<1x16x16x8xf32> to vector<16x16x8xf32>
    %150 = vector.shape_cast %149 : vector<16x16x8xf32> to vector<256x8xf32>
    %c1_159 = arith.constant 1 : index
    %c0_160 = arith.constant 0 : index
    %c0_161 = arith.constant 0 : index
    %151 = vector.load %arg4[%c1_159, %c0_160, %c0_161] : memref<9x8x12xf32, #tpu.memory_space<vmem>>, vector<1x8x12xf32>
    %152 = vector.shape_cast %151 : vector<1x8x12xf32> to vector<8x12xf32>
    %cst_162 = arith.constant dense<0.000000e+00> : vector<256x12xf32>
    %153 = tpu.matmul %150, %152, %cst_162 {dimension_numbers = #tpu.dot_dimension_numbers<[1], [0], [0], [1], [0, 0, 1, 1], [], []>} : vector<256x8xf32>, vector<8x12xf32>, vector<256x12xf32> -> vector<256x12xf32>
    %154 = arith.addf %147, %153 : vector<256x12xf32>
    %c0_163 = arith.constant 0 : index
    %c0_164 = arith.constant 0 : index
    %c6_165 = arith.constant 6 : index
    %c0_166 = arith.constant 0 : index
    %155 = vector.load %arg1[%c0_163, %c0_164, %c6_165, %c0_166] : memref<1x22x22x8xf32, #tpu.memory_space<vmem>>, vector<1x16x16x8xf32>
    %156 = vector.shape_cast %155 : vector<1x16x16x8xf32> to vector<16x16x8xf32>
    %157 = vector.shape_cast %156 : vector<16x16x8xf32> to vector<256x8xf32>
    %c2_167 = arith.constant 2 : index
    %c0_168 = arith.constant 0 : index
    %c0_169 = arith.constant 0 : index
    %158 = vector.load %arg4[%c2_167, %c0_168, %c0_169] : memref<9x8x12xf32, #tpu.memory_space<vmem>>, vector<1x8x12xf32>
    %159 = vector.shape_cast %158 : vector<1x8x12xf32> to vector<8x12xf32>
    %cst_170 = arith.constant dense<0.000000e+00> : vector<256x12xf32>
    %160 = tpu.matmul %157, %159, %cst_170 {dimension_numbers = #tpu.dot_dimension_numbers<[1], [0], [0], [1], [0, 0, 1, 1], [], []>} : vector<256x8xf32>, vector<8x12xf32>, vector<256x12xf32> -> vector<256x12xf32>
    %161 = arith.addf %154, %160 : vector<256x12xf32>
    %c0_171 = arith.constant 0 : index
    %c3_172 = arith.constant 3 : index
    %c0_173 = arith.constant 0 : index
    %c0_174 = arith.constant 0 : index
    %162 = vector.load %arg1[%c0_171, %c3_172, %c0_173, %c0_174] : memref<1x22x22x8xf32, #tpu.memory_space<vmem>>, vector<1x16x16x8xf32>
    %163 = vector.shape_cast %162 : vector<1x16x16x8xf32> to vector<16x16x8xf32>
    %164 = vector.shape_cast %163 : vector<16x16x8xf32> to vector<256x8xf32>
    %c3_175 = arith.constant 3 : index
    %c0_176 = arith.constant 0 : index
    %c0_177 = arith.constant 0 : index
    %165 = vector.load %arg4[%c3_175, %c0_176, %c0_177] : memref<9x8x12xf32, #tpu.memory_space<vmem>>, vector<1x8x12xf32>
    %166 = vector.shape_cast %165 : vector<1x8x12xf32> to vector<8x12xf32>
    %cst_178 = arith.constant dense<0.000000e+00> : vector<256x12xf32>
    %167 = tpu.matmul %164, %166, %cst_178 {dimension_numbers = #tpu.dot_dimension_numbers<[1], [0], [0], [1], [0, 0, 1, 1], [], []>} : vector<256x8xf32>, vector<8x12xf32>, vector<256x12xf32> -> vector<256x12xf32>
    %168 = arith.addf %161, %167 : vector<256x12xf32>
    %c0_179 = arith.constant 0 : index
    %c3_180 = arith.constant 3 : index
    %c3_181 = arith.constant 3 : index
    %c0_182 = arith.constant 0 : index
    %169 = vector.load %arg1[%c0_179, %c3_180, %c3_181, %c0_182] : memref<1x22x22x8xf32, #tpu.memory_space<vmem>>, vector<1x16x16x8xf32>
    %170 = vector.shape_cast %169 : vector<1x16x16x8xf32> to vector<16x16x8xf32>
    %171 = vector.shape_cast %170 : vector<16x16x8xf32> to vector<256x8xf32>
    %c4_183 = arith.constant 4 : index
    %c0_184 = arith.constant 0 : index
    %c0_185 = arith.constant 0 : index
    %172 = vector.load %arg4[%c4_183, %c0_184, %c0_185] : memref<9x8x12xf32, #tpu.memory_space<vmem>>, vector<1x8x12xf32>
    %173 = vector.shape_cast %172 : vector<1x8x12xf32> to vector<8x12xf32>
    %cst_186 = arith.constant dense<0.000000e+00> : vector<256x12xf32>
    %174 = tpu.matmul %171, %173, %cst_186 {dimension_numbers = #tpu.dot_dimension_numbers<[1], [0], [0], [1], [0, 0, 1, 1], [], []>} : vector<256x8xf32>, vector<8x12xf32>, vector<256x12xf32> -> vector<256x12xf32>
    %175 = arith.addf %168, %174 : vector<256x12xf32>
    %c0_187 = arith.constant 0 : index
    %c3_188 = arith.constant 3 : index
    %c6_189 = arith.constant 6 : index
    %c0_190 = arith.constant 0 : index
    %176 = vector.load %arg1[%c0_187, %c3_188, %c6_189, %c0_190] : memref<1x22x22x8xf32, #tpu.memory_space<vmem>>, vector<1x16x16x8xf32>
    %177 = vector.shape_cast %176 : vector<1x16x16x8xf32> to vector<16x16x8xf32>
    %178 = vector.shape_cast %177 : vector<16x16x8xf32> to vector<256x8xf32>
    %c5_191 = arith.constant 5 : index
    %c0_192 = arith.constant 0 : index
    %c0_193 = arith.constant 0 : index
    %179 = vector.load %arg4[%c5_191, %c0_192, %c0_193] : memref<9x8x12xf32, #tpu.memory_space<vmem>>, vector<1x8x12xf32>
    %180 = vector.shape_cast %179 : vector<1x8x12xf32> to vector<8x12xf32>
    %cst_194 = arith.constant dense<0.000000e+00> : vector<256x12xf32>
    %181 = tpu.matmul %178, %180, %cst_194 {dimension_numbers = #tpu.dot_dimension_numbers<[1], [0], [0], [1], [0, 0, 1, 1], [], []>} : vector<256x8xf32>, vector<8x12xf32>, vector<256x12xf32> -> vector<256x12xf32>
    %182 = arith.addf %175, %181 : vector<256x12xf32>
    %c0_195 = arith.constant 0 : index
    %c6_196 = arith.constant 6 : index
    %c0_197 = arith.constant 0 : index
    %c0_198 = arith.constant 0 : index
    %183 = vector.load %arg1[%c0_195, %c6_196, %c0_197, %c0_198] : memref<1x22x22x8xf32, #tpu.memory_space<vmem>>, vector<1x16x16x8xf32>
    %184 = vector.shape_cast %183 : vector<1x16x16x8xf32> to vector<16x16x8xf32>
    %185 = vector.shape_cast %184 : vector<16x16x8xf32> to vector<256x8xf32>
    %c6_199 = arith.constant 6 : index
    %c0_200 = arith.constant 0 : index
    %c0_201 = arith.constant 0 : index
    %186 = vector.load %arg4[%c6_199, %c0_200, %c0_201] : memref<9x8x12xf32, #tpu.memory_space<vmem>>, vector<1x8x12xf32>
    %187 = vector.shape_cast %186 : vector<1x8x12xf32> to vector<8x12xf32>
    %cst_202 = arith.constant dense<0.000000e+00> : vector<256x12xf32>
    %188 = tpu.matmul %185, %187, %cst_202 {dimension_numbers = #tpu.dot_dimension_numbers<[1], [0], [0], [1], [0, 0, 1, 1], [], []>} : vector<256x8xf32>, vector<8x12xf32>, vector<256x12xf32> -> vector<256x12xf32>
    %189 = arith.addf %182, %188 : vector<256x12xf32>
    %c0_203 = arith.constant 0 : index
    %c6_204 = arith.constant 6 : index
    %c3_205 = arith.constant 3 : index
    %c0_206 = arith.constant 0 : index
    %190 = vector.load %arg1[%c0_203, %c6_204, %c3_205, %c0_206] : memref<1x22x22x8xf32, #tpu.memory_space<vmem>>, vector<1x16x16x8xf32>
    %191 = vector.shape_cast %190 : vector<1x16x16x8xf32> to vector<16x16x8xf32>
    %192 = vector.shape_cast %191 : vector<16x16x8xf32> to vector<256x8xf32>
    %c7_207 = arith.constant 7 : index
    %c0_208 = arith.constant 0 : index
    %c0_209 = arith.constant 0 : index
    %193 = vector.load %arg4[%c7_207, %c0_208, %c0_209] : memref<9x8x12xf32, #tpu.memory_space<vmem>>, vector<1x8x12xf32>
    %194 = vector.shape_cast %193 : vector<1x8x12xf32> to vector<8x12xf32>
    %cst_210 = arith.constant dense<0.000000e+00> : vector<256x12xf32>
    %195 = tpu.matmul %192, %194, %cst_210 {dimension_numbers = #tpu.dot_dimension_numbers<[1], [0], [0], [1], [0, 0, 1, 1], [], []>} : vector<256x8xf32>, vector<8x12xf32>, vector<256x12xf32> -> vector<256x12xf32>
    %196 = arith.addf %189, %195 : vector<256x12xf32>
    %c0_211 = arith.constant 0 : index
    %c6_212 = arith.constant 6 : index
    %c6_213 = arith.constant 6 : index
    %c0_214 = arith.constant 0 : index
    %197 = vector.load %arg1[%c0_211, %c6_212, %c6_213, %c0_214] : memref<1x22x22x8xf32, #tpu.memory_space<vmem>>, vector<1x16x16x8xf32>
    %198 = vector.shape_cast %197 : vector<1x16x16x8xf32> to vector<16x16x8xf32>
    %199 = vector.shape_cast %198 : vector<16x16x8xf32> to vector<256x8xf32>
    %c8_215 = arith.constant 8 : index
    %c0_216 = arith.constant 0 : index
    %c0_217 = arith.constant 0 : index
    %200 = vector.load %arg4[%c8_215, %c0_216, %c0_217] : memref<9x8x12xf32, #tpu.memory_space<vmem>>, vector<1x8x12xf32>
    %201 = vector.shape_cast %200 : vector<1x8x12xf32> to vector<8x12xf32>
    %cst_218 = arith.constant dense<0.000000e+00> : vector<256x12xf32>
    %202 = tpu.matmul %199, %201, %cst_218 {dimension_numbers = #tpu.dot_dimension_numbers<[1], [0], [0], [1], [0, 0, 1, 1], [], []>} : vector<256x8xf32>, vector<8x12xf32>, vector<256x12xf32> -> vector<256x12xf32>
    %203 = arith.addf %196, %202 : vector<256x12xf32>
    %cst_219 = arith.constant 0.000000e+00 : f32
    %204 = vector.broadcast %cst_219 : f32 to vector<256x12xf32>
    %205 = arith.maximumf %203, %204 : vector<256x12xf32>
    %206 = arith.addf %139, %205 : vector<256x12xf32>
    %207 = arith.addf %206, %6 : vector<256x12xf32>
    %cst_220 = arith.constant 0.000000e+00 : f32
    %208 = vector.broadcast %cst_220 : f32 to vector<18x18x12xf32>
    %c0_221 = arith.constant 0 : index
    %c0_222 = arith.constant 0 : index
    %c0_223 = arith.constant 0 : index
    %209 = vector.load %arg9[%c0_221, %c0_222, %c0_223] : memref<18x18x12xf32, #tpu.memory_space<vmem>>, vector<18x18x12xf32>
    tpu.vector_store %arg9[%c0_221, %c0_222, %c0_223], %208 {strides = array<i32>} : memref<18x18x12xf32, #tpu.memory_space<vmem>>, vector<18x18x12xf32>,
    %210 = vector.shape_cast %207 : vector<256x12xf32> to vector<16x16x12xf32>
    %c1_224 = arith.constant 1 : index
    %c1_225 = arith.constant 1 : index
    %c0_226 = arith.constant 0 : index
    %211 = vector.load %arg9[%c1_224, %c1_225, %c0_226] : memref<18x18x12xf32, #tpu.memory_space<vmem>>, vector<16x16x12xf32>
    tpu.vector_store %arg9[%c1_224, %c1_225, %c0_226], %210 {strides = array<i32>} : memref<18x18x12xf32, #tpu.memory_space<vmem>>, vector<16x16x12xf32>,
    %cst_227 = arith.constant 0.000000e+00 : f32
    %212 = vector.broadcast %cst_227 : f32 to vector<256x96xf32>
    %c0_228 = arith.constant 0 : index
    %c0_229 = arith.constant 0 : index
    %c0_230 = arith.constant 0 : index
    %213 = vector.load %arg9[%c0_228, %c0_229, %c0_230] : memref<18x18x12xf32, #tpu.memory_space<vmem>>, vector<16x16x12xf32>
    %214 = vector.shape_cast %213 : vector<16x16x12xf32> to vector<256x12xf32>
    %c0_231 = arith.constant 0 : index
    %c0_232 = arith.constant 0 : index
    %c0_233 = arith.constant 0 : index
    %215 = vector.load %arg6[%c0_231, %c0_232, %c0_233] : memref<9x12x96xf32, #tpu.memory_space<vmem>>, vector<1x12x96xf32>
    %216 = vector.shape_cast %215 : vector<1x12x96xf32> to vector<12x96xf32>
    %cst_234 = arith.constant dense<0.000000e+00> : vector<256x96xf32>
    %217 = tpu.matmul %214, %216, %cst_234 {dimension_numbers = #tpu.dot_dimension_numbers<[1], [0], [0], [1], [0, 0, 1, 1], [], []>} : vector<256x12xf32>, vector<12x96xf32>, vector<256x96xf32> -> vector<256x96xf32>
    %218 = arith.addf %212, %217 : vector<256x96xf32>
    %c0_235 = arith.constant 0 : index
    %c1_236 = arith.constant 1 : index
    %c0_237 = arith.constant 0 : index
    %219 = vector.load %arg9[%c0_235, %c1_236, %c0_237] : memref<18x18x12xf32, #tpu.memory_space<vmem>>, vector<16x16x12xf32>
    %220 = vector.shape_cast %219 : vector<16x16x12xf32> to vector<256x12xf32>
    %c1_238 = arith.constant 1 : index
    %c0_239 = arith.constant 0 : index
    %c0_240 = arith.constant 0 : index
    %221 = vector.load %arg6[%c1_238, %c0_239, %c0_240] : memref<9x12x96xf32, #tpu.memory_space<vmem>>, vector<1x12x96xf32>
    %222 = vector.shape_cast %221 : vector<1x12x96xf32> to vector<12x96xf32>
    %cst_241 = arith.constant dense<0.000000e+00> : vector<256x96xf32>
    %223 = tpu.matmul %220, %222, %cst_241 {dimension_numbers = #tpu.dot_dimension_numbers<[1], [0], [0], [1], [0, 0, 1, 1], [], []>} : vector<256x12xf32>, vector<12x96xf32>, vector<256x96xf32> -> vector<256x96xf32>
    %224 = arith.addf %218, %223 : vector<256x96xf32>
    %c0_242 = arith.constant 0 : index
    %c2_243 = arith.constant 2 : index
    %c0_244 = arith.constant 0 : index
    %225 = vector.load %arg9[%c0_242, %c2_243, %c0_244] : memref<18x18x12xf32, #tpu.memory_space<vmem>>, vector<16x16x12xf32>
    %226 = vector.shape_cast %225 : vector<16x16x12xf32> to vector<256x12xf32>
    %c2_245 = arith.constant 2 : index
    %c0_246 = arith.constant 0 : index
    %c0_247 = arith.constant 0 : index
    %227 = vector.load %arg6[%c2_245, %c0_246, %c0_247] : memref<9x12x96xf32, #tpu.memory_space<vmem>>, vector<1x12x96xf32>
    %228 = vector.shape_cast %227 : vector<1x12x96xf32> to vector<12x96xf32>
    %cst_248 = arith.constant dense<0.000000e+00> : vector<256x96xf32>
    %229 = tpu.matmul %226, %228, %cst_248 {dimension_numbers = #tpu.dot_dimension_numbers<[1], [0], [0], [1], [0, 0, 1, 1], [], []>} : vector<256x12xf32>, vector<12x96xf32>, vector<256x96xf32> -> vector<256x96xf32>
    %230 = arith.addf %224, %229 : vector<256x96xf32>
    %c1_249 = arith.constant 1 : index
    %c0_250 = arith.constant 0 : index
    %c0_251 = arith.constant 0 : index
    %231 = vector.load %arg9[%c1_249, %c0_250, %c0_251] : memref<18x18x12xf32, #tpu.memory_space<vmem>>, vector<16x16x12xf32>
    %232 = vector.shape_cast %231 : vector<16x16x12xf32> to vector<256x12xf32>
    %c3_252 = arith.constant 3 : index
    %c0_253 = arith.constant 0 : index
    %c0_254 = arith.constant 0 : index
    %233 = vector.load %arg6[%c3_252, %c0_253, %c0_254] : memref<9x12x96xf32, #tpu.memory_space<vmem>>, vector<1x12x96xf32>
    %234 = vector.shape_cast %233 : vector<1x12x96xf32> to vector<12x96xf32>
    %cst_255 = arith.constant dense<0.000000e+00> : vector<256x96xf32>
    %235 = tpu.matmul %232, %234, %cst_255 {dimension_numbers = #tpu.dot_dimension_numbers<[1], [0], [0], [1], [0, 0, 1, 1], [], []>} : vector<256x12xf32>, vector<12x96xf32>, vector<256x96xf32> -> vector<256x96xf32>
    %236 = arith.addf %230, %235 : vector<256x96xf32>
    %c1_256 = arith.constant 1 : index
    %c1_257 = arith.constant 1 : index
    %c0_258 = arith.constant 0 : index
    %237 = vector.load %arg9[%c1_256, %c1_257, %c0_258] : memref<18x18x12xf32, #tpu.memory_space<vmem>>, vector<16x16x12xf32>
    %238 = vector.shape_cast %237 : vector<16x16x12xf32> to vector<256x12xf32>
    %c4_259 = arith.constant 4 : index
    %c0_260 = arith.constant 0 : index
    %c0_261 = arith.constant 0 : index
    %239 = vector.load %arg6[%c4_259, %c0_260, %c0_261] : memref<9x12x96xf32, #tpu.memory_space<vmem>>, vector<1x12x96xf32>
    %240 = vector.shape_cast %239 : vector<1x12x96xf32> to vector<12x96xf32>
    %cst_262 = arith.constant dense<0.000000e+00> : vector<256x96xf32>
    %241 = tpu.matmul %238, %240, %cst_262 {dimension_numbers = #tpu.dot_dimension_numbers<[1], [0], [0], [1], [0, 0, 1, 1], [], []>} : vector<256x12xf32>, vector<12x96xf32>, vector<256x96xf32> -> vector<256x96xf32>
    %242 = arith.addf %236, %241 : vector<256x96xf32>
    %c1_263 = arith.constant 1 : index
    %c2_264 = arith.constant 2 : index
    %c0_265 = arith.constant 0 : index
    %243 = vector.load %arg9[%c1_263, %c2_264, %c0_265] : memref<18x18x12xf32, #tpu.memory_space<vmem>>, vector<16x16x12xf32>
    %244 = vector.shape_cast %243 : vector<16x16x12xf32> to vector<256x12xf32>
    %c5_266 = arith.constant 5 : index
    %c0_267 = arith.constant 0 : index
    %c0_268 = arith.constant 0 : index
    %245 = vector.load %arg6[%c5_266, %c0_267, %c0_268] : memref<9x12x96xf32, #tpu.memory_space<vmem>>, vector<1x12x96xf32>
    %246 = vector.shape_cast %245 : vector<1x12x96xf32> to vector<12x96xf32>
    %cst_269 = arith.constant dense<0.000000e+00> : vector<256x96xf32>
    %247 = tpu.matmul %244, %246, %cst_269 {dimension_numbers = #tpu.dot_dimension_numbers<[1], [0], [0], [1], [0, 0, 1, 1], [], []>} : vector<256x12xf32>, vector<12x96xf32>, vector<256x96xf32> -> vector<256x96xf32>
    %248 = arith.addf %242, %247 : vector<256x96xf32>
    %c2_270 = arith.constant 2 : index
    %c0_271 = arith.constant 0 : index
    %c0_272 = arith.constant 0 : index
    %249 = vector.load %arg9[%c2_270, %c0_271, %c0_272] : memref<18x18x12xf32, #tpu.memory_space<vmem>>, vector<16x16x12xf32>
    %250 = vector.shape_cast %249 : vector<16x16x12xf32> to vector<256x12xf32>
    %c6_273 = arith.constant 6 : index
    %c0_274 = arith.constant 0 : index
    %c0_275 = arith.constant 0 : index
    %251 = vector.load %arg6[%c6_273, %c0_274, %c0_275] : memref<9x12x96xf32, #tpu.memory_space<vmem>>, vector<1x12x96xf32>
    %252 = vector.shape_cast %251 : vector<1x12x96xf32> to vector<12x96xf32>
    %cst_276 = arith.constant dense<0.000000e+00> : vector<256x96xf32>
    %253 = tpu.matmul %250, %252, %cst_276 {dimension_numbers = #tpu.dot_dimension_numbers<[1], [0], [0], [1], [0, 0, 1, 1], [], []>} : vector<256x12xf32>, vector<12x96xf32>, vector<256x96xf32> -> vector<256x96xf32>
    %254 = arith.addf %248, %253 : vector<256x96xf32>
    %c2_277 = arith.constant 2 : index
    %c1_278 = arith.constant 1 : index
    %c0_279 = arith.constant 0 : index
    %255 = vector.load %arg9[%c2_277, %c1_278, %c0_279] : memref<18x18x12xf32, #tpu.memory_space<vmem>>, vector<16x16x12xf32>
    %256 = vector.shape_cast %255 : vector<16x16x12xf32> to vector<256x12xf32>
    %c7_280 = arith.constant 7 : index
    %c0_281 = arith.constant 0 : index
    %c0_282 = arith.constant 0 : index
    %257 = vector.load %arg6[%c7_280, %c0_281, %c0_282] : memref<9x12x96xf32, #tpu.memory_space<vmem>>, vector<1x12x96xf32>
    %258 = vector.shape_cast %257 : vector<1x12x96xf32> to vector<12x96xf32>
    %cst_283 = arith.constant dense<0.000000e+00> : vector<256x96xf32>
    %259 = tpu.matmul %256, %258, %cst_283 {dimension_numbers = #tpu.dot_dimension_numbers<[1], [0], [0], [1], [0, 0, 1, 1], [], []>} : vector<256x12xf32>, vector<12x96xf32>, vector<256x96xf32> -> vector<256x96xf32>
    %260 = arith.addf %254, %259 : vector<256x96xf32>
    %c2_284 = arith.constant 2 : index
    %c2_285 = arith.constant 2 : index
    %c0_286 = arith.constant 0 : index
    %261 = vector.load %arg9[%c2_284, %c2_285, %c0_286] : memref<18x18x12xf32, #tpu.memory_space<vmem>>, vector<16x16x12xf32>
    %262 = vector.shape_cast %261 : vector<16x16x12xf32> to vector<256x12xf32>
    %c8_287 = arith.constant 8 : index
    %c0_288 = arith.constant 0 : index
    %c0_289 = arith.constant 0 : index
    %263 = vector.load %arg6[%c8_287, %c0_288, %c0_289] : memref<9x12x96xf32, #tpu.memory_space<vmem>>, vector<1x12x96xf32>
    %264 = vector.shape_cast %263 : vector<1x12x96xf32> to vector<12x96xf32>
    %cst_290 = arith.constant dense<0.000000e+00> : vector<256x96xf32>
    %265 = tpu.matmul %262, %264, %cst_290 {dimension_numbers = #tpu.dot_dimension_numbers<[1], [0], [0], [1], [0, 0, 1, 1], [], []>} : vector<256x12xf32>, vector<12x96xf32>, vector<256x96xf32> -> vector<256x96xf32>
    %266 = arith.addf %260, %265 : vector<256x96xf32>
    %cst_291 = arith.constant 0.000000e+00 : f32
    %267 = vector.broadcast %cst_291 : f32 to vector<256x96xf32>
    %268 = arith.maximumf %266, %267 : vector<256x96xf32>
    %c0_292 = arith.constant 0 : index
    %c0_293 = arith.constant 0 : index
    %269 = vector.load %arg7[%c0_292, %c0_293] : memref<96x1xf32, #tpu.memory_space<vmem>>, vector<96x1xf32>
    %cst_294 = arith.constant dense<0.000000e+00> : vector<256x1xf32>
    %270 = tpu.matmul %268, %269, %cst_294 {dimension_numbers = #tpu.dot_dimension_numbers<[1], [0], [0], [1], [0, 0, 1, 1], [], []>} : vector<256x96xf32>, vector<96x1xf32>, vector<256x1xf32> -> vector<256x1xf32>
    %271 = vector.shape_cast %270 : vector<256x1xf32> to vector<1x16x16x1xf32>
    %c0_295 = arith.constant 0 : index
    %c0_296 = arith.constant 0 : index
    %c0_297 = arith.constant 0 : index
    %c0_298 = arith.constant 0 : index
    %272 = vector.load %arg8[%c0_295, %c0_296, %c0_297, %c0_298] : memref<1x16x16x1xf32, #tpu.memory_space<vmem>>, vector<1x16x16x1xf32>
    tpu.vector_store %arg8[%c0_295, %c0_296, %c0_297, %c0_298], %271 {strides = array<i32>} : memref<1x16x16x1xf32, #tpu.memory_space<vmem>>, vector<1x16x16x1xf32>,
    return
  }
  func.func @transform_0(%arg0: i32) -> (i32, i32, i32, i32) {
    %c0_i32 = arith.constant 0 : i32
    %c0_i32_0 = arith.constant 0 : i32
    %c0_i32_1 = arith.constant 0 : i32
    %c0_i32_2 = arith.constant 0 : i32
    return %arg0, %c0_i32, %c0_i32_0, %c0_i32_1 : i32, i32, i32, i32
  }
  func.func @transform_1(%arg0: i32) -> (i32, i32, i32) {
    %c0_i32 = arith.constant 0 : i32
    %c0_i32_0 = arith.constant 0 : i32
    %c0_i32_1 = arith.constant 0 : i32
    %c0_i32_2 = arith.constant 0 : i32
    return %c0_i32, %c0_i32_0, %c0_i32_1 : i32, i32, i32
  }
  func.func @transform_2(%arg0: i32) -> (i32, i32, i32) {
    %c0_i32 = arith.constant 0 : i32
    %c0_i32_0 = arith.constant 0 : i32
    %c0_i32_1 = arith.constant 0 : i32
    %c0_i32_2 = arith.constant 0 : i32
    return %c0_i32, %c0_i32_0, %c0_i32_1 : i32, i32, i32
  }
  func.func @transform_3(%arg0: i32) -> (i32, i32, i32) {
    %c0_i32 = arith.constant 0 : i32
    %c0_i32_0 = arith.constant 0 : i32
    %c0_i32_1 = arith.constant 0 : i32
    %c0_i32_2 = arith.constant 0 : i32
    return %c0_i32, %c0_i32_0, %c0_i32_1 : i32, i32, i32
  }
  func.func @transform_4(%arg0: i32) -> (i32, i32) {
    %c0_i32 = arith.constant 0 : i32
    %c0_i32_0 = arith.constant 0 : i32
    %c0_i32_1 = arith.constant 0 : i32
    return %c0_i32, %c0_i32_0 : i32, i32
  }
  func.func @transform_5(%arg0: i32) -> (i32, i32, i32) {
    %c0_i32 = arith.constant 0 : i32
    %c0_i32_0 = arith.constant 0 : i32
    %c0_i32_1 = arith.constant 0 : i32
    %c0_i32_2 = arith.constant 0 : i32
    return %c0_i32, %c0_i32_0, %c0_i32_1 : i32, i32, i32
  }
  func.func @transform_6(%arg0: i32) -> (i32, i32) {
    %c0_i32 = arith.constant 0 : i32
    %c0_i32_0 = arith.constant 0 : i32
    %c0_i32_1 = arith.constant 0 : i32
    return %c0_i32, %c0_i32_0 : i32, i32
  }
  func.func @transform_7(%arg0: i32) -> (i32, i32, i32, i32) {
    %c0_i32 = arith.constant 0 : i32
    %c0_i32_0 = arith.constant 0 : i32
    %c0_i32_1 = arith.constant 0 : i32
    %c0_i32_2 = arith.constant 0 : i32
    return %arg0, %c0_i32, %c0_i32_0, %c0_i32_1 : i32, i32, i32, i32
  }
}

</mosaic_0001>

<bundles_post_ra>
// kernel: tpu_custom_call.1
= control target key start
LH: loop header
LB: loop body
LE: loop exit
PB: predicated region body
PF: predicated region fallthrough
CT: control target
= control target key end

     0   :  { %s21131_s24 = smov 0   ;;  %s25248_s0 = inlined_call_operand.vmem [shape: f32[2,22,22,8], index: 0, kind: input, shape index: {}]   ;;  %s25249_s1 = inlined_call_operand.vmem [shape: f32[9,8,12], index: 1, kind: input, shape index: {}]   ;;  %s25250_s2 = inlined_call_operand.vmem [shape: f32[9,8,12], index: 2, kind: input, shape index: {}]   ;;  %s25251_s3 = inlined_call_operand.vmem [shape: f32[9,8,12], index: 3, kind: input, shape index: {}]   ;;  %s25252_s4 = inlined_call_operand.vmem [shape: f32[8,12], index: 4, kind: input, shape index: {}]   ;;  %s25253_s5 = inlined_call_operand.vmem [shape: f32[9,12,96], index: 5, kind: input, shape index: {}]   ;;  %s25254_s6 = inlined_call_operand.vmem [shape: f32[96,1], index: 6, kind: input, shape index: {}]   ;;  %s25255_s7 = inlined_call_operand.vmem [shape: f32[2,16,16,1], index: 7, kind: output, shape index: {}]  }
   0x1 LB: > { %s14733_s25 = sadd.s32 4294967295, %s21087_s24   ;;  %p14737_p0 = scmp.ge.s32.totalorder %s21087_s24, 1  ;;  %s21087_s24 = sphi %s21131_s24, %s17_s24  }
   0x2   : > { %p237_p1 = scmp.lt.s32.totalorder %s21087_s24, 3 }
   0x4   : > { %p238_p2 = pnand %p14737_p0, %p237_p1 }
   0x6   : > { %241 = sbr.rel (%p238_p2) target bundleno = 2335 (0x91f), region = 48 }
   0xd   : > { %v14869_v0 = vld [vmem:[%s25249_s1 + $0x8] sm:$0xff]  ;;  %v312_v1 = vld [vmem:[%s25252_s4] sm:$0xff]  ;;  %p269_p3 = scmp.lt.s32.totalorder %s14733_s25, 1  ;;  %vm313_vm0 = vcmask 64512   ;;  %v21181_v9 = vld [vmem:[%s25249_s1 + $0x10] sm:$0xff]  ;;  %vm10988_vm1 = vcmask 1043456  }
   0xe   : > { %v700_v2 = vld [vmem:[%s25249_s1] sm:$0xff]  ;;  %18037 = vmatprep.subr.mxu1 %v14869_v0  ;;  %17987 = vmatprep.subr.mxu0 %v312_v1  ;;  %v15421_v3 = vld [vmem:[%s25250_s2 + $0x8] sm:$0xff]  ;;  %v21413_v45 = vld [vmem:[%s25249_s1 + $0x18] sm:$0xff]  ;;  %vm21089_vm2 = vmmov 1   ;;  %vm10734_vm4 = vcmask 97280   ;;  %vm10737_vm5 = vcmask 91136  }
   0xf   : > { %18038 = vmatpush3.msra.mxu1 %v14869_v0  ;;  %17988 = vmatpush3.msra.mxu0 %v312_v1  ;;  %s25796_s25 = smov (!%p269_p3, %s14733_s25), 1  ;;  %v21201_v12 = vld [vmem:[%s25250_s2] sm:$0xff]  ;;  %v21433_v48 = vld [vmem:[%s25250_s2 + $0x10] sm:$0xff]  ;;  %vm23990_vm3 = vmpackc.low %vm10988_vm1, %vm21089_vm2  ;;  %vm14323_vm6 = vcmask 785408   ;;  %vm14645_vm7 = vcmask 7168  }
  0x10   : > { %18087 = vmatprep.subr.mxu1 %v700_v2  ;;  %18487 = vmatprep.subr.mxu0 %v15421_v3  ;;  %s21029_s11 = smul.u32 528, %s25796_s25  ;;  %s16712_s20 = sshll.u32 %s25796_s25, 8 }
  0x11   : > { %s25179_s23 = scalar_lea.vmem %s25255_s7, %s16712_s20 }
  0x12   : > { %s21157_s14 = scalar_lea.vmem %s25248_s0, %s21029_s11 }
  0x13   : > { %v21160_v4 = vld [vmem:[%s21157_s14 + $0x4b] sm:$0xff]  ;;  %v21163_v5 = vld [vmem:[%s21157_s14 + $0x33] sm:$0xff]  ;;  %v21173_v7 = vld [vmem:[%s21157_s14 + $0x3b] sm:$0xff] }
  0x14   : > { %v21166_v6 = vld [vmem:[%s21157_s14 + $0x53] sm:$0xff]  ;;  %17989 = vmatprep.mubr.msk.f32.mxu0 %vm313_vm0, %v21160_v4  ;;  %18039 = vmatprep.mubr.msk.f32.mxu1 %vm313_vm0, %v21163_v5  ;;  %v21176_v8 = vld [vmem:[%s21157_s14 + $0x63] sm:$0xff]  ;;  %v21190_v10 = vld [vmem:[%s21157_s14 + $0x6b] sm:$0xff] }
  0x15   : > { %17990 = vmatmul.mubr.msk.f32.vlgmr.msra.gmra.mrb[0].mxu0 %vm313_vm0, %v21166_v6  ;;  %18040 = vmatmul.mubr.msk.f32.vlgmr.msra.gmra.mrb[0].mxu1 %vm313_vm0, %v21173_v7  ;;  %v21195_v11 = vld [vmem:[%s21157_s14 + $0x7b] sm:$0xff]  ;;  %v21212_v13 = vld [vmem:[%s21157_s14 + $0x83] sm:$0xff]  ;;  %v21215_v14 = vld [vmem:[%s21157_s14 + $0x93] sm:$0xff] }
  0x16   : > { %18088 = vmatpush3.msra.mxu1 %v700_v2  ;;  %17992 = vmatprep.mubr.msk.f32.mxu0 %vm313_vm0, %v21176_v8  ;;  %v21227_v15 = vld [vmem:[%s21157_s14 + $0x9b] sm:$0xff]  ;;  %v21230_v16 = vld [vmem:[%s21157_s14 + $0xab] sm:$0xff]  ;;  %v21241_v17 = vld [vmem:[%s21157_s14 + $0xb3] sm:$0xff] }
  0x17   : > { %18042 = vmatprep.mubr.msk.f32.mxu1 %vm313_vm0, %v21160_v4  ;;  %18137 = vmatprep.subr.mxu1 %v21181_v9  ;;  %v21244_v18 = vld [vmem:[%s21157_s14 + $0xc3] sm:$0xff]  ;;  %v21255_v19 = vld [vmem:[%s21157_s14 + $0xcb] sm:$0xff]  ;;  %v21258_v20 = vld [vmem:[%s21157_s14 + $0xdb] sm:$0xff] }
  0x18   : > { %18488 = vmatpush3.msra.mxu0 %v15421_v3  ;;  %25441 = vst [vmem:[#allocation3_spill] sm:$0xff] %v21258_v20  ;;  %v21269_v21 = vld [vmem:[%s21157_s14 + $0xe3] sm:$0xff]  ;;  %v21272_v22 = vld [vmem:[%s21157_s14 + $0xf3] sm:$0xff]  ;;  %v21283_v23 = vld [vmem:[%s21157_s14 + $0xfb] sm:$0xff] }
  0x19   : > { %17993 = vmatmul.mubr.msk.f32.gmra.mrb[2].mxu0 %vm313_vm0, %v21190_v10  ;;  %18043 = vmatmul.mubr.msk.f32.gmra.mrb[2].mxu1 %vm313_vm0, %v21166_v6  ;;  %25442 = vst [vmem:[#allocation4_spill] sm:$0xff] %v21269_v21  ;;  %25443 = vst [vmem:[#allocation5_spill] sm:$0xff] %v21272_v22  ;;  %v21286_v24 = vld [vmem:[%s21157_s14 + $0x10b] sm:$0xff]  ;;  %v21297_v25 = vld [vmem:[%s21157_s14 + $0x113] sm:$0xff] }
  0x1a   : > { %17995 = vmatprep.mubr.msk.f32.mxu0 %vm313_vm0, %v21195_v11  ;;  %18045 = vmatprep.mubr.msk.f32.mxu1 %vm313_vm0, %v21176_v8  ;;  %25444 = vst [vmem:[#allocation6_spill] sm:$0xff] %v21283_v23  ;;  %25445 = vst [vmem:[#allocation7_spill] sm:$0xff] %v21286_v24  ;;  %v21300_v26 = vld [vmem:[%s21157_s14 + $0x123] sm:$0xff]  ;;  %v21311_v27 = vld [vmem:[%s21157_s14 + $0x12b] sm:$0xff] }
  0x1b   : > { %18537 = vmatprep.subr.mxu0 %v21201_v12  ;;  %25446 = vst [vmem:[#allocation8_spill] sm:$0xff] %v21297_v25  ;;  %25447 = vst [vmem:[#allocation9_spill] sm:$0xff] %v21300_v26  ;;  %v21314_v28 = vld [vmem:[%s21157_s14 + $0x13b] sm:$0xff]  ;;  %v21325_v29 = vld [vmem:[%s21157_s14 + $0x143] sm:$0xff] }
  0x1c   : > { %25448 = vst [vmem:[#allocation10_spill] sm:$0xff] %v21311_v27  ;;  %25449 = vst [vmem:[#allocation11_spill] sm:$0xff] %v21314_v28  ;;  %v21328_v30 = vld [vmem:[%s21157_s14 + $0x153] sm:$0xff]  ;;  %v21339_v31 = vld [vmem:[%s21157_s14 + $0x15b] sm:$0xff] }
  0x1d   : > { %17996 = vmatmul.mubr.msk.f32.gmra.mrb[4].mxu0 %vm313_vm0, %v21212_v13  ;;  %18046 = vmatmul.mubr.msk.f32.gmra.mrb[4].mxu1 %vm313_vm0, %v21190_v10  ;;  %25450 = vst [vmem:[#allocation12_spill] sm:$0xff] %v21325_v29  ;;  %25451 = vst [vmem:[#allocation13_spill] sm:$0xff] %v21328_v30  ;;  %v21342_v32 = vld [vmem:[%s21157_s14 + $0x16b] sm:$0xff]  ;;  %v21353_v33 = vld [vmem:[%s21157_s14 + $0x173] sm:$0xff] }
  0x1e   : > { %17998 = vmatprep.mubr.msk.f32.mxu0 %vm313_vm0, %v21215_v14  ;;  %18048 = vmatprep.mubr.msk.f32.mxu1 %vm313_vm0, %v21195_v11  ;;  %25452 = vst [vmem:[#allocation14_spill] sm:$0xff] %v21339_v31  ;;  %25453 = vst [vmem:[#allocation15_spill] sm:$0xff] %v21342_v32  ;;  %v21356_v34 = vld [vmem:[%s21157_s14 + $0x183] sm:$0xff]  ;;  %v21367_v35 = vld [vmem:[%s21157_s14 + $0x18b] sm:$0xff] }
  0x1f   : > { %25454 = vst [vmem:[#allocation16_spill] sm:$0xff] %v21353_v33  ;;  %25455 = vst [vmem:[#allocation17_spill] sm:$0xff] %v21356_v34  ;;  %v21370_v36 = vld [vmem:[%s21157_s14 + $0x19b] sm:$0xff]  ;;  %v21381_v37 = vld [vmem:[%s21157_s14 + $0x1a3] sm:$0xff] }
  0x20   : > { %25456 = vst [vmem:[#allocation18_spill] sm:$0xff] %v21367_v35  ;;  %25457 = vst [vmem:[#allocation19_spill] sm:$0xff] %v21370_v36  ;;  %v21384_v38 = vld [vmem:[%s21157_s14 + $0x1b3] sm:$0xff]  ;;  %v21395_v39 = vld [vmem:[%s21157_s14 + $0x1bb] sm:$0xff] }
  0x21   : > { %17999 = vmatmul.mubr.msk.f32.gmra.mrb[6].mxu0 %vm313_vm0, %v21227_v15  ;;  %18049 = vmatmul.mubr.msk.f32.gmra.mrb[6].mxu1 %vm313_vm0, %v21212_v13  ;;  %25458 = vst [vmem:[#allocation20_spill] sm:$0xff] %v21381_v37  ;;  %25459 = vst [vmem:[#allocation21_spill] sm:$0xff] %v21384_v38  ;;  %v14805_v40 = vld [vmem:[%s21157_s14 + $0x32] sm:$0xff]  ;;  %v15389_v41 = vld [vmem:[%s21157_s14 + $0x1b] sm:$0xff] }
  0x22   : > { %18001 = vmatprep.mubr.msk.f32.mxu0 %vm313_vm0, %v21230_v16  ;;  %18051 = vmatprep.mubr.msk.f32.mxu1 %vm313_vm0, %v21215_v14  ;;  %25460 = vst [vmem:[#allocation22_spill] sm:$0xff] %v21395_v39  ;;  %v14806_v42 = vld [vmem:[%s21157_s14 + $0x3a] sm:$0xff]  ;;  %v15390_v43 = vld [vmem:[%s21157_s14 + $0x23] sm:$0xff]  ;;  %v21421_v46 = vld [vmem:[%s21157_s14 + $0x52] sm:$0xff] }
  0x23   : > { %v21408_v44 = vld [vmem:[%s21157_s14 + $0x4a] sm:$0xff]  ;;  %v21426_v47 = vld [vmem:[%s21157_s14 + $0x62] sm:$0xff]  ;;  %v21447_v50 = vld [vmem:[%s21157_s14 + $0x7a] sm:$0xff] }
  0x24   : > { %v21444_v49 = vld [vmem:[%s21157_s14 + $0x6a] sm:$0xff]  ;;  %v21459_v51 = vld [vmem:[%s21157_s14 + $0x82] sm:$0xff]  ;;  %v21462_v52 = vld [vmem:[%s21157_s14 + $0x92] sm:$0xff] }
  0x25   : > { %18002 = vmatmul.mubr.msk.f32.gmra.mrb[8].mxu0 %vm313_vm0, %v21241_v17  ;;  %18052 = vmatmul.mubr.msk.f32.gmra.mrb[8].mxu1 %vm313_vm0, %v21227_v15  ;;  %v21473_v53 = vld [vmem:[%s21157_s14 + $0x9a] sm:$0xff]  ;;  %v21476_v54 = vld [vmem:[%s21157_s14 + $0xaa] sm:$0xff]  ;;  %v21487_v55 = vld [vmem:[%s21157_s14 + $0xb2] sm:$0xff] }
  0x26   : > { %18004 = vmatprep.mubr.msk.f32.mxu0 %vm313_vm0, %v21244_v18  ;;  %18054 = vmatprep.mubr.msk.f32.mxu1 %vm313_vm0, %v21230_v16  ;;  %v21490_v56 = vld [vmem:[%s21157_s14 + $0xc2] sm:$0xff]  ;;  %v21501_v57 = vld [vmem:[%s21157_s14 + $0xca] sm:$0xff]  ;;  %v21504_v58 = vld [vmem:[%s21157_s14 + $0xda] sm:$0xff] }
  0x27   : > { %v21515_v59 = vld [vmem:[%s21157_s14 + $0xe2] sm:$0xff]  ;;  %v21518_v60 = vld [vmem:[%s21157_s14 + $0xf2] sm:$0xff]  ;;  %v21529_v61 = vld [vmem:[%s21157_s14 + $0xfa] sm:$0xff] }
  0x28   : > { %v21532_v62 = vld [vmem:[%s21157_s14 + $0x10a] sm:$0xff]  ;;  %v21543_v63 = vld [vmem:[%s21157_s14 + $0x112] sm:$0xff]  ;;  %v21546_v0 = vld [vmem:[%s21157_s14 + $0x122] sm:$0xff] }
  0x29   : > { %18005 = vmatmul.mubr.msk.f32.gmra.mrb[10].mxu0 %vm313_vm0, %v21255_v19  ;;  %18055 = vmatmul.mubr.msk.f32.gmra.mrb[10].mxu1 %vm313_vm0, %v21241_v17  ;;  %v21557_v1 = vld [vmem:[%s21157_s14 + $0x12a] sm:$0xff]  ;;  %v21560_v2 = vld [vmem:[%s21157_s14 + $0x13a] sm:$0xff]  ;;  %v21571_v3 = vld [vmem:[%s21157_s14 + $0x142] sm:$0xff] }
  0x2a   : > { %18007 = vmatprep.mubr.msk.f32.mxu0 %vm313_vm0, %v21258_v20  ;;  %18057 = vmatprep.mubr.msk.f32.mxu1 %vm313_vm0, %v21244_v18 }
  0x2d   : > { %18008 = vmatmul.mubr.msk.f32.gmra.mrb[12].mxu0 %vm313_vm0, %v21269_v21  ;;  %18058 = vmatmul.mubr.msk.f32.gmra.mrb[12].mxu1 %vm313_vm0, %v21255_v19 }
  0x2e   : > { %18010 = vmatprep.mubr.msk.f32.mxu0 %vm313_vm0, %v21272_v22  ;;  %18060 = vmatprep.mubr.msk.f32.mxu1 %vm313_vm0, %v21258_v20 }
  0x31   : > { %18011 = vmatmul.mubr.msk.f32.gmra.mrb[14].mxu0 %vm313_vm0, %v21283_v23  ;;  %18061 = vmatmul.mubr.msk.f32.gmra.mrb[14].mxu1 %vm313_vm0, %v21269_v21 }
  0x32   : > { %18013 = vmatprep.mubr.msk.f32.mxu0 %vm313_vm0, %v21286_v24  ;;  %18063 = vmatprep.mubr.msk.f32.mxu1 %vm313_vm0, %v21272_v22 }
  0x35   : > { %18014 = vmatmul.mubr.msk.f32.gmra.mrb[16].mxu0 %vm313_vm0, %v21297_v25  ;;  %18064 = vmatmul.mubr.msk.f32.gmra.mrb[16].mxu1 %vm313_vm0, %v21283_v23 }
  0x36   : > { %18016 = vmatprep.mubr.msk.f32.mxu0 %vm313_vm0, %v21300_v26  ;;  %18066 = vmatprep.mubr.msk.f32.mxu1 %vm313_vm0, %v21286_v24 }
  0x39   : > { %18017 = vmatmul.mubr.msk.f32.gmra.mrb[18].mxu0 %vm313_vm0, %v21311_v27  ;;  %18067 = vmatmul.mubr.msk.f32.gmra.mrb[18].mxu1 %vm313_vm0, %v21297_v25 }
  0x3a   : > { %18019 = vmatprep.mubr.msk.f32.mxu0 %vm313_vm0, %v21314_v28  ;;  %18069 = vmatprep.mubr.msk.f32.mxu1 %vm313_vm0, %v21300_v26 }
  0x3d   : > { %18020 = vmatmul.mubr.msk.f32.gmra.mrb[20].mxu0 %vm313_vm0, %v21325_v29  ;;  %18070 = vmatmul.mubr.msk.f32.gmra.mrb[20].mxu1 %vm313_vm0, %v21311_v27 }
  0x3e   : > { %18022 = vmatprep.mubr.msk.f32.mxu0 %vm313_vm0, %v21328_v30  ;;  %18072 = vmatprep.mubr.msk.f32.mxu1 %vm313_vm0, %v21314_v28 }
  0x41   : > { %18023 = vmatmul.mubr.msk.f32.gmra.mrb[22].mxu0 %vm313_vm0, %v21339_v31  ;;  %18073 = vmatmul.mubr.msk.f32.gmra.mrb[22].mxu1 %vm313_vm0, %v21325_v29 }
  0x42   : > { %18025 = vmatprep.mubr.msk.f32.mxu0 %vm313_vm0, %v21342_v32  ;;  %18075 = vmatprep.mubr.msk.f32.mxu1 %vm313_vm0, %v21328_v30 }
  0x45   : > { %18026 = vmatmul.mubr.msk.f32.gmra.mrb[24].mxu0 %vm313_vm0, %v21353_v33  ;;  %18076 = vmatmul.mubr.msk.f32.gmra.mrb[24].mxu1 %vm313_vm0, %v21339_v31 }
  0x46   : > { %18028 = vmatprep.mubr.msk.f32.mxu0 %vm313_vm0, %v21356_v34  ;;  %18078 = vmatprep.mubr.msk.f32.mxu1 %vm313_vm0, %v21342_v32 }
  0x49   : > { %18029 = vmatmul.mubr.msk.f32.gmra.mrb[26].mxu0 %vm313_vm0, %v21367_v35  ;;  %18079 = vmatmul.mubr.msk.f32.gmra.mrb[26].mxu1 %vm313_vm0, %v21353_v33 }
  0x4a   : > { %18031 = vmatprep.mubr.msk.f32.mxu0 %vm313_vm0, %v21370_v36  ;;  %18081 = vmatprep.mubr.msk.f32.mxu1 %vm313_vm0, %v21356_v34 }
  0x4d   : > { %18032 = vmatmul.mubr.msk.f32.gmra.mrb[28].mxu0 %vm313_vm0, %v21381_v37  ;;  %18082 = vmatmul.mubr.msk.f32.gmra.mrb[28].mxu1 %vm313_vm0, %v21367_v35 }
  0x4e   : > { %18034 = vmatprep.mubr.msk.f32.mxu0 %vm313_vm0, %v21384_v38  ;;  %18084 = vmatprep.mubr.msk.f32.mxu1 %vm313_vm0, %v21370_v36  ;;  %v15357_v38 = vld [vmem:[%s21157_s14 + $0x19] sm:$0xff]  ;;  %v15358_v36 = vld [vmem:[%s21157_s14 + $0x21] sm:$0xff] }
  0x51   : > { %18035 = vmatmul.mubr.msk.f32.gmra.mrb[30].mxu0 %vm313_vm0, %v21395_v39  ;;  %18085 = vmatmul.mubr.msk.f32.gmra.mrb[30].mxu1 %vm313_vm0, %v21381_v37  ;;  %v14934_v39 = vld [vmem:[%s21157_s14 + $0x34] sm:$0xff]  ;;  %v14935_v37 = vld [vmem:[%s21157_s14 + $0x3c] sm:$0xff] }
  0x52   : > { %18089 = vmatprep.mubr.msk.f32.mxu1 %vm313_vm0, %v14805_v40  ;;  %18489 = vmatprep.mubr.msk.f32.mxu0 %vm313_vm0, %v15389_v41  ;;  %v21602_v40 = vld [vmem:[%s21157_s14 + $0x182] sm:$0xff]  ;;  %v21613_v41 = vld [vmem:[%s21157_s14 + $0x18a] sm:$0xff] }
  0x55   : > { %18090 = vmatmul.mubr.msk.f32.vlgmr.msra.gmra.mrb[0].mxu1 %vm313_vm0, %v14806_v42  ;;  %18490 = vmatmul.mubr.msk.f32.vlgmr.msra.gmra.mrb[32].mxu0 %vm313_vm0, %v15390_v43  ;;  %v21616_v42 = vld [vmem:[%s21157_s14 + $0x19a] sm:$0xff]  ;;  %v21627_v43 = vld [vmem:[%s21157_s14 + $0x1a2] sm:$0xff] }
  0x56   : > { %18138 = vmatpush3.msra.mxu1 %v21181_v9  ;;  %18092 = vmatprep.mubr.msk.f32.mxu1 %vm313_vm0, %v21408_v44  ;;  %v21588_v9 = vld [vmem:[%s21157_s14 + $0x16a] sm:$0xff] }
  0x57   : > { %18492 = vmatprep.mubr.msk.f32.mxu0 %vm313_vm0, %v21163_v5  ;;  %18187 = vmatprep.subr.mxu1 %v21413_v45  ;;  %v21574_v5 = vld [vmem:[%s21157_s14 + $0x152] sm:$0xff] }
  0x58   : > { %18538 = vmatpush3.msra.mxu0 %v21201_v12  ;;  %v21599_v12 = vld [vmem:[%s21157_s14 + $0x172] sm:$0xff] }
  0x59   : > { %18093 = vmatmul.mubr.msk.f32.gmra.mrb[2].mxu1 %vm313_vm0, %v21421_v46  ;;  %18493 = vmatmul.mubr.msk.f32.gmra.mrb[34].mxu0 %vm313_vm0, %v21173_v7  ;;  %v21585_v7 = vld [vmem:[%s21157_s14 + $0x15a] sm:$0xff] }
  0x5a   : > { %18095 = vmatprep.mubr.msk.f32.mxu1 %vm313_vm0, %v21426_v47  ;;  %18495 = vmatprep.mubr.msk.f32.mxu0 %vm313_vm0, %v21160_v4 }
  0x5b   : > { %18587 = vmatprep.subr.mxu0 %v21433_v48 }
  0x5d   : > { %18096 = vmatmul.mubr.msk.f32.gmra.mrb[4].mxu1 %vm313_vm0, %v21444_v49  ;;  %18496 = vmatmul.mubr.msk.f32.gmra.mrb[36].mxu0 %vm313_vm0, %v21166_v6 }
  0x5e   : > { %18098 = vmatprep.mubr.msk.f32.mxu1 %vm313_vm0, %v21447_v50  ;;  %18498 = vmatprep.mubr.msk.f32.mxu0 %vm313_vm0, %v21176_v8 }
  0x61   : > { %18099 = vmatmul.mubr.msk.f32.gmra.mrb[6].mxu1 %vm313_vm0, %v21459_v51  ;;  %18499 = vmatmul.mubr.msk.f32.gmra.mrb[38].mxu0 %vm313_vm0, %v21190_v10 }
  0x62   : > { %18101 = vmatprep.mubr.msk.f32.mxu1 %vm313_vm0, %v21462_v52  ;;  %18501 = vmatprep.mubr.msk.f32.mxu0 %vm313_vm0, %v21195_v11 }
  0x65   : > { %18102 = vmatmul.mubr.msk.f32.gmra.mrb[8].mxu1 %vm313_vm0, %v21473_v53  ;;  %18502 = vmatmul.mubr.msk.f32.gmra.mrb[40].mxu0 %vm313_vm0, %v21212_v13 }
  0x66   : > { %18104 = vmatprep.mubr.msk.f32.mxu1 %vm313_vm0, %v21476_v54  ;;  %18504 = vmatprep.mubr.msk.f32.mxu0 %vm313_vm0, %v21215_v14 }
  0x69   : > { %18105 = vmatmul.mubr.msk.f32.gmra.mrb[10].mxu1 %vm313_vm0, %v21487_v55  ;;  %18505 = vmatmul.mubr.msk.f32.gmra.mrb[42].mxu0 %vm313_vm0, %v21227_v15 }
  0x6a   : > { %18107 = vmatprep.mubr.msk.f32.mxu1 %vm313_vm0, %v21490_v56  ;;  %18507 = vmatprep.mubr.msk.f32.mxu0 %vm313_vm0, %v21230_v16 }
  0x6d   : > { %18108 = vmatmul.mubr.msk.f32.gmra.mrb[12].mxu1 %vm313_vm0, %v21501_v57  ;;  %18508 = vmatmul.mubr.msk.f32.gmra.mrb[44].mxu0 %vm313_vm0, %v21241_v17 }
  0x6e   : > { %18110 = vmatprep.mubr.msk.f32.mxu1 %vm313_vm0, %v21504_v58  ;;  %18510 = vmatprep.mubr.msk.f32.mxu0 %vm313_vm0, %v21244_v18 }
  0x71   : > { %18111 = vmatmul.mubr.msk.f32.gmra.mrb[14].mxu1 %vm313_vm0, %v21515_v59  ;;  %18511 = vmatmul.mubr.msk.f32.gmra.mrb[46].mxu0 %vm313_vm0, %v21255_v19 }
  0x72   : > { %18113 = vmatprep.mubr.msk.f32.mxu1 %vm313_vm0, %v21518_v60  ;;  %18513 = vmatprep.mubr.msk.f32.mxu0 %vm313_vm0, %v21258_v20  ;;  %v21829_v20 = vld [vmem:[%s21157_s14 + $0x109] sm:$0xff] }
  0x73   : > { %25484 = vst [vmem:[#allocation46_spill] sm:$0xff] %v21829_v20 }
  0x75   : > { %18114 = vmatmul.mubr.msk.f32.gmra.mrb[16].mxu1 %vm313_vm0, %v21529_v61  ;;  %18514 = vmatmul.mubr.msk.f32.gmra.mrb[48].mxu0 %vm313_vm0, %v21269_v21  ;;  %v21809_v21 = vld [vmem:[%s21157_s14 + $0xf1] sm:$0xff] }
  0x76   : > { %18116 = vmatprep.mubr.msk.f32.mxu1 %vm313_vm0, %v21532_v62  ;;  %18516 = vmatprep.mubr.msk.f32.mxu0 %vm313_vm0, %v21272_v22  ;;  %v21806_v22 = vld [vmem:[%s21157_s14 + $0x10c] sm:$0xff]  ;;  %25480 = vst [vmem:[#allocation42_spill] sm:$0xff] %v21809_v21 }
  0x77   : > { %25479 = vst [vmem:[#allocation41_spill] sm:$0xff] %v21806_v22 }
  0x79   : > { %18117 = vmatmul.mubr.msk.f32.gmra.mrb[18].mxu1 %vm313_vm0, %v21543_v63  ;;  %18517 = vmatmul.mubr.msk.f32.gmra.mrb[50].mxu0 %vm313_vm0, %v21283_v23  ;;  %v21789_v23 = vld [vmem:[%s21157_s14 + $0xd9] sm:$0xff] }
  0x7a   : > { %18119 = vmatprep.mubr.msk.f32.mxu1 %vm313_vm0, %v21546_v0  ;;  %18519 = vmatprep.mubr.msk.f32.mxu0 %vm313_vm0, %v21286_v24  ;;  %v21786_v24 = vld [vmem:[%s21157_s14 + $0xf4] sm:$0xff]  ;;  %25476 = vst [vmem:[#allocation38_spill] sm:$0xff] %v21789_v23 }
  0x7b   : > { %25475 = vst [vmem:[#allocation37_spill] sm:$0xff] %v21786_v24 }
  0x7d   : > { %18120 = vmatmul.mubr.msk.f32.gmra.mrb[20].mxu1 %vm313_vm0, %v21557_v1  ;;  %18520 = vmatmul.mubr.msk.f32.gmra.mrb[52].mxu0 %vm313_vm0, %v21297_v25  ;;  %v21769_v25 = vld [vmem:[%s21157_s14 + $0xc1] sm:$0xff] }
  0x7e   : > { %18122 = vmatprep.mubr.msk.f32.mxu1 %vm313_vm0, %v21560_v2  ;;  %18522 = vmatprep.mubr.msk.f32.mxu0 %vm313_vm0, %v21300_v26  ;;  %v21766_v26 = vld [vmem:[%s21157_s14 + $0xdc] sm:$0xff] }
  0x7f   : > { %25473 = vst [vmem:[#allocation35_spill] sm:$0xff] %v21766_v26 }
  0x81   : > { %18123 = vmatmul.mubr.msk.f32.gmra.mrb[22].mxu1 %vm313_vm0, %v21571_v3  ;;  %18523 = vmatmul.mubr.msk.f32.gmra.mrb[54].mxu0 %vm313_vm0, %v21311_v27  ;;  %v21749_v27 = vld [vmem:[%s21157_s14 + $0xa9] sm:$0xff] }
  0x82   : > { %18125 = vmatprep.mubr.msk.f32.mxu1 %vm313_vm0, %v21574_v5  ;;  %18525 = vmatprep.mubr.msk.f32.mxu0 %vm313_vm0, %v21314_v28  ;;  %v21746_v28 = vld [vmem:[%s21157_s14 + $0xc4] sm:$0xff] }
  0x83   : > { %25471 = vst [vmem:[#allocation33_spill] sm:$0xff] %v21746_v28 }
  0x85   : > { %18126 = vmatmul.mubr.msk.f32.gmra.mrb[24].mxu1 %vm313_vm0, %v21585_v7  ;;  %18526 = vmatmul.mubr.msk.f32.gmra.mrb[56].mxu0 %vm313_vm0, %v21325_v29  ;;  %v21729_v29 = vld [vmem:[%s21157_s14 + $0x91] sm:$0xff] }
  0x86   : > { %18128 = vmatprep.mubr.msk.f32.mxu1 %vm313_vm0, %v21588_v9  ;;  %18528 = vmatprep.mubr.msk.f32.mxu0 %vm313_vm0, %v21328_v30  ;;  %v21726_v30 = vld [vmem:[%s21157_s14 + $0xac] sm:$0xff] }
  0x87   : > { %25469 = vst [vmem:[#allocation31_spill] sm:$0xff] %v21726_v30 }
  0x89   : > { %18129 = vmatmul.mubr.msk.f32.gmra.mrb[26].mxu1 %vm313_vm0, %v21599_v12  ;;  %18529 = vmatmul.mubr.msk.f32.gmra.mrb[58].mxu0 %vm313_vm0, %v21339_v31  ;;  %v21662_v31 = vld [vmem:[%s21157_s14 + $0x49] sm:$0xff] }
  0x8a   : > { %18131 = vmatprep.mubr.msk.f32.mxu1 %vm313_vm0, %v21602_v40  ;;  %18531 = vmatprep.mubr.msk.f32.mxu0 %vm313_vm0, %v21342_v32  ;;  %v21646_v32 = vld [vmem:[%s25249_s1 + $0x20] sm:$0xff] }
  0x8d   : > { %18132 = vmatmul.mubr.msk.f32.gmra.mrb[28].mxu1 %vm313_vm0, %v21613_v41  ;;  %18532 = vmatmul.mubr.msk.f32.gmra.mrb[60].mxu0 %vm313_vm0, %v21353_v33  ;;  %v15359_v33 = vld [vmem:[%s21157_s14 + $0x31] sm:$0xff] }
  0x8e   : > { %18134 = vmatprep.mubr.msk.f32.mxu1 %vm313_vm0, %v21616_v42  ;;  %18534 = vmatprep.mubr.msk.f32.mxu0 %vm313_vm0, %v21356_v34  ;;  %v21640_v34 = vld [vmem:[%s21157_s14 + $0x4c] sm:$0xff] }
  0x8f   : > { %25461 = vst [vmem:[#allocation23_spill] sm:$0xff] %v21640_v34 }
  0x91   : > { %18135 = vmatmul.mubr.msk.f32.gmra.mrb[30].mxu1 %vm313_vm0, %v21627_v43  ;;  %18535 = vmatmul.mubr.msk.f32.gmra.mrb[62].mxu0 %vm313_vm0, %v21367_v35  ;;  %v21659_v35 = vld [vmem:[%s21157_s14 + $0x64] sm:$0xff] }
  0x92   : > { %18139 = vmatprep.mubr.msk.f32.mxu1 %vm313_vm0, %v14934_v39  ;;  %18539 = vmatprep.mubr.msk.f32.mxu0 %vm313_vm0, %v15357_v38  ;;  %v21654_v38 = vld [vmem:[%s21157_s14 + $0x54] sm:$0xff]  ;;  %25463 = vst [vmem:[#allocation25_spill] sm:$0xff] %v21659_v35 }
  0x93   : > { %25462 = vst [vmem:[#allocation24_spill] sm:$0xff] %v21654_v38  ;;  %v15360_v39 = vld [vmem:[%s21157_s14 + $0x39] sm:$0xff] }
  0x95   : > { %18140 = vmatmul.mubr.msk.f32.vlgmr.msra.gmra.mrb[0].mxu1 %vm313_vm0, %v14935_v37  ;;  %18540 = vmatmul.mubr.msk.f32.vlgmr.msra.gmra.mrb[32].mxu0 %vm313_vm0, %v15358_v36  ;;  %v21669_v36 = vld [vmem:[%s25250_s2 + $0x18] sm:$0xff] }
  0x96   : > { %18188 = vmatpush3.msra.mxu1 %v21413_v45  ;;  %18142 = vmatprep.mubr.msk.f32.mxu1 %vm313_vm0, %v21640_v34  ;;  %v21682_v37 = vld [vmem:[%s21157_s14 + $0x51] sm:$0xff]  ;;  %v21685_v45 = vld [vmem:[%s21157_s14 + $0x7c] sm:$0xff] }
  0x97   : > { %18542 = vmatprep.mubr.msk.f32.mxu0 %vm313_vm0, %v15359_v33  ;;  %18237 = vmatprep.subr.mxu1 %v21646_v32  ;;  %v21679_v33 = vld [vmem:[%s21157_s14 + $0x6c] sm:$0xff]  ;;  %25465 = vst [vmem:[#allocation27_spill] sm:$0xff] %v21685_v45  ;;  %v21709_v34 = vld [vmem:[%s21157_s14 + $0x79] sm:$0xff] }
  0x98   : > { %18588 = vmatpush3.msra.mxu0 %v21433_v48  ;;  %25464 = vst [vmem:[#allocation26_spill] sm:$0xff] %v21679_v33  ;;  %v21688_v48 = vld [vmem:[%s21157_s14 + $0x61] sm:$0xff] }
  0x99   : > { %18143 = vmatmul.mubr.msk.f32.gmra.mrb[2].mxu1 %vm313_vm0, %v21654_v38  ;;  %18543 = vmatmul.mubr.msk.f32.gmra.mrb[34].mxu0 %vm313_vm0, %v15360_v39  ;;  %v21700_v39 = vld [vmem:[%s21157_s14 + $0x84] sm:$0xff]  ;;  %v21706_v38 = vld [vmem:[%s21157_s14 + $0x94] sm:$0xff] }
  0x9a   : > { %18145 = vmatprep.mubr.msk.f32.mxu1 %vm313_vm0, %v21659_v35  ;;  %18545 = vmatprep.mubr.msk.f32.mxu0 %vm313_vm0, %v21662_v31  ;;  %25466 = vst [vmem:[#allocation28_spill] sm:$0xff] %v21700_v39  ;;  %v21703_v35 = vld [vmem:[%s21157_s14 + $0x69] sm:$0xff]  ;;  %25467 = vst [vmem:[#allocation29_spill] sm:$0xff] %v21706_v38 }
  0x9b   : > { %18637 = vmatprep.subr.mxu0 %v21669_v36 }
  0x9d   : > { %18146 = vmatmul.mubr.msk.f32.gmra.mrb[4].mxu1 %vm313_vm0, %v21679_v33  ;;  %18546 = vmatmul.mubr.msk.f32.gmra.mrb[36].mxu0 %vm313_vm0, %v21682_v37  ;;  %v21723_v33 = vld [vmem:[%s21157_s14 + $0x81] sm:$0xff] }
  0x9e   : > { %18148 = vmatprep.mubr.msk.f32.mxu1 %vm313_vm0, %v21685_v45  ;;  %18548 = vmatprep.mubr.msk.f32.mxu0 %vm313_vm0, %v21688_v48  ;;  %v21720_v45 = vld [vmem:[%s21157_s14 + $0x9c] sm:$0xff] }
  0x9f   : > { %25468 = vst [vmem:[#allocation30_spill] sm:$0xff] %v21720_v45 }
  0xa1   : > { %18149 = vmatmul.mubr.msk.f32.gmra.mrb[6].mxu1 %vm313_vm0, %v21700_v39  ;;  %18549 = vmatmul.mubr.msk.f32.gmra.mrb[38].mxu0 %vm313_vm0, %v21703_v35  ;;  %v21743_v39 = vld [vmem:[%s21157_s14 + $0x99] sm:$0xff] }
  0xa2   : > { %18151 = vmatprep.mubr.msk.f32.mxu1 %vm313_vm0, %v21706_v38  ;;  %18551 = vmatprep.mubr.msk.f32.mxu0 %vm313_vm0, %v21709_v34  ;;  %v21740_v38 = vld [vmem:[%s21157_s14 + $0xb4] sm:$0xff] }
  0xa3   : > { %25470 = vst [vmem:[#allocation32_spill] sm:$0xff] %v21740_v38 }
  0xa5   : > { %18152 = vmatmul.mubr.msk.f32.gmra.mrb[8].mxu1 %vm313_vm0, %v21720_v45  ;;  %18552 = vmatmul.mubr.msk.f32.gmra.mrb[40].mxu0 %vm313_vm0, %v21723_v33  ;;  %v21763_v45 = vld [vmem:[%s21157_s14 + $0xb1] sm:$0xff] }
  0xa6   : > { %18154 = vmatprep.mubr.msk.f32.mxu1 %vm313_vm0, %v21726_v30  ;;  %18554 = vmatprep.mubr.msk.f32.mxu0 %vm313_vm0, %v21729_v29  ;;  %v21760_v30 = vld [vmem:[%s21157_s14 + $0xcc] sm:$0xff] }
  0xa7   : > { %25472 = vst [vmem:[#allocation34_spill] sm:$0xff] %v21760_v30 }
  0xa9   : > { %18155 = vmatmul.mubr.msk.f32.gmra.mrb[10].mxu1 %vm313_vm0, %v21740_v38  ;;  %18555 = vmatmul.mubr.msk.f32.gmra.mrb[42].mxu0 %vm313_vm0, %v21743_v39  ;;  %v21783_v38 = vld [vmem:[%s21157_s14 + $0xc9] sm:$0xff] }
  0xaa   : > { %18157 = vmatprep.mubr.msk.f32.mxu1 %vm313_vm0, %v21746_v28  ;;  %18557 = vmatprep.mubr.msk.f32.mxu0 %vm313_vm0, %v21749_v27  ;;  %v21780_v28 = vld [vmem:[%s21157_s14 + $0xe4] sm:$0xff] }
  0xab   : > { %25474 = vst [vmem:[#allocation36_spill] sm:$0xff] %v21780_v28 }
  0xad   : > { %18158 = vmatmul.mubr.msk.f32.gmra.mrb[12].mxu1 %vm313_vm0, %v21760_v30  ;;  %18558 = vmatmul.mubr.msk.f32.gmra.mrb[44].mxu0 %vm313_vm0, %v21763_v45  ;;  %v21803_v30 = vld [vmem:[%s21157_s14 + $0xe1] sm:$0xff] }
  0xae   : > { %18160 = vmatprep.mubr.msk.f32.mxu1 %vm313_vm0, %v21766_v26  ;;  %18560 = vmatprep.mubr.msk.f32.mxu0 %vm313_vm0, %v21769_v25  ;;  %v21800_v26 = vld [vmem:[%s21157_s14 + $0xfc] sm:$0xff]  ;;  %25478 = vst [vmem:[#allocation40_spill] sm:$0xff] %v21803_v30 }
  0xaf   : > { %25477 = vst [vmem:[#allocation39_spill] sm:$0xff] %v21800_v26 }
  0xb1   : > { %18161 = vmatmul.mubr.msk.f32.gmra.mrb[14].mxu1 %vm313_vm0, %v21780_v28  ;;  %18561 = vmatmul.mubr.msk.f32.gmra.mrb[46].mxu0 %vm313_vm0, %v21783_v38  ;;  %v21823_v28 = vld [vmem:[%s21157_s14 + $0xf9] sm:$0xff] }
  0xb2   : > { %18163 = vmatprep.mubr.msk.f32.mxu1 %vm313_vm0, %v21786_v24  ;;  %18563 = vmatprep.mubr.msk.f32.mxu0 %vm313_vm0, %v21789_v23  ;;  %v21820_v24 = vld [vmem:[%s21157_s14 + $0x114] sm:$0xff]  ;;  %25482 = vst [vmem:[#allocation44_spill] sm:$0xff] %v21823_v28  ;;  %v21826_v23 = vld [vmem:[%s21157_s14 + $0x124] sm:$0xff] }
  0xb3   : > { %25481 = vst [vmem:[#allocation43_spill] sm:$0xff] %v21820_v24  ;;  %25483 = vst [vmem:[#allocation45_spill] sm:$0xff] %v21826_v23 }
  0xb5   : > { %18164 = vmatmul.mubr.msk.f32.gmra.mrb[16].mxu1 %vm313_vm0, %v21800_v26  ;;  %18564 = vmatmul.mubr.msk.f32.gmra.mrb[48].mxu0 %vm313_vm0, %v21803_v30  ;;  %v21843_v26 = vld [vmem:[%s21157_s14 + $0x111] sm:$0xff]  ;;  %v21849_v30 = vld [vmem:[%s21157_s14 + $0x121] sm:$0xff] }
  0xb6   : > { %18166 = vmatprep.mubr.msk.f32.mxu1 %vm313_vm0, %v21806_v22  ;;  %18566 = vmatprep.mubr.msk.f32.mxu0 %vm313_vm0, %v21809_v21  ;;  %v21840_v22 = vld [vmem:[%s21157_s14 + $0x12c] sm:$0xff]  ;;  %25486 = vst [vmem:[#allocation48_spill] sm:$0xff] %v21843_v26  ;;  %v21846_v21 = vld [vmem:[%s21157_s14 + $0x13c] sm:$0xff]  ;;  %25488 = vst [vmem:[#allocation50_spill] sm:$0xff] %v21849_v30 }
  0xb7   : > { %25485 = vst [vmem:[#allocation47_spill] sm:$0xff] %v21840_v22  ;;  %25487 = vst [vmem:[#allocation49_spill] sm:$0xff] %v21846_v21 }
  0xb9   : > { %18167 = vmatmul.mubr.msk.f32.gmra.mrb[18].mxu1 %vm313_vm0, %v21820_v24  ;;  %18567 = vmatmul.mubr.msk.f32.gmra.mrb[50].mxu0 %vm313_vm0, %v21823_v28  ;;  %v21863_v24 = vld [vmem:[%s21157_s14 + $0x129] sm:$0xff]  ;;  %v21869_v28 = vld [vmem:[%s21157_s14 + $0x139] sm:$0xff] }
  0xba   : > { %18169 = vmatprep.mubr.msk.f32.mxu1 %vm313_vm0, %v21826_v23  ;;  %18569 = vmatprep.mubr.msk.f32.mxu0 %vm313_vm0, %v21829_v20  ;;  %v21860_v23 = vld [vmem:[%s21157_s14 + $0x144] sm:$0xff]  ;;  %25490 = vst [vmem:[#allocation52_spill] sm:$0xff] %v21863_v24  ;;  %v21866_v20 = vld [vmem:[%s21157_s14 + $0x154] sm:$0xff]  ;;  %25492 = vst [vmem:[#allocation54_spill] sm:$0xff] %v21869_v28 }
  0xbb   : > { %25489 = vst [vmem:[#allocation51_spill] sm:$0xff] %v21860_v23  ;;  %25491 = vst [vmem:[#allocation53_spill] sm:$0xff] %v21866_v20 }
  0xbd   : > { %18170 = vmatmul.mubr.msk.f32.gmra.mrb[20].mxu1 %vm313_vm0, %v21840_v22  ;;  %18570 = vmatmul.mubr.msk.f32.gmra.mrb[52].mxu0 %vm313_vm0, %v21843_v26  ;;  %v21883_v22 = vld [vmem:[%s21157_s14 + $0x141] sm:$0xff]  ;;  %v21889_v26 = vld [vmem:[%s21157_s14 + $0x151] sm:$0xff] }
  0xbe   : > { %18172 = vmatprep.mubr.msk.f32.mxu1 %vm313_vm0, %v21846_v21  ;;  %18572 = vmatprep.mubr.msk.f32.mxu0 %vm313_vm0, %v21849_v30  ;;  %v21880_v21 = vld [vmem:[%s21157_s14 + $0x15c] sm:$0xff]  ;;  %25494 = vst [vmem:[#allocation56_spill] sm:$0xff] %v21883_v22  ;;  %v21886_v30 = vld [vmem:[%s21157_s14 + $0x16c] sm:$0xff]  ;;  %25496 = vst [vmem:[#allocation58_spill] sm:$0xff] %v21889_v26 }
  0xbf   : > { %25493 = vst [vmem:[#allocation55_spill] sm:$0xff] %v21880_v21  ;;  %25495 = vst [vmem:[#allocation57_spill] sm:$0xff] %v21886_v30 }
  0xc1   : > { %18173 = vmatmul.mubr.msk.f32.gmra.mrb[22].mxu1 %vm313_vm0, %v21860_v23  ;;  %18573 = vmatmul.mubr.msk.f32.gmra.mrb[54].mxu0 %vm313_vm0, %v21863_v24  ;;  %v21903_v23 = vld [vmem:[%s21157_s14 + $0x159] sm:$0xff]  ;;  %v21909_v24 = vld [vmem:[%s21157_s14 + $0x169] sm:$0xff] }
  0xc2   : > { %18175 = vmatprep.mubr.msk.f32.mxu1 %vm313_vm0, %v21866_v20  ;;  %18575 = vmatprep.mubr.msk.f32.mxu0 %vm313_vm0, %v21869_v28  ;;  %v21900_v20 = vld [vmem:[%s21157_s14 + $0x174] sm:$0xff]  ;;  %v21906_v28 = vld [vmem:[%s21157_s14 + $0x184] sm:$0xff]  ;;  %25499 = vst [vmem:[#allocation61_spill] sm:$0xff] %v21909_v24 }
  0xc3   : > { %25497 = vst [vmem:[#allocation59_spill] sm:$0xff] %v21900_v20  ;;  %25498 = vst [vmem:[#allocation60_spill] sm:$0xff] %v21906_v28 }
  0xc5   : > { %18176 = vmatmul.mubr.msk.f32.gmra.mrb[24].mxu1 %vm313_vm0, %v21880_v21  ;;  %18576 = vmatmul.mubr.msk.f32.gmra.mrb[56].mxu0 %vm313_vm0, %v21883_v22  ;;  %v21923_v21 = vld [vmem:[%s21157_s14 + $0x171] sm:$0xff]  ;;  %v21929_v22 = vld [vmem:[%s21157_s14 + $0x181] sm:$0xff] }
  0xc6   : > { %18178 = vmatprep.mubr.msk.f32.mxu1 %vm313_vm0, %v21886_v30  ;;  %18578 = vmatprep.mubr.msk.f32.mxu0 %vm313_vm0, %v21889_v26  ;;  %v21920_v30 = vld [vmem:[%s21157_s14 + $0x18c] sm:$0xff]  ;;  %v21926_v26 = vld [vmem:[%s21157_s14 + $0x19c] sm:$0xff]  ;;  %25502 = vst [vmem:[#allocation64_spill] sm:$0xff] %v21929_v22 }
  0xc7   : > { %25500 = vst [vmem:[#allocation62_spill] sm:$0xff] %v21920_v30  ;;  %25501 = vst [vmem:[#allocation63_spill] sm:$0xff] %v21926_v26 }
  0xc9   : > { %18179 = vmatmul.mubr.msk.f32.gmra.mrb[26].mxu1 %vm313_vm0, %v21900_v20  ;;  %18579 = vmatmul.mubr.msk.f32.gmra.mrb[58].mxu0 %vm313_vm0, %v21903_v23  ;;  %v21943_v20 = vld [vmem:[%s21157_s14 + $0x189] sm:$0xff] }
  0xca   : > { %18181 = vmatprep.mubr.msk.f32.mxu1 %vm313_vm0, %v21906_v28  ;;  %18581 = vmatprep.mubr.msk.f32.mxu0 %vm313_vm0, %v21909_v24  ;;  %v21940_v28 = vld [vmem:[%s21157_s14 + $0x1a4] sm:$0xff] }
  0xcb   : > { %v15486_v24 = vld [vmem:[%s21157_s14 + $0x1d] sm:$0xff] }
  0xcd   : > { %18182 = vmatmul.mubr.msk.f32.gmra.mrb[28].mxu1 %vm313_vm0, %v21920_v30  ;;  %18582 = vmatmul.mubr.msk.f32.gmra.mrb[60].mxu0 %vm313_vm0, %v21923_v21  ;;  %v15488_v30 = vld [vmem:[%s21157_s14 + $0x35] sm:$0xff] }
  0xce   : > { %18184 = vmatprep.mubr.msk.f32.mxu1 %vm313_vm0, %v21926_v26  ;;  %18584 = vmatprep.mubr.msk.f32.mxu0 %vm313_vm0, %v21929_v22  ;;  %v15487_v26 = vld [vmem:[%s21157_s14 + $0x25] sm:$0xff] }
  0xcf   : > { %v21958_v22 = vld [vmem:[%s25249_s1 + $0x28] sm:$0xff] }
  0xd1   : > { %18185 = vmatmul.mubr.msk.f32.gmra.mrb[30].mxu1 %vm313_vm0, %v21940_v28  ;;  %18585 = vmatmul.mubr.msk.f32.gmra.mrb[62].mxu0 %vm313_vm0, %v21943_v20 }
  0xd2   : > { %18189 = vmatprep.mubr.msk.f32.mxu1 %vm313_vm0, %v21408_v44  ;;  %18589 = vmatprep.mubr.msk.f32.mxu0 %vm313_vm0, %v15486_v24  ;;  %v15489_v24 = vld [vmem:[%s21157_s14 + $0x3d] sm:$0xff]  ;;  %v21969_v44 = vld [vmem:[%s21157_s14 + $0x4d] sm:$0xff] }
  0xd5   : > { %18190 = vmatmul.mubr.msk.f32.vlgmr.msra.gmra.mrb[0].mxu1 %vm313_vm0, %v21421_v46  ;;  %18590 = vmatmul.mubr.msk.f32.vlgmr.msra.gmra.mrb[32].mxu0 %vm313_vm0, %v15487_v26  ;;  %v21976_v26 = vld [vmem:[%s25250_s2 + $0x20] sm:$0xff]  ;;  %v22001_v46 = vld [vmem:[%s21157_s14 + $0x6d] sm:$0xff] }
  0xd6   : > { %18238 = vmatpush3.msra.mxu1 %v21646_v32  ;;  %18192 = vmatprep.mubr.msk.f32.mxu1 %vm313_vm0, %v21426_v47  ;;  %v21989_v32 = vld [vmem:[%s21157_s14 + $0x65] sm:$0xff]  ;;  %v22004_v47 = vld [vmem:[%s21157_s14 + $0x7d] sm:$0xff] }
  0xd7   : > { %18592 = vmatprep.mubr.msk.f32.mxu0 %vm313_vm0, %v15488_v30  ;;  %18287 = vmatprep.subr.mxu1 %v21958_v22  ;;  %v21986_v30 = vld [vmem:[%s21157_s14 + $0x55] sm:$0xff] }
  0xd8   : > { %18638 = vmatpush3.msra.mxu0 %v21669_v36  ;;  %v25520_v36 = vld [vmem:[#allocation54_spill] sm:$0xff] }
  0xd9   : > { %18193 = vmatmul.mubr.msk.f32.gmra.mrb[2].mxu1 %vm313_vm0, %v21444_v49  ;;  %18593 = vmatmul.mubr.msk.f32.gmra.mrb[34].mxu0 %vm313_vm0, %v15489_v24  ;;  %v22015_v49 = vld [vmem:[%s21157_s14 + $0x85] sm:$0xff]  ;;  %v25526_v24 = vld [vmem:[#allocation15_spill] sm:$0xff] }
  0xda   : > { %18195 = vmatprep.mubr.msk.f32.mxu1 %vm313_vm0, %v21447_v50  ;;  %18595 = vmatprep.mubr.msk.f32.mxu0 %vm313_vm0, %v21969_v44  ;;  %v22018_v50 = vld [vmem:[%s21157_s14 + $0x95] sm:$0xff] }
  0xdb   : > { %18687 = vmatprep.subr.mxu0 %v21976_v26 }
  0xdd   : > { %18196 = vmatmul.mubr.msk.f32.gmra.mrb[4].mxu1 %vm313_vm0, %v21459_v51  ;;  %18596 = vmatmul.mubr.msk.f32.gmra.mrb[36].mxu0 %vm313_vm0, %v21986_v30  ;;  %v22029_v51 = vld [vmem:[%s21157_s14 + $0x9d] sm:$0xff] }
  0xde   : > { %18198 = vmatprep.mubr.msk.f32.mxu1 %vm313_vm0, %v21462_v52  ;;  %18598 = vmatprep.mubr.msk.f32.mxu0 %vm313_vm0, %v21989_v32  ;;  %v22032_v52 = vld [vmem:[%s21157_s14 + $0xad] sm:$0xff] }
  0xe1   : > { %18199 = vmatmul.mubr.msk.f32.gmra.mrb[6].mxu1 %vm313_vm0, %v21473_v53  ;;  %18599 = vmatmul.mubr.msk.f32.gmra.mrb[38].mxu0 %vm313_vm0, %v22001_v46  ;;  %v22043_v53 = vld [vmem:[%s21157_s14 + $0xb5] sm:$0xff] }
  0xe2   : > { %18201 = vmatprep.mubr.msk.f32.mxu1 %vm313_vm0, %v21476_v54  ;;  %18601 = vmatprep.mubr.msk.f32.mxu0 %vm313_vm0, %v22004_v47  ;;  %v22046_v54 = vld [vmem:[%s21157_s14 + $0xc5] sm:$0xff] }
  0xe5   : > { %18202 = vmatmul.mubr.msk.f32.gmra.mrb[8].mxu1 %vm313_vm0, %v21487_v55  ;;  %18602 = vmatmul.mubr.msk.f32.gmra.mrb[40].mxu0 %vm313_vm0, %v22015_v49  ;;  %v22057_v55 = vld [vmem:[%s21157_s14 + $0xcd] sm:$0xff] }
  0xe6   : > { %18204 = vmatprep.mubr.msk.f32.mxu1 %vm313_vm0, %v21490_v56  ;;  %18604 = vmatprep.mubr.msk.f32.mxu0 %vm313_vm0, %v22018_v50  ;;  %v22060_v56 = vld [vmem:[%s21157_s14 + $0xdd] sm:$0xff] }
  0xe9   : > { %18205 = vmatmul.mubr.msk.f32.gmra.mrb[10].mxu1 %vm313_vm0, %v21501_v57  ;;  %18605 = vmatmul.mubr.msk.f32.gmra.mrb[42].mxu0 %vm313_vm0, %v22029_v51  ;;  %v22071_v57 = vld [vmem:[%s21157_s14 + $0xe5] sm:$0xff] }
  0xea   : > { %18207 = vmatprep.mubr.msk.f32.mxu1 %vm313_vm0, %v21504_v58  ;;  %18607 = vmatprep.mubr.msk.f32.mxu0 %vm313_vm0, %v22032_v52  ;;  %v22074_v58 = vld [vmem:[%s21157_s14 + $0xf5] sm:$0xff] }
  0xed   : > { %18208 = vmatmul.mubr.msk.f32.gmra.mrb[12].mxu1 %vm313_vm0, %v21515_v59  ;;  %18608 = vmatmul.mubr.msk.f32.gmra.mrb[44].mxu0 %vm313_vm0, %v22043_v53  ;;  %v22085_v59 = vld [vmem:[%s21157_s14 + $0xfd] sm:$0xff] }
  0xee   : > { %18210 = vmatprep.mubr.msk.f32.mxu1 %vm313_vm0, %v21518_v60  ;;  %18610 = vmatprep.mubr.msk.f32.mxu0 %vm313_vm0, %v22046_v54  ;;  %v22088_v60 = vld [vmem:[%s21157_s14 + $0x10d] sm:$0xff] }
  0xf1   : > { %18211 = vmatmul.mubr.msk.f32.gmra.mrb[14].mxu1 %vm313_vm0, %v21529_v61  ;;  %18611 = vmatmul.mubr.msk.f32.gmra.mrb[46].mxu0 %vm313_vm0, %v22057_v55  ;;  %v22099_v61 = vld [vmem:[%s21157_s14 + $0x115] sm:$0xff] }
  0xf2   : > { %18213 = vmatprep.mubr.msk.f32.mxu1 %vm313_vm0, %v21532_v62  ;;  %18613 = vmatprep.mubr.msk.f32.mxu0 %vm313_vm0, %v22060_v56  ;;  %v22102_v62 = vld [vmem:[%s21157_s14 + $0x125] sm:$0xff] }
  0xf5   : > { %18214 = vmatmul.mubr.msk.f32.gmra.mrb[16].mxu1 %vm313_vm0, %v21543_v63  ;;  %18614 = vmatmul.mubr.msk.f32.gmra.mrb[48].mxu0 %vm313_vm0, %v22071_v57  ;;  %v22113_v63 = vld [vmem:[%s21157_s14 + $0x12d] sm:$0xff] }
  0xf6   : > { %18216 = vmatprep.mubr.msk.f32.mxu1 %vm313_vm0, %v21546_v0  ;;  %18616 = vmatprep.mubr.msk.f32.mxu0 %vm313_vm0, %v22074_v58  ;;  %v22116_v0 = vld [vmem:[%s21157_s14 + $0x13d] sm:$0xff] }
  0xf9   : > { %18217 = vmatmul.mubr.msk.f32.gmra.mrb[18].mxu1 %vm313_vm0, %v21557_v1  ;;  %18617 = vmatmul.mubr.msk.f32.gmra.mrb[50].mxu0 %vm313_vm0, %v22085_v59  ;;  %v22127_v1 = vld [vmem:[%s21157_s14 + $0x145] sm:$0xff] }
  0xfa   : > { %18219 = vmatprep.mubr.msk.f32.mxu1 %vm313_vm0, %v21560_v2  ;;  %18619 = vmatprep.mubr.msk.f32.mxu0 %vm313_vm0, %v22088_v60  ;;  %v22130_v2 = vld [vmem:[%s21157_s14 + $0x155] sm:$0xff] }
  0xfd   : > { %18220 = vmatmul.mubr.msk.f32.gmra.mrb[20].mxu1 %vm313_vm0, %v21571_v3  ;;  %18620 = vmatmul.mubr.msk.f32.gmra.mrb[52].mxu0 %vm313_vm0, %v22099_v61  ;;  %v22141_v3 = vld [vmem:[%s21157_s14 + $0x15d] sm:$0xff] }
  0xfe   : > { %18222 = vmatprep.mubr.msk.f32.mxu1 %vm313_vm0, %v21574_v5  ;;  %18622 = vmatprep.mubr.msk.f32.mxu0 %vm313_vm0, %v22102_v62  ;;  %v22144_v5 = vld [vmem:[%s21157_s14 + $0x16d] sm:$0xff] }
 0x101   : > { %18223 = vmatmul.mubr.msk.f32.gmra.mrb[22].mxu1 %vm313_vm0, %v21585_v7  ;;  %18623 = vmatmul.mubr.msk.f32.gmra.mrb[54].mxu0 %vm313_vm0, %v22113_v63  ;;  %v22155_v7 = vld [vmem:[%s21157_s14 + $0x175] sm:$0xff] }
 0x102   : > { %18225 = vmatprep.mubr.msk.f32.mxu1 %vm313_vm0, %v21588_v9  ;;  %18625 = vmatprep.mubr.msk.f32.mxu0 %vm313_vm0, %v22116_v0  ;;  %v22158_v9 = vld [vmem:[%s21157_s14 + $0x1b2] sm:$0xff] }
 0x105   : > { %18226 = vmatmul.mubr.msk.f32.gmra.mrb[24].mxu1 %vm313_vm0, %v21599_v12  ;;  %18626 = vmatmul.mubr.msk.f32.gmra.mrb[56].mxu0 %vm313_vm0, %v22127_v1  ;;  %v22161_v12 = vld [vmem:[%s21157_s14 + $0x185] sm:$0xff] }
 0x106   : > { %18228 = vmatprep.mubr.msk.f32.mxu1 %vm313_vm0, %v21602_v40  ;;  %18628 = vmatprep.mubr.msk.f32.mxu0 %vm313_vm0, %v22130_v2  ;;  %v22172_v40 = vld [vmem:[%s21157_s14 + $0x1ba] sm:$0xff] }
 0x109   : > { %18229 = vmatmul.mubr.msk.f32.gmra.mrb[26].mxu1 %vm313_vm0, %v21613_v41  ;;  %18629 = vmatmul.mubr.msk.f32.gmra.mrb[58].mxu0 %vm313_vm0, %v22141_v3  ;;  %v22175_v41 = vld [vmem:[%s21157_s14 + $0x18d] sm:$0xff] }
 0x10a   : > { %18231 = vmatprep.mubr.msk.f32.mxu1 %vm313_vm0, %v21616_v42  ;;  %18631 = vmatprep.mubr.msk.f32.mxu0 %vm313_vm0, %v22144_v5  ;;  %v22188_v42 = vld [vmem:[%s25249_s1 + $0x30] sm:$0xff] }
 0x10d   : > { %18232 = vmatmul.mubr.msk.f32.gmra.mrb[28].mxu1 %vm313_vm0, %v21627_v43  ;;  %18632 = vmatmul.mubr.msk.f32.gmra.mrb[60].mxu0 %vm313_vm0, %v22155_v7  ;;  %v25518_v43 = vld [vmem:[#allocation52_spill] sm:$0xff] }
 0x10e   : > { %18234 = vmatprep.mubr.msk.f32.mxu1 %vm313_vm0, %v22158_v9  ;;  %18634 = vmatprep.mubr.msk.f32.mxu0 %vm313_vm0, %v22161_v12 }
 0x111   : > { %18235 = vmatmul.mubr.msk.f32.gmra.mrb[30].mxu1 %vm313_vm0, %v22172_v40  ;;  %18635 = vmatmul.mubr.msk.f32.gmra.mrb[62].mxu0 %vm313_vm0, %v22175_v41 }
 0x112   : > { %18239 = vmatprep.mubr.msk.f32.mxu1 %vm313_vm0, %v21160_v4  ;;  %18639 = vmatprep.mubr.msk.f32.mxu0 %vm313_vm0, %v21662_v31  ;;  %v22204_v4 = vld [vmem:[%s25250_s2 + $0x28] sm:$0xff]  ;;  %v25515_v31 = vld [vmem:[#allocation9_spill] sm:$0xff] }
 0x115   : > { %18240 = vmatmul.mubr.msk.f32.vlgmr.msra.gmra.mrb[0].mxu1 %vm313_vm0, %v21166_v6  ;;  %18640 = vmatmul.mubr.msk.f32.vlgmr.msra.gmra.mrb[32].mxu0 %vm313_vm0, %v21682_v37  ;;  %v25503_v6 = vld [vmem:[#allocation3_spill] sm:$0xff]  ;;  %v25522_v37 = vld [vmem:[#allocation56_spill] sm:$0xff] }
 0x116   : > { %18288 = vmatpush3.msra.mxu1 %v21958_v22  ;;  %18242 = vmatprep.mubr.msk.f32.mxu1 %vm313_vm0, %v21176_v8  ;;  %v25504_v8 = vld [vmem:[#allocation38_spill] sm:$0xff]  ;;  %v25511_v22 = vld [vmem:[#allocation7_spill] sm:$0xff] }
 0x117   : > { %18642 = vmatprep.mubr.msk.f32.mxu0 %vm313_vm0, %v21688_v48  ;;  %18337 = vmatprep.subr.mxu1 %v22188_v42  ;;  %v25524_v48 = vld [vmem:[#allocation58_spill] sm:$0xff] }
 0x118   : > { %18688 = vmatpush3.msra.mxu0 %v21976_v26  ;;  %v25527_v26 = vld [vmem:[#allocation61_spill] sm:$0xff] }
 0x119   : > { %18243 = vmatmul.mubr.msk.f32.gmra.mrb[2].mxu1 %vm313_vm0, %v21190_v10  ;;  %18643 = vmatmul.mubr.msk.f32.gmra.mrb[34].mxu0 %vm313_vm0, %v21703_v35  ;;  %v25505_v10 = vld [vmem:[#allocation4_spill] sm:$0xff]  ;;  %v25517_v35 = vld [vmem:[#allocation10_spill] sm:$0xff] }
 0x11a   : > { %18245 = vmatprep.mubr.msk.f32.mxu1 %vm313_vm0, %v21195_v11  ;;  %18645 = vmatprep.mubr.msk.f32.mxu0 %vm313_vm0, %v21709_v34  ;;  %v25506_v11 = vld [vmem:[#allocation40_spill] sm:$0xff]  ;;  %v25516_v34 = vld [vmem:[#allocation50_spill] sm:$0xff] }
 0x11b   : > { %18737 = vmatprep.subr.mxu0 %v22204_v4 }
 0x11d   : > { %18246 = vmatmul.mubr.msk.f32.gmra.mrb[4].mxu1 %vm313_vm0, %v21212_v13  ;;  %18646 = vmatmul.mubr.msk.f32.gmra.mrb[36].mxu0 %vm313_vm0, %v21723_v33  ;;  %v25507_v13 = vld [vmem:[#allocation5_spill] sm:$0xff]  ;;  %v25521_v33 = vld [vmem:[#allocation12_spill] sm:$0xff] }
 0x11e   : > { %18248 = vmatprep.mubr.msk.f32.mxu1 %vm313_vm0, %v21215_v14  ;;  %18648 = vmatprep.mubr.msk.f32.mxu0 %vm313_vm0, %v21729_v29  ;;  %v25508_v14 = vld [vmem:[#allocation42_spill] sm:$0xff]  ;;  %v25514_v29 = vld [vmem:[#allocation48_spill] sm:$0xff] }
 0x121   : > { %18249 = vmatmul.mubr.msk.f32.gmra.mrb[6].mxu1 %vm313_vm0, %v21227_v15  ;;  %18649 = vmatmul.mubr.msk.f32.gmra.mrb[38].mxu0 %vm313_vm0, %v21743_v39  ;;  %v25509_v15 = vld [vmem:[#allocation6_spill] sm:$0xff] }
 0x122   : > { %18251 = vmatprep.mubr.msk.f32.mxu1 %vm313_vm0, %v21230_v16  ;;  %18651 = vmatprep.mubr.msk.f32.mxu0 %vm313_vm0, %v21749_v27  ;;  %v25510_v16 = vld [vmem:[#allocation44_spill] sm:$0xff]  ;;  %v25525_v39 = vld [vmem:[#allocation14_spill] sm:$0xff] }
 0x123   : > { %v25513_v27 = vld [vmem:[#allocation8_spill] sm:$0xff] }
 0x125   : > { %18252 = vmatmul.mubr.msk.f32.gmra.mrb[8].mxu1 %vm313_vm0, %v21241_v17  ;;  %18652 = vmatmul.mubr.msk.f32.gmra.mrb[40].mxu0 %vm313_vm0, %v21763_v45  ;;  %v25523_v45 = vld [vmem:[#allocation13_spill] sm:$0xff] }
 0x126   : > { %18254 = vmatprep.mubr.msk.f32.mxu1 %vm313_vm0, %v21244_v18  ;;  %18654 = vmatprep.mubr.msk.f32.mxu0 %vm313_vm0, %v21769_v25  ;;  %v25512_v25 = vld [vmem:[#allocation46_spill] sm:$0xff] }
 0x129   : > { %18255 = vmatmul.mubr.msk.f32.gmra.mrb[10].mxu1 %vm313_vm0, %v21255_v19  ;;  %18655 = vmatmul.mubr.msk.f32.gmra.mrb[42].mxu0 %vm313_vm0, %v21783_v38  ;;  %v25519_v38 = vld [vmem:[#allocation11_spill] sm:$0xff] }
 0x12a   : > { %18257 = vmatprep.mubr.msk.f32.mxu1 %vm313_vm0, %v25503_v6  ;;  %18657 = vmatprep.mubr.msk.f32.mxu0 %vm313_vm0, %v25504_v8  ;;  %v25528_v8 = vld [vmem:[#allocation16_spill] sm:$0xff] }
 0x12d   : > { %18258 = vmatmul.mubr.msk.f32.gmra.mrb[12].mxu1 %vm313_vm0, %v25505_v10  ;;  %18658 = vmatmul.mubr.msk.f32.gmra.mrb[44].mxu0 %vm313_vm0, %v25506_v11  ;;  %v25529_v11 = vld [vmem:[#allocation17_spill] sm:$0xff] }
 0x12e   : > { %18260 = vmatprep.mubr.msk.f32.mxu1 %vm313_vm0, %v25507_v13  ;;  %18660 = vmatprep.mubr.msk.f32.mxu0 %vm313_vm0, %v25508_v14  ;;  %v25530_v14 = vld [vmem:[#allocation64_spill] sm:$0xff] }
 0x131   : > { %18261 = vmatmul.mubr.msk.f32.gmra.mrb[14].mxu1 %vm313_vm0, %v25509_v15  ;;  %18661 = vmatmul.mubr.msk.f32.gmra.mrb[46].mxu0 %vm313_vm0, %v25510_v16  ;;  %v25532_v16 = vld [vmem:[#allocation18_spill] sm:$0xff] }
 0x132   : > { %18263 = vmatprep.mubr.msk.f32.mxu1 %vm313_vm0, %v25511_v22  ;;  %18663 = vmatprep.mubr.msk.f32.mxu0 %vm313_vm0, %v25512_v25  ;;  %v25533_v25 = vld [vmem:[#allocation19_spill] sm:$0xff] }
 0x135   : > { %18264 = vmatmul.mubr.msk.f32.gmra.mrb[16].mxu1 %vm313_vm0, %v25513_v27  ;;  %18664 = vmatmul.mubr.msk.f32.gmra.mrb[48].mxu0 %vm313_vm0, %v25514_v29  ;;  %v22318_v29 = vld [vmem:[%s21157_s14 + $0x1b1] sm:$0xff] }
 0x136   : > { %18266 = vmatprep.mubr.msk.f32.mxu1 %vm313_vm0, %v25515_v31  ;;  %18666 = vmatprep.mubr.msk.f32.mxu0 %vm313_vm0, %v25516_v34  ;;  %25535 = vst [vmem:[#allocation4_spill] sm:$0xff] %v22318_v29  ;;  %v25536_v34 = vld [vmem:[#allocation20_spill] sm:$0xff] }
 0x139   : > { %18267 = vmatmul.mubr.msk.f32.gmra.mrb[18].mxu1 %vm313_vm0, %v25517_v35  ;;  %18667 = vmatmul.mubr.msk.f32.gmra.mrb[50].mxu0 %vm313_vm0, %v25518_v43  ;;  %v25537_v43 = vld [vmem:[#allocation21_spill] sm:$0xff] }
 0x13a   : > { %18269 = vmatprep.mubr.msk.f32.mxu1 %vm313_vm0, %v25519_v38  ;;  %18669 = vmatprep.mubr.msk.f32.mxu0 %vm313_vm0, %v25520_v36  ;;  %v25539_v36 = vld [vmem:[#allocation22_spill] sm:$0xff] }
 0x13d   : > { %18270 = vmatmul.mubr.msk.f32.gmra.mrb[20].mxu1 %vm313_vm0, %v25521_v33  ;;  %18670 = vmatmul.mubr.msk.f32.gmra.mrb[52].mxu0 %vm313_vm0, %v25522_v37  ;;  %v25540_v37 = vld [vmem:[#allocation23_spill] sm:$0xff] }
 0x13e   : > { %18272 = vmatprep.mubr.msk.f32.mxu1 %vm313_vm0, %v25523_v45  ;;  %18672 = vmatprep.mubr.msk.f32.mxu0 %vm313_vm0, %v25524_v48  ;;  %v21040_v48 = vld [vmem:[%s21157_s14 + $0x4b] sm:$0xff] }
 0x141   : > { %18273 = vmatmul.mubr.msk.f32.gmra.mrb[22].mxu1 %vm313_vm0, %v25525_v39  ;;  %18673 = vmatmul.mubr.msk.f32.gmra.mrb[54].mxu0 %vm313_vm0, %v21903_v23  ;;  %v22304_v23 = vld [vmem:[%s21157_s14 + $0x199] sm:$0xff] }
 0x142   : > { %18275 = vmatprep.mubr.msk.f32.mxu1 %vm313_vm0, %v25526_v24  ;;  %18675 = vmatprep.mubr.msk.f32.mxu0 %vm313_vm0, %v25527_v26  ;;  %25531 = vst [vmem:[#allocation3_spill] sm:$0xff] %v22304_v23  ;;  %v22342_v26 = vld [vmem:[%s25249_s1 + $0x38] sm:$0xff] }
 0x145   : > { %18276 = vmatmul.mubr.msk.f32.gmra.mrb[24].mxu1 %vm313_vm0, %v25528_v8  ;;  %18676 = vmatmul.mubr.msk.f32.gmra.mrb[56].mxu0 %vm313_vm0, %v21923_v21  ;;  %v22315_v21 = vld [vmem:[%s21157_s14 + $0x1a1] sm:$0xff] }
 0x146   : > { %18278 = vmatprep.mubr.msk.f32.mxu1 %vm313_vm0, %v25529_v11  ;;  %18678 = vmatprep.mubr.msk.f32.mxu0 %vm313_vm0, %v25530_v14  ;;  %25534 = vst [vmem:[#allocation38_spill] sm:$0xff] %v22315_v21  ;;  %v25541_v14 = vld [vmem:[#allocation24_spill] sm:$0xff] }
 0x149   : > { %18279 = vmatmul.mubr.msk.f32.gmra.mrb[26].mxu1 %vm313_vm0, %v25532_v16  ;;  %18679 = vmatmul.mubr.msk.f32.gmra.mrb[58].mxu0 %vm313_vm0, %v21943_v20  ;;  %v22329_v20 = vld [vmem:[%s21157_s14 + $0x1b9] sm:$0xff] }
 0x14a   : > { %18281 = vmatprep.mubr.msk.f32.mxu1 %vm313_vm0, %v25533_v25  ;;  %18681 = vmatprep.mubr.msk.f32.mxu0 %vm313_vm0, %v22304_v23  ;;  %25538 = vst [vmem:[#allocation40_spill] sm:$0xff] %v22329_v20  ;;  %v21048_v23 = vld [vmem:[%s21157_s14 + $0xab] sm:$0xff] }
 0x14d   : > { %18282 = vmatmul.mubr.msk.f32.gmra.mrb[28].mxu1 %vm313_vm0, %v25536_v34  ;;  %18682 = vmatmul.mubr.msk.f32.gmra.mrb[60].mxu0 %vm313_vm0, %v22315_v21  ;;  %v25546_v21 = vld [vmem:[#allocation29_spill] sm:$0xff] }
 0x14e   : > { %18284 = vmatprep.mubr.msk.f32.mxu1 %vm313_vm0, %v25537_v43  ;;  %18684 = vmatprep.mubr.msk.f32.mxu0 %vm313_vm0, %v22318_v29  ;;  %v21041_v29 = vld [vmem:[%s21157_s14 + $0x53] sm:$0xff] }
 0x151   : > { %18285 = vmatmul.mubr.msk.f32.gmra.mrb[30].mxu1 %vm313_vm0, %v25539_v36  ;;  %18685 = vmatmul.mubr.msk.f32.gmra.mrb[62].mxu0 %vm313_vm0, %v22329_v20  ;;  %v25542_v20 = vld [vmem:[#allocation25_spill] sm:$0xff] }
 0x152   : > { %18289 = vmatprep.mubr.msk.f32.mxu1 %vm313_vm0, %v25540_v37  ;;  %18689 = vmatprep.mubr.msk.f32.mxu0 %vm313_vm0, %v21040_v48  ;;  %v21042_v37 = vld [vmem:[%s21157_s14 + $0x63] sm:$0xff]  ;;  %v22358_v48 = vld [vmem:[%s25250_s2 + $0x30] sm:$0xff] }
 0x155   : > { %18290 = vmatmul.mubr.msk.f32.vlgmr.msra.gmra.mrb[0].mxu1 %vm313_vm0, %v25541_v14  ;;  %18690 = vmatmul.mubr.msk.f32.vlgmr.msra.gmra.mrb[32].mxu0 %vm313_vm0, %v21041_v29  ;;  %v25543_v29 = vld [vmem:[#allocation26_spill] sm:$0xff]  ;;  %v21044_v14 = vld [vmem:[%s21157_s14 + $0x7b] sm:$0xff] }
 0x156   : > { %18338 = vmatpush3.msra.mxu1 %v22188_v42  ;;  %18292 = vmatprep.mubr.msk.f32.mxu1 %vm313_vm0, %v25542_v20  ;;  %v21043_v42 = vld [vmem:[%s21157_s14 + $0x6b] sm:$0xff] }
 0x157   : > { %18692 = vmatprep.mubr.msk.f32.mxu0 %vm313_vm0, %v21042_v37  ;;  %18387 = vmatprep.subr.mxu1 %v22342_v26  ;;  %v25544_v20 = vld [vmem:[#allocation27_spill] sm:$0xff]  ;;  %v21045_v37 = vld [vmem:[%s21157_s14 + $0x83] sm:$0xff] }
 0x158   : > { %18738 = vmatpush3.msra.mxu0 %v22204_v4  ;;  %v25545_v4 = vld [vmem:[#allocation28_spill] sm:$0xff] }
 0x159   : > { %18293 = vmatmul.mubr.msk.f32.gmra.mrb[2].mxu1 %vm313_vm0, %v25543_v29  ;;  %18693 = vmatmul.mubr.msk.f32.gmra.mrb[34].mxu0 %vm313_vm0, %v21043_v42  ;;  %v21046_v29 = vld [vmem:[%s21157_s14 + $0x93] sm:$0xff]  ;;  %v25547_v42 = vld [vmem:[#allocation30_spill] sm:$0xff] }
 0x15a   : > { %18295 = vmatprep.mubr.msk.f32.mxu1 %vm313_vm0, %v25544_v20  ;;  %18695 = vmatprep.mubr.msk.f32.mxu0 %vm313_vm0, %v21044_v14  ;;  %v21047_v20 = vld [vmem:[%s21157_s14 + $0x9b] sm:$0xff]  ;;  %v25548_v14 = vld [vmem:[#allocation31_spill] sm:$0xff] }
 0x15b   : > { %18787 = vmatprep.subr.mxu0 %v22358_v48 }
 0x15d   : > { %18296 = vmatmul.mubr.msk.f32.gmra.mrb[4].mxu1 %vm313_vm0, %v25545_v4  ;;  %18696 = vmatmul.mubr.msk.f32.gmra.mrb[36].mxu0 %vm313_vm0, %v21045_v37  ;;  %v25549_v4 = vld [vmem:[#allocation32_spill] sm:$0xff]  ;;  %v25551_v37 = vld [vmem:[#allocation34_spill] sm:$0xff] }
 0x15e   : > { %18298 = vmatprep.mubr.msk.f32.mxu1 %vm313_vm0, %v25546_v21  ;;  %18698 = vmatprep.mubr.msk.f32.mxu0 %vm313_vm0, %v21046_v29  ;;  %v25550_v21 = vld [vmem:[#allocation33_spill] sm:$0xff]  ;;  %v25552_v29 = vld [vmem:[#allocation35_spill] sm:$0xff] }
 0x161   : > { %18299 = vmatmul.mubr.msk.f32.gmra.mrb[6].mxu1 %vm313_vm0, %v25547_v42  ;;  %18699 = vmatmul.mubr.msk.f32.gmra.mrb[38].mxu0 %vm313_vm0, %v21047_v20  ;;  %v15715_v42 = vld [vmem:[%s21157_s14 + $0x81] sm:$0xff] }
 0x162   : > { %18301 = vmatprep.mubr.msk.f32.mxu1 %vm313_vm0, %v25548_v14  ;;  %18701 = vmatprep.mubr.msk.f32.mxu0 %vm313_vm0, %v21048_v23  ;;  %v25553_v23 = vld [vmem:[#allocation36_spill] sm:$0xff] }
 0x163   : > { %v22649_v20 = vld [vmem:[%s21157_s14 + $0x7b] sm:$0xff]  ;;  %v15716_v14 = vld [vmem:[%s21157_s14 + $0x91] sm:$0xff] }
 0x165   : > { %18302 = vmatmul.mubr.msk.f32.gmra.mrb[8].mxu1 %vm313_vm0, %v25549_v4  ;;  %18702 = vmatmul.mubr.msk.f32.gmra.mrb[40].mxu0 %vm313_vm0, %v21241_v17  ;;  %v25554_v17 = vld [vmem:[#allocation37_spill] sm:$0xff]  ;;  %v22658_v4 = vld [vmem:[%s25251_s3 + $0x8] sm:$0xff] }
 0x166   : > { %18304 = vmatprep.mubr.msk.f32.mxu1 %vm313_vm0, %v25550_v21  ;;  %18704 = vmatprep.mubr.msk.f32.mxu0 %vm313_vm0, %v21244_v18  ;;  %v25555_v18 = vld [vmem:[#allocation39_spill] sm:$0xff]  ;;  %v22663_v21 = vld [vmem:[%s25250_s2 + $0x40] sm:$0xff] }
 0x169   : > { %18305 = vmatmul.mubr.msk.f32.gmra.mrb[10].mxu1 %vm313_vm0, %v25551_v37  ;;  %18705 = vmatmul.mubr.msk.f32.gmra.mrb[42].mxu0 %vm313_vm0, %v21255_v19  ;;  %v25556_v19 = vld [vmem:[#allocation41_spill] sm:$0xff] }
 0x16a   : > { %18307 = vmatprep.mubr.msk.f32.mxu1 %vm313_vm0, %v25552_v29  ;;  %18707 = vmatprep.mubr.msk.f32.mxu0 %vm313_vm0, %v25503_v6  ;;  %v25557_v6 = vld [vmem:[#allocation43_spill] sm:$0xff]  ;;  %v22669_v37 = vld [vmem:[%s21157_s14 + $0x83] sm:$0xff]  ;;  %v15717_v29 = vld [vmem:[%s21157_s14 + $0x99] sm:$0xff] }
 0x16d   : > { %18308 = vmatmul.mubr.msk.f32.gmra.mrb[12].mxu1 %vm313_vm0, %v25553_v23  ;;  %18708 = vmatmul.mubr.msk.f32.gmra.mrb[44].mxu0 %vm313_vm0, %v25505_v10  ;;  %v25558_v10 = vld [vmem:[#allocation45_spill] sm:$0xff]  ;;  %v22674_v23 = vld [vmem:[%s21157_s14 + $0x93] sm:$0xff] }
 0x16e   : > { %18310 = vmatprep.mubr.msk.f32.mxu1 %vm313_vm0, %v25554_v17  ;;  %18710 = vmatprep.mubr.msk.f32.mxu0 %vm313_vm0, %v25507_v13  ;;  %v25559_v13 = vld [vmem:[#allocation47_spill] sm:$0xff] }
 0x16f   : > { %v15718_v17 = vld [vmem:[%s21157_s14 + $0xa9] sm:$0xff] }
 0x171   : > { %18311 = vmatmul.mubr.msk.f32.gmra.mrb[14].mxu1 %vm313_vm0, %v25555_v18  ;;  %18711 = vmatmul.mubr.msk.f32.gmra.mrb[46].mxu0 %vm313_vm0, %v25509_v15  ;;  %v25560_v15 = vld [vmem:[#allocation49_spill] sm:$0xff] }
 0x172   : > { %18313 = vmatprep.mubr.msk.f32.mxu1 %vm313_vm0, %v25556_v19  ;;  %18713 = vmatprep.mubr.msk.f32.mxu0 %vm313_vm0, %v25511_v22  ;;  %v25561_v22 = vld [vmem:[#allocation51_spill] sm:$0xff]  ;;  %v22687_v18 = vld [vmem:[%s21157_s14 + $0x9b] sm:$0xff] }
 0x173   : > { %v15719_v19 = vld [vmem:[%s21157_s14 + $0xb1] sm:$0xff] }
 0x175   : > { %18314 = vmatmul.mubr.msk.f32.gmra.mrb[16].mxu1 %vm313_vm0, %v25557_v6  ;;  %18714 = vmatmul.mubr.msk.f32.gmra.mrb[48].mxu0 %vm313_vm0, %v25513_v27  ;;  %v25562_v27 = vld [vmem:[#allocation53_spill] sm:$0xff]  ;;  %v22691_v6 = vld [vmem:[%s21157_s14 + $0xab] sm:$0xff] }
 0x176   : > { %18316 = vmatprep.mubr.msk.f32.mxu1 %vm313_vm0, %v25558_v10  ;;  %18716 = vmatprep.mubr.msk.f32.mxu0 %vm313_vm0, %v25515_v31  ;;  %v25563_v31 = vld [vmem:[#allocation55_spill] sm:$0xff]  ;;  %v15720_v10 = vld [vmem:[%s21157_s14 + $0xc1] sm:$0xff] }
 0x179   : > { %18317 = vmatmul.mubr.msk.f32.gmra.mrb[18].mxu1 %vm313_vm0, %v25559_v13  ;;  %18717 = vmatmul.mubr.msk.f32.gmra.mrb[50].mxu0 %vm313_vm0, %v25517_v35  ;;  %v25564_v35 = vld [vmem:[#allocation57_spill] sm:$0xff]  ;;  %v22701_v13 = vld [vmem:[%s21157_s14 + $0xb3] sm:$0xff] }
 0x17a   : > { %18319 = vmatprep.mubr.msk.f32.mxu1 %vm313_vm0, %v25560_v15  ;;  %18719 = vmatprep.mubr.msk.f32.mxu0 %vm313_vm0, %v25519_v38  ;;  %v25565_v38 = vld [vmem:[#allocation59_spill] sm:$0xff] }
 0x17b   : > { %v15721_v15 = vld [vmem:[%s21157_s14 + $0xc9] sm:$0xff] }
 0x17d   : > { %18320 = vmatmul.mubr.msk.f32.gmra.mrb[20].mxu1 %vm313_vm0, %v25561_v22  ;;  %18720 = vmatmul.mubr.msk.f32.gmra.mrb[52].mxu0 %vm313_vm0, %v25521_v33  ;;  %v25566_v33 = vld [vmem:[#allocation60_spill] sm:$0xff]  ;;  %v22705_v22 = vld [vmem:[%s21157_s14 + $0xc3] sm:$0xff] }
 0x17e   : > { %18322 = vmatprep.mubr.msk.f32.mxu1 %vm313_vm0, %v25562_v27  ;;  %18722 = vmatprep.mubr.msk.f32.mxu0 %vm313_vm0, %v25523_v45  ;;  %v25567_v45 = vld [vmem:[#allocation62_spill] sm:$0xff]  ;;  %v15722_v27 = vld [vmem:[%s21157_s14 + $0xd9] sm:$0xff] }
 0x181   : > { %18323 = vmatmul.mubr.msk.f32.gmra.mrb[22].mxu1 %vm313_vm0, %v25563_v31  ;;  %18723 = vmatmul.mubr.msk.f32.gmra.mrb[54].mxu0 %vm313_vm0, %v25525_v39  ;;  %v25568_v39 = vld [vmem:[#allocation63_spill] sm:$0xff] }
 0x182   : > { %18325 = vmatprep.mubr.msk.f32.mxu1 %vm313_vm0, %v25564_v35  ;;  %18725 = vmatprep.mubr.msk.f32.mxu0 %vm313_vm0, %v25526_v24  ;;  %v22466_v24 = vld [vmem:[%s21157_s14 + $0x1b4] sm:$0xff]  ;;  %v22715_v31 = vld [vmem:[%s21157_s14 + $0xcb] sm:$0xff]  ;;  %v15723_v35 = vld [vmem:[%s21157_s14 + $0xe1] sm:$0xff] }
 0x185   : > { %18326 = vmatmul.mubr.msk.f32.gmra.mrb[24].mxu1 %vm313_vm0, %v25565_v38  ;;  %18726 = vmatmul.mubr.msk.f32.gmra.mrb[56].mxu0 %vm313_vm0, %v25528_v8  ;;  %v22477_v8 = vld [vmem:[%s21157_s14 + $0x1bc] sm:$0xff] }
 0x186   : > { %18328 = vmatprep.mubr.msk.f32.mxu1 %vm313_vm0, %v25566_v33  ;;  %18728 = vmatprep.mubr.msk.f32.mxu0 %vm313_vm0, %v25529_v11  ;;  %v15162_v11 = vld [vmem:[%s21157_s14 + $0x62] sm:$0xff]  ;;  %v15724_v33 = vld [vmem:[%s21157_s14 + $0xf1] sm:$0xff] }
 0x187   : > { %v22719_v38 = vld [vmem:[%s21157_s14 + $0xdb] sm:$0xff] }
 0x189   : > { %18329 = vmatmul.mubr.msk.f32.gmra.mrb[26].mxu1 %vm313_vm0, %v25567_v45  ;;  %18729 = vmatmul.mubr.msk.f32.gmra.mrb[58].mxu0 %vm313_vm0, %v25532_v16  ;;  %v15164_v16 = vld [vmem:[%s21157_s14 + $0x7a] sm:$0xff]  ;;  %v22729_v45 = vld [vmem:[%s21157_s14 + $0xe3] sm:$0xff] }
 0x18a   : > { %18331 = vmatprep.mubr.msk.f32.mxu1 %vm313_vm0, %v25568_v39  ;;  %18731 = vmatprep.mubr.msk.f32.mxu0 %vm313_vm0, %v25533_v25  ;;  %v22492_v25 = vld [vmem:[%s25249_s1 + $0x40] sm:$0xff] }
 0x18b   : > { %v15725_v39 = vld [vmem:[%s21157_s14 + $0xf9] sm:$0xff] }
 0x18d   : > { %18332 = vmatmul.mubr.msk.f32.gmra.mrb[28].mxu1 %vm313_vm0, %v21940_v28  ;;  %18732 = vmatmul.mubr.msk.f32.gmra.mrb[60].mxu0 %vm313_vm0, %v25536_v34  ;;  %v15163_v28 = vld [vmem:[%s21157_s14 + $0x6a] sm:$0xff]  ;;  %v15165_v34 = vld [vmem:[%s21157_s14 + $0x82] sm:$0xff] }
 0x18e   : > { %18334 = vmatprep.mubr.msk.f32.mxu1 %vm313_vm0, %v22466_v24  ;;  %18734 = vmatprep.mubr.msk.f32.mxu0 %vm313_vm0, %v25537_v43  ;;  %v22508_v43 = vld [vmem:[%s25250_s2 + $0x38] sm:$0xff] }
 0x191   : > { %18335 = vmatmul.mubr.msk.f32.gmra.mrb[30].mxu1 %vm313_vm0, %v22477_v8  ;;  %18735 = vmatmul.mubr.msk.f32.gmra.mrb[62].mxu0 %vm313_vm0, %v25539_v36  ;;  %v15170_v36 = vld [vmem:[%s21157_s14 + $0xc2] sm:$0xff] }
 0x192   : > { %18339 = vmatprep.mubr.msk.f32.mxu1 %vm313_vm0, %v15162_v11  ;;  %18739 = vmatprep.mubr.msk.f32.mxu0 %vm313_vm0, %v21969_v44  ;;  %v15166_v44 = vld [vmem:[%s21157_s14 + $0x92] sm:$0xff] }
 0x193   : > { %v22733_v11 = vld [vmem:[%s21157_s14 + $0xf3] sm:$0xff] }
 0x195   : > { %18340 = vmatmul.mubr.msk.f32.vlgmr.msra.gmra.mrb[0].mxu1 %vm313_vm0, %v15163_v28  ;;  %18740 = vmatmul.mubr.msk.f32.vlgmr.msra.gmra.mrb[32].mxu0 %vm313_vm0, %v21986_v30  ;;  %v15167_v30 = vld [vmem:[%s21157_s14 + $0x9a] sm:$0xff]  ;;  %v15726_v28 = vld [vmem:[%s21157_s14 + $0x109] sm:$0xff] }
 0x196   : > { %18388 = vmatpush3.msra.mxu1 %v22342_v26  ;;  %18342 = vmatprep.mubr.msk.f32.mxu1 %vm313_vm0, %v15164_v16  ;;  %v22635_v26 = vld [vmem:[%s21157_s14 + $0x63] sm:$0xff]  ;;  %v22743_v16 = vld [vmem:[%s21157_s14 + $0xfb] sm:$0xff] }
 0x197   : > { %18742 = vmatprep.mubr.msk.f32.mxu0 %vm313_vm0, %v21989_v32  ;;  %18437 = vmatprep.subr.mxu1 %v22492_v25  ;;  %v15168_v32 = vld [vmem:[%s21157_s14 + $0xaa] sm:$0xff] }
 0x198   : > { %18788 = vmatpush3.msra.mxu0 %v22358_v48  ;;  %v15714_v48 = vld [vmem:[%s21157_s14 + $0x79] sm:$0xff] }
 0x199   : > { %18343 = vmatmul.mubr.msk.f32.gmra.mrb[2].mxu1 %vm313_vm0, %v15165_v34  ;;  %18743 = vmatmul.mubr.msk.f32.gmra.mrb[34].mxu0 %vm313_vm0, %v22001_v46  ;;  %v15169_v46 = vld [vmem:[%s21157_s14 + $0xb2] sm:$0xff] }
 0x19a   : > { %18345 = vmatprep.mubr.msk.f32.mxu1 %vm313_vm0, %v15166_v44  ;;  %18745 = vmatprep.mubr.msk.f32.mxu0 %vm313_vm0, %v22004_v47  ;;  %v15171_v47 = vld [vmem:[%s21157_s14 + $0xca] sm:$0xff]  ;;  %v15728_v44 = vld [vmem:[%s21157_s14 + $0x121] sm:$0xff] }
 0x19b   : > { %18837 = vmatprep.subr.mxu0 %v22508_v43  ;;  %v22747_v34 = vld [vmem:[%s21157_s14 + $0x10b] sm:$0xff] }
 0x19d   : > { %18346 = vmatmul.mubr.msk.f32.gmra.mrb[4].mxu1 %vm313_vm0, %v15167_v30  ;;  %18746 = vmatmul.mubr.msk.f32.gmra.mrb[36].mxu0 %vm313_vm0, %v22015_v49  ;;  %v15172_v49 = vld [vmem:[%s21157_s14 + $0xda] sm:$0xff]  ;;  %v15729_v30 = vld [vmem:[%s21157_s14 + $0x129] sm:$0xff] }
 0x19e   : > { %18348 = vmatprep.mubr.msk.f32.mxu1 %vm313_vm0, %v15168_v32  ;;  %18748 = vmatprep.mubr.msk.f32.mxu0 %vm313_vm0, %v22018_v50  ;;  %v15173_v50 = vld [vmem:[%s21157_s14 + $0xe2] sm:$0xff] }
 0x19f   : > { %v22761_v32 = vld [vmem:[%s21157_s14 + $0x123] sm:$0xff] }
 0x1a1   : > { %18349 = vmatmul.mubr.msk.f32.gmra.mrb[6].mxu1 %vm313_vm0, %v15169_v46  ;;  %18749 = vmatmul.mubr.msk.f32.gmra.mrb[38].mxu0 %vm313_vm0, %v22029_v51  ;;  %v15174_v51 = vld [vmem:[%s21157_s14 + $0xf2] sm:$0xff] }
 0x1a2   : > { %18351 = vmatprep.mubr.msk.f32.mxu1 %vm313_vm0, %v15170_v36  ;;  %18751 = vmatprep.mubr.msk.f32.mxu0 %vm313_vm0, %v22032_v52  ;;  %v15175_v52 = vld [vmem:[%s21157_s14 + $0xfa] sm:$0xff]  ;;  %v22771_v36 = vld [vmem:[%s21157_s14 + $0x12b] sm:$0xff] }
 0x1a3   : > { %v15730_v46 = vld [vmem:[%s21157_s14 + $0x139] sm:$0xff] }
 0x1a5   : > { %18352 = vmatmul.mubr.msk.f32.gmra.mrb[8].mxu1 %vm313_vm0, %v15171_v47  ;;  %18752 = vmatmul.mubr.msk.f32.gmra.mrb[40].mxu0 %vm313_vm0, %v22043_v53  ;;  %v15176_v53 = vld [vmem:[%s21157_s14 + $0x10a] sm:$0xff]  ;;  %v15731_v47 = vld [vmem:[%s21157_s14 + $0x141] sm:$0xff] }
 0x1a6   : > { %18354 = vmatprep.mubr.msk.f32.mxu1 %vm313_vm0, %v15172_v49  ;;  %18754 = vmatprep.mubr.msk.f32.mxu0 %vm313_vm0, %v22046_v54  ;;  %v15177_v54 = vld [vmem:[%s21157_s14 + $0x112] sm:$0xff]  ;;  %v22775_v49 = vld [vmem:[%s21157_s14 + $0x13b] sm:$0xff] }
 0x1a9   : > { %18355 = vmatmul.mubr.msk.f32.gmra.mrb[10].mxu1 %vm313_vm0, %v15173_v50  ;;  %18755 = vmatmul.mubr.msk.f32.gmra.mrb[42].mxu0 %vm313_vm0, %v22057_v55  ;;  %v15178_v55 = vld [vmem:[%s21157_s14 + $0x122] sm:$0xff]  ;;  %v15732_v50 = vld [vmem:[%s21157_s14 + $0x151] sm:$0xff] }
 0x1aa   : > { %18357 = vmatprep.mubr.msk.f32.mxu1 %vm313_vm0, %v15174_v51  ;;  %18757 = vmatprep.mubr.msk.f32.mxu0 %vm313_vm0, %v22060_v56  ;;  %v15179_v56 = vld [vmem:[%s21157_s14 + $0x12a] sm:$0xff] }
 0x1ab   : > { %v22785_v51 = vld [vmem:[%s21157_s14 + $0x143] sm:$0xff] }
 0x1ad   : > { %18358 = vmatmul.mubr.msk.f32.gmra.mrb[12].mxu1 %vm313_vm0, %v15175_v52  ;;  %18758 = vmatmul.mubr.msk.f32.gmra.mrb[44].mxu0 %vm313_vm0, %v22071_v57  ;;  %v15180_v57 = vld [vmem:[%s21157_s14 + $0x13a] sm:$0xff] }
 0x1ae   : > { %18360 = vmatprep.mubr.msk.f32.mxu1 %vm313_vm0, %v15176_v53  ;;  %18760 = vmatprep.mubr.msk.f32.mxu0 %vm313_vm0, %v22074_v58  ;;  %v15181_v58 = vld [vmem:[%s21157_s14 + $0x142] sm:$0xff]  ;;  %v15733_v52 = vld [vmem:[%s21157_s14 + $0x159] sm:$0xff] }
 0x1af   : > { %v22789_v53 = vld [vmem:[%s21157_s14 + $0x153] sm:$0xff] }
 0x1b1   : > { %18361 = vmatmul.mubr.msk.f32.gmra.mrb[14].mxu1 %vm313_vm0, %v15177_v54  ;;  %18761 = vmatmul.mubr.msk.f32.gmra.mrb[46].mxu0 %vm313_vm0, %v22085_v59  ;;  %v15182_v59 = vld [vmem:[%s21157_s14 + $0x152] sm:$0xff]  ;;  %v15734_v54 = vld [vmem:[%s21157_s14 + $0x169] sm:$0xff] }
 0x1b2   : > { %18363 = vmatprep.mubr.msk.f32.mxu1 %vm313_vm0, %v15178_v55  ;;  %18763 = vmatprep.mubr.msk.f32.mxu0 %vm313_vm0, %v22088_v60  ;;  %v15183_v60 = vld [vmem:[%s21157_s14 + $0x15a] sm:$0xff] }
 0x1b3   : > { %v22799_v55 = vld [vmem:[%s21157_s14 + $0x15b] sm:$0xff] }
 0x1b5   : > { %18364 = vmatmul.mubr.msk.f32.gmra.mrb[16].mxu1 %vm313_vm0, %v15179_v56  ;;  %18764 = vmatmul.mubr.msk.f32.gmra.mrb[48].mxu0 %vm313_vm0, %v22099_v61  ;;  %v15184_v61 = vld [vmem:[%s21157_s14 + $0x16a] sm:$0xff] }
 0x1b6   : > { %18366 = vmatprep.mubr.msk.f32.mxu1 %vm313_vm0, %v15180_v57  ;;  %18766 = vmatprep.mubr.msk.f32.mxu0 %vm313_vm0, %v22102_v62  ;;  %v15185_v62 = vld [vmem:[%s21157_s14 + $0x172] sm:$0xff] }
 0x1b7   : > { %v15735_v56 = vld [vmem:[%s21157_s14 + $0x171] sm:$0xff] }
 0x1b8   : > { %v22803_v57 = vld [vmem:[%s21157_s14 + $0x16b] sm:$0xff] }
 0x1b9   : > { %18367 = vmatmul.mubr.msk.f32.gmra.mrb[18].mxu1 %vm313_vm0, %v15181_v58  ;;  %18767 = vmatmul.mubr.msk.f32.gmra.mrb[50].mxu0 %vm313_vm0, %v22113_v63  ;;  %v15186_v63 = vld [vmem:[%s21157_s14 + $0x182] sm:$0xff] }
 0x1ba   : > { %18369 = vmatprep.mubr.msk.f32.mxu1 %vm313_vm0, %v15182_v59  ;;  %18769 = vmatprep.mubr.msk.f32.mxu0 %vm313_vm0, %v22116_v0  ;;  %v15187_v0 = vld [vmem:[%s21157_s14 + $0x18a] sm:$0xff]  ;;  %v15736_v58 = vld [vmem:[%s21157_s14 + $0x181] sm:$0xff]  ;;  %v22813_v59 = vld [vmem:[%s21157_s14 + $0x173] sm:$0xff] }
 0x1bd   : > { %18370 = vmatmul.mubr.msk.f32.gmra.mrb[20].mxu1 %vm313_vm0, %v15183_v60  ;;  %18770 = vmatmul.mubr.msk.f32.gmra.mrb[52].mxu0 %vm313_vm0, %v22127_v1  ;;  %v15188_v1 = vld [vmem:[%s21157_s14 + $0x19a] sm:$0xff]  ;;  %v15737_v60 = vld [vmem:[%s21157_s14 + $0x189] sm:$0xff] }
 0x1be   : > { %18372 = vmatprep.mubr.msk.f32.mxu1 %vm313_vm0, %v15184_v61  ;;  %18772 = vmatprep.mubr.msk.f32.mxu0 %vm313_vm0, %v22130_v2  ;;  %v15189_v2 = vld [vmem:[%s21157_s14 + $0x1a2] sm:$0xff] }
 0x1bf   : > { %v22817_v61 = vld [vmem:[%s21157_s14 + $0x183] sm:$0xff] }
 0x1c1   : > { %18373 = vmatmul.mubr.msk.f32.gmra.mrb[22].mxu1 %vm313_vm0, %v15185_v62  ;;  %18773 = vmatmul.mubr.msk.f32.gmra.mrb[54].mxu0 %vm313_vm0, %v22141_v3  ;;  %v22607_v3 = vld [vmem:[%s21157_s14 + $0x19d] sm:$0xff]  ;;  %v25569_v62 = vld [vmem:[#allocation3_spill] sm:$0xff] }
 0x1c2   : > { %18375 = vmatprep.mubr.msk.f32.mxu1 %vm313_vm0, %v15186_v63  ;;  %18775 = vmatprep.mubr.msk.f32.mxu0 %vm313_vm0, %v22144_v5  ;;  %v22617_v5 = vld [vmem:[%s21157_s14 + $0x1a5] sm:$0xff] }
 0x1c3   : > { %v22827_v63 = vld [vmem:[%s21157_s14 + $0x18b] sm:$0xff] }
 0x1c5   : > { %18376 = vmatmul.mubr.msk.f32.gmra.mrb[24].mxu1 %vm313_vm0, %v15187_v0  ;;  %18776 = vmatmul.mubr.msk.f32.gmra.mrb[56].mxu0 %vm313_vm0, %v22155_v7  ;;  %v15192_v7 = vld [vmem:[%s21157_s14 + $0x1ca] sm:$0xff]  ;;  %v22830_v0 = vld [vmem:[%s21157_s14 + $0x19b] sm:$0xff] }
 0x1c6   : > { %18378 = vmatprep.mubr.msk.f32.mxu1 %vm313_vm0, %v15188_v1  ;;  %18778 = vmatprep.mubr.msk.f32.mxu0 %vm313_vm0, %v22161_v12  ;;  %v22621_v12 = vld [vmem:[%s21157_s14 + $0x1b5] sm:$0xff]  ;;  %v25570_v1 = vld [vmem:[#allocation38_spill] sm:$0xff] }
 0x1c9   : > { %18379 = vmatmul.mubr.msk.f32.gmra.mrb[26].mxu1 %vm313_vm0, %v15189_v2  ;;  %18779 = vmatmul.mubr.msk.f32.gmra.mrb[58].mxu0 %vm313_vm0, %v22175_v41  ;;  %v22632_v41 = vld [vmem:[%s21157_s14 + $0x1bd] sm:$0xff] }
 0x1ca   : > { %18381 = vmatprep.mubr.msk.f32.mxu1 %vm313_vm0, %v22158_v9  ;;  %18781 = vmatprep.mubr.msk.f32.mxu0 %vm313_vm0, %v22607_v3  ;;  %v15193_v9 = vld [vmem:[%s21157_s14 + $0x1d2] sm:$0xff] }
 0x1cb   : > { %v25571_v2 = vld [vmem:[#allocation4_spill] sm:$0xff] }
 0x1cd   : > { %18382 = vmatmul.mubr.msk.f32.gmra.mrb[28].mxu1 %vm313_vm0, %v22172_v40  ;;  %18782 = vmatmul.mubr.msk.f32.gmra.mrb[60].mxu0 %vm313_vm0, %v22617_v5  ;;  %v22645_v40 = vld [vmem:[%s21157_s14 + $0x6b] sm:$0xff] }
 0x1ce   : > { %18384 = vmatprep.mubr.msk.f32.mxu1 %vm313_vm0, %v15192_v7  ;;  %18784 = vmatprep.mubr.msk.f32.mxu0 %vm313_vm0, %v22621_v12  ;;  %v22841_v7 = vld [vmem:[%s21157_s14 + $0x1a3] sm:$0xff] }
 0x1d1   : > { %18385 = vmatmul.mubr.msk.f32.gmra.mrb[30].mxu1 %vm313_vm0, %v15193_v9  ;;  %18785 = vmatmul.mubr.msk.f32.gmra.mrb[62].mxu0 %vm313_vm0, %v22632_v41  ;;  %v22844_v9 = vld [vmem:[%s21157_s14 + $0x1b3] sm:$0xff] }
 0x1d2   : > { %18389 = vmatprep.mubr.msk.f32.mxu1 %vm313_vm0, %v22635_v26  ;;  %18789 = vmatprep.mubr.msk.f32.mxu0 %vm313_vm0, %v15714_v48  ;;  %v15742_v48 = vld [vmem:[%s21157_s14 + $0x1c9] sm:$0xff] }
 0x1d5   : > { %18390 = vmatmul.mubr.msk.f32.vlgmr.msra.gmra.mrb[0].mxu1 %vm313_vm0, %v22645_v40  ;;  %18790 = vmatmul.mubr.msk.f32.vlgmr.msra.gmra.mrb[32].mxu0 %vm313_vm0, %v15715_v42  ;;  %v25572_v42 = vld [vmem:[#allocation40_spill] sm:$0xff] }
 0x1d6   : > { %18438 = vmatpush3.msra.mxu1 %v22492_v25  ;;  %18392 = vmatprep.mubr.msk.f32.mxu1 %vm313_vm0, %v22649_v20  ;;  %v15727_v25 = vld [vmem:[%s21157_s14 + $0x111] sm:$0xff] }
 0x1d7   : > { %18792 = vmatprep.mubr.msk.f32.mxu0 %vm313_vm0, %v15716_v14  ;;  %18838 = vmatpush3.msra.mxu0 %v22508_v43  ;;  %v22757_v43 = vld [vmem:[%s21157_s14 + $0x113] sm:$0xff]  ;;  %v22855_v14 = vld [vmem:[%s21157_s14 + $0x1bb] sm:$0xff] }
 0x1d8   : > { %18937 = vmatprep.subr.mxu1 %v22658_v4  ;;  %18887 = vmatprep.subr.mxu0 %v22663_v21 }
 0x1d9   : > { %18393 = vmatmul.mubr.msk.f32.gmra.mrb[2].mxu1 %vm313_vm0, %v22669_v37  ;;  %18793 = vmatmul.mubr.msk.f32.gmra.mrb[34].mxu0 %vm313_vm0, %v15717_v29  ;;  %v15743_v29 = vld [vmem:[%s21157_s14 + $0x1d1] sm:$0xff] }
 0x1da   : > { %18395 = vmatprep.mubr.msk.f32.mxu1 %vm313_vm0, %v22674_v23  ;;  %18795 = vmatprep.mubr.msk.f32.mxu0 %vm313_vm0, %v15718_v17  ;;  %v22859_v17 = vld [vmem:[%s21157_s14 + $0x1cb] sm:$0xff] }
 0x1dd   : > { %18396 = vmatmul.mubr.msk.f32.gmra.mrb[4].mxu1 %vm313_vm0, %v22687_v18  ;;  %18796 = vmatmul.mubr.msk.f32.gmra.mrb[36].mxu0 %vm313_vm0, %v15719_v19  ;;  %v15744_v19 = vld [vmem:[%s21157_s14 + $0x1e1] sm:$0xff] }
 0x1de   : > { %18398 = vmatprep.mubr.msk.f32.mxu1 %vm313_vm0, %v22691_v6  ;;  %18798 = vmatprep.mubr.msk.f32.mxu0 %vm313_vm0, %v15720_v10  ;;  %v22869_v10 = vld [vmem:[%s21157_s14 + $0x1d3] sm:$0xff] }
 0x1e1   : > { %18399 = vmatmul.mubr.msk.f32.gmra.mrb[6].mxu1 %vm313_vm0, %v22701_v13  ;;  %18799 = vmatmul.mubr.msk.f32.gmra.mrb[38].mxu0 %vm313_vm0, %v15721_v15  ;;  %v15745_v15 = vld [vmem:[%s21157_s14 + $0x1e9] sm:$0xff] }
 0x1e2   : > { %18401 = vmatprep.mubr.msk.f32.mxu1 %vm313_vm0, %v22705_v22  ;;  %18801 = vmatprep.mubr.msk.f32.mxu0 %vm313_vm0, %v15722_v27  ;;  %v15292_v27 = vld [vmem:[%s21157_s14 + $0x64] sm:$0xff] }
 0x1e5   : > { %18402 = vmatmul.mubr.msk.f32.gmra.mrb[8].mxu1 %vm313_vm0, %v22715_v31  ;;  %18802 = vmatmul.mubr.msk.f32.gmra.mrb[40].mxu0 %vm313_vm0, %v15723_v35  ;;  %v15293_v35 = vld [vmem:[%s21157_s14 + $0x6c] sm:$0xff] }
 0x1e6   : > { %18404 = vmatprep.mubr.msk.f32.mxu1 %vm313_vm0, %v22719_v38  ;;  %18804 = vmatprep.mubr.msk.f32.mxu0 %vm313_vm0, %v15724_v33  ;;  %v15294_v33 = vld [vmem:[%s21157_s14 + $0x7c] sm:$0xff] }
 0x1e9   : > { %18405 = vmatmul.mubr.msk.f32.gmra.mrb[10].mxu1 %vm313_vm0, %v22729_v45  ;;  %18805 = vmatmul.mubr.msk.f32.gmra.mrb[42].mxu0 %vm313_vm0, %v15725_v39  ;;  %v22887_v39 = vld [vmem:[%s25251_s3] sm:$0xff] }
 0x1ea   : > { %18407 = vmatprep.mubr.msk.f32.mxu1 %vm313_vm0, %v22733_v11  ;;  %18807 = vmatprep.mubr.msk.f32.mxu0 %vm313_vm0, %v15726_v28  ;;  %v15295_v28 = vld [vmem:[%s21157_s14 + $0x84] sm:$0xff] }
 0x1ed   : > { %18408 = vmatmul.mubr.msk.f32.gmra.mrb[12].mxu1 %vm313_vm0, %v22743_v16  ;;  %18808 = vmatmul.mubr.msk.f32.gmra.mrb[44].mxu0 %vm313_vm0, %v15727_v25  ;;  %v15296_v25 = vld [vmem:[%s21157_s14 + $0x94] sm:$0xff] }
 0x1ee   : > { %18410 = vmatprep.mubr.msk.f32.mxu1 %vm313_vm0, %v22747_v34  ;;  %18810 = vmatprep.mubr.msk.f32.mxu0 %vm313_vm0, %v15728_v44  ;;  %v15298_v44 = vld [vmem:[%s21157_s14 + $0xac] sm:$0xff] }
 0x1f1   : > { %18411 = vmatmul.mubr.msk.f32.gmra.mrb[14].mxu1 %vm313_vm0, %v22757_v43  ;;  %18811 = vmatmul.mubr.msk.f32.gmra.mrb[46].mxu0 %vm313_vm0, %v15729_v30  ;;  %v15300_v30 = vld [vmem:[%s21157_s14 + $0xc4] sm:$0xff] }
 0x1f2   : > { %18413 = vmatprep.mubr.msk.f32.mxu1 %vm313_vm0, %v22761_v32  ;;  %18813 = vmatprep.mubr.msk.f32.mxu0 %vm313_vm0, %v15730_v46  ;;  %v15301_v46 = vld [vmem:[%s21157_s14 + $0xcc] sm:$0xff] }
 0x1f5   : > { %18414 = vmatmul.mubr.msk.f32.gmra.mrb[16].mxu1 %vm313_vm0, %v22771_v36  ;;  %18814 = vmatmul.mubr.msk.f32.gmra.mrb[48].mxu0 %vm313_vm0, %v15731_v47  ;;  %v15302_v47 = vld [vmem:[%s21157_s14 + $0xdc] sm:$0xff] }
 0x1f6   : > { %18416 = vmatprep.mubr.msk.f32.mxu1 %vm313_vm0, %v22775_v49  ;;  %18816 = vmatprep.mubr.msk.f32.mxu0 %vm313_vm0, %v15732_v50  ;;  %v15303_v50 = vld [vmem:[%s21157_s14 + $0xe4] sm:$0xff] }
 0x1f9   : > { %18417 = vmatmul.mubr.msk.f32.gmra.mrb[18].mxu1 %vm313_vm0, %v22785_v51  ;;  %18817 = vmatmul.mubr.msk.f32.gmra.mrb[50].mxu0 %vm313_vm0, %v15733_v52  ;;  %v15304_v52 = vld [vmem:[%s21157_s14 + $0xf4] sm:$0xff] }
 0x1fa   : > { %18419 = vmatprep.mubr.msk.f32.mxu1 %vm313_vm0, %v22789_v53  ;;  %18819 = vmatprep.mubr.msk.f32.mxu0 %vm313_vm0, %v15734_v54  ;;  %v15305_v54 = vld [vmem:[%s21157_s14 + $0xfc] sm:$0xff] }
 0x1fd   : > { %18420 = vmatmul.mubr.msk.f32.gmra.mrb[20].mxu1 %vm313_vm0, %v22799_v55  ;;  %18820 = vmatmul.mubr.msk.f32.gmra.mrb[52].mxu0 %vm313_vm0, %v15735_v56  ;;  %v15306_v56 = vld [vmem:[%s21157_s14 + $0x10c] sm:$0xff] }
 0x1fe   : > { %18422 = vmatprep.mubr.msk.f32.mxu1 %vm313_vm0, %v22803_v57  ;;  %18822 = vmatprep.mubr.msk.f32.mxu0 %vm313_vm0, %v15736_v58  ;;  %v15307_v58 = vld [vmem:[%s21157_s14 + $0x114] sm:$0xff] }
 0x201   : > { %18423 = vmatmul.mubr.msk.f32.gmra.mrb[22].mxu1 %vm313_vm0, %v22813_v59  ;;  %18823 = vmatmul.mubr.msk.f32.gmra.mrb[54].mxu0 %vm313_vm0, %v15737_v60  ;;  %v15308_v60 = vld [vmem:[%s21157_s14 + $0x124] sm:$0xff] }
 0x202   : > { %18425 = vmatprep.mubr.msk.f32.mxu1 %vm313_vm0, %v22817_v61  ;;  %18825 = vmatprep.mubr.msk.f32.mxu0 %vm313_vm0, %v25569_v62  ;;  %v15309_v62 = vld [vmem:[%s21157_s14 + $0x12c] sm:$0xff] }
 0x205   : > { %18426 = vmatmul.mubr.msk.f32.gmra.mrb[24].mxu1 %vm313_vm0, %v22827_v63  ;;  %18826 = vmatmul.mubr.msk.f32.gmra.mrb[56].mxu0 %vm313_vm0, %v25570_v1  ;;  %v15310_v1 = vld [vmem:[%s21157_s14 + $0x13c] sm:$0xff] }
 0x206   : > { %18428 = vmatprep.mubr.msk.f32.mxu1 %vm313_vm0, %v22830_v0  ;;  %18828 = vmatprep.mubr.msk.f32.mxu0 %vm313_vm0, %v25571_v2  ;;  %v15311_v2 = vld [vmem:[%s21157_s14 + $0x144] sm:$0xff] }
 0x209   : > { %18429 = vmatmul.mubr.msk.f32.gmra.mrb[26].mxu1 %vm313_vm0, %v22841_v7  ;;  %18829 = vmatmul.mubr.msk.f32.gmra.mrb[58].mxu0 %vm313_vm0, %v25572_v42  ;;  %v15313_v42 = vld [vmem:[%s21157_s14 + $0x15c] sm:$0xff] }
 0x20a   : > { %18431 = vmatprep.mubr.msk.f32.mxu1 %vm313_vm0, %v22844_v9  ;;  %18831 = vmatprep.mubr.msk.f32.mxu0 %vm313_vm0, %v15742_v48  ;;  %v15312_v48 = vld [vmem:[%s21157_s14 + $0x154] sm:$0xff] }
 0x20d   : > { %18432 = vmatmul.mubr.msk.f32.gmra.mrb[28].mxu1 %vm313_vm0, %v22855_v14  ;;  %18832 = vmatmul.mubr.msk.f32.gmra.mrb[60].mxu0 %vm313_vm0, %v15743_v29  ;;  %v15314_v29 = vld [vmem:[%s21157_s14 + $0x16c] sm:$0xff] }
 0x20e   : > { %18434 = vmatprep.mubr.msk.f32.mxu1 %vm313_vm0, %v22859_v17  ;;  %18834 = vmatprep.mubr.msk.f32.mxu0 %vm313_vm0, %v15744_v19  ;;  %v15315_v19 = vld [vmem:[%s21157_s14 + $0x174] sm:$0xff] }
 0x211   : > { %18435 = vmatmul.mubr.msk.f32.gmra.mrb[30].mxu1 %vm313_vm0, %v22869_v10  ;;  %18835 = vmatmul.mubr.msk.f32.gmra.mrb[62].mxu0 %vm313_vm0, %v15745_v15  ;;  %v15316_v15 = vld [vmem:[%s21157_s14 + $0x184] sm:$0xff] }
 0x212   : > { %18439 = vmatprep.mubr.msk.f32.mxu1 %vm313_vm0, %v15292_v27  ;;  %18839 = vmatprep.mubr.msk.f32.mxu0 %vm313_vm0, %v22649_v20  ;;  %v15317_v27 = vld [vmem:[%s21157_s14 + $0x18c] sm:$0xff] }
 0x215   : > { %18440 = vmatmul.mubr.msk.f32.vlgmr.msra.gmra.mrb[0].mxu1 %vm313_vm0, %v15293_v35  ;;  %18840 = vmatmul.mubr.msk.f32.vlgmr.msra.gmra.mrb[32].mxu0 %vm313_vm0, %v22669_v37  ;;  %v15318_v35 = vld [vmem:[%s21157_s14 + $0x19c] sm:$0xff] }
 0x216   : > { %18938 = vmatpush3.msra.mxu1 %v22658_v4  ;;  %18442 = vmatprep.mubr.msk.f32.mxu1 %vm313_vm0, %v15294_v33  ;;  %v15297_v4 = vld [vmem:[%s21157_s14 + $0x9c] sm:$0xff] }
 0x217   : > { %18842 = vmatprep.mubr.msk.f32.mxu0 %vm313_vm0, %v22674_v23  ;;  %18888 = vmatpush3.msra.mxu0 %v22663_v21  ;;  %v15299_v21 = vld [vmem:[%s21157_s14 + $0xb4] sm:$0xff] }
 0x218   : > { %18987 = vmatprep.subr.mxu1 %v22887_v39  ;;  %v7382_v33 = vld [vmem:[%s21157_s14 + $0x1b] sm:$0xff] }
 0x219   : > { %18443 = vmatmul.mubr.msk.f32.gmra.mrb[2].mxu1 %vm313_vm0, %v15295_v28  ;;  %18843 = vmatmul.mubr.msk.f32.gmra.mrb[34].mxu0 %vm313_vm0, %v22687_v18  ;;  %v23022_v28 = vld [vmem:[%s25251_s3 + $0x10] sm:$0xff] }
 0x21a   : > { %18445 = vmatprep.mubr.msk.f32.mxu1 %vm313_vm0, %v15296_v25  ;;  %18845 = vmatprep.mubr.msk.f32.mxu0 %vm313_vm0, %v22691_v6  ;;  %v15847_v25 = vld [vmem:[%s21157_s14 + $0x9d] sm:$0xff] }
 0x21d   : > { %18446 = vmatmul.mubr.msk.f32.gmra.mrb[4].mxu1 %vm313_vm0, %v15297_v4  ;;  %18846 = vmatmul.mubr.msk.f32.gmra.mrb[36].mxu0 %vm313_vm0, %v22701_v13  ;;  %v7383_v4 = vld [vmem:[%s21157_s14 + $0x23] sm:$0xff] }
 0x21e   : > { %18448 = vmatprep.mubr.msk.f32.mxu1 %vm313_vm0, %v15298_v44  ;;  %18848 = vmatprep.mubr.msk.f32.mxu0 %vm313_vm0, %v22705_v22  ;;  %v15848_v44 = vld [vmem:[%s21157_s14 + $0xad] sm:$0xff] }
 0x221   : > { %18449 = vmatmul.mubr.msk.f32.gmra.mrb[6].mxu1 %vm313_vm0, %v15299_v21  ;;  %18849 = vmatmul.mubr.msk.f32.gmra.mrb[38].mxu0 %vm313_vm0, %v22715_v31  ;;  %v7384_v21 = vld [vmem:[%s21157_s14 + $0x33] sm:$0xff] }
 0x222   : > { %18451 = vmatprep.mubr.msk.f32.mxu1 %vm313_vm0, %v15300_v30  ;;  %18851 = vmatprep.mubr.msk.f32.mxu0 %vm313_vm0, %v22719_v38  ;;  %v7385_v30 = vld [vmem:[%s21157_s14 + $0x3b] sm:$0xff] }
 0x225   : > { %18452 = vmatmul.mubr.msk.f32.gmra.mrb[8].mxu1 %vm313_vm0, %v15301_v46  ;;  %18852 = vmatmul.mubr.msk.f32.gmra.mrb[40].mxu0 %vm313_vm0, %v22729_v45  ;;  %v15850_v46 = vld [vmem:[%s21157_s14 + $0xc5] sm:$0xff] }
 0x226   : > { %18454 = vmatprep.mubr.msk.f32.mxu1 %vm313_vm0, %v15302_v47  ;;  %18854 = vmatprep.mubr.msk.f32.mxu0 %vm313_vm0, %v22733_v11  ;;  %v7386_v47 = vld [vmem:[%s21157_s14 + $0x4b] sm:$0xff] }
 0x229   : > { %18455 = vmatmul.mubr.msk.f32.gmra.mrb[10].mxu1 %vm313_vm0, %v15303_v50  ;;  %18855 = vmatmul.mubr.msk.f32.gmra.mrb[42].mxu0 %vm313_vm0, %v22743_v16  ;;  %v15851_v50 = vld [vmem:[%s21157_s14 + $0xcd] sm:$0xff] }
 0x22a   : > { %18457 = vmatprep.mubr.msk.f32.mxu1 %vm313_vm0, %v15304_v52  ;;  %18857 = vmatprep.mubr.msk.f32.mxu0 %vm313_vm0, %v22747_v34  ;;  %v7387_v52 = vld [vmem:[%s21157_s14 + $0x53] sm:$0xff] }
 0x22d   : > { %18458 = vmatmul.mubr.msk.f32.gmra.mrb[12].mxu1 %vm313_vm0, %v15305_v54  ;;  %18858 = vmatmul.mubr.msk.f32.gmra.mrb[44].mxu0 %vm313_vm0, %v22757_v43  ;;  %v15852_v54 = vld [vmem:[%s21157_s14 + $0xdd] sm:$0xff] }
 0x22e   : > { %18460 = vmatprep.mubr.msk.f32.mxu1 %vm313_vm0, %v15306_v56  ;;  %18860 = vmatprep.mubr.msk.f32.mxu0 %vm313_vm0, %v22761_v32  ;;  %v15853_v56 = vld [vmem:[%s21157_s14 + $0xe5] sm:$0xff] }
 0x231   : > { %18461 = vmatmul.mubr.msk.f32.gmra.mrb[14].mxu1 %vm313_vm0, %v15307_v58  ;;  %18861 = vmatmul.mubr.msk.f32.gmra.mrb[46].mxu0 %vm313_vm0, %v22771_v36  ;;  %v23055_v58 = vpop.f32.mrb[0].mxu0 }
 0x232   : > { %18463 = vmatprep.mubr.msk.f32.mxu1 %vm313_vm0, %v15308_v60  ;;  %18863 = vmatprep.mubr.msk.f32.mxu0 %vm313_vm0, %v22775_v49  ;;  %25573 = vst [vmem:[#allocation5_spill] sm:$0xff] %v23055_v58  ;;  %v15854_v60 = vld [vmem:[%s21157_s14 + $0xf5] sm:$0xff] }
 0x235   : > { %18464 = vmatmul.mubr.msk.f32.gmra.mrb[16].mxu1 %vm313_vm0, %v15309_v62  ;;  %18864 = vmatmul.mubr.msk.f32.gmra.mrb[48].mxu0 %vm313_vm0, %v22785_v51  ;;  %v23061_v62 = vpop.f32.mrb[1].mxu0 }
 0x236   : > { %18466 = vmatprep.mubr.msk.f32.mxu1 %vm313_vm0, %v15310_v1  ;;  %18866 = vmatprep.mubr.msk.f32.mxu0 %vm313_vm0, %v22789_v53  ;;  %25574 = vst [vmem:[#allocation42_spill] sm:$0xff] %v23061_v62  ;;  %v15856_v1 = vld [vmem:[%s21157_s14 + $0x10d] sm:$0xff] }
 0x239   : > { %18467 = vmatmul.mubr.msk.f32.gmra.mrb[18].mxu1 %vm313_vm0, %v15311_v2  ;;  %18867 = vmatmul.mubr.msk.f32.gmra.mrb[50].mxu0 %vm313_vm0, %v22799_v55  ;;  %v23071_v2 = vpop.f32.mrb[2].mxu0 }
 0x23a   : > { %18469 = vmatprep.mubr.msk.f32.mxu1 %vm313_vm0, %v15312_v48  ;;  %18869 = vmatprep.mubr.msk.f32.mxu0 %vm313_vm0, %v22803_v57  ;;  %25575 = vst [vmem:[#allocation6_spill] sm:$0xff] %v23071_v2  ;;  %v23077_v48 = vpop.f32.mrb[3].mxu0  ;;  %v23505_v2 = vld [vmem:[%s21157_s14 + $0x13e] sm:$0xff] }
 0x23b   : > { %25576 = vst [vmem:[#allocation44_spill] sm:$0xff] %v23077_v48  ;;  %v23502_v48 = vld [vmem:[%s21157_s14 + $0x12e] sm:$0xff]  ;;  %25626 = vst [vmem:[#allocation57_spill] sm:$0xff] %v23505_v2 }
 0x23c   : > { %25625 = vst [vmem:[#allocation55_spill] sm:$0xff] %v23502_v48 }
 0x23d   : > { %18470 = vmatmul.mubr.msk.f32.gmra.mrb[20].mxu1 %vm313_vm0, %v15313_v42  ;;  %18870 = vmatmul.mubr.msk.f32.gmra.mrb[52].mxu0 %vm313_vm0, %v22813_v59  ;;  %v23083_v42 = vpop.f32.mrb[4].mxu0 }
 0x23e   : > { %18472 = vmatprep.mubr.msk.f32.mxu1 %vm313_vm0, %v15314_v29  ;;  %18872 = vmatprep.mubr.msk.f32.mxu0 %vm313_vm0, %v22817_v61  ;;  %v15319_v61 = vld [vmem:[%s21157_s14 + $0x1a4] sm:$0xff]  ;;  %25577 = vst [vmem:[#allocation7_spill] sm:$0xff] %v23083_v42 }
 0x23f   : > { %v15860_v29 = vld [vmem:[%s21157_s14 + $0x13d] sm:$0xff] }
 0x241   : > { %18473 = vmatmul.mubr.msk.f32.gmra.mrb[22].mxu1 %vm313_vm0, %v15315_v19  ;;  %18873 = vmatmul.mubr.msk.f32.gmra.mrb[54].mxu0 %vm313_vm0, %v22827_v63  ;;  %v15322_v63 = vld [vmem:[%s21157_s14 + $0x1cc] sm:$0xff] }
 0x242   : > { %18475 = vmatprep.mubr.msk.f32.mxu1 %vm313_vm0, %v15316_v15  ;;  %18875 = vmatprep.mubr.msk.f32.mxu0 %vm313_vm0, %v22830_v0  ;;  %v15809_v0 = vld [vmem:[%s21157_s14 + $0x1e3] sm:$0xff]  ;;  %v15862_v15 = vld [vmem:[%s21157_s14 + $0x155] sm:$0xff] }
 0x245   : > { %18476 = vmatmul.mubr.msk.f32.gmra.mrb[24].mxu1 %vm313_vm0, %v15317_v27  ;;  %18876 = vmatmul.mubr.msk.f32.gmra.mrb[56].mxu0 %vm313_vm0, %v22841_v7  ;;  %v15810_v7 = vld [vmem:[%s21157_s14 + $0x1eb] sm:$0xff] }
 0x246   : > { %18478 = vmatprep.mubr.msk.f32.mxu1 %vm313_vm0, %v15318_v35  ;;  %18878 = vmatprep.mubr.msk.f32.mxu0 %vm313_vm0, %v22844_v9  ;;  %v15844_v9 = vld [vmem:[%s21157_s14 + $0x7d] sm:$0xff]  ;;  %v15864_v35 = vld [vmem:[%s21157_s14 + $0x16d] sm:$0xff] }
 0x249   : > { %18479 = vmatmul.mubr.msk.f32.gmra.mrb[26].mxu1 %vm313_vm0, %v15319_v61  ;;  %18879 = vmatmul.mubr.msk.f32.gmra.mrb[58].mxu0 %vm313_vm0, %v22855_v14  ;;  %v7380_v14 = vld [vmem:[%s21157_s14 + $0x3] sm:$0xff] }
 0x24a   : > { %18481 = vmatprep.mubr.msk.f32.mxu1 %vm313_vm0, %v22466_v24  ;;  %18881 = vmatprep.mubr.msk.f32.mxu0 %vm313_vm0, %v22859_v17  ;;  %v15323_v24 = vld [vmem:[%s21157_s14 + $0x1d4] sm:$0xff]  ;;  %v7381_v17 = vld [vmem:[%s21157_s14 + $0xb] sm:$0xff] }
 0x24d   : > { %18482 = vmatmul.mubr.msk.f32.gmra.mrb[28].mxu1 %vm313_vm0, %v22477_v8  ;;  %18882 = vmatmul.mubr.msk.f32.gmra.mrb[60].mxu0 %vm313_vm0, %v22869_v10  ;;  %v15845_v8 = vld [vmem:[%s21157_s14 + $0x85] sm:$0xff]  ;;  %v15846_v10 = vld [vmem:[%s21157_s14 + $0x95] sm:$0xff] }
 0x24e   : > { %18484 = vmatprep.mubr.msk.f32.mxu1 %vm313_vm0, %v15322_v63  ;;  %18884 = vmatprep.mubr.msk.f32.mxu0 %vm313_vm0, %v15809_v0 }
 0x251   : > { %18485 = vmatmul.mubr.msk.f32.gmra.mrb[30].mxu1 %vm313_vm0, %v15323_v24  ;;  %18885 = vmatmul.mubr.msk.f32.gmra.mrb[62].mxu0 %vm313_vm0, %v15810_v7 }
 0x252   : > { %18889 = vmatprep.mubr.msk.f32.mxu0 %vm313_vm0, %v15844_v9  ;;  %18939 = vmatprep.mubr.msk.f32.mxu1 %vm313_vm0, %v7380_v14  ;;  %v23201_v14 = vld [vmem:[%s25251_s3 + $0x18] sm:$0xff] }
 0x255   : > { %18890 = vmatmul.mubr.msk.f32.vlgmr.msra.gmra.mrb[32].mxu0 %vm313_vm0, %v15845_v8  ;;  %18940 = vmatmul.mubr.msk.f32.vlgmr.msra.gmra.mrb[32].mxu1 %vm313_vm0, %v7381_v17 }
 0x256   : > { %18988 = vmatpush3.msra.mxu1 %v22887_v39  ;;  %18892 = vmatprep.mubr.msk.f32.mxu0 %vm313_vm0, %v15846_v10  ;;  %v15849_v39 = vld [vmem:[%s21157_s14 + $0xb5] sm:$0xff] }
 0x257   : > { %18942 = vmatprep.mubr.msk.f32.mxu1 %vm313_vm0, %v7382_v33  ;;  %19037 = vmatprep.subr.mxu1 %v23022_v28  ;;  %v7351_v10 = vld [vmem:[%s21157_s14 + $0x30] sm:$0xff] }
 0x259   : > { %18893 = vmatmul.mubr.msk.f32.gmra.mrb[34].mxu0 %vm313_vm0, %v15847_v25  ;;  %18943 = vmatmul.mubr.msk.f32.gmra.mrb[34].mxu1 %vm313_vm0, %v7383_v4  ;;  %v7352_v25 = vld [vmem:[%s21157_s14 + $0x38] sm:$0xff] }
 0x25a   : > { %18895 = vmatprep.mubr.msk.f32.mxu0 %vm313_vm0, %v15848_v44  ;;  %18945 = vmatprep.mubr.msk.f32.mxu1 %vm313_vm0, %v7384_v21  ;;  %v23229_v21 = vld [vmem:[%s21157_s14 + $0x50] sm:$0xff] }
 0x25d   : > { %18896 = vmatmul.mubr.msk.f32.gmra.mrb[36].mxu0 %vm313_vm0, %v15849_v39  ;;  %18946 = vmatmul.mubr.msk.f32.gmra.mrb[36].mxu1 %vm313_vm0, %v7385_v30  ;;  %v23234_v30 = vld [vmem:[%s21157_s14 + $0x60] sm:$0xff] }
 0x25e   : > { %18898 = vmatprep.mubr.msk.f32.mxu0 %vm313_vm0, %v15850_v46  ;;  %18948 = vmatprep.mubr.msk.f32.mxu1 %vm313_vm0, %v7386_v47  ;;  %v23243_v47 = vld [vmem:[%s21157_s14 + $0x68] sm:$0xff] }
 0x261   : > { %18899 = vmatmul.mubr.msk.f32.gmra.mrb[38].mxu0 %vm313_vm0, %v15851_v50  ;;  %18949 = vmatmul.mubr.msk.f32.gmra.mrb[38].mxu1 %vm313_vm0, %v7387_v52  ;;  %v23248_v52 = vld [vmem:[%s21157_s14 + $0x78] sm:$0xff] }
 0x262   : > { %18901 = vmatprep.mubr.msk.f32.mxu0 %vm313_vm0, %v15852_v54  ;;  %18951 = vmatprep.mubr.msk.f32.mxu1 %vm313_vm0, %v22635_v26  ;;  %v15855_v26 = vld [vmem:[%s21157_s14 + $0xfd] sm:$0xff] }
 0x263   : > { %v23255_v54 = vld [vmem:[%s21157_s14 + $0x80] sm:$0xff] }
 0x265   : > { %18902 = vmatmul.mubr.msk.f32.gmra.mrb[40].mxu0 %vm313_vm0, %v15853_v56  ;;  %18952 = vmatmul.mubr.msk.f32.gmra.mrb[40].mxu1 %vm313_vm0, %v22645_v40  ;;  %v15857_v40 = vld [vmem:[%s21157_s14 + $0x115] sm:$0xff] }
 0x266   : > { %18904 = vmatprep.mubr.msk.f32.mxu0 %vm313_vm0, %v15854_v60  ;;  %18954 = vmatprep.mubr.msk.f32.mxu1 %vm313_vm0, %v22649_v20  ;;  %v15858_v20 = vld [vmem:[%s21157_s14 + $0x125] sm:$0xff]  ;;  %v23258_v56 = vld [vmem:[%s21157_s14 + $0x90] sm:$0xff]  ;;  %v23265_v60 = vld [vmem:[%s21157_s14 + $0x98] sm:$0xff] }
 0x267   : > { %25605 = vst [vmem:[#allocation26_spill] sm:$0xff] %v23258_v56  ;;  %25606 = vst [vmem:[#allocation27_spill] sm:$0xff] %v23265_v60 }
 0x269   : > { %18905 = vmatmul.mubr.msk.f32.gmra.mrb[42].mxu0 %vm313_vm0, %v15855_v26  ;;  %18955 = vmatmul.mubr.msk.f32.gmra.mrb[42].mxu1 %vm313_vm0, %v22669_v37  ;;  %v15859_v37 = vld [vmem:[%s21157_s14 + $0x12d] sm:$0xff] }
 0x26a   : > { %18907 = vmatprep.mubr.msk.f32.mxu0 %vm313_vm0, %v15856_v1  ;;  %18957 = vmatprep.mubr.msk.f32.mxu1 %vm313_vm0, %v22674_v23  ;;  %v23089_v23 = vpop.f32.mrb[5].mxu0  ;;  %v23268_v26 = vld [vmem:[%s21157_s14 + $0xa8] sm:$0xff]  ;;  %v23275_v1 = vld [vmem:[%s21157_s14 + $0xb0] sm:$0xff] }
 0x26b   : > { %25578 = vst [vmem:[#allocation46_spill] sm:$0xff] %v23089_v23  ;;  %v23095_v19 = vpop.f32.mrb[6].mxu0  ;;  %25607 = vst [vmem:[#allocation28_spill] sm:$0xff] %v23268_v26 }
 0x26c   : > { %25579 = vst [vmem:[#allocation8_spill] sm:$0xff] %v23095_v19  ;;  %25608 = vst [vmem:[#allocation29_spill] sm:$0xff] %v23275_v1  ;;  %v23491_v19 = vld [vmem:[%s21157_s14 + $0x126] sm:$0xff] }
 0x26d   : > { %18908 = vmatmul.mubr.msk.f32.gmra.mrb[44].mxu0 %vm313_vm0, %v15857_v40  ;;  %18958 = vmatmul.mubr.msk.f32.gmra.mrb[44].mxu1 %vm313_vm0, %v22687_v18  ;;  %v15861_v18 = vld [vmem:[%s21157_s14 + $0x145] sm:$0xff]  ;;  %25624 = vst [vmem:[#allocation53_spill] sm:$0xff] %v23491_v19 }
 0x26e   : > { %18910 = vmatprep.mubr.msk.f32.mxu0 %vm313_vm0, %v15858_v20  ;;  %18960 = vmatprep.mubr.msk.f32.mxu1 %vm313_vm0, %v22691_v6  ;;  %v23101_v6 = vpop.f32.mrb[7].mxu0  ;;  %v23278_v40 = vld [vmem:[%s21157_s14 + $0xc0] sm:$0xff]  ;;  %v23285_v20 = vld [vmem:[%s21157_s14 + $0xc8] sm:$0xff] }
 0x26f   : > { %25580 = vst [vmem:[#allocation48_spill] sm:$0xff] %v23101_v6  ;;  %v23107_v27 = vpop.f32.mrb[8].mxu0  ;;  %25609 = vst [vmem:[#allocation30_spill] sm:$0xff] %v23278_v40  ;;  %v23488_v6 = vld [vmem:[%s21157_s14 + $0x116] sm:$0xff] }
 0x270   : > { %25581 = vst [vmem:[#allocation9_spill] sm:$0xff] %v23107_v27  ;;  %25610 = vst [vmem:[#allocation31_spill] sm:$0xff] %v23285_v20 }
 0x271   : > { %18911 = vmatmul.mubr.msk.f32.gmra.mrb[46].mxu0 %vm313_vm0, %v15859_v37  ;;  %18961 = vmatmul.mubr.msk.f32.gmra.mrb[46].mxu1 %vm313_vm0, %v22701_v13  ;;  %v15863_v13 = vld [vmem:[%s21157_s14 + $0x15d] sm:$0xff]  ;;  %25623 = vst [vmem:[#allocation51_spill] sm:$0xff] %v23488_v6 }
 0x272   : > { %18913 = vmatprep.mubr.msk.f32.mxu0 %vm313_vm0, %v15860_v29  ;;  %18963 = vmatprep.mubr.msk.f32.mxu1 %vm313_vm0, %v22705_v22  ;;  %v23113_v22 = vpop.f32.mrb[9].mxu0  ;;  %v23288_v37 = vld [vmem:[%s21157_s14 + $0xd8] sm:$0xff]  ;;  %v23295_v29 = vld [vmem:[%s21157_s14 + $0xe0] sm:$0xff] }
 0x273   : > { %25582 = vst [vmem:[#allocation50_spill] sm:$0xff] %v23113_v22  ;;  %v23119_v61 = vpop.f32.mrb[10].mxu0 }
 0x274   : > { %25583 = vst [vmem:[#allocation10_spill] sm:$0xff] %v23119_v61  ;;  %v23125_v63 = vpop.f32.mrb[11].mxu0  ;;  %v23477_v61 = vld [vmem:[%s21157_s14 + $0x10e] sm:$0xff] }
 0x275   : > { %18914 = vmatmul.mubr.msk.f32.gmra.mrb[48].mxu0 %vm313_vm0, %v15861_v18  ;;  %18964 = vmatmul.mubr.msk.f32.gmra.mrb[48].mxu1 %vm313_vm0, %v22715_v31  ;;  %v15865_v31 = vld [vmem:[%s21157_s14 + $0x175] sm:$0xff]  ;;  %25584 = vst [vmem:[#allocation52_spill] sm:$0xff] %v23125_v63  ;;  %v23131_v0 = vpop.f32.mrb[12].mxu0  ;;  %v23474_v63 = vld [vmem:[%s21157_s14 + $0xfe] sm:$0xff]  ;;  %25622 = vst [vmem:[#allocation49_spill] sm:$0xff] %v23477_v61 }
 0x276   : > { %18916 = vmatprep.mubr.msk.f32.mxu0 %vm313_vm0, %v15862_v15  ;;  %18966 = vmatprep.mubr.msk.f32.mxu1 %vm313_vm0, %v22719_v38  ;;  %v15866_v38 = vld [vmem:[%s21157_s14 + $0x185] sm:$0xff]  ;;  %25585 = vst [vmem:[#allocation11_spill] sm:$0xff] %v23131_v0  ;;  %v23137_v24 = vpop.f32.mrb[13].mxu0  ;;  %v23298_v18 = vld [vmem:[%s21157_s14 + $0xf0] sm:$0xff]  ;;  %v23305_v15 = vld [vmem:[%s21157_s14 + $0xf8] sm:$0xff] }
 0x277   : > { %25586 = vst [vmem:[#allocation54_spill] sm:$0xff] %v23137_v24  ;;  %25621 = vst [vmem:[#allocation47_spill] sm:$0xff] %v23474_v63 }
 0x279   : > { %18917 = vmatmul.mubr.msk.f32.gmra.mrb[50].mxu0 %vm313_vm0, %v15863_v13  ;;  %18967 = vmatmul.mubr.msk.f32.gmra.mrb[50].mxu1 %vm313_vm0, %v22729_v45  ;;  %v15867_v45 = vld [vmem:[%s21157_s14 + $0x18d] sm:$0xff] }
 0x27a   : > { %18919 = vmatprep.mubr.msk.f32.mxu0 %vm313_vm0, %v15864_v35  ;;  %18969 = vmatprep.mubr.msk.f32.mxu1 %vm313_vm0, %v22733_v11  ;;  %v23142_v11 = vpop.f32.mrb[14].mxu0  ;;  %v23308_v13 = vld [vmem:[%s21157_s14 + $0x108] sm:$0xff]  ;;  %v23315_v35 = vld [vmem:[%s21157_s14 + $0x110] sm:$0xff] }
 0x27b   : > { %25587 = vst [vmem:[#allocation12_spill] sm:$0xff] %v23142_v11  ;;  %v23463_v11 = vld [vmem:[%s21157_s14 + $0xf6] sm:$0xff] }
 0x27c   : > { %25620 = vst [vmem:[#allocation45_spill] sm:$0xff] %v23463_v11 }
 0x27d   : > { %18920 = vmatmul.mubr.msk.f32.gmra.mrb[52].mxu0 %vm313_vm0, %v15865_v31  ;;  %18970 = vmatmul.mubr.msk.f32.gmra.mrb[52].mxu1 %vm313_vm0, %v22743_v16  ;;  %v23148_v16 = vpop.f32.mrb[15].mxu0  ;;  %v23318_v31 = vld [vmem:[%s21157_s14 + $0x120] sm:$0xff] }
 0x27e   : > { %18922 = vmatprep.mubr.msk.f32.mxu0 %vm313_vm0, %v15866_v38  ;;  %18972 = vmatprep.mubr.msk.f32.mxu1 %vm313_vm0, %v22747_v34  ;;  %25588 = vst [vmem:[#allocation56_spill] sm:$0xff] %v23148_v16  ;;  %v23154_v34 = vpop.f32.mrb[16].mxu0  ;;  %v23325_v38 = vld [vmem:[%s21157_s14 + $0x128] sm:$0xff] }
 0x27f   : > { %25589 = vst [vmem:[#allocation13_spill] sm:$0xff] %v23154_v34  ;;  %v23460_v16 = vld [vmem:[%s21157_s14 + $0xe6] sm:$0xff] }
 0x280   : > { %25619 = vst [vmem:[#allocation43_spill] sm:$0xff] %v23460_v16 }
 0x281   : > { %18923 = vmatmul.mubr.msk.f32.gmra.mrb[54].mxu0 %vm313_vm0, %v15867_v45  ;;  %18973 = vmatmul.mubr.msk.f32.gmra.mrb[54].mxu1 %vm313_vm0, %v22757_v43  ;;  %v15872_v43 = vld [vmem:[%s21157_s14 + $0x1cd] sm:$0xff]  ;;  %v23328_v45 = vld [vmem:[%s21157_s14 + $0x138] sm:$0xff] }
 0x282   : > { %18925 = vmatprep.mubr.msk.f32.mxu0 %vm313_vm0, %v22607_v3  ;;  %18975 = vmatprep.mubr.msk.f32.mxu1 %vm313_vm0, %v22761_v32  ;;  %v23160_v3 = vpop.f32.mrb[17].mxu0 }
 0x283   : > { %25590 = vst [vmem:[#allocation58_spill] sm:$0xff] %v23160_v3 }
 0x285   : > { %18926 = vmatmul.mubr.msk.f32.gmra.mrb[56].mxu0 %vm313_vm0, %v22617_v5  ;;  %18976 = vmatmul.mubr.msk.f32.gmra.mrb[56].mxu1 %vm313_vm0, %v22771_v36  ;;  %v23167_v5 = vpop.f32.mrb[18].mxu0  ;;  %v15874_v36 = vld [vmem:[%s21157_s14 + $0x1e5] sm:$0xff] }
 0x286   : > { %18928 = vmatprep.mubr.msk.f32.mxu0 %vm313_vm0, %v22621_v12  ;;  %18978 = vmatprep.mubr.msk.f32.mxu1 %vm313_vm0, %v22775_v49  ;;  %25591 = vst [vmem:[#allocation14_spill] sm:$0xff] %v23167_v5  ;;  %v15873_v12 = vld [vmem:[%s21157_s14 + $0x1d5] sm:$0xff]  ;;  %v23173_v32 = vpop.f32.mrb[19].mxu0  ;;  %v15875_v49 = vld [vmem:[%s21157_s14 + $0x1ed] sm:$0xff]  ;;  %v23449_v5 = vld [vmem:[%s21157_s14 + $0xde] sm:$0xff] }
 0x287   : > { %25592 = vst [vmem:[#allocation15_spill] sm:$0xff] %v23173_v32  ;;  %v23446_v32 = vld [vmem:[%s21157_s14 + $0xce] sm:$0xff]  ;;  %25618 = vst [vmem:[#allocation41_spill] sm:$0xff] %v23449_v5 }
 0x288   : > { %25617 = vst [vmem:[#allocation39_spill] sm:$0xff] %v23446_v32 }
 0x289   : > { %18929 = vmatmul.mubr.msk.f32.gmra.mrb[58].mxu0 %vm313_vm0, %v22632_v41  ;;  %18979 = vmatmul.mubr.msk.f32.gmra.mrb[58].mxu1 %vm313_vm0, %v22785_v51  ;;  %v23179_v41 = vpop.f32.mrb[20].mxu0 }
 0x28a   : > { %18931 = vmatprep.mubr.msk.f32.mxu0 %vm313_vm0, %v15872_v43  ;;  %18981 = vmatprep.mubr.msk.f32.mxu1 %vm313_vm0, %v22789_v53  ;;  %25593 = vst [vmem:[#allocation61_spill] sm:$0xff] %v23179_v41  ;;  %v23185_v51 = vpop.f32.mrb[21].mxu0  ;;  %v7347_v53 = vld [vmem:[%s21157_s14] sm:$0xff] }
 0x28b   : > { %25594 = vst [vmem:[#allocation16_spill] sm:$0xff] %v23185_v51  ;;  %v23191_v7 = vpop.f32.mrb[22].mxu0  ;;  %v23335_v43 = vld [vmem:[%s21157_s14 + $0x140] sm:$0xff] }
 0x28c   : > { %25595 = vst [vmem:[#allocation17_spill] sm:$0xff] %v23191_v7  ;;  %v23195_v9 = vpop.f32.mrb[23].mxu0  ;;  %v23435_v7 = vld [vmem:[%s21157_s14 + $0xc6] sm:$0xff] }
 0x28d   : > { %18932 = vmatmul.mubr.msk.f32.gmra.mrb[60].mxu0 %vm313_vm0, %v15873_v12  ;;  %18982 = vmatmul.mubr.msk.f32.gmra.mrb[60].mxu1 %vm313_vm0, %v22799_v55  ;;  %v7348_v55 = vld [vmem:[%s21157_s14 + $0x8] sm:$0xff]  ;;  %25596 = vst [vmem:[#allocation64_spill] sm:$0xff] %v23195_v9  ;;  %v23204_v8 = vpop.f32.mrb[24].mxu0  ;;  %v23338_v12 = vld [vmem:[%s21157_s14 + $0x150] sm:$0xff]  ;;  %25616 = vst [vmem:[#allocation37_spill] sm:$0xff] %v23435_v7 }
 0x28e   : > { %18934 = vmatprep.mubr.msk.f32.mxu0 %vm313_vm0, %v15874_v36  ;;  %18984 = vmatprep.mubr.msk.f32.mxu1 %vm313_vm0, %v22803_v57  ;;  %v7349_v57 = vld [vmem:[%s21157_s14 + $0x18] sm:$0xff]  ;;  %25597 = vst [vmem:[#allocation18_spill] sm:$0xff] %v23204_v8  ;;  %v23209_v17 = vpop.f32.mrb[25].mxu0 }
 0x28f   : > { %25598 = vst [vmem:[#allocation19_spill] sm:$0xff] %v23209_v17  ;;  %v23214_v33 = vpop.f32.mrb[26].mxu0  ;;  %v23345_v36 = vld [vmem:[%s21157_s14 + $0x158] sm:$0xff] }
 0x290   : > { %25599 = vst [vmem:[#allocation20_spill] sm:$0xff] %v23214_v33  ;;  %v23218_v4 = vpop.f32.mrb[27].mxu0  ;;  %v23421_v33 = vld [vmem:[%s21157_s14 + $0xae] sm:$0xff]  ;;  %v23432_v9 = vld [vmem:[%s21157_s14 + $0xb6] sm:$0xff] }
 0x291   : > { %18935 = vmatmul.mubr.msk.f32.gmra.mrb[62].mxu0 %vm313_vm0, %v15875_v49  ;;  %18985 = vmatmul.mubr.msk.f32.gmra.mrb[62].mxu1 %vm313_vm0, %v22813_v59  ;;  %v7350_v59 = vld [vmem:[%s21157_s14 + $0x20] sm:$0xff]  ;;  %25600 = vst [vmem:[#allocation21_spill] sm:$0xff] %v23218_v4  ;;  %v23224_v44 = vpop.f32.mrb[28].mxu0  ;;  %v23348_v49 = vld [vmem:[%s21157_s14 + $0x168] sm:$0xff]  ;;  %25614 = vst [vmem:[#allocation35_spill] sm:$0xff] %v23421_v33 }
 0x292   : > { %18989 = vmatprep.mubr.msk.f32.mxu1 %vm313_vm0, %v7347_v53  ;;  %25601 = vst [vmem:[#allocation22_spill] sm:$0xff] %v23224_v44  ;;  %v23231_v39 = vpop.f32.mrb[29].mxu0  ;;  %v23355_v53 = vld [vmem:[%s21157_s14 + $0x170] sm:$0xff]  ;;  %v23418_v4 = vld [vmem:[%s21157_s14 + $0x9e] sm:$0xff]  ;;  %25615 = vst [vmem:[#allocation36_spill] sm:$0xff] %v23432_v9 }
 0x293   : > { %25602 = vst [vmem:[#allocation23_spill] sm:$0xff] %v23231_v39  ;;  %v23238_v46 = vpop.f32.mrb[30].mxu0  ;;  %25613 = vst [vmem:[#allocation34_spill] sm:$0xff] %v23418_v4 }
 0x294   : > { %25603 = vst [vmem:[#allocation24_spill] sm:$0xff] %v23238_v46  ;;  %v23245_v50 = vpop.f32.mrb[31].mxu0  ;;  %v23378_v46 = vld [vmem:[%s21157_s14 + $0x4e] sm:$0xff] }
 0x295   : > { %18990 = vmatmul.mubr.msk.f32.vlgmr.msra.gmra.mrb[32].mxu1 %vm313_vm0, %v7348_v55  ;;  %25604 = vst [vmem:[#allocation25_spill] sm:$0xff] %v23245_v50  ;;  %v8056_v55 = vld [vmem:[%s21157_s14 + $0x6] sm:$0xff]  ;;  %v8060_v50 = vld [vmem:[%s21157_s14 + $0x36] sm:$0xff] }
 0x296   : > { %19038 = vmatpush3.msra.mxu1 %v23022_v28  ;;  %18992 = vmatprep.mubr.msk.f32.mxu1 %vm313_vm0, %v7349_v57  ;;  %v23221_v28 = vld [vmem:[%s21157_s14 + $0x48] sm:$0xff] }
 0x297   : > { %19087 = vmatprep.subr.mxu1 %v23201_v14  ;;  %v8057_v57 = vld [vmem:[%s21157_s14 + $0xe] sm:$0xff] }
 0x299   : > { %18993 = vmatmul.mubr.msk.f32.gmra.mrb[34].mxu1 %vm313_vm0, %v7350_v59  ;;  %v8058_v59 = vld [vmem:[%s21157_s14 + $0x1e] sm:$0xff] }
 0x29a   : > { %18995 = vmatprep.mubr.msk.f32.mxu1 %vm313_vm0, %v7351_v10  ;;  %v23366_v10 = vld [vmem:[%s25251_s3 + $0x20] sm:$0xff] }
 0x29d   : > { %18996 = vmatmul.mubr.msk.f32.gmra.mrb[36].mxu1 %vm313_vm0, %v7352_v25  ;;  %v8059_v25 = vld [vmem:[%s21157_s14 + $0x26] sm:$0xff] }
 0x29e   : > { %18998 = vmatprep.mubr.msk.f32.mxu1 %vm313_vm0, %v23221_v28 }
 0x2a1   : > { %18999 = vmatmul.mubr.msk.f32.gmra.mrb[38].mxu1 %vm313_vm0, %v23229_v21 }
 0x2a2   : > { %19001 = vmatprep.mubr.msk.f32.mxu1 %vm313_vm0, %v23234_v30 }
 0x2a5   : > { %19002 = vmatmul.mubr.msk.f32.gmra.mrb[40].mxu1 %vm313_vm0, %v23243_v47 }
 0x2a6   : > { %19004 = vmatprep.mubr.msk.f32.mxu1 %vm313_vm0, %v23248_v52 }
 0x2a9   : > { %19005 = vmatmul.mubr.msk.f32.gmra.mrb[42].mxu1 %vm313_vm0, %v23255_v54 }
 0x2aa   : > { %19007 = vmatprep.mubr.msk.f32.mxu1 %vm313_vm0, %v23258_v56 }
 0x2ad   : > { %19008 = vmatmul.mubr.msk.f32.gmra.mrb[44].mxu1 %vm313_vm0, %v23265_v60 }
 0x2ae   : > { %19010 = vmatprep.mubr.msk.f32.mxu1 %vm313_vm0, %v23268_v26 }
 0x2b1   : > { %19011 = vmatmul.mubr.msk.f32.gmra.mrb[46].mxu1 %vm313_vm0, %v23275_v1 }
 0x2b2   : > { %19013 = vmatprep.mubr.msk.f32.mxu1 %vm313_vm0, %v23278_v40 }
 0x2b5   : > { %19014 = vmatmul.mubr.msk.f32.gmra.mrb[48].mxu1 %vm313_vm0, %v23285_v20 }
 0x2b6   : > { %19016 = vmatprep.mubr.msk.f32.mxu1 %vm313_vm0, %v23288_v37 }
 0x2b9   : > { %19017 = vmatmul.mubr.msk.f32.gmra.mrb[50].mxu1 %vm313_vm0, %v23295_v29 }
 0x2ba   : > { %19019 = vmatprep.mubr.msk.f32.mxu1 %vm313_vm0, %v23298_v18 }
 0x2bd   : > { %19020 = vmatmul.mubr.msk.f32.gmra.mrb[52].mxu1 %vm313_vm0, %v23305_v15 }
 0x2be   : > { %19022 = vmatprep.mubr.msk.f32.mxu1 %vm313_vm0, %v23308_v13 }
 0x2c1   : > { %19023 = vmatmul.mubr.msk.f32.gmra.mrb[54].mxu1 %vm313_vm0, %v23315_v35 }
 0x2c2   : > { %19025 = vmatprep.mubr.msk.f32.mxu1 %vm313_vm0, %v23318_v31 }
 0x2c5   : > { %19026 = vmatmul.mubr.msk.f32.gmra.mrb[56].mxu1 %vm313_vm0, %v23325_v38 }
 0x2c6   : > { %19028 = vmatprep.mubr.msk.f32.mxu1 %vm313_vm0, %v23328_v45 }
 0x2c9   : > { %19029 = vmatmul.mubr.msk.f32.gmra.mrb[58].mxu1 %vm313_vm0, %v23335_v43 }
 0x2ca   : > { %19031 = vmatprep.mubr.msk.f32.mxu1 %vm313_vm0, %v23338_v12 }
 0x2cd   : > { %19032 = vmatmul.mubr.msk.f32.gmra.mrb[60].mxu1 %vm313_vm0, %v23345_v36 }
 0x2ce   : > { %19034 = vmatprep.mubr.msk.f32.mxu1 %vm313_vm0, %v23348_v49 }
 0x2d1   : > { %19035 = vmatmul.mubr.msk.f32.gmra.mrb[62].mxu1 %vm313_vm0, %v23355_v53 }
 0x2d2   : > { %19039 = vmatprep.mubr.msk.f32.mxu1 %vm313_vm0, %v8056_v55  ;;  %v8061_v55 = vld [vmem:[%s21157_s14 + $0x3e] sm:$0xff] }
 0x2d5   : > { %19040 = vmatmul.mubr.msk.f32.vlgmr.msra.gmra.mrb[32].mxu1 %vm313_vm0, %v8057_v57  ;;  %v23387_v57 = vld [vmem:[%s21157_s14 + $0x66] sm:$0xff] }
 0x2d6   : > { %19088 = vmatpush3.msra.mxu1 %v23201_v14  ;;  %19042 = vmatprep.mubr.msk.f32.mxu1 %vm313_vm0, %v8058_v59  ;;  %v23384_v14 = vld [vmem:[%s21157_s14 + $0x56] sm:$0xff]  ;;  %v23397_v59 = vld [vmem:[%s21157_s14 + $0x7e] sm:$0xff] }
 0x2d7   : > { %19137 = vmatprep.subr.mxu1 %v23366_v10 }
 0x2d9   : > { %19043 = vmatmul.mubr.msk.f32.gmra.mrb[34].mxu1 %vm313_vm0, %v8059_v25  ;;  %v23404_v25 = vld [vmem:[%s21157_s14 + $0x86] sm:$0xff] }
 0x2da   : > { %19045 = vmatprep.mubr.msk.f32.mxu1 %vm313_vm0, %v8060_v50  ;;  %v23394_v50 = vld [vmem:[%s21157_s14 + $0x6e] sm:$0xff]  ;;  %25611 = vst [vmem:[#allocation32_spill] sm:$0xff] %v23404_v25 }
 0x2dd   : > { %19046 = vmatmul.mubr.msk.f32.gmra.mrb[36].mxu1 %vm313_vm0, %v8061_v55  ;;  %v23407_v55 = vld [vmem:[%s21157_s14 + $0x96] sm:$0xff] }
 0x2de   : > { %19048 = vmatprep.mubr.msk.f32.mxu1 %vm313_vm0, %v23378_v46  ;;  %25612 = vst [vmem:[#allocation33_spill] sm:$0xff] %v23407_v55 }
 0x2e1   : > { %19049 = vmatmul.mubr.msk.f32.gmra.mrb[38].mxu1 %vm313_vm0, %v23384_v14 }
 0x2e2   : > { %19051 = vmatprep.mubr.msk.f32.mxu1 %vm313_vm0, %v23387_v57 }
 0x2e5   : > { %19052 = vmatmul.mubr.msk.f32.gmra.mrb[40].mxu1 %vm313_vm0, %v23394_v50 }
 0x2e6   : > { %19054 = vmatprep.mubr.msk.f32.mxu1 %vm313_vm0, %v23397_v59 }
 0x2e8   : > { %v23409_v39 = vpop.f32.mrb[0].mxu1 }
 0x2e9   : > { %v23411_v44 = vpop.f32.mrb[1].mxu1  ;;  %19055 = vmatmul.mubr.msk.f32.gmra.mrb[42].mxu1 %vm313_vm0, %v23404_v25 }
 0x2ea   : > { %19057 = vmatprep.mubr.msk.f32.mxu1 %vm313_vm0, %v23407_v55 }
 0x2ec   : > { %v23423_v17 = vpop.f32.mrb[2].mxu1 }
 0x2ed   : > { %v23425_v8 = vpop.f32.mrb[3].mxu1  ;;  %19058 = vmatmul.mubr.msk.f32.gmra.mrb[44].mxu1 %vm313_vm0, %v23418_v4 }
 0x2ee   : > { %19060 = vmatprep.mubr.msk.f32.mxu1 %vm313_vm0, %v23421_v33 }
 0x2f0   : > { %v23437_v51 = vpop.f32.mrb[4].mxu1 }
 0x2f1   : > { %v23439_v41 = vpop.f32.mrb[5].mxu1  ;;  %19061 = vmatmul.mubr.msk.f32.gmra.mrb[46].mxu1 %vm313_vm0, %v23432_v9 }
 0x2f2   : > { %19063 = vmatprep.mubr.msk.f32.mxu1 %vm313_vm0, %v23435_v7 }
 0x2f4   : > { %v23451_v3 = vpop.f32.mrb[6].mxu1 }
 0x2f5   : > { %v23453_v34 = vpop.f32.mrb[7].mxu1  ;;  %19064 = vmatmul.mubr.msk.f32.gmra.mrb[48].mxu1 %vm313_vm0, %v23446_v32 }
 0x2f6   : > { %19066 = vmatprep.mubr.msk.f32.mxu1 %vm313_vm0, %v23449_v5  ;;  %v23544_v5 = vld [vmem:[%s21157_s14 + $0x176] sm:$0xff] }
 0x2f7   : > { %25631 = vst [vmem:[#allocation3_spill] sm:$0xff] %v23544_v5 }
 0x2f8   : > { %v23465_v24 = vpop.f32.mrb[8].mxu1 }
 0x2f9   : > { %v23467_v0 = vpop.f32.mrb[9].mxu1  ;;  %19067 = vmatmul.mubr.msk.f32.gmra.mrb[50].mxu1 %vm313_vm0, %v23460_v16 }
 0x2fa   : > { %19069 = vmatprep.mubr.msk.f32.mxu1 %vm313_vm0, %v23463_v11  ;;  %v23530_v11 = vld [vmem:[%s21157_s14 + $0x15e] sm:$0xff] }
 0x2fb   : > { %25629 = vst [vmem:[#allocation62_spill] sm:$0xff] %v23530_v11 }
 0x2fc   : > { %v23479_v22 = vpop.f32.mrb[10].mxu1 }
 0x2fd   : > { %v23481_v27 = vpop.f32.mrb[11].mxu1  ;;  %19070 = vmatmul.mubr.msk.f32.gmra.mrb[52].mxu1 %vm313_vm0, %v23474_v63 }
 0x2fe   : > { %19072 = vmatprep.mubr.msk.f32.mxu1 %vm313_vm0, %v23477_v61  ;;  %v23516_v61 = vld [vmem:[%s21157_s14 + $0x146] sm:$0xff] }
 0x2ff   : > { %25627 = vst [vmem:[#allocation59_spill] sm:$0xff] %v23516_v61 }
 0x300   : > { %v23493_v23 = vpop.f32.mrb[12].mxu1 }
 0x301   : > { %v23495_v42 = vpop.f32.mrb[13].mxu1  ;;  %19073 = vmatmul.mubr.msk.f32.gmra.mrb[54].mxu1 %vm313_vm0, %v23488_v6  ;;  %v23519_v6 = vld [vmem:[%s21157_s14 + $0x156] sm:$0xff] }
 0x302   : > { %19075 = vmatprep.mubr.msk.f32.mxu1 %vm313_vm0, %v23491_v19  ;;  %25628 = vst [vmem:[#allocation60_spill] sm:$0xff] %v23519_v6 }
 0x304   : > { %v23507_v62 = vpop.f32.mrb[14].mxu1 }
 0x305   : > { %v23509_v58 = vpop.f32.mrb[15].mxu1  ;;  %19076 = vmatmul.mubr.msk.f32.gmra.mrb[56].mxu1 %vm313_vm0, %v23502_v48  ;;  %v23533_v48 = vld [vmem:[%s21157_s14 + $0x16e] sm:$0xff] }
 0x306   : > { %19078 = vmatprep.mubr.msk.f32.mxu1 %vm313_vm0, %v23505_v2  ;;  %25630 = vst [vmem:[#allocation63_spill] sm:$0xff] %v23533_v48 }
 0x308   : > { %v23521_v19 = vpop.f32.mrb[16].mxu1 }
 0x309   : > { %v23523_v63 = vpop.f32.mrb[17].mxu1  ;;  %19079 = vmatmul.mubr.msk.f32.gmra.mrb[58].mxu1 %vm313_vm0, %v23516_v61 }
 0x30a   : > { %19081 = vmatprep.mubr.msk.f32.mxu1 %vm313_vm0, %v23519_v6 }
 0x30c   : > { %v23535_v16 = vpop.f32.mrb[18].mxu1 }
 0x30d   : > { %v23537_v2 = vpop.f32.mrb[19].mxu1  ;;  %19082 = vmatmul.mubr.msk.f32.gmra.mrb[60].mxu1 %vm313_vm0, %v23530_v11  ;;  %v23559_v11 = vld [vmem:[%s25251_s3 + $0x28] sm:$0xff] }
 0x30e   : > { %19084 = vmatprep.mubr.msk.f32.mxu1 %vm313_vm0, %v23533_v48 }
 0x310   : > { %v23546_v61 = vpop.f32.mrb[20].mxu1 }
 0x311   : > { %v23548_v32 = vpop.f32.mrb[21].mxu1  ;;  %19085 = vmatmul.mubr.msk.f32.gmra.mrb[62].mxu1 %vm313_vm0, %v23544_v5 }
 0x312   : > { %19089 = vmatprep.mubr.msk.f32.mxu1 %vm313_vm0, %v23221_v28 }
 0x314   : > { %v23554_v6 = vpop.f32.mrb[22].mxu1 }
 0x315   : > { %v23561_v48 = vpop.f32.mrb[23].mxu1  ;;  %19090 = vmatmul.mubr.msk.f32.vlgmr.msra.gmra.mrb[32].mxu1 %vm313_vm0, %v23229_v21 }
 0x316   : > { %19138 = vmatpush3.msra.mxu1 %v23366_v10  ;;  %19092 = vmatprep.mubr.msk.f32.mxu1 %vm313_vm0, %v23234_v30 }
 0x317   : > { %19187 = vmatprep.subr.mxu1 %v23559_v11 }
 0x318   : > { %v23569_v28 = vpop.f32.mrb[24].mxu1 }
 0x319   : > { %v23571_v5 = vpop.f32.mrb[25].mxu1  ;;  %19093 = vmatmul.mubr.msk.f32.gmra.mrb[34].mxu1 %vm313_vm0, %v23243_v47 }
 0x31a   : > { %19095 = vmatprep.mubr.msk.f32.mxu1 %vm313_vm0, %v23248_v52 }
 0x31c   : > { %v23577_v7 = vpop.f32.mrb[26].mxu1 }
 0x31d   : > { %v23579_v21 = vpop.f32.mrb[27].mxu1  ;;  %19096 = vmatmul.mubr.msk.f32.gmra.mrb[36].mxu1 %vm313_vm0, %v23255_v54 }
 0x31e   : > { %19098 = vmatprep.mubr.msk.f32.mxu1 %vm313_vm0, %v23258_v56  ;;  %v3960_v56 = vmax.f32 %v23409_v39, 0.0 }
 0x320   : > { %v23585_v30 = vpop.f32.mrb[28].mxu1 }
 0x321   : > { %v23587_v10 = vpop.f32.mrb[29].mxu1  ;;  %19099 = vmatmul.mubr.msk.f32.gmra.mrb[38].mxu1 %vm313_vm0, %v23265_v60 }
 0x322   : > { %19101 = vmatprep.mubr.msk.f32.mxu1 %vm313_vm0, %v23268_v26  ;;  %v3959_v26 = vmax.f32 %v23411_v44, 0.0 }
 0x324   : > { %v23593_v47 = vpop.f32.mrb[30].mxu1 }
 0x325   : > { %v23595_v52 = vpop.f32.mrb[31].mxu1  ;;  %19102 = vmatmul.mubr.msk.f32.gmra.mrb[40].mxu1 %vm313_vm0, %v23275_v1 }
 0x326   : > { %19104 = vmatprep.mubr.msk.f32.mxu1 %vm313_vm0, %v23278_v40  ;;  %v3962_v40 = vmax.f32 %v23423_v17, 0.0 }
 0x328   : > { %v18891_v54 = vpop.f32.mrb[32].mxu0 }
 0x329   : > { %v7284_v9 = vmax.f32 %v18891_v54, 0.0  ;;  %v7092_v33 = vpop.f32.mrb[33].mxu0  ;;  %19105 = vmatmul.mubr.msk.f32.gmra.mrb[42].mxu1 %vm313_vm0, %v23285_v20  ;;  %v3961_v54 = vmax.f32 %v23425_v8, 0.0 }
 0x32a   : > { %v7283_v60 = vmax.f32 %v7092_v33, 0.0  ;;  %19107 = vmatprep.mubr.msk.f32.mxu1 %vm313_vm0, %v23288_v37 }
 0x32b   : > { %v23607_v4 = vadd.f32 %v7284_v9, %v3960_v56  ;;  %v3964_v56 = vmax.f32 %v23437_v51, 0.0 }
 0x32c   : > { %v23609_v1 = vadd.f32 %v7283_v60, %v3959_v26  ;;  %v18894_v55 = vpop.f32.mrb[34].mxu0  ;;  %v3963_v26 = vmax.f32 %v23439_v41, 0.0 }
 0x32d   : > { %v7286_v25 = vmax.f32 %v18894_v55, 0.0  ;;  %v7102_v39 = vpop.f32.mrb[35].mxu0  ;;  %19108 = vmatmul.mubr.msk.f32.gmra.mrb[44].mxu1 %vm313_vm0, %v23295_v29 }
 0x32e   : > { %v7285_v20 = vmax.f32 %v7102_v39, 0.0  ;;  %19110 = vmatprep.mubr.msk.f32.mxu1 %vm313_vm0, %v23298_v18 }
 0x32f   : > { %v23617_v33 = vadd.f32 %v7286_v25, %v3962_v40  ;;  %v3966_v25 = vmax.f32 %v23451_v3, 0.0 }
 0x330   : > { %v23619_v9 = vadd.f32 %v7285_v20, %v3961_v54  ;;  %v18897_v44 = vpop.f32.mrb[36].mxu0  ;;  %v3965_v54 = vmax.f32 %v23453_v34, 0.0 }
 0x331   : > { %v7288_v60 = vmax.f32 %v18897_v44, 0.0  ;;  %v7112_v17 = vpop.f32.mrb[37].mxu0  ;;  %19111 = vmatmul.mubr.msk.f32.gmra.mrb[46].mxu1 %vm313_vm0, %v23305_v15 }
 0x332   : > { %v7287_v55 = vmax.f32 %v7112_v17, 0.0  ;;  %19113 = vmatprep.mubr.msk.f32.mxu1 %vm313_vm0, %v23308_v13  ;;  %v3968_v17 = vmax.f32 %v23465_v24, 0.0 }
 0x333   : > { %v23627_v8 = vadd.f32 %v7288_v60, %v3964_v56 }
 0x334   : > { %v23629_v40 = vadd.f32 %v7287_v55, %v3963_v26  ;;  %v18900_v20 = vpop.f32.mrb[38].mxu0  ;;  %v3967_v55 = vmax.f32 %v23467_v0, 0.0 }
 0x335   : > { %v7290_v39 = vmax.f32 %v18900_v20, 0.0  ;;  %v7122_v51 = vpop.f32.mrb[39].mxu0  ;;  %19114 = vmatmul.mubr.msk.f32.gmra.mrb[48].mxu1 %vm313_vm0, %v23315_v35 }
 0x336   : > { %v7289_v44 = vmax.f32 %v7122_v51, 0.0  ;;  %19116 = vmatprep.mubr.msk.f32.mxu1 %vm313_vm0, %v23318_v31  ;;  %v3970_v51 = vmax.f32 %v23479_v22, 0.0 }
 0x337   : > { %v23637_v41 = vadd.f32 %v7290_v39, %v3966_v25 }
 0x338   : > { %v23639_v56 = vadd.f32 %v7289_v44, %v3965_v54  ;;  %v18903_v60 = vpop.f32.mrb[40].mxu0  ;;  %v3969_v44 = vmax.f32 %v23481_v27, 0.0 }
 0x339   : > { %v7292_v26 = vmax.f32 %v18903_v60, 0.0  ;;  %v7132_v3 = vpop.f32.mrb[41].mxu0  ;;  %19117 = vmatmul.mubr.msk.f32.gmra.mrb[50].mxu1 %vm313_vm0, %v23325_v38 }
 0x33a   : > { %v7291_v20 = vmax.f32 %v7132_v3, 0.0  ;;  %19119 = vmatprep.mubr.msk.f32.mxu1 %vm313_vm0, %v23328_v45  ;;  %v3972_v3 = vmax.f32 %v23493_v23, 0.0 }
 0x33b   : > { %v23647_v34 = vadd.f32 %v7292_v26, %v3968_v17 }
 0x33c   : > { %v23649_v25 = vadd.f32 %v7291_v20, %v3967_v55  ;;  %v18906_v39 = vpop.f32.mrb[42].mxu0  ;;  %v3971_v20 = vmax.f32 %v23495_v42, 0.0  ;;  %v3973_v42 = vmax.f32 %v23509_v58, 0.0  ;;  %v3975_v58 = vmax.f32 %v23523_v63, 0.0 }
 0x33d   : > { %v7294_v54 = vmax.f32 %v18906_v39, 0.0  ;;  %v7142_v24 = vpop.f32.mrb[43].mxu0  ;;  %19120 = vmatmul.mubr.msk.f32.gmra.mrb[52].mxu1 %vm313_vm0, %v23335_v43  ;;  %v3977_v63 = vmax.f32 %v23537_v2, 0.0  ;;  %v3979_v2 = vmax.f32 %v23548_v32, 0.0 }
 0x33e   : > { %v7293_v0 = vmax.f32 %v7142_v24, 0.0  ;;  %19122 = vmatprep.mubr.msk.f32.mxu1 %vm313_vm0, %v23338_v12  ;;  %v3974_v24 = vmax.f32 %v23507_v62, 0.0 }
 0x33f   : > { %v23657_v60 = vadd.f32 %v7294_v54, %v3970_v51  ;;  %v23670_v51 = vld [vmem:[%s21157_s14 + $0x180] sm:$0xff] }
 0x340   : > { %v23659_v17 = vadd.f32 %v7293_v0, %v3969_v44  ;;  %v18909_v26 = vpop.f32.mrb[44].mxu0 }
 0x341   : > { %v7296_v22 = vmax.f32 %v18909_v26, 0.0  ;;  %v7152_v55 = vpop.f32.mrb[45].mxu0  ;;  %19123 = vmatmul.mubr.msk.f32.gmra.mrb[54].mxu1 %vm313_vm0, %v23345_v36 }
 0x342   : > { %v7295_v27 = vmax.f32 %v7152_v55, 0.0  ;;  %19125 = vmatprep.mubr.msk.f32.mxu1 %vm313_vm0, %v23348_v49  ;;  %v23686_v55 = vld [vmem:[%s21157_s14 + $0x198] sm:$0xff] }
 0x343   : > { %v23667_v39 = vadd.f32 %v7296_v22, %v3972_v3  ;;  %v23681_v3 = vld [vmem:[%s21157_s14 + $0x188] sm:$0xff] }
 0x344   : > { %v23672_v54 = vadd.f32 %v7295_v27, %v3971_v20  ;;  %v18912_v23 = vpop.f32.mrb[46].mxu0  ;;  %v3976_v27 = vmax.f32 %v23521_v19, 0.0 }
 0x345   : > { %v7298_v44 = vmax.f32 %v18912_v23, 0.0  ;;  %v7162_v0 = vpop.f32.mrb[47].mxu0  ;;  %19126 = vmatmul.mubr.msk.f32.gmra.mrb[56].mxu1 %vm313_vm0, %v23355_v53 }
 0x346   : > { %25632 = vst [vmem:[#allocation38_spill] sm:$0xff] %v23672_v54  ;;  %v7297_v26 = vmax.f32 %v7162_v0, 0.0  ;;  %19128 = vmatprep.mubr.msk.f32.mxu1 %vm313_vm0, %v23670_v51 }
 0x347   : > { %v23683_v22 = vadd.f32 %v7298_v44, %v3974_v24  ;;  %v23697_v24 = vld [vmem:[%s21157_s14 + $0x1a0] sm:$0xff] }
 0x348   : > { %v23688_v62 = vadd.f32 %v7297_v26, %v3973_v42  ;;  %v18915_v20 = vpop.f32.mrb[48].mxu0  ;;  %v23702_v42 = vld [vmem:[%s21157_s14 + $0x1b0] sm:$0xff] }
 0x349   : > { %25633 = vst [vmem:[#allocation4_spill] sm:$0xff] %v23683_v22  ;;  %v7300_v23 = vmax.f32 %v18915_v20, 0.0  ;;  %v7172_v54 = vpop.f32.mrb[49].mxu0  ;;  %19129 = vmatmul.mubr.msk.f32.gmra.mrb[58].mxu1 %vm313_vm0, %v23681_v3  ;;  %v3978_v20 = vmax.f32 %v23535_v16, 0.0  ;;  %v3980_v16 = vmax.f32 %v23546_v61, 0.0  ;;  %v23732_v61 = vld [vmem:[%s25251_s3 + $0x30] sm:$0xff] }
 0x34a   : > { %25634 = vst [vmem:[#allocation40_spill] sm:$0xff] %v23688_v62  ;;  %v7299_v0 = vmax.f32 %v7172_v54, 0.0  ;;  %19131 = vmatprep.mubr.msk.f32.mxu1 %vm313_vm0, %v23686_v55 }
 0x34b   : > { %v23699_v44 = vadd.f32 %v7300_v23, %v3976_v27  ;;  %v23713_v27 = vld [vmem:[%s21157_s14 + $0x1b8] sm:$0xff] }
 0x34c   : > { %v23704_v26 = vadd.f32 %v7299_v0, %v3975_v58  ;;  %v18918_v19 = vpop.f32.mrb[50].mxu0 }
 0x34d   : > { %25635 = vst [vmem:[#allocation65_spill] sm:$0xff] %v23699_v44  ;;  %v7302_v62 = vmax.f32 %v18918_v19, 0.0  ;;  %v7182_v22 = vpop.f32.mrb[51].mxu0  ;;  %19132 = vmatmul.mubr.msk.f32.gmra.mrb[60].mxu1 %vm313_vm0, %v23697_v24  ;;  %v21049_v44 = vld [vmem:[%s21157_s14 + $0x4b] sm:$0xff] }
 0x34e   : > { %25636 = vst [vmem:[#allocation66_spill] sm:$0xff] %v23704_v26  ;;  %v7301_v54 = vmax.f32 %v7182_v22, 0.0  ;;  %19134 = vmatprep.mubr.msk.f32.mxu1 %vm313_vm0, %v23702_v42 }
 0x34f   : > { %v23715_v23 = vadd.f32 %v7302_v62, %v3978_v20 }
 0x350   : > { %v23717_v58 = vadd.f32 %v7301_v54, %v3977_v63  ;;  %v18921_v0 = vpop.f32.mrb[52].mxu0  ;;  %v3982_v54 = vmax.f32 %v23554_v6, 0.0 }
 0x351   : > { %v7304_v19 = vmax.f32 %v18921_v0, 0.0  ;;  %v7192_v26 = vpop.f32.mrb[53].mxu0  ;;  %19135 = vmatmul.mubr.msk.f32.gmra.mrb[62].mxu1 %vm313_vm0, %v23713_v27 }
 0x352   : > { %25637 = vst [vmem:[#allocation67_spill] sm:$0xff] %v23717_v58  ;;  %v7303_v22 = vmax.f32 %v7192_v26, 0.0  ;;  %19139 = vmatprep.mubr.msk.f32.mxu1 %vm313_vm0, %v21049_v44  ;;  %v21050_v58 = vld [vmem:[%s21157_s14 + $0x53] sm:$0xff]  ;;  %v3981_v44 = vmax.f32 %v23561_v48, 0.0  ;;  %v21052_v48 = vld [vmem:[%s21157_s14 + $0x6b] sm:$0xff] }
 0x353   : > { %v23725_v62 = vadd.f32 %v7304_v19, %v3980_v16  ;;  %v21051_v16 = vld [vmem:[%s21157_s14 + $0x63] sm:$0xff] }
 0x354   : > { %v23727_v20 = vadd.f32 %v7303_v22, %v3979_v2  ;;  %v18924_v63 = vpop.f32.mrb[54].mxu0  ;;  %v3984_v22 = vmax.f32 %v23569_v28, 0.0  ;;  %v3986_v28 = vmax.f32 %v23577_v7, 0.0  ;;  %v3988_v7 = vmax.f32 %v23585_v30, 0.0 }
 0x355   : > { %v7306_v0 = vmax.f32 %v18924_v63, 0.0  ;;  %v7202_v32 = vpop.f32.mrb[55].mxu0  ;;  %19140 = vmatmul.mubr.msk.f32.vlgmr.msra.gmra.mrb[32].mxu1 %vm313_vm0, %v21050_v58  ;;  %v3990_v30 = vmax.f32 %v23593_v47, 0.0  ;;  %v21060_v47 = vld [vmem:[%s21157_s14 + $0xcb] sm:$0xff] }
 0x356   : > { %v7305_v26 = vmax.f32 %v7202_v32, 0.0  ;;  %19188 = vmatpush3.msra.mxu1 %v23559_v11  ;;  %19142 = vmatprep.mubr.msk.f32.mxu1 %vm313_vm0, %v21051_v16  ;;  %v3983_v11 = vmax.f32 %v23571_v5, 0.0  ;;  %v21053_v16 = vld [vmem:[%s21157_s14 + $0x7b] sm:$0xff]  ;;  %v3985_v5 = vmax.f32 %v23579_v21, 0.0  ;;  %v3987_v21 = vmax.f32 %v23587_v10, 0.0 }
 0x357   : > { %v23741_v19 = vadd.f32 %v7306_v0, %v3982_v54  ;;  %19237 = vmatprep.subr.mxu1 %v23732_v61  ;;  %v3989_v10 = vmax.f32 %v23595_v52, 0.0  ;;  %v21062_v52 = vld [vmem:[%s21157_s14 + $0xe3] sm:$0xff] }
 0x358   : > { %v23744_v6 = vadd.f32 %v7305_v26, %v3981_v44  ;;  %v18927_v2 = vpop.f32.mrb[56].mxu0 }
 0x359   : > { %v7308_v58 = vmax.f32 %v18927_v2, 0.0  ;;  %v7212_v63 = vpop.f32.mrb[57].mxu0  ;;  %19143 = vmatmul.mubr.msk.f32.gmra.mrb[34].mxu1 %vm313_vm0, %v21052_v48  ;;  %v21055_v48 = vld [vmem:[%s21157_s14 + $0x93] sm:$0xff] }
 0x35a   : > { %25638 = vst [vmem:[#allocation68_spill] sm:$0xff] %v23744_v6  ;;  %v7307_v32 = vmax.f32 %v7212_v63, 0.0  ;;  %19145 = vmatprep.mubr.msk.f32.mxu1 %vm313_vm0, %v21053_v16  ;;  %v21054_v6 = vld [vmem:[%s21157_s14 + $0x83] sm:$0xff] }
 0x35b   : > { %v23752_v54 = vadd.f32 %v7308_v58, %v3984_v22 }
 0x35c   : > { %v23754_v0 = vadd.f32 %v7307_v32, %v3983_v11  ;;  %v18930_v44 = vpop.f32.mrb[58].mxu0 }
 0x35d   : > { %v7310_v26 = vmax.f32 %v18930_v44, 0.0  ;;  %v7222_v2 = vpop.f32.mrb[59].mxu0  ;;  %19146 = vmatmul.mubr.msk.f32.gmra.mrb[36].mxu1 %vm313_vm0, %v21054_v6  ;;  %v21056_v44 = vld [vmem:[%s21157_s14 + $0x9b] sm:$0xff] }
 0x35e   : > { %v7309_v63 = vmax.f32 %v7222_v2, 0.0  ;;  %19148 = vmatprep.mubr.msk.f32.mxu1 %vm313_vm0, %v21055_v48  ;;  %v21057_v2 = vld [vmem:[%s21157_s14 + $0xab] sm:$0xff] }
 0x35f   : > { %v23762_v22 = vadd.f32 %v7310_v26, %v3986_v28 }
 0x360   : > { %v23764_v58 = vadd.f32 %v7309_v63, %v3985_v5  ;;  %v18933_v11 = vpop.f32.mrb[60].mxu0 }
 0x361   : > { %v7312_v32 = vmax.f32 %v18933_v11, 0.0  ;;  %v7232_v16 = vpop.f32.mrb[61].mxu0  ;;  %19149 = vmatmul.mubr.msk.f32.gmra.mrb[38].mxu1 %vm313_vm0, %v21056_v44  ;;  %v21058_v11 = vld [vmem:[%s21157_s14 + $0xb3] sm:$0xff] }
 0x362   : > { %v7311_v6 = vmax.f32 %v7232_v16, 0.0  ;;  %19151 = vmatprep.mubr.msk.f32.mxu1 %vm313_vm0, %v21057_v2  ;;  %v21064_v2 = vld [vmem:[%s21157_s14 + $0xfb] sm:$0xff] }
 0x363   : > { %v23772_v28 = vadd.f32 %v7312_v32, %v3988_v7  ;;  %v21059_v7 = vld [vmem:[%s21157_s14 + $0xc3] sm:$0xff] }
 0x364   : > { %v23774_v26 = vadd.f32 %v7311_v6, %v3987_v21  ;;  %v18936_v5 = vpop.f32.mrb[62].mxu0  ;;  %v21061_v21 = vld [vmem:[%s21157_s14 + $0xdb] sm:$0xff]  ;;  %v21063_v6 = vld [vmem:[%s21157_s14 + $0xf3] sm:$0xff] }
 0x365   : > { %25639 = vst [vmem:[#allocation69_spill] sm:$0xff] %v23772_v28  ;;  %v7314_v63 = vmax.f32 %v18936_v5, 0.0  ;;  %v7242_v48 = vpop.f32.mrb[63].mxu0  ;;  %19152 = vmatmul.mubr.msk.f32.gmra.mrb[40].mxu1 %vm313_vm0, %v21058_v11  ;;  %v21065_v5 = vld [vmem:[%s21157_s14 + $0x10b] sm:$0xff]  ;;  %v21069_v11 = vld [vmem:[%s21157_s14 + $0x13b] sm:$0xff] }
 0x366   : > { %25640 = vst [vmem:[#allocation70_spill] sm:$0xff] %v23774_v26  ;;  %v7313_v16 = vmax.f32 %v7242_v48, 0.0  ;;  %19154 = vmatprep.mubr.msk.f32.mxu1 %vm313_vm0, %v21059_v7  ;;  %v21068_v48 = vld [vmem:[%s21157_s14 + $0x12b] sm:$0xff]  ;;  %v21072_v7 = vld [vmem:[%s21157_s14 + $0x15b] sm:$0xff] }
 0x367   : > { %v23782_v32 = vadd.f32 %v7314_v63, %v3990_v30  ;;  %v21066_v30 = vld [vmem:[%s21157_s14 + $0x113] sm:$0xff]  ;;  %v21067_v63 = vld [vmem:[%s21157_s14 + $0x123] sm:$0xff] }
 0x368   : > { %v23784_v44 = vadd.f32 %v7313_v16, %v3989_v10  ;;  %v21070_v10 = vld [vmem:[%s21157_s14 + $0x143] sm:$0xff]  ;;  %v21071_v16 = vld [vmem:[%s21157_s14 + $0x153] sm:$0xff] }
 0x369   : > { %25641 = vst [vmem:[#allocation71_spill] sm:$0xff] %v23782_v32  ;;  %19155 = vmatmul.mubr.msk.f32.gmra.mrb[42].mxu1 %vm313_vm0, %v21060_v47  ;;  %v21073_v47 = vld [vmem:[%s21157_s14 + $0x16b] sm:$0xff]  ;;  %v25667_v32 = vld [vmem:[#allocation29_spill] sm:$0xff] }
 0x36a   : > { %25642 = vst [vmem:[#allocation72_spill] sm:$0xff] %v23784_v44  ;;  %19157 = vmatprep.mubr.msk.f32.mxu1 %vm313_vm0, %v21061_v21  ;;  %v21074_v21 = vld [vmem:[%s21157_s14 + $0x173] sm:$0xff]  ;;  %v25668_v26 = vld [vmem:[#allocation30_spill] sm:$0xff] }
 0x36b   : > { %v25666_v44 = vld [vmem:[#allocation28_spill] sm:$0xff]  ;;  %v25669_v28 = vld [vmem:[#allocation31_spill] sm:$0xff] }
 0x36d   : > { %19158 = vmatmul.mubr.msk.f32.gmra.mrb[44].mxu1 %vm313_vm0, %v21062_v52  ;;  %v21075_v52 = vld [vmem:[%s21157_s14 + $0x183] sm:$0xff] }
 0x36e   : > { %19160 = vmatprep.mubr.msk.f32.mxu1 %vm313_vm0, %v21063_v6  ;;  %v21076_v6 = vld [vmem:[%s21157_s14 + $0x18b] sm:$0xff] }
 0x371   : > { %19161 = vmatmul.mubr.msk.f32.gmra.mrb[46].mxu1 %vm313_vm0, %v21064_v2  ;;  %v21077_v2 = vld [vmem:[%s21157_s14 + $0x19b] sm:$0xff] }
 0x372   : > { %19163 = vmatprep.mubr.msk.f32.mxu1 %vm313_vm0, %v21065_v5  ;;  %v21078_v5 = vld [vmem:[%s21157_s14 + $0x1a3] sm:$0xff] }
 0x375   : > { %19164 = vmatmul.mubr.msk.f32.gmra.mrb[48].mxu1 %vm313_vm0, %v21066_v30  ;;  %v21079_v30 = vld [vmem:[%s21157_s14 + $0x1b3] sm:$0xff] }
 0x376   : > { %19166 = vmatprep.mubr.msk.f32.mxu1 %vm313_vm0, %v21067_v63  ;;  %v21080_v63 = vld [vmem:[%s21157_s14 + $0x1bb] sm:$0xff] }
 0x379   : > { %19167 = vmatmul.mubr.msk.f32.gmra.mrb[50].mxu1 %vm313_vm0, %v21068_v48  ;;  %v16267_v48 = vld [vmem:[%s25251_s3 + $0x38] sm:$0xff] }
 0x37a   : > { %19169 = vmatprep.mubr.msk.f32.mxu1 %vm313_vm0, %v21069_v11  ;;  %v25644_v11 = vld [vmem:[#allocation33_spill] sm:$0xff] }
 0x37d   : > { %19170 = vmatmul.mubr.msk.f32.gmra.mrb[52].mxu1 %vm313_vm0, %v21070_v10  ;;  %v25645_v10 = vld [vmem:[#allocation34_spill] sm:$0xff] }
 0x37e   : > { %19172 = vmatprep.mubr.msk.f32.mxu1 %vm313_vm0, %v21071_v16  ;;  %v25651_v16 = vld [vmem:[#allocation43_spill] sm:$0xff] }
 0x381   : > { %19173 = vmatmul.mubr.msk.f32.gmra.mrb[54].mxu1 %vm313_vm0, %v21072_v7  ;;  %v25652_v7 = vld [vmem:[#allocation45_spill] sm:$0xff] }
 0x382   : > { %19175 = vmatprep.mubr.msk.f32.mxu1 %vm313_vm0, %v21073_v47  ;;  %v25653_v47 = vld [vmem:[#allocation47_spill] sm:$0xff] }
 0x385   : > { %19176 = vmatmul.mubr.msk.f32.gmra.mrb[56].mxu1 %vm313_vm0, %v21074_v21  ;;  %v25654_v21 = vld [vmem:[#allocation49_spill] sm:$0xff] }
 0x386   : > { %19178 = vmatprep.mubr.msk.f32.mxu1 %vm313_vm0, %v21075_v52  ;;  %v25655_v52 = vld [vmem:[#allocation51_spill] sm:$0xff] }
 0x389   : > { %19179 = vmatmul.mubr.msk.f32.gmra.mrb[58].mxu1 %vm313_vm0, %v21076_v6  ;;  %v25656_v6 = vld [vmem:[#allocation53_spill] sm:$0xff] }
 0x38a   : > { %19181 = vmatprep.mubr.msk.f32.mxu1 %vm313_vm0, %v21077_v2  ;;  %v25657_v2 = vld [vmem:[#allocation55_spill] sm:$0xff] }
 0x38d   : > { %19182 = vmatmul.mubr.msk.f32.gmra.mrb[60].mxu1 %vm313_vm0, %v21078_v5  ;;  %v25658_v5 = vld [vmem:[#allocation57_spill] sm:$0xff] }
 0x38e   : > { %19184 = vmatprep.mubr.msk.f32.mxu1 %vm313_vm0, %v21079_v30  ;;  %v25659_v30 = vld [vmem:[#allocation59_spill] sm:$0xff] }
 0x391   : > { %19185 = vmatmul.mubr.msk.f32.gmra.mrb[62].mxu1 %vm313_vm0, %v21080_v63  ;;  %v25660_v63 = vld [vmem:[#allocation60_spill] sm:$0xff] }
 0x392   : > { %19189 = vmatprep.mubr.msk.f32.mxu1 %vm313_vm0, %v23378_v46  ;;  %v25643_v46 = vld [vmem:[#allocation32_spill] sm:$0xff] }
 0x395   : > { %19190 = vmatmul.mubr.msk.f32.vlgmr.msra.gmra.mrb[32].mxu1 %vm313_vm0, %v23384_v14  ;;  %v25646_v14 = vld [vmem:[#allocation35_spill] sm:$0xff] }
 0x396   : > { %19238 = vmatpush3.msra.mxu1 %v23732_v61  ;;  %19192 = vmatprep.mubr.msk.f32.mxu1 %vm313_vm0, %v23387_v57  ;;  %v25647_v57 = vld [vmem:[#allocation36_spill] sm:$0xff]  ;;  %v25648_v61 = vld [vmem:[#allocation37_spill] sm:$0xff] }
 0x397   : > { %19287 = vmatprep.subr.mxu1 %v16267_v48 }
 0x399   : > { %19193 = vmatmul.mubr.msk.f32.gmra.mrb[34].mxu1 %vm313_vm0, %v23394_v50  ;;  %v25649_v50 = vld [vmem:[#allocation39_spill] sm:$0xff] }
 0x39a   : > { %19195 = vmatprep.mubr.msk.f32.mxu1 %vm313_vm0, %v23397_v59  ;;  %v25650_v59 = vld [vmem:[#allocation41_spill] sm:$0xff] }
 0x39d   : > { %19196 = vmatmul.mubr.msk.f32.gmra.mrb[36].mxu1 %vm313_vm0, %v25643_v46  ;;  %v25661_v46 = vld [vmem:[#allocation62_spill] sm:$0xff] }
 0x39e   : > { %19198 = vmatprep.mubr.msk.f32.mxu1 %vm313_vm0, %v25644_v11  ;;  %v25662_v11 = vld [vmem:[#allocation63_spill] sm:$0xff] }
 0x3a1   : > { %19199 = vmatmul.mubr.msk.f32.gmra.mrb[38].mxu1 %vm313_vm0, %v25645_v10  ;;  %v23883_v10 = vld [vmem:[%s21157_s14 + $0x186] sm:$0xff] }
 0x3a2   : > { %19201 = vmatprep.mubr.msk.f32.mxu1 %vm313_vm0, %v25646_v14  ;;  %v25663_v14 = vld [vmem:[#allocation3_spill] sm:$0xff] }
 0x3a5   : > { %19202 = vmatmul.mubr.msk.f32.gmra.mrb[40].mxu1 %vm313_vm0, %v25647_v57  ;;  %v23890_v57 = vld [vmem:[%s21157_s14 + $0x18e] sm:$0xff] }
 0x3a6   : > { %19204 = vmatprep.mubr.msk.f32.mxu1 %vm313_vm0, %v25648_v61  ;;  %v23893_v61 = vld [vmem:[%s21157_s14 + $0x19e] sm:$0xff] }
 0x3a9   : > { %19205 = vmatmul.mubr.msk.f32.gmra.mrb[42].mxu1 %vm313_vm0, %v25649_v50  ;;  %v23900_v50 = vld [vmem:[%s21157_s14 + $0x1a6] sm:$0xff] }
 0x3aa   : > { %19207 = vmatprep.mubr.msk.f32.mxu1 %vm313_vm0, %v25650_v59  ;;  %v23903_v59 = vld [vmem:[%s21157_s14 + $0x1b6] sm:$0xff] }
 0x3ad   : > { %19208 = vmatmul.mubr.msk.f32.gmra.mrb[44].mxu1 %vm313_vm0, %v25651_v16  ;;  %v23910_v16 = vld [vmem:[%s21157_s14 + $0x1be] sm:$0xff] }
 0x3ae   : > { %19210 = vmatprep.mubr.msk.f32.mxu1 %vm313_vm0, %v25652_v7  ;;  %v25664_v7 = vld [vmem:[#allocation26_spill] sm:$0xff] }
 0x3b1   : > { %19211 = vmatmul.mubr.msk.f32.gmra.mrb[46].mxu1 %vm313_vm0, %v25653_v47  ;;  %v16332_v47 = vld [vmem:[%s25251_s3 + $0x40] sm:$0xff] }
 0x3b2   : > { %19213 = vmatprep.mubr.msk.f32.mxu1 %vm313_vm0, %v25654_v21  ;;  %v25665_v21 = vld [vmem:[#allocation27_spill] sm:$0xff] }
 0x3b5   : > { %19214 = vmatmul.mubr.msk.f32.gmra.mrb[48].mxu1 %vm313_vm0, %v25655_v52 }
 0x3b6   : > { %19216 = vmatprep.mubr.msk.f32.mxu1 %vm313_vm0, %v25656_v6 }
 0x3b9   : > { %19217 = vmatmul.mubr.msk.f32.gmra.mrb[50].mxu1 %vm313_vm0, %v25657_v2 }
 0x3ba   : > { %19219 = vmatprep.mubr.msk.f32.mxu1 %vm313_vm0, %v25658_v5 }
 0x3bd   : > { %19220 = vmatmul.mubr.msk.f32.gmra.mrb[52].mxu1 %vm313_vm0, %v25659_v30 }
 0x3be   : > { %19222 = vmatprep.mubr.msk.f32.mxu1 %vm313_vm0, %v25660_v63 }
 0x3c1   : > { %19223 = vmatmul.mubr.msk.f32.gmra.mrb[54].mxu1 %vm313_vm0, %v25661_v46 }
 0x3c2   : > { %19225 = vmatprep.mubr.msk.f32.mxu1 %vm313_vm0, %v25662_v11 }
 0x3c5   : > { %19226 = vmatmul.mubr.msk.f32.gmra.mrb[56].mxu1 %vm313_vm0, %v25663_v14 }
 0x3c6   : > { %19228 = vmatprep.mubr.msk.f32.mxu1 %vm313_vm0, %v23883_v10 }
 0x3c9   : > { %19229 = vmatmul.mubr.msk.f32.gmra.mrb[58].mxu1 %vm313_vm0, %v23890_v57 }
 0x3ca   : > { %19231 = vmatprep.mubr.msk.f32.mxu1 %vm313_vm0, %v23893_v61 }
 0x3cd   : > { %19232 = vmatmul.mubr.msk.f32.gmra.mrb[60].mxu1 %vm313_vm0, %v23900_v50 }
 0x3ce   : > { %19234 = vmatprep.mubr.msk.f32.mxu1 %vm313_vm0, %v23903_v59 }
 0x3d1   : > { %19235 = vmatmul.mubr.msk.f32.gmra.mrb[62].mxu1 %vm313_vm0, %v23910_v16 }
 0x3d2   : > { %19239 = vmatprep.mubr.msk.f32.mxu1 %vm313_vm0, %v25664_v7  ;;  %v16250_v7 = vld [vmem:[%s21157_s14 + $0x143] sm:$0xff] }
 0x3d5   : > { %19240 = vmatmul.mubr.msk.f32.vlgmr.msra.gmra.mrb[32].mxu1 %vm313_vm0, %v25665_v21  ;;  %v16252_v21 = vld [vmem:[%s21157_s14 + $0x15b] sm:$0xff] }
 0x3d6   : > { %19288 = vmatpush3.msra.mxu1 %v16267_v48  ;;  %19242 = vmatprep.mubr.msk.f32.mxu1 %vm313_vm0, %v25666_v44  ;;  %v16248_v44 = vld [vmem:[%s21157_s14 + $0x12b] sm:$0xff]  ;;  %v16249_v48 = vld [vmem:[%s21157_s14 + $0x13b] sm:$0xff] }
 0x3d7   : > { %19337 = vmatprep.subr.mxu1 %v16332_v47 }
 0x3d9   : > { %19243 = vmatmul.mubr.msk.f32.gmra.mrb[34].mxu1 %vm313_vm0, %v25667_v32  ;;  %v16247_v32 = vld [vmem:[%s21157_s14 + $0x123] sm:$0xff] }
 0x3da   : > { %19245 = vmatprep.mubr.msk.f32.mxu1 %vm313_vm0, %v25668_v26  ;;  %v16246_v26 = vld [vmem:[%s21157_s14 + $0x113] sm:$0xff] }
 0x3dd   : > { %19246 = vmatmul.mubr.msk.f32.gmra.mrb[36].mxu1 %vm313_vm0, %v25669_v28  ;;  %v16245_v28 = vld [vmem:[%s21157_s14 + $0x10b] sm:$0xff] }
 0x3de   : > { %19248 = vmatprep.mubr.msk.f32.mxu1 %vm313_vm0, %v23288_v37  ;;  %v16196_v37 = vld [vmem:[%s21157_s14 + $0x1c8] sm:$0xff] }
 0x3e1   : > { %19249 = vmatmul.mubr.msk.f32.gmra.mrb[38].mxu1 %vm313_vm0, %v23295_v29  ;;  %v16197_v29 = vld [vmem:[%s21157_s14 + $0x1d0] sm:$0xff] }
 0x3e2   : > { %19251 = vmatprep.mubr.msk.f32.mxu1 %vm313_vm0, %v23298_v18  ;;  %v16198_v18 = vld [vmem:[%s21157_s14 + $0x1e0] sm:$0xff] }
 0x3e5   : > { %19252 = vmatmul.mubr.msk.f32.gmra.mrb[40].mxu1 %vm313_vm0, %v23305_v15  ;;  %v16199_v15 = vld [vmem:[%s21157_s14 + $0x1e8] sm:$0xff] }
 0x3e6   : > { %19254 = vmatprep.mubr.msk.f32.mxu1 %vm313_vm0, %v23308_v13  ;;  %v16200_v13 = vld [vmem:[%s21157_s14 + $0x1f8] sm:$0xff] }
 0x3e9   : > { %19255 = vmatmul.mubr.msk.f32.gmra.mrb[42].mxu1 %vm313_vm0, %v23315_v35  ;;  %v16201_v35 = vld [vmem:[%s21157_s14 + $0x200] sm:$0xff] }
 0x3ea   : > { %19257 = vmatprep.mubr.msk.f32.mxu1 %vm313_vm0, %v23318_v31  ;;  %v16235_v31 = vld [vmem:[%s21157_s14 + $0x93] sm:$0xff] }
 0x3ed   : > { %19258 = vmatmul.mubr.msk.f32.gmra.mrb[44].mxu1 %vm313_vm0, %v23325_v38  ;;  %v16365_v38 = vld [vmem:[%s25253_s5 + $0x10] sm:$0xff] }
 0x3ee   : > { %19260 = vmatprep.mubr.msk.f32.mxu1 %vm313_vm0, %v23328_v45  ;;  %v16366_v45 = vld [vmem:[%s25253_s5 + $0x18] sm:$0xf] }
 0x3f1   : > { %19261 = vmatmul.mubr.msk.f32.gmra.mrb[46].mxu1 %vm313_vm0, %v23335_v43  ;;  %v16236_v43 = vld [vmem:[%s21157_s14 + $0x9b] sm:$0xff] }
 0x3f2   : > { %19263 = vmatprep.mubr.msk.f32.mxu1 %vm313_vm0, %v23338_v12  ;;  %v19927_v12 = vpack.c.bf16 %v16366_v45, %v16365_v38  ;;  %v16260_v38 = vld [vmem:[%s21157_s14 + $0x1bb] sm:$0xff]  ;;  %v16261_v45 = vld [vmem:[%s21157_s14 + $0x1cb] sm:$0xff] }
 0x3f4   : > { %19929 = vmatprep.subr.msk.bf16.mxu0 %vm23990_vm3, %v19927_v12 }
 0x3f5   : > { %19264 = vmatmul.mubr.msk.f32.gmra.mrb[48].mxu1 %vm313_vm0, %v23345_v36  ;;  %19932 = vmatpush3.bf16.msk.msra.mxu0 %vm23990_vm3, %v19927_v12  ;;  %v16263_v12 = vld [vmem:[%s21157_s14 + $0x1e3] sm:$0xff] }
 0x3f6   : > { %19266 = vmatprep.mubr.msk.f32.mxu1 %vm313_vm0, %v23348_v49  ;;  %v16237_v49 = vld [vmem:[%s21157_s14 + $0xab] sm:$0xff] }
 0x3f9   : > { %19267 = vmatmul.mubr.msk.f32.gmra.mrb[50].mxu1 %vm313_vm0, %v23355_v53  ;;  %v16238_v53 = vld [vmem:[%s21157_s14 + $0xb3] sm:$0xff] }
 0x3fa   : > { %19269 = vmatprep.mubr.msk.f32.mxu1 %vm313_vm0, %v23670_v51  ;;  %v16239_v51 = vld [vmem:[%s21157_s14 + $0xc3] sm:$0xff] }
 0x3fd   : > { %19270 = vmatmul.mubr.msk.f32.gmra.mrb[52].mxu1 %vm313_vm0, %v23681_v3  ;;  %v16240_v3 = vld [vmem:[%s21157_s14 + $0xcb] sm:$0xff] }
 0x3fe   : > { %19272 = vmatprep.mubr.msk.f32.mxu1 %vm313_vm0, %v23686_v55  ;;  %v16241_v55 = vld [vmem:[%s21157_s14 + $0xdb] sm:$0xff] }
 0x401   : > { %19273 = vmatmul.mubr.msk.f32.gmra.mrb[54].mxu1 %vm313_vm0, %v23697_v24  ;;  %v16242_v24 = vld [vmem:[%s21157_s14 + $0xe3] sm:$0xff] }
 0x402   : > { %19275 = vmatprep.mubr.msk.f32.mxu1 %vm313_vm0, %v23702_v42  ;;  %v16243_v42 = vld [vmem:[%s21157_s14 + $0xf3] sm:$0xff] }
 0x405   : > { %19276 = vmatmul.mubr.msk.f32.gmra.mrb[56].mxu1 %vm313_vm0, %v23713_v27  ;;  %v16244_v27 = vld [vmem:[%s21157_s14 + $0xfb] sm:$0xff] }
 0x406   : > { %19278 = vmatprep.mubr.msk.f32.mxu1 %vm313_vm0, %v16196_v37  ;;  %v16253_v37 = vld [vmem:[%s21157_s14 + $0x16b] sm:$0xff] }
 0x409   : > { %19279 = vmatmul.mubr.msk.f32.gmra.mrb[58].mxu1 %vm313_vm0, %v16197_v29  ;;  %v16254_v29 = vld [vmem:[%s21157_s14 + $0x173] sm:$0xff] }
 0x40a   : > { %19281 = vmatprep.mubr.msk.f32.mxu1 %vm313_vm0, %v16198_v18  ;;  %v16255_v18 = vld [vmem:[%s21157_s14 + $0x183] sm:$0xff] }
 0x40d   : > { %19282 = vmatmul.mubr.msk.f32.gmra.mrb[60].mxu1 %vm313_vm0, %v16199_v15  ;;  %v16256_v15 = vld [vmem:[%s21157_s14 + $0x18b] sm:$0xff] }
 0x40e   : > { %19284 = vmatprep.mubr.msk.f32.mxu1 %vm313_vm0, %v16200_v13  ;;  %v16257_v13 = vld [vmem:[%s21157_s14 + $0x19b] sm:$0xff] }
 0x411   : > { %19285 = vmatmul.mubr.msk.f32.gmra.mrb[62].mxu1 %vm313_vm0, %v16201_v35  ;;  %v16258_v35 = vld [vmem:[%s21157_s14 + $0x1a3] sm:$0xff] }
 0x412   : > { %19289 = vmatprep.mubr.msk.f32.mxu1 %vm313_vm0, %v16235_v31  ;;  %v16259_v31 = vld [vmem:[%s21157_s14 + $0x1b3] sm:$0xff] }
 0x415   : > { %19290 = vmatmul.mubr.msk.f32.vlgmr.msra.gmra.mrb[32].mxu1 %vm313_vm0, %v16236_v43  ;;  %v16262_v43 = vld [vmem:[%s21157_s14 + $0x1d3] sm:$0xff] }
 0x416   : > { %19338 = vmatpush3.msra.mxu1 %v16332_v47  ;;  %19292 = vmatprep.mubr.msk.f32.mxu1 %vm313_vm0, %v16237_v49  ;;  %v16251_v47 = vld [vmem:[%s21157_s14 + $0x153] sm:$0xff]  ;;  %v16264_v49 = vld [vmem:[%s21157_s14 + $0x1eb] sm:$0xff] }
 0x419   : > { %19293 = vmatmul.mubr.msk.f32.gmra.mrb[34].mxu1 %vm313_vm0, %v16238_v53  ;;  %v16265_v53 = vld [vmem:[%s21157_s14 + $0x1fb] sm:$0xff] }
 0x41a   : > { %19295 = vmatprep.mubr.msk.f32.mxu1 %vm313_vm0, %v16239_v51  ;;  %v16266_v51 = vld [vmem:[%s21157_s14 + $0x203] sm:$0xff] }
 0x41d   : > { %19296 = vmatmul.mubr.msk.f32.gmra.mrb[36].mxu1 %vm313_vm0, %v16240_v3  ;;  %v16300_v3 = vld [vmem:[%s21157_s14 + $0x96] sm:$0xff] }
 0x41e   : > { %19298 = vmatprep.mubr.msk.f32.mxu1 %vm313_vm0, %v16241_v55  ;;  %v16301_v55 = vld [vmem:[%s21157_s14 + $0x9e] sm:$0xff] }
 0x421   : > { %19299 = vmatmul.mubr.msk.f32.gmra.mrb[38].mxu1 %vm313_vm0, %v16242_v24  ;;  %v16302_v24 = vld [vmem:[%s21157_s14 + $0xae] sm:$0xff] }
 0x422   : > { %19301 = vmatprep.mubr.msk.f32.mxu1 %vm313_vm0, %v16243_v42  ;;  %v16303_v42 = vld [vmem:[%s21157_s14 + $0xb6] sm:$0xff] }
 0x425   : > { %19302 = vmatmul.mubr.msk.f32.gmra.mrb[40].mxu1 %vm313_vm0, %v16244_v27  ;;  %v16304_v27 = vld [vmem:[%s21157_s14 + $0xc6] sm:$0xff] }
 0x426   : > { %19304 = vmatprep.mubr.msk.f32.mxu1 %vm313_vm0, %v16245_v28  ;;  %v16305_v28 = vld [vmem:[%s21157_s14 + $0xce] sm:$0xff] }
 0x429   : > { %19305 = vmatmul.mubr.msk.f32.gmra.mrb[42].mxu1 %vm313_vm0, %v16246_v26  ;;  %v16306_v26 = vld [vmem:[%s21157_s14 + $0xde] sm:$0xff] }
 0x42a   : > { %19307 = vmatprep.mubr.msk.f32.mxu1 %vm313_vm0, %v16247_v32  ;;  %v16307_v32 = vld [vmem:[%s21157_s14 + $0xe6] sm:$0xff] }
 0x42d   : > { %19308 = vmatmul.mubr.msk.f32.gmra.mrb[44].mxu1 %vm313_vm0, %v16248_v44  ;;  %v16308_v44 = vld [vmem:[%s21157_s14 + $0xf6] sm:$0xff] }
 0x42e   : > { %19310 = vmatprep.mubr.msk.f32.mxu1 %vm313_vm0, %v16249_v48  ;;  %v16309_v48 = vld [vmem:[%s21157_s14 + $0xfe] sm:$0xff] }
 0x431   : > { %19311 = vmatmul.mubr.msk.f32.gmra.mrb[46].mxu1 %vm313_vm0, %v16250_v7  ;;  %v16310_v7 = vld [vmem:[%s21157_s14 + $0x10e] sm:$0xff] }
 0x432   : > { %19313 = vmatprep.mubr.msk.f32.mxu1 %vm313_vm0, %v16251_v47 }
 0x435   : > { %19314 = vmatmul.mubr.msk.f32.gmra.mrb[48].mxu1 %vm313_vm0, %v16252_v21 }
 0x436   : > { %19316 = vmatprep.mubr.msk.f32.mxu1 %vm313_vm0, %v16253_v37 }
 0x439   : > { %19317 = vmatmul.mubr.msk.f32.gmra.mrb[50].mxu1 %vm313_vm0, %v16254_v29 }
 0x43a   : > { %19319 = vmatprep.mubr.msk.f32.mxu1 %vm313_vm0, %v16255_v18  ;;  %v25672_v18 = vld [vmem:[#allocation5_spill] sm:$0xff] }
 0x43d   : > { %19320 = vmatmul.mubr.msk.f32.gmra.mrb[52].mxu1 %vm313_vm0, %v16256_v15  ;;  %v636_v15 = vmax.f32 %v25672_v18, 0.0 }
 0x43e   : > { %19322 = vmatprep.mubr.msk.f32.mxu1 %vm313_vm0, %v16257_v13 }
 0x441   : > { %19323 = vmatmul.mubr.msk.f32.gmra.mrb[54].mxu1 %vm313_vm0, %v16258_v35  ;;  %v25673_v35 = vld [vmem:[#allocation42_spill] sm:$0xff] }
 0x442   : > { %19325 = vmatprep.mubr.msk.f32.mxu1 %vm313_vm0, %v16259_v31  ;;  %v635_v31 = vmax.f32 %v25673_v35, 0.0 }
 0x445   : > { %19326 = vmatmul.mubr.msk.f32.gmra.mrb[56].mxu1 %vm313_vm0, %v16260_v38 }
 0x446   : > { %19328 = vmatprep.mubr.msk.f32.mxu1 %vm313_vm0, %v16261_v45 }
 0x449   : > { %19329 = vmatmul.mubr.msk.f32.gmra.mrb[58].mxu1 %vm313_vm0, %v16262_v43 }
 0x44a   : > { %19331 = vmatprep.mubr.msk.f32.mxu1 %vm313_vm0, %v16263_v12 }
 0x44d   : > { %19332 = vmatmul.mubr.msk.f32.gmra.mrb[60].mxu1 %vm313_vm0, %v16264_v49 }
 0x44e   : > { %19334 = vmatprep.mubr.msk.f32.mxu1 %vm313_vm0, %v16265_v53 }
 0x451   : > { %19335 = vmatmul.mubr.msk.f32.gmra.mrb[62].mxu1 %vm313_vm0, %v16266_v51 }
 0x452   : > { %19339 = vmatprep.mubr.msk.f32.mxu1 %vm313_vm0, %v16300_v3  ;;  %v25674_v3 = vld [vmem:[#allocation6_spill] sm:$0xff] }
 0x455   : > { %19340 = vmatmul.mubr.msk.f32.vlgmr.msra.gmra.mrb[32].mxu1 %vm313_vm0, %v16301_v55  ;;  %v638_v55 = vmax.f32 %v25674_v3, 0.0 }
 0x456   : > { %19342 = vmatprep.mubr.msk.f32.mxu1 %vm313_vm0, %v16302_v24 }
 0x459   : > { %19343 = vmatmul.mubr.msk.f32.gmra.mrb[34].mxu1 %vm313_vm0, %v16303_v42  ;;  %v25675_v42 = vld [vmem:[#allocation44_spill] sm:$0xff] }
 0x45a   : > { %19345 = vmatprep.mubr.msk.f32.mxu1 %vm313_vm0, %v16304_v27  ;;  %v637_v27 = vmax.f32 %v25675_v42, 0.0 }
 0x45d   : > { %19346 = vmatmul.mubr.msk.f32.gmra.mrb[36].mxu1 %vm313_vm0, %v16305_v28 }
 0x45e   : > { %19348 = vmatprep.mubr.msk.f32.mxu1 %vm313_vm0, %v16306_v26 }
 0x461   : > { %19349 = vmatmul.mubr.msk.f32.gmra.mrb[38].mxu1 %vm313_vm0, %v16307_v32 }
 0x462   : > { %19351 = vmatprep.mubr.msk.f32.mxu1 %vm313_vm0, %v16308_v44 }
 0x465   : > { %19352 = vmatmul.mubr.msk.f32.gmra.mrb[40].mxu1 %vm313_vm0, %v16309_v48 }
 0x466   : > { %19354 = vmatprep.mubr.msk.f32.mxu1 %vm313_vm0, %v16310_v7  ;;  %v25676_v7 = vld [vmem:[#allocation7_spill] sm:$0xff] }
 0x469   : > { %19355 = vmatmul.mubr.msk.f32.gmra.mrb[42].mxu1 %vm313_vm0, %v25655_v52  ;;  %v16326_v52 = vld [vmem:[%s21157_s14 + $0x1ce] sm:$0xff] }
 0x46a   : > { %19357 = vmatprep.mubr.msk.f32.mxu1 %vm313_vm0, %v25656_v6  ;;  %v16327_v6 = vld [vmem:[%s21157_s14 + $0x1d6] sm:$0xff] }
 0x46d   : > { %19358 = vmatmul.mubr.msk.f32.gmra.mrb[44].mxu1 %vm313_vm0, %v25657_v2  ;;  %v16328_v2 = vld [vmem:[%s21157_s14 + $0x1e6] sm:$0xff] }
 0x46e   : > { %19360 = vmatprep.mubr.msk.f32.mxu1 %vm313_vm0, %v25658_v5  ;;  %v16329_v5 = vld [vmem:[%s21157_s14 + $0x1ee] sm:$0xff] }
 0x471   : > { %19361 = vmatmul.mubr.msk.f32.gmra.mrb[46].mxu1 %vm313_vm0, %v25659_v30  ;;  %v16330_v30 = vld [vmem:[%s21157_s14 + $0x1fe] sm:$0xff] }
 0x472   : > { %19363 = vmatprep.mubr.msk.f32.mxu1 %vm313_vm0, %v25660_v63  ;;  %v16331_v63 = vld [vmem:[%s21157_s14 + $0x206] sm:$0xff] }
 0x475   : > { %19364 = vmatmul.mubr.msk.f32.gmra.mrb[48].mxu1 %vm313_vm0, %v25661_v46  ;;  %v21090_v46 = vmov 0.0  }
 0x476   : > { %19366 = vmatprep.mubr.msk.f32.mxu1 %vm313_vm0, %v25662_v11  ;;  %10740 = vst.msk [vmem:[#allocation2 + $0x20] sm:$0xff] %vm10734_vm4, %v21090_v46  ;;  %10735 = vst.msk [vmem:[#allocation2] sm:$0xff] %vm10734_vm4, %v21090_v46 }
 0x477   : > { %10736 = vst.msk [vmem:[#allocation2 + $0x8] sm:$0xff] %vm10734_vm4, %v21090_v46  ;;  %10739 = vst.msk [vmem:[#allocation2 + $0x18] sm:$0xff] %vm10734_vm4, %v21090_v46 }
 0x478   : > { %10742 = vst.msk [vmem:[#allocation2 + $0x30] sm:$0xff] %vm10734_vm4, %v21090_v46  ;;  %10743 = vst.msk [vmem:[#allocation2 + $0x38] sm:$0xff] %vm10734_vm4, %v21090_v46 }
 0x479   : > { %19367 = vmatmul.mubr.msk.f32.gmra.mrb[50].mxu1 %vm313_vm0, %v25663_v14  ;;  %10745 = vst.msk [vmem:[#allocation2 + $0x48] sm:$0xff] %vm10734_vm4, %v21090_v46  ;;  %10746 = vst.msk [vmem:[#allocation2 + $0x50] sm:$0xff] %vm10734_vm4, %v21090_v46  ;;  %v10855_v14 = vld [vmem:[%s25253_s5] sm:$0xff] }
 0x47a   : > { %19369 = vmatprep.mubr.msk.f32.mxu1 %vm313_vm0, %v23883_v10  ;;  %10748 = vst.msk [vmem:[#allocation2 + $0x60] sm:$0xff] %vm10734_vm4, %v21090_v46  ;;  %10749 = vst.msk [vmem:[#allocation2 + $0x68] sm:$0xff] %vm10734_vm4, %v21090_v46 }
 0x47b   : > { %10751 = vst.msk [vmem:[#allocation2 + $0x78] sm:$0xff] %vm10734_vm4, %v21090_v46  ;;  %10752 = vst.msk [vmem:[#allocation2 + $0x80] sm:$0xff] %vm10734_vm4, %v21090_v46 }
 0x47c   : > { %10754 = vst.msk [vmem:[#allocation2 + $0x90] sm:$0xff] %vm10734_vm4, %v21090_v46  ;;  %10755 = vst.msk [vmem:[#allocation2 + $0x98] sm:$0xff] %vm10734_vm4, %v21090_v46 }
 0x47d   : > { %19370 = vmatmul.mubr.msk.f32.gmra.mrb[52].mxu1 %vm313_vm0, %v23890_v57  ;;  %10757 = vst.msk [vmem:[#allocation2 + $0xa8] sm:$0xff] %vm10734_vm4, %v21090_v46  ;;  %10758 = vst.msk [vmem:[#allocation2 + $0xb0] sm:$0xff] %vm10734_vm4, %v21090_v46  ;;  %v10856_v57 = vld [vmem:[%s25253_s5 + $0x8] sm:$0xf] }
 0x47e   : > { %19372 = vmatprep.mubr.msk.f32.mxu1 %vm313_vm0, %v23893_v61  ;;  %10760 = vst.msk [vmem:[#allocation2 + $0xc0] sm:$0xff] %vm10734_vm4, %v21090_v46  ;;  %10761 = vst.msk [vmem:[#allocation2 + $0xc8] sm:$0xff] %vm10734_vm4, %v21090_v46  ;;  %v10857_v11 = vld [vmem:[#allocation2 + $0x1] sm:$0xff]  ;;  %v19933_v61 = vpack.c.bf16 %v10856_v57, %v10855_v14  ;;  %v25678_v14 = vld [vmem:[#allocation8_spill] sm:$0xff] }
 0x47f   : > { %10763 = vst.msk [vmem:[#allocation2 + $0xd8] sm:$0xff] %vm10734_vm4, %v21090_v46  ;;  %10764 = vst.msk [vmem:[#allocation2 + $0xe0] sm:$0xff] %vm10734_vm4, %v21090_v46  ;;  %19391 = vmatprep.mubr.msk.f32.mxu0 %vm10734_vm4, %v10857_v11  ;;  %v642_v57 = vmax.f32 %v25678_v14, 0.0 }
 0x480   : > { %10766 = vst.msk [vmem:[#allocation2 + $0xf0] sm:$0xff] %vm10734_vm4, %v21090_v46  ;;  %10767 = vst.msk [vmem:[#allocation2 + $0xf8] sm:$0xff] %vm10734_vm4, %v21090_v46  ;;  %19935 = vmatprep.subr.msk.bf16.mxu0 %vm23990_vm3, %v19933_v61 }
 0x481   : > { %19373 = vmatmul.mubr.msk.f32.gmra.mrb[54].mxu1 %vm313_vm0, %v23900_v50  ;;  %10769 = vst.msk [vmem:[#allocation2 + $0x108] sm:$0xff] %vm10734_vm4, %v21090_v46  ;;  %10770 = vst.msk [vmem:[#allocation2 + $0x110] sm:$0xff] %vm10734_vm4, %v21090_v46  ;;  %v16433_v50 = vld [vmem:[%s25253_s5 + $0x20] sm:$0xff] }
 0x482   : > { %19375 = vmatprep.mubr.msk.f32.mxu1 %vm313_vm0, %v23903_v59  ;;  %10772 = vst.msk [vmem:[#allocation2 + $0x120] sm:$0xff] %vm10734_vm4, %v21090_v46  ;;  %10773 = vst.msk [vmem:[#allocation2 + $0x128] sm:$0xff] %vm10734_vm4, %v21090_v46  ;;  %v16434_v59 = vld [vmem:[%s25253_s5 + $0x28] sm:$0xf] }
 0x483   : > { %10775 = vst.msk [vmem:[#allocation2 + $0x138] sm:$0xff] %vm10734_vm4, %v21090_v46  ;;  %10776 = vst.msk [vmem:[#allocation2 + $0x140] sm:$0xff] %vm10734_vm4, %v21090_v46 }
 0x484   : > { %10778 = vst.msk [vmem:[#allocation2 + $0x150] sm:$0xff] %vm10734_vm4, %v21090_v46  ;;  %10779 = vst.msk [vmem:[#allocation2 + $0x158] sm:$0xff] %vm10734_vm4, %v21090_v46 }
 0x485   : > { %19376 = vmatmul.mubr.msk.f32.gmra.mrb[56].mxu1 %vm313_vm0, %v23910_v16  ;;  %10781 = vst.msk [vmem:[#allocation2 + $0x168] sm:$0xff] %vm10734_vm4, %v21090_v46  ;;  %10782 = vst.msk [vmem:[#allocation2 + $0x170] sm:$0xff] %vm10734_vm4, %v21090_v46  ;;  %v24195_v16 = vpack.c.bf16 %v16434_v59, %v16433_v50 }
 0x486   : > { %19378 = vmatprep.mubr.msk.f32.mxu1 %vm313_vm0, %v16326_v52  ;;  %10784 = vst.msk [vmem:[#allocation2 + $0x180] sm:$0xff] %vm10734_vm4, %v21090_v46  ;;  %10785 = vst.msk [vmem:[#allocation2 + $0x188] sm:$0xff] %vm10734_vm4, %v21090_v46  ;;  %v640_v52 = vmax.f32 %v25676_v7, 0.0 }
 0x487   : > { %10787 = vst.msk [vmem:[#allocation2 + $0x198] sm:$0xff] %vm10734_vm4, %v21090_v46  ;;  %10788 = vst.msk [vmem:[#allocation2 + $0x1a0] sm:$0xff] %vm10734_vm4, %v21090_v46 }
 0x488   : > { %10741 = vst.msk [vmem:[#allocation2 + $0x28] sm:$0x3] %vm10737_vm5, %v21090_v46  ;;  %10738 = vst.msk [vmem:[#allocation2 + $0x10] sm:$0x3] %vm10737_vm5, %v21090_v46 }
 0x489   : > { %19379 = vmatmul.mubr.msk.f32.gmra.mrb[58].mxu1 %vm313_vm0, %v16327_v6  ;;  %10744 = vst.msk [vmem:[#allocation2 + $0x40] sm:$0x3] %vm10737_vm5, %v21090_v46  ;;  %10747 = vst.msk [vmem:[#allocation2 + $0x58] sm:$0x3] %vm10737_vm5, %v21090_v46 }
 0x48a   : > { %19381 = vmatprep.mubr.msk.f32.mxu1 %vm313_vm0, %v16328_v2  ;;  %10750 = vst.msk [vmem:[#allocation2 + $0x70] sm:$0x3] %vm10737_vm5, %v21090_v46  ;;  %10753 = vst.msk [vmem:[#allocation2 + $0x88] sm:$0x3] %vm10737_vm5, %v21090_v46  ;;  %v25677_v2 = vld [vmem:[#allocation46_spill] sm:$0xff] }
 0x48b   : > { %10756 = vst.msk [vmem:[#allocation2 + $0xa0] sm:$0x3] %vm10737_vm5, %v21090_v46  ;;  %10759 = vst.msk [vmem:[#allocation2 + $0xb8] sm:$0x3] %vm10737_vm5, %v21090_v46 }
 0x48c   : > { %10762 = vst.msk [vmem:[#allocation2 + $0xd0] sm:$0x3] %vm10737_vm5, %v21090_v46  ;;  %10765 = vst.msk [vmem:[#allocation2 + $0xe8] sm:$0x3] %vm10737_vm5, %v21090_v46 }
 0x48d   : > { %19382 = vmatmul.mubr.msk.f32.gmra.mrb[60].mxu1 %vm313_vm0, %v16329_v5  ;;  %10768 = vst.msk [vmem:[#allocation2 + $0x100] sm:$0x3] %vm10737_vm5, %v21090_v46  ;;  %10771 = vst.msk [vmem:[#allocation2 + $0x118] sm:$0x3] %vm10737_vm5, %v21090_v46 }
 0x48e   : > { %19384 = vmatprep.mubr.msk.f32.mxu1 %vm313_vm0, %v16330_v30  ;;  %10774 = vst.msk [vmem:[#allocation2 + $0x130] sm:$0x3] %vm10737_vm5, %v21090_v46  ;;  %10777 = vst.msk [vmem:[#allocation2 + $0x148] sm:$0x3] %vm10737_vm5, %v21090_v46 }
 0x48f   : > { %10780 = vst.msk [vmem:[#allocation2 + $0x160] sm:$0x3] %vm10737_vm5, %v21090_v46  ;;  %10783 = vst.msk [vmem:[#allocation2 + $0x178] sm:$0x3] %vm10737_vm5, %v21090_v46  ;;  %v10858_v10 = vld [vmem:[#allocation2 + $0x9] sm:$0xff] }
 0x490   : > { %10786 = vst.msk [vmem:[#allocation2 + $0x190] sm:$0x3] %vm10737_vm5, %v21090_v46  ;;  %10789 = vst.msk [vmem:[#allocation2 + $0x1a8] sm:$0x3] %vm10737_vm5, %v21090_v46  ;;  %19392 = vmatmul.mubr.msk.f32.vlgmr.msra.gmra.mrb[64].mxu0 %vm10734_vm4, %v10858_v10 }
 0x491   : > { %19385 = vmatmul.mubr.msk.f32.gmra.mrb[62].mxu1 %vm313_vm0, %v16331_v63  ;;  %19938 = vmatpush3.bf16.msk.msra.mxu0 %vm23990_vm3, %v19933_v61 }
 0x492   : > { %19941 = vmatprep.subr.msk.bf16.mxu0 %vm23990_vm3, %v24195_v16 }
 0x528   : > { %v19341_v47 = vpop.f32.mrb[32].mxu1 }
 0x529   : > { %v10639_v21 = vmax.f32 %v19341_v47, 0.0  ;;  %v10447_v37 = vpop.f32.mrb[33].mxu1 }
 0x52a   : > { %v10638_v29 = vmax.f32 %v10447_v37, 0.0 }
 0x52b   : > { %v10671_v13 = vadd.f32 %v10639_v21, %v23607_v4 }
 0x52c   : > { %v10670_v38 = vadd.f32 %v10638_v29, %v23609_v1  ;;  %v19344_v45 = vpop.f32.mrb[34].mxu1 }
 0x52d   : > { %v10703_v43 = vadd.f32 %v10671_v13, %v636_v15  ;;  %v10641_v12 = vmax.f32 %v19344_v45, 0.0  ;;  %v10457_v49 = vpop.f32.mrb[35].mxu1  ;;  %v25680_v13 = vld [vmem:[#allocation9_spill] sm:$0xff] }
 0x52e   : > { %v10702_v53 = vadd.f32 %v10670_v38, %v635_v31  ;;  %v10640_v51 = vmax.f32 %v10457_v49, 0.0  ;;  %v644_v35 = vmax.f32 %v25680_v13, 0.0  ;;  %v25681_v38 = vld [vmem:[#allocation50_spill] sm:$0xff] }
 0x52f   : > { %10792 = vst.msk [vmem:[#allocation2 + $0x21] sm:$0xff] %vm10734_vm4, %v10703_v43  ;;  %v10673_v24 = vadd.f32 %v10641_v12, %v23617_v33  ;;  %v639_v33 = vmax.f32 %v25677_v2, 0.0  ;;  %v643_v45 = vmax.f32 %v25681_v38, 0.0 }
 0x530   : > { %10791 = vst.msk [vmem:[#allocation2 + $0x19] sm:$0xff] %vm10734_vm4, %v10702_v53  ;;  %v10672_v4 = vadd.f32 %v10640_v51, %v23619_v9  ;;  %v19347_v28 = vpop.f32.mrb[36].mxu1 }
 0x531   : > { %v10705_v1 = vadd.f32 %v10673_v24, %v638_v55  ;;  %v10643_v26 = vmax.f32 %v19347_v28, 0.0  ;;  %v10467_v32 = vpop.f32.mrb[37].mxu1  ;;  %v25682_v24 = vld [vmem:[#allocation10_spill] sm:$0xff] }
 0x532   : > { %v10704_v44 = vadd.f32 %v10672_v4, %v637_v27  ;;  %v10642_v48 = vmax.f32 %v10467_v32, 0.0  ;;  %v646_v42 = vmax.f32 %v25682_v24, 0.0  ;;  %v25683_v4 = vld [vmem:[#allocation52_spill] sm:$0xff]  ;;  %v25693_v24 = vld [vmem:[#allocation58_spill] sm:$0xff] }
 0x533   : > { %10794 = vst.msk [vmem:[#allocation2 + $0x39] sm:$0xff] %vm10734_vm4, %v10705_v1  ;;  %v10675_v6 = vadd.f32 %v10643_v26, %v23627_v8  ;;  %v25679_v8 = vld [vmem:[#allocation48_spill] sm:$0xff]  ;;  %v645_v28 = vmax.f32 %v25683_v4, 0.0 }
 0x534   : > { %10793 = vst.msk [vmem:[#allocation2 + $0x31] sm:$0xff] %vm10734_vm4, %v10704_v44  ;;  %v10674_v5 = vadd.f32 %v10642_v48, %v23629_v40  ;;  %v19350_v30 = vpop.f32.mrb[38].mxu1  ;;  %v641_v59 = vmax.f32 %v25679_v8, 0.0  ;;  %v25687_v8 = vld [vmem:[#allocation12_spill] sm:$0xff] }
 0x535   : > { %v10707_v9 = vadd.f32 %v10675_v6, %v640_v52  ;;  %v10645_v63 = vmax.f32 %v19350_v30, 0.0  ;;  %v10477_v46 = vpop.f32.mrb[39].mxu1  ;;  %v25684_v6 = vld [vmem:[#allocation11_spill] sm:$0xff] }
 0x536   : > { %v10706_v11 = vadd.f32 %v10674_v5, %v639_v33  ;;  %v10644_v10 = vmax.f32 %v10477_v46, 0.0  ;;  %v24226_v21 = vld [vmem:[#allocation2 + $0x21] sm:$0xff]  ;;  %v648_v2 = vmax.f32 %v25684_v6, 0.0 }
 0x537   : > { %10796 = vst.msk [vmem:[#allocation2 + $0x51] sm:$0xff] %vm10734_vm4, %v10707_v9  ;;  %v10677_v61 = vadd.f32 %v10645_v63, %v23637_v41  ;;  %v24219_v50 = vld [vmem:[#allocation2 + $0x19] sm:$0xff]  ;;  %v25685_v5 = vld [vmem:[#allocation54_spill] sm:$0xff] }
 0x538   : > { %10795 = vst.msk [vmem:[#allocation2 + $0x49] sm:$0xff] %vm10734_vm4, %v10706_v11  ;;  %v10676_v40 = vadd.f32 %v10644_v10, %v23639_v56  ;;  %v19353_v47 = vpop.f32.mrb[40].mxu1  ;;  %19394 = vmatprep.mubr.msk.f32.mxu0 %vm10734_vm4, %v24219_v50  ;;  %v647_v30 = vmax.f32 %v25685_v5, 0.0  ;;  %v25686_v9 = vld [vmem:[#allocation38_spill] sm:$0xff]  ;;  %v25696_v5 = vld [vmem:[#allocation15_spill] sm:$0xff] }
 0x539   : > { %v10709_v37 = vadd.f32 %v10677_v61, %v642_v57  ;;  %v10647_v29 = vmax.f32 %v19353_v47, 0.0  ;;  %v10487_v18 = vpop.f32.mrb[41].mxu1  ;;  %19395 = vmatmul.mubr.msk.f32.gmra.mrb[66].mxu0 %vm10734_vm4, %v24226_v21 }
 0x53a   : > { %v10708_v41 = vadd.f32 %v10676_v40, %v641_v59  ;;  %v10646_v15 = vmax.f32 %v10487_v18, 0.0  ;;  %v24240_v49 = vld [vmem:[#allocation2 + $0x39] sm:$0xff]  ;;  %v650_v59 = vmax.f32 %v25687_v8, 0.0 }
 0x53b   : > { %10798 = vst.msk [vmem:[#allocation2 + $0x69] sm:$0xff] %vm10734_vm4, %v10709_v37  ;;  %v10679_v56 = vadd.f32 %v10647_v29, %v23647_v34  ;;  %v24233_v31 = vld [vmem:[#allocation2 + $0x31] sm:$0xff]  ;;  %v25698_v8 = vld [vmem:[#allocation61_spill] sm:$0xff] }
 0x53c   : > { %10797 = vst.msk [vmem:[#allocation2 + $0x61] sm:$0xff] %vm10734_vm4, %v10708_v41  ;;  %v10678_v43 = vadd.f32 %v10646_v15, %v23649_v25  ;;  %v19356_v12 = vpop.f32.mrb[42].mxu1  ;;  %19397 = vmatprep.mubr.msk.f32.mxu0 %vm10734_vm4, %v24233_v31  ;;  %v25688_v40 = vld [vmem:[#allocation4_spill] sm:$0xff] }
 0x53d   : > { %v10711_v53 = vadd.f32 %v10679_v56, %v644_v35  ;;  %v10649_v51 = vmax.f32 %v19356_v12, 0.0  ;;  %v10497_v3 = vpop.f32.mrb[43].mxu1  ;;  %19398 = vmatmul.mubr.msk.f32.gmra.mrb[68].mxu0 %vm10734_vm4, %v24240_v49  ;;  %v25689_v29 = vld [vmem:[#allocation56_spill] sm:$0xff] }
 0x53e   : > { %v10710_v34 = vadd.f32 %v10678_v43, %v643_v45  ;;  %v10648_v55 = vmax.f32 %v10497_v3, 0.0  ;;  %v24254_v32 = vld [vmem:[#allocation2 + $0x51] sm:$0xff]  ;;  %v649_v18 = vmax.f32 %v25689_v29, 0.0  ;;  %v25692_v3 = vld [vmem:[#allocation65_spill] sm:$0xff] }
 0x53f   : > { %10800 = vst.msk [vmem:[#allocation2 + $0x81] sm:$0xff] %vm10734_vm4, %v10711_v53  ;;  %v10681_v25 = vadd.f32 %v10649_v51, %v23657_v60  ;;  %v24247_v27 = vld [vmem:[#allocation2 + $0x49] sm:$0xff]  ;;  %v25690_v41 = vld [vmem:[#allocation40_spill] sm:$0xff]  ;;  %v25691_v53 = vld [vmem:[#allocation13_spill] sm:$0xff] }
 0x540   : > { %10799 = vst.msk [vmem:[#allocation2 + $0x79] sm:$0xff] %vm10734_vm4, %v10710_v34  ;;  %v10680_v1 = vadd.f32 %v10648_v55, %v23659_v17  ;;  %v19359_v26 = vpop.f32.mrb[44].mxu1  ;;  %19400 = vmatprep.mubr.msk.f32.mxu0 %vm10734_vm4, %v24247_v27  ;;  %v652_v51 = vmax.f32 %v25691_v53, 0.0  ;;  %v25699_v29 = vld [vmem:[#allocation16_spill] sm:$0xff] }
 0x541   : > { %v10713_v44 = vadd.f32 %v10681_v25, %v646_v42  ;;  %v10651_v48 = vmax.f32 %v19359_v26, 0.0  ;;  %v10507_v7 = vpop.f32.mrb[45].mxu1  ;;  %19401 = vmatmul.mubr.msk.f32.gmra.mrb[70].mxu0 %vm10734_vm4, %v24254_v32  ;;  %v651_v42 = vmax.f32 %v25693_v24, 0.0  ;;  %v25694_v25 = vld [vmem:[#allocation66_spill] sm:$0xff]  ;;  %v25702_v24 = vld [vmem:[#allocation68_spill] sm:$0xff] }
 0x542   : > { %v10712_v60 = vadd.f32 %v10680_v1, %v645_v28  ;;  %v10650_v52 = vmax.f32 %v10507_v7, 0.0  ;;  %v24268_v11 = vld [vmem:[#allocation2 + $0x69] sm:$0xff] }
 0x543   : > { %10802 = vst.msk [vmem:[#allocation2 + $0x99] sm:$0xff] %vm10734_vm4, %v10713_v44  ;;  %v10683_v17 = vadd.f32 %v10651_v48, %v23667_v39  ;;  %v24261_v33 = vld [vmem:[#allocation2 + $0x61] sm:$0xff] }
 0x544   : > { %10801 = vst.msk [vmem:[#allocation2 + $0x91] sm:$0xff] %vm10734_vm4, %v10712_v60  ;;  %v10682_v63 = vadd.f32 %v10650_v52, %v25686_v9  ;;  %v19362_v46 = vpop.f32.mrb[46].mxu1  ;;  %19403 = vmatprep.mubr.msk.f32.mxu0 %vm10734_vm4, %v24261_v33  ;;  %v25695_v52 = vld [vmem:[#allocation14_spill] sm:$0xff]  ;;  %v25697_v9 = vld [vmem:[#allocation67_spill] sm:$0xff] }
 0x545   : > { %v10715_v10 = vadd.f32 %v10683_v17, %v648_v2  ;;  %v10653_v14 = vmax.f32 %v19362_v46, 0.0  ;;  %v10517_v57 = vpop.f32.mrb[47].mxu1  ;;  %19404 = vmatmul.mubr.msk.f32.gmra.mrb[72].mxu0 %vm10734_vm4, %v24268_v11  ;;  %v654_v6 = vmax.f32 %v25695_v52, 0.0 }
 0x546   : > { %v10714_v39 = vadd.f32 %v10682_v63, %v647_v30  ;;  %v10652_v61 = vmax.f32 %v10517_v57, 0.0  ;;  %v24282_v35 = vld [vmem:[#allocation2 + $0x81] sm:$0xff]  ;;  %v653_v30 = vmax.f32 %v25696_v5, 0.0 }
 0x547   : > { %10804 = vst.msk [vmem:[#allocation2 + $0xb1] sm:$0xff] %vm10734_vm4, %v10715_v10  ;;  %v10685_v47 = vadd.f32 %v10653_v14, %v25688_v40  ;;  %v24275_v37 = vld [vmem:[#allocation2 + $0x79] sm:$0xff] }
 0x548   : > { %10803 = vst.msk [vmem:[#allocation2 + $0xa9] sm:$0xff] %vm10734_vm4, %v10714_v39  ;;  %v10684_v15 = vadd.f32 %v10652_v61, %v25690_v41  ;;  %v19365_v13 = vpop.f32.mrb[48].mxu1  ;;  %19406 = vmatprep.mubr.msk.f32.mxu0 %vm10734_vm4, %v24275_v37 }
 0x549   : > { %v10717_v56 = vadd.f32 %v10685_v47, %v650_v59  ;;  %v10655_v38 = vmax.f32 %v19365_v13, 0.0  ;;  %v10527_v45 = vpop.f32.mrb[49].mxu1  ;;  %19407 = vmatmul.mubr.msk.f32.gmra.mrb[74].mxu0 %vm10734_vm4, %v24282_v35  ;;  %v656_v59 = vmax.f32 %v25698_v8, 0.0 }
 0x54a   : > { %v10716_v43 = vadd.f32 %v10684_v15, %v649_v18  ;;  %v10654_v12 = vmax.f32 %v10527_v45, 0.0  ;;  %v24296_v1 = vld [vmem:[#allocation2 + $0x99] sm:$0xff]  ;;  %v655_v18 = vmax.f32 %v25699_v29, 0.0 }
 0x54b   : > { %10806 = vst.msk [vmem:[#allocation2 + $0xc9] sm:$0xff] %vm10734_vm4, %v10717_v56  ;;  %v10687_v34 = vadd.f32 %v10655_v38, %v25692_v3  ;;  %v24289_v55 = vld [vmem:[#allocation2 + $0x91] sm:$0xff] }
 0x54c   : > { %10805 = vst.msk [vmem:[#allocation2 + $0xc1] sm:$0xff] %vm10734_vm4, %v10716_v43  ;;  %v10686_v4 = vadd.f32 %v10654_v12, %v25694_v25  ;;  %v19368_v28 = vpop.f32.mrb[50].mxu1  ;;  %19409 = vmatprep.mubr.msk.f32.mxu0 %vm10734_vm4, %v24289_v55  ;;  %v25700_v12 = vld [vmem:[#allocation17_spill] sm:$0xff]  ;;  %v25701_v3 = vld [vmem:[#allocation64_spill] sm:$0xff] }
 0x54d   : > { %v10719_v26 = vadd.f32 %v10687_v34, %v652_v51  ;;  %v10657_v44 = vmax.f32 %v19368_v28, 0.0  ;;  %v10537_v48 = vpop.f32.mrb[51].mxu1  ;;  %19410 = vmatmul.mubr.msk.f32.gmra.mrb[76].mxu0 %vm10734_vm4, %v24296_v1  ;;  %v658_v53 = vmax.f32 %v25700_v12, 0.0  ;;  %v657_v34 = vmax.f32 %v25701_v3, 0.0  ;;  %v25708_v12 = vld [vmem:[#allocation69_spill] sm:$0xff] }
 0x54e   : > { %v10718_v7 = vadd.f32 %v10686_v4, %v651_v42  ;;  %v10656_v60 = vmax.f32 %v10537_v48, 0.0  ;;  %v24310_v10 = vld [vmem:[#allocation2 + $0xb1] sm:$0xff] }
 0x54f   : > { %10808 = vst.msk [vmem:[#allocation2 + $0xe1] sm:$0xff] %vm10734_vm4, %v10719_v26  ;;  %v10689_v2 = vadd.f32 %v10657_v44, %v23715_v23  ;;  %v24303_v17 = vld [vmem:[#allocation2 + $0xa9] sm:$0xff] }
 0x550   : > { %10807 = vst.msk [vmem:[#allocation2 + $0xd9] sm:$0xff] %vm10734_vm4, %v10718_v7  ;;  %v10688_v63 = vadd.f32 %v10656_v60, %v25697_v9  ;;  %v19371_v46 = vpop.f32.mrb[52].mxu1  ;;  %19412 = vmatprep.mubr.msk.f32.mxu0 %vm10734_vm4, %v24303_v17  ;;  %v25703_v7 = vld [vmem:[#allocation18_spill] sm:$0xff] }
 0x551   : > { %v10721_v14 = vadd.f32 %v10689_v2, %v654_v6  ;;  %v10659_v57 = vmax.f32 %v19371_v46, 0.0  ;;  %v10547_v39 = vpop.f32.mrb[53].mxu1  ;;  %19413 = vmatmul.mubr.msk.f32.gmra.mrb[78].mxu0 %vm10734_vm4, %v24310_v10  ;;  %v660_v60 = vmax.f32 %v25703_v7, 0.0  ;;  %v25704_v2 = vld [vmem:[#allocation19_spill] sm:$0xff]  ;;  %v25711_v7 = vld [vmem:[#allocation24_spill] sm:$0xff] }
 0x552   : > { %v10720_v23 = vadd.f32 %v10688_v63, %v653_v30  ;;  %v10658_v61 = vmax.f32 %v10547_v39, 0.0  ;;  %v24324_v13 = vld [vmem:[#allocation2 + $0xc9] sm:$0xff]  ;;  %v659_v5 = vmax.f32 %v25704_v2, 0.0 }
 0x553   : > { %10810 = vst.msk [vmem:[#allocation2 + $0xf9] sm:$0xff] %vm10734_vm4, %v10721_v14  ;;  %v10691_v40 = vadd.f32 %v10659_v57, %v23725_v62  ;;  %v24317_v47 = vld [vmem:[#allocation2 + $0xc1] sm:$0xff] }
 0x554   : > { %10809 = vst.msk [vmem:[#allocation2 + $0xf1] sm:$0xff] %vm10734_vm4, %v10720_v23  ;;  %v10690_v41 = vadd.f32 %v10658_v61, %v23727_v20  ;;  %v19374_v15 = vpop.f32.mrb[54].mxu1  ;;  %19415 = vmatprep.mubr.msk.f32.mxu0 %vm10734_vm4, %v24317_v47  ;;  %v25705_v23 = vld [vmem:[#allocation20_spill] sm:$0xff] }
 0x555   : > { %v10723_v56 = vadd.f32 %v10691_v40, %v656_v59  ;;  %v10661_v38 = vmax.f32 %v19374_v15, 0.0  ;;  %v10557_v45 = vpop.f32.mrb[55].mxu1  ;;  %19416 = vmatmul.mubr.msk.f32.gmra.mrb[80].mxu0 %vm10734_vm4, %v24324_v13  ;;  %v662_v61 = vmax.f32 %v25705_v23, 0.0  ;;  %v25706_v59 = vld [vmem:[#allocation21_spill] sm:$0xff] }
 0x556   : > { %v10722_v62 = vadd.f32 %v10690_v41, %v655_v18  ;;  %v10660_v43 = vmax.f32 %v10557_v45, 0.0  ;;  %v24338_v4 = vld [vmem:[#allocation2 + $0xe1] sm:$0xff]  ;;  %v661_v40 = vmax.f32 %v25706_v59, 0.0 }
 0x557   : > { %10812 = vst.msk [vmem:[#allocation2 + $0x111] sm:$0xff] %vm10734_vm4, %v10723_v56  ;;  %v10693_v20 = vadd.f32 %v10661_v38, %v23741_v19  ;;  %v24331_v51 = vld [vmem:[#allocation2 + $0xd9] sm:$0xff] }
 0x558   : > { %10811 = vst.msk [vmem:[#allocation2 + $0x109] sm:$0xff] %vm10734_vm4, %v10722_v62  ;;  %v10692_v42 = vadd.f32 %v10660_v43, %v25702_v24  ;;  %v19377_v25 = vpop.f32.mrb[56].mxu1  ;;  %19418 = vmatprep.mubr.msk.f32.mxu0 %vm10734_vm4, %v24331_v51  ;;  %v25707_v62 = vld [vmem:[#allocation22_spill] sm:$0xff]  ;;  %v10823_v59 = vld [vmem:[#allocation2] sm:$0xff] }
 0x559   : > { %v10725_v28 = vadd.f32 %v10693_v20, %v658_v53  ;;  %v10663_v26 = vmax.f32 %v19377_v25, 0.0  ;;  %v10567_v44 = vpop.f32.mrb[57].mxu1  ;;  %19419 = vmatmul.mubr.msk.f32.gmra.mrb[82].mxu0 %vm10734_vm4, %v24338_v4  ;;  %v664_v43 = vmax.f32 %v25707_v62, 0.0  ;;  %v25709_v20 = vld [vmem:[#allocation23_spill] sm:$0xff]  ;;  %v24444_v62 = vld [vmem:[#allocation2 + $0x38] sm:$0xff] }
 0x55a   : > { %v10724_v19 = vadd.f32 %v10692_v42, %v657_v34  ;;  %v10662_v48 = vmax.f32 %v10567_v44, 0.0  ;;  %v24352_v63 = vld [vmem:[#allocation2 + $0xf9] sm:$0xff]  ;;  %v663_v3 = vmax.f32 %v25709_v20, 0.0  ;;  %v25710_v34 = vld [vmem:[#allocation70_spill] sm:$0xff] }
 0x55b   : > { %10814 = vst.msk [vmem:[#allocation2 + $0x129] sm:$0xff] %vm10734_vm4, %v10725_v28  ;;  %v10695_v52 = vadd.f32 %v10663_v26, %v23752_v54  ;;  %v24345_v6 = vld [vmem:[#allocation2 + $0xf1] sm:$0xff] }
 0x55c   : > { %10813 = vst.msk [vmem:[#allocation2 + $0x121] sm:$0xff] %vm10734_vm4, %v10724_v19  ;;  %v10694_v30 = vadd.f32 %v10662_v48, %v23754_v0  ;;  %v19380_v9 = vpop.f32.mrb[58].mxu1  ;;  %19421 = vmatprep.mubr.msk.f32.mxu0 %vm10734_vm4, %v24345_v6  ;;  %v24464_v20 = vld [vmem:[#allocation2 + $0x78] sm:$0xff] }
 0x55d   : > { %v10727_v46 = vadd.f32 %v10695_v52, %v660_v60  ;;  %v10665_v14 = vmax.f32 %v19380_v9, 0.0  ;;  %v10577_v57 = vpop.f32.mrb[59].mxu1  ;;  %19422 = vmatmul.mubr.msk.f32.gmra.mrb[84].mxu0 %vm10734_vm4, %v24352_v63  ;;  %v666_v60 = vmax.f32 %v25711_v7, 0.0  ;;  %v25712_v52 = vld [vmem:[#allocation71_spill] sm:$0xff] }
 0x55e   : > { %v10726_v54 = vadd.f32 %v10694_v30, %v659_v5  ;;  %v10664_v39 = vmax.f32 %v10577_v57, 0.0  ;;  %v24366_v41 = vld [vmem:[#allocation2 + $0x111] sm:$0xff]  ;;  %v25713_v30 = vld [vmem:[#allocation25_spill] sm:$0xff] }
 0x55f   : > { %10816 = vst.msk [vmem:[#allocation2 + $0x141] sm:$0xff] %vm10734_vm4, %v10727_v46  ;;  %v10697_v0 = vadd.f32 %v10665_v14, %v23762_v22  ;;  %v24359_v8 = vld [vmem:[#allocation2 + $0x109] sm:$0xff]  ;;  %v665_v9 = vmax.f32 %v25713_v30, 0.0  ;;  %v25714_v46 = vld [vmem:[#allocation72_spill] sm:$0xff] }
 0x560   : > { %10815 = vst.msk [vmem:[#allocation2 + $0x139] sm:$0xff] %vm10734_vm4, %v10726_v54  ;;  %v10696_v29 = vadd.f32 %v10664_v39, %v23764_v58  ;;  %v19383_v18 = vpop.f32.mrb[60].mxu1  ;;  %19424 = vmatprep.mubr.msk.f32.mxu0 %vm10734_vm4, %v24359_v8  ;;  %v24504_v7 = vld [vmem:[#allocation2 + $0xf0] sm:$0xff] }
 0x561   : > { %v10729_v15 = vadd.f32 %v10697_v0, %v662_v61  ;;  %v10667_v56 = vmax.f32 %v19383_v18, 0.0  ;;  %v10587_v38 = vpop.f32.mrb[61].mxu1  ;;  %19425 = vmatmul.mubr.msk.f32.gmra.mrb[86].mxu0 %vm10734_vm4, %v24366_v41  ;;  %v16469_v18 = vld [vmem:[%s25253_s5 + $0x38] sm:$0xf] }
 0x562   : > { %v10728_v22 = vadd.f32 %v10696_v29, %v661_v40  ;;  %v10666_v45 = vmax.f32 %v10587_v38, 0.0  ;;  %v24380_v25 = vld [vmem:[#allocation2 + $0x129] sm:$0xff]  ;;  %v24426_v38 = vld [vmem:[#allocation2 + $0x18] sm:$0xff] }
 0x563   : > { %10818 = vst.msk [vmem:[#allocation2 + $0x159] sm:$0xff] %vm10734_vm4, %v10729_v15  ;;  %v10699_v58 = vadd.f32 %v10667_v56, %v25708_v12  ;;  %v24373_v53 = vld [vmem:[#allocation2 + $0x121] sm:$0xff]  ;;  %v16468_v29 = vld [vmem:[%s25253_s5 + $0x30] sm:$0xff] }
 0x564   : > { %10817 = vst.msk [vmem:[#allocation2 + $0x151] sm:$0xff] %vm10734_vm4, %v10728_v22  ;;  %v10698_v24 = vadd.f32 %v10666_v45, %v25710_v34  ;;  %v19386_v42 = vpop.f32.mrb[62].mxu1  ;;  %19427 = vmatprep.mubr.msk.f32.mxu0 %vm10734_vm4, %v24373_v53  ;;  %v10824_v15 = vld [vmem:[#allocation2 + $0x8] sm:$0xff]  ;;  %v24423_v56 = vpack.c.bf16 %v16469_v18, %v16468_v29  ;;  %v24436_v22 = vld [vmem:[#allocation2 + $0x20] sm:$0xff]  ;;  %v24440_v45 = vld [vmem:[#allocation2 + $0x30] sm:$0xff] }
 0x565   : > { %v10731_v28 = vadd.f32 %v10699_v58, %v664_v43  ;;  %v10669_v26 = vmax.f32 %v19386_v42, 0.0  ;;  %v10597_v44 = vpop.f32.mrb[63].mxu1  ;;  %19428 = vmatmul.mubr.msk.f32.gmra.mrb[88].mxu0 %vm10734_vm4, %v24380_v25  ;;  %v24452_v43 = vld [vmem:[#allocation2 + $0x50] sm:$0xff]  ;;  %v24456_v12 = vld [vmem:[#allocation2 + $0x60] sm:$0xff]  ;;  %v24460_v58 = vld [vmem:[#allocation2 + $0x68] sm:$0xff] }
 0x566   : > { %v10730_v19 = vadd.f32 %v10698_v24, %v663_v3  ;;  %v10668_v48 = vmax.f32 %v10597_v44, 0.0  ;;  %v24394_v57 = vld [vmem:[#allocation2 + $0x141] sm:$0xff]  ;;  %v24472_v34 = vld [vmem:[#allocation2 + $0x90] sm:$0xff]  ;;  %v24476_v24 = vld [vmem:[#allocation2 + $0x98] sm:$0xff] }
 0x567   : > { %10820 = vst.msk [vmem:[#allocation2 + $0x171] sm:$0xff] %vm10734_vm4, %v10731_v28  ;;  %v10701_v2 = vadd.f32 %v10669_v26, %v25712_v52  ;;  %v24387_v5 = vld [vmem:[#allocation2 + $0x139] sm:$0xff]  ;;  %25715 = vst [vmem:[#allocation32_spill] sm:$0xff] %v24394_v57  ;;  %v24480_v42 = vld [vmem:[#allocation2 + $0xa8] sm:$0xff] }
 0x568   : > { %10819 = vst.msk [vmem:[#allocation2 + $0x169] sm:$0xff] %vm10734_vm4, %v10730_v19  ;;  %v10700_v14 = vadd.f32 %v10668_v48, %v25714_v46  ;;  %19430 = vmatprep.mubr.msk.f32.mxu0 %vm10734_vm4, %v24387_v5  ;;  %v24468_v3 = vld [vmem:[#allocation2 + $0x80] sm:$0xff]  ;;  %v24484_v28 = vld [vmem:[#allocation2 + $0xb0] sm:$0xff]  ;;  %v24492_v44 = vld [vmem:[#allocation2 + $0xc8] sm:$0xff] }
 0x569   : > { %v10733_v54 = vadd.f32 %v10701_v2, %v666_v60  ;;  %19431 = vmatmul.mubr.msk.f32.gmra.mrb[90].mxu0 %vm10734_vm4, %v24394_v57  ;;  %v24488_v26 = vld [vmem:[#allocation2 + $0xc0] sm:$0xff]  ;;  %v24496_v19 = vld [vmem:[#allocation2 + $0xd8] sm:$0xff]  ;;  %v24512_v52 = vld [vmem:[#allocation2 + $0x108] sm:$0xff] }
 0x56a   : > { %v10732_v39 = vadd.f32 %v10700_v14, %v665_v9  ;;  %v24404_v61 = vld [vmem:[#allocation2 + $0x159] sm:$0xff]  ;;  %v24516_v2 = vld [vmem:[#allocation2 + $0x110] sm:$0xff]  ;;  %v24524_v9 = vld [vmem:[#allocation2 + $0x128] sm:$0xff] }
 0x56b   : > { %10822 = vst.msk [vmem:[#allocation2 + $0x189] sm:$0xff] %vm10734_vm4, %v10733_v54  ;;  %v24399_v23 = vld [vmem:[#allocation2 + $0x151] sm:$0xff]  ;;  %25717 = vst [vmem:[#allocation34_spill] sm:$0xff] %v24404_v61  ;;  %v24500_v48 = vld [vmem:[#allocation2 + $0xe0] sm:$0xff] }
 0x56c   : > { %25716 = vst [vmem:[#allocation33_spill] sm:$0xff] %v24399_v23  ;;  %10821 = vst.msk [vmem:[#allocation2 + $0x181] sm:$0xff] %vm10734_vm4, %v10732_v39  ;;  %19433 = vmatprep.mubr.msk.f32.mxu0 %vm10734_vm4, %v24399_v23  ;;  %v24508_v60 = vld [vmem:[#allocation2 + $0xf8] sm:$0xff]  ;;  %v24520_v30 = vld [vmem:[#allocation2 + $0x120] sm:$0xff] }
 0x56d   : > { %19434 = vmatmul.mubr.msk.f32.gmra.mrb[92].mxu0 %vm10734_vm4, %v24404_v61  ;;  %v24528_v46 = vld [vmem:[#allocation2 + $0x138] sm:$0xff]  ;;  %v24532_v14 = vld [vmem:[#allocation2 + $0x140] sm:$0xff]  ;;  %v24536_v54 = vld [vmem:[#allocation2 + $0x150] sm:$0xff] }
 0x56e   : > { %v24412_v40 = vld [vmem:[#allocation2 + $0x171] sm:$0xff]  ;;  %v11541_v29 = vld [vmem:[#allocation2 + $0x2] sm:$0xff]  ;;  %v24562_v23 = vld [vmem:[#allocation2 + $0x1a] sm:$0xff] }
 0x56f   : > { %v24408_v0 = vld [vmem:[#allocation2 + $0x169] sm:$0xff]  ;;  %25719 = vst [vmem:[#allocation36_spill] sm:$0xff] %v24412_v40  ;;  %v24540_v39 = vld [vmem:[#allocation2 + $0x158] sm:$0xff] }
 0x570   : > { %25718 = vst [vmem:[#allocation35_spill] sm:$0xff] %v24408_v0  ;;  %19436 = vmatprep.mubr.msk.f32.mxu0 %vm10734_vm4, %v24408_v0  ;;  %v24548_v18 = vld [vmem:[#allocation2 + $0x170] sm:$0xff]  ;;  %v24572_v57 = vld [vmem:[#allocation2 + $0x22] sm:$0xff] }
 0x571   : > { %19437 = vmatmul.mubr.msk.f32.gmra.mrb[94].mxu0 %vm10734_vm4, %v24412_v40  ;;  %v16504_v40 = vld [vmem:[%s25253_s5 + $0x48] sm:$0xf] }
 0x572   : > { %19443 = vmatprep.mubr.msk.f32.mxu0 %vm10734_vm4, %v10823_v59  ;;  %v24544_v59 = vld [vmem:[#allocation2 + $0x168] sm:$0xff] }
 0x573   : > { %v11542_v0 = vld [vmem:[#allocation2 + $0xa] sm:$0xff] }
 0x575   : > { %19444 = vmatmul.mubr.msk.f32.vlgmr.msra.gmra.mrb[64].mxu0 %vm10734_vm4, %v10824_v15  ;;  %v16503_v15 = vld [vmem:[%s25253_s5 + $0x40] sm:$0xff] }
 0x576   : > { %19944 = vmatpush3.bf16.msk.msra.mxu0 %vm23990_vm3, %v24195_v16  ;;  %19446 = vmatprep.mubr.msk.f32.mxu0 %vm10734_vm4, %v24426_v38  ;;  %v24448_v16 = vld [vmem:[#allocation2 + $0x48] sm:$0xff]  ;;  %v24559_v61 = vpack.c.bf16 %v16504_v40, %v16503_v15  ;;  %v24576_v40 = vld [vmem:[#allocation2 + $0x32] sm:$0xff] }
 0x577   : > { %19947 = vmatprep.subr.msk.bf16.mxu0 %vm23990_vm3, %v24423_v56  ;;  %25720 = vst [vmem:[#allocation37_spill] sm:$0xff] %v24576_v40  ;;  %v24592_v15 = vld [vmem:[#allocation2 + $0x62] sm:$0xff] }
 0x578   : > { %25724 = vst [vmem:[#allocation45_spill] sm:$0xff] %v24592_v15 }
 0x579   : > { %19447 = vmatmul.mubr.msk.f32.gmra.mrb[66].mxu0 %vm10734_vm4, %v24436_v22 }
 0x57a   : > { %19449 = vmatprep.mubr.msk.f32.mxu0 %vm10734_vm4, %v24440_v45 }
 0x57d   : > { %19450 = vmatmul.mubr.msk.f32.gmra.mrb[68].mxu0 %vm10734_vm4, %v24444_v62 }
 0x57e   : > { %19452 = vmatprep.mubr.msk.f32.mxu0 %vm10734_vm4, %v24448_v16 }
 0x581   : > { %19453 = vmatmul.mubr.msk.f32.gmra.mrb[70].mxu0 %vm10734_vm4, %v24452_v43 }
 0x582   : > { %19455 = vmatprep.mubr.msk.f32.mxu0 %vm10734_vm4, %v24456_v12 }
 0x585   : > { %19456 = vmatmul.mubr.msk.f32.gmra.mrb[72].mxu0 %vm10734_vm4, %v24460_v58 }
 0x586   : > { %19458 = vmatprep.mubr.msk.f32.mxu0 %vm10734_vm4, %v24464_v20 }
 0x589   : > { %19459 = vmatmul.mubr.msk.f32.gmra.mrb[74].mxu0 %vm10734_vm4, %v24468_v3 }
 0x58a   : > { %19461 = vmatprep.mubr.msk.f32.mxu0 %vm10734_vm4, %v24472_v34 }
 0x58d   : > { %19462 = vmatmul.mubr.msk.f32.gmra.mrb[76].mxu0 %vm10734_vm4, %v24476_v24 }
 0x58e   : > { %19464 = vmatprep.mubr.msk.f32.mxu0 %vm10734_vm4, %v24480_v42 }
 0x591   : > { %19465 = vmatmul.mubr.msk.f32.gmra.mrb[78].mxu0 %vm10734_vm4, %v24484_v28 }
 0x592   : > { %19467 = vmatprep.mubr.msk.f32.mxu0 %vm10734_vm4, %v24488_v26 }
 0x595   : > { %19468 = vmatmul.mubr.msk.f32.gmra.mrb[80].mxu0 %vm10734_vm4, %v24492_v44 }
 0x596   : > { %19470 = vmatprep.mubr.msk.f32.mxu0 %vm10734_vm4, %v24496_v19 }
 0x599   : > { %19471 = vmatmul.mubr.msk.f32.gmra.mrb[82].mxu0 %vm10734_vm4, %v24500_v48 }
 0x59a   : > { %19473 = vmatprep.mubr.msk.f32.mxu0 %vm10734_vm4, %v24504_v7 }
 0x59d   : > { %19474 = vmatmul.mubr.msk.f32.gmra.mrb[84].mxu0 %vm10734_vm4, %v24508_v60 }
 0x59e   : > { %19476 = vmatprep.mubr.msk.f32.mxu0 %vm10734_vm4, %v24512_v52 }
 0x5a1   : > { %19477 = vmatmul.mubr.msk.f32.gmra.mrb[86].mxu0 %vm10734_vm4, %v24516_v2 }
 0x5a2   : > { %19479 = vmatprep.mubr.msk.f32.mxu0 %vm10734_vm4, %v24520_v30 }
 0x5a5   : > { %19480 = vmatmul.mubr.msk.f32.gmra.mrb[88].mxu0 %vm10734_vm4, %v24524_v9 }
 0x5a6   : > { %19482 = vmatprep.mubr.msk.f32.mxu0 %vm10734_vm4, %v24528_v46 }
 0x5a9   : > { %19483 = vmatmul.mubr.msk.f32.gmra.mrb[90].mxu0 %vm10734_vm4, %v24532_v14 }
 0x5aa   : > { %19485 = vmatprep.mubr.msk.f32.mxu0 %vm10734_vm4, %v24536_v54 }
 0x5ad   : > { %19486 = vmatmul.mubr.msk.f32.gmra.mrb[92].mxu0 %vm10734_vm4, %v24540_v39 }
 0x5ae   : > { %19488 = vmatprep.mubr.msk.f32.mxu0 %vm10734_vm4, %v24544_v59 }
 0x5b1   : > { %19489 = vmatmul.mubr.msk.f32.gmra.mrb[94].mxu0 %vm10734_vm4, %v24548_v18 }
 0x5b2   : > { %19495 = vmatprep.mubr.msk.f32.mxu0 %vm10734_vm4, %v11541_v29  ;;  %v24588_v29 = vld [vmem:[#allocation2 + $0x52] sm:$0xff] }
 0x5b3   : > { %25723 = vst [vmem:[#allocation43_spill] sm:$0xff] %v24588_v29 }
 0x5b5   : > { %19496 = vmatmul.mubr.msk.f32.vlgmr.msra.gmra.mrb[64].mxu0 %vm10734_vm4, %v11542_v0  ;;  %v24580_v0 = vld [vmem:[#allocation2 + $0x3a] sm:$0xff] }
 0x5b6   : > { %19950 = vmatpush3.bf16.msk.msra.mxu0 %vm23990_vm3, %v24423_v56  ;;  %19498 = vmatprep.mubr.msk.f32.mxu0 %vm10734_vm4, %v24562_v23  ;;  %25721 = vst [vmem:[#allocation39_spill] sm:$0xff] %v24580_v0  ;;  %v24584_v56 = vld [vmem:[#allocation2 + $0x4a] sm:$0xff] }
 0x5b7   : > { %19953 = vmatprep.subr.msk.bf16.mxu0 %vm23990_vm3, %v24559_v61  ;;  %25722 = vst [vmem:[#allocation41_spill] sm:$0xff] %v24584_v56 }
 0x5b9   : > { %19499 = vmatmul.mubr.msk.f32.gmra.mrb[66].mxu0 %vm10734_vm4, %v24572_v57 }
 0x5ba   : > { %19501 = vmatprep.mubr.msk.f32.mxu0 %vm10734_vm4, %v24576_v40  ;;  %v24596_v40 = vld [vmem:[#allocation2 + $0x6a] sm:$0xff] }
 0x5bb   : > { %25725 = vst [vmem:[#allocation47_spill] sm:$0xff] %v24596_v40 }
 0x5bd   : > { %19502 = vmatmul.mubr.msk.f32.gmra.mrb[68].mxu0 %vm10734_vm4, %v24580_v0  ;;  %v24600_v0 = vld [vmem:[#allocation2 + $0x7a] sm:$0xff] }
 0x5be   : > { %19504 = vmatprep.mubr.msk.f32.mxu0 %vm10734_vm4, %v24584_v56  ;;  %25726 = vst [vmem:[#allocation49_spill] sm:$0xff] %v24600_v0  ;;  %v24604_v56 = vld [vmem:[#allocation2 + $0x82] sm:$0xff] }
 0x5bf   : > { %25727 = vst [vmem:[#allocation51_spill] sm:$0xff] %v24604_v56 }
 0x5c1   : > { %19505 = vmatmul.mubr.msk.f32.gmra.mrb[70].mxu0 %vm10734_vm4, %v24588_v29  ;;  %v24608_v29 = vld [vmem:[#allocation2 + $0x92] sm:$0xff] }
 0x5c2   : > { %19507 = vmatprep.mubr.msk.f32.mxu0 %vm10734_vm4, %v24592_v15  ;;  %25728 = vst [vmem:[#allocation53_spill] sm:$0xff] %v24608_v29  ;;  %v24612_v15 = vld [vmem:[#allocation2 + $0x9a] sm:$0xff] }
 0x5c3   : > { %25729 = vst [vmem:[#allocation55_spill] sm:$0xff] %v24612_v15 }
 0x5c5   : > { %19508 = vmatmul.mubr.msk.f32.gmra.mrb[72].mxu0 %vm10734_vm4, %v24596_v40  ;;  %v24616_v40 = vld [vmem:[#allocation2 + $0xaa] sm:$0xff] }
 0x5c6   : > { %19510 = vmatprep.mubr.msk.f32.mxu0 %vm10734_vm4, %v24600_v0  ;;  %25730 = vst [vmem:[#allocation57_spill] sm:$0xff] %v24616_v40  ;;  %v24620_v0 = vld [vmem:[#allocation2 + $0xb2] sm:$0xff] }
 0x5c7   : > { %25731 = vst [vmem:[#allocation59_spill] sm:$0xff] %v24620_v0 }
 0x5c9   : > { %19511 = vmatmul.mubr.msk.f32.gmra.mrb[74].mxu0 %vm10734_vm4, %v24604_v56  ;;  %v24624_v56 = vld [vmem:[#allocation2 + $0xc2] sm:$0xff] }
 0x5ca   : > { %19513 = vmatprep.mubr.msk.f32.mxu0 %vm10734_vm4, %v24608_v29  ;;  %25732 = vst [vmem:[#allocation60_spill] sm:$0xff] %v24624_v56  ;;  %v24628_v29 = vld [vmem:[#allocation2 + $0xca] sm:$0xff] }
 0x5cb   : > { %25733 = vst [vmem:[#allocation62_spill] sm:$0xff] %v24628_v29 }
 0x5cd   : > { %19514 = vmatmul.mubr.msk.f32.gmra.mrb[76].mxu0 %vm10734_vm4, %v24612_v15  ;;  %v24632_v15 = vld [vmem:[#allocation2 + $0xda] sm:$0xff] }
 0x5ce   : > { %19516 = vmatprep.mubr.msk.f32.mxu0 %vm10734_vm4, %v24616_v40  ;;  %25734 = vst [vmem:[#allocation63_spill] sm:$0xff] %v24632_v15  ;;  %v24636_v40 = vld [vmem:[#allocation2 + $0xe2] sm:$0xff] }
 0x5cf   : > { %25735 = vst [vmem:[#allocation3_spill] sm:$0xff] %v24636_v40 }
 0x5d1   : > { %19517 = vmatmul.mubr.msk.f32.gmra.mrb[78].mxu0 %vm10734_vm4, %v24620_v0  ;;  %v24640_v0 = vld [vmem:[#allocation2 + $0xf2] sm:$0xff] }
 0x5d2   : > { %19519 = vmatprep.mubr.msk.f32.mxu0 %vm10734_vm4, %v24624_v56  ;;  %25736 = vst [vmem:[#allocation26_spill] sm:$0xff] %v24640_v0  ;;  %v24644_v56 = vld [vmem:[#allocation2 + $0xfa] sm:$0xff] }
 0x5d3   : > { %25737 = vst [vmem:[#allocation27_spill] sm:$0xff] %v24644_v56 }
 0x5d5   : > { %19520 = vmatmul.mubr.msk.f32.gmra.mrb[80].mxu0 %vm10734_vm4, %v24628_v29  ;;  %v24648_v29 = vld [vmem:[#allocation2 + $0x10a] sm:$0xff] }
 0x5d6   : > { %19522 = vmatprep.mubr.msk.f32.mxu0 %vm10734_vm4, %v24632_v15  ;;  %25738 = vst [vmem:[#allocation28_spill] sm:$0xff] %v24648_v29  ;;  %v24652_v15 = vld [vmem:[#allocation2 + $0x112] sm:$0xff] }
 0x5d7   : > { %25739 = vst [vmem:[#allocation29_spill] sm:$0xff] %v24652_v15 }
 0x5d9   : > { %19523 = vmatmul.mubr.msk.f32.gmra.mrb[82].mxu0 %vm10734_vm4, %v24636_v40  ;;  %v24656_v40 = vld [vmem:[#allocation2 + $0x122] sm:$0xff] }
 0x5da   : > { %19525 = vmatprep.mubr.msk.f32.mxu0 %vm10734_vm4, %v24640_v0  ;;  %25740 = vst [vmem:[#allocation30_spill] sm:$0xff] %v24656_v40  ;;  %v24660_v0 = vld [vmem:[#allocation2 + $0x12a] sm:$0xff] }
 0x5db   : > { %25741 = vst [vmem:[#allocation31_spill] sm:$0xff] %v24660_v0 }
 0x5dd   : > { %19526 = vmatmul.mubr.msk.f32.gmra.mrb[84].mxu0 %vm10734_vm4, %v24644_v56  ;;  %v24664_v56 = vld [vmem:[#allocation2 + $0x13a] sm:$0xff] }
 0x5de   : > { %19528 = vmatprep.mubr.msk.f32.mxu0 %vm10734_vm4, %v24648_v29  ;;  %25742 = vst [vmem:[#allocation5_spill] sm:$0xff] %v24664_v56  ;;  %v24668_v29 = vld [vmem:[#allocation2 + $0x142] sm:$0xff] }
 0x5df   : > { %25743 = vst [vmem:[#allocation42_spill] sm:$0xff] %v24668_v29 }
 0x5e1   : > { %19529 = vmatmul.mubr.msk.f32.gmra.mrb[86].mxu0 %vm10734_vm4, %v24652_v15  ;;  %v24672_v15 = vld [vmem:[#allocation2 + $0x152] sm:$0xff] }
 0x5e2   : > { %19531 = vmatprep.mubr.msk.f32.mxu0 %vm10734_vm4, %v24656_v40  ;;  %25744 = vst [vmem:[#allocation6_spill] sm:$0xff] %v24672_v15  ;;  %v24676_v40 = vld [vmem:[#allocation2 + $0x15a] sm:$0xff] }
 0x5e3   : > { %25745 = vst [vmem:[#allocation44_spill] sm:$0xff] %v24676_v40 }
 0x5e5   : > { %19532 = vmatmul.mubr.msk.f32.gmra.mrb[88].mxu0 %vm10734_vm4, %v24660_v0  ;;  %v24680_v0 = vld [vmem:[#allocation2 + $0x16a] sm:$0xff] }
 0x5e6   : > { %19534 = vmatprep.mubr.msk.f32.mxu0 %vm10734_vm4, %v24664_v56  ;;  %v24684_v56 = vld [vmem:[#allocation2 + $0x172] sm:$0xff] }
 0x5e7   : > { %25746 = vst [vmem:[#allocation7_spill] sm:$0xff] %v24684_v56 }
 0x5e9   : > { %19535 = vmatmul.mubr.msk.f32.gmra.mrb[90].mxu0 %vm10734_vm4, %v24668_v29  ;;  %v16538_v29 = vld [vmem:[%s25253_s5 + $0x50] sm:$0xff] }
 0x5ea   : > { %19537 = vmatprep.mubr.msk.f32.mxu0 %vm10734_vm4, %v24672_v15  ;;  %v16539_v15 = vld [vmem:[%s25253_s5 + $0x58] sm:$0xf] }
 0x5ed   : > { %19538 = vmatmul.mubr.msk.f32.gmra.mrb[92].mxu0 %vm10734_vm4, %v24676_v40  ;;  %v19957_v40 = vpack.c.bf16 %v16539_v15, %v16538_v29  ;;  %v16574_v29 = vld [vmem:[%s25253_s5 + $0x68] sm:$0xf] }
 0x5ee   : > { %19540 = vmatprep.mubr.msk.f32.mxu0 %vm10734_vm4, %v24680_v0 }
 0x5f1   : > { %19541 = vmatmul.mubr.msk.f32.gmra.mrb[94].mxu0 %vm10734_vm4, %v24684_v56 }
 0x5f2   : > { %19547 = vmatprep.mubr.msk.f32.mxu0 %vm10734_vm4, %v24426_v38  ;;  %v24763_v38 = vld [vmem:[#allocation2 + $0x188] sm:$0xff] }
 0x5f5   : > { %19548 = vmatmul.mubr.msk.f32.vlgmr.msra.gmra.mrb[64].mxu0 %vm10734_vm4, %v24436_v22  ;;  %v16573_v22 = vld [vmem:[%s25253_s5 + $0x60] sm:$0xff] }
 0x5f6   : > { %19956 = vmatpush3.bf16.msk.msra.mxu0 %vm23990_vm3, %v24559_v61  ;;  %19550 = vmatprep.mubr.msk.f32.mxu0 %vm10734_vm4, %v24440_v45  ;;  %v24759_v61 = vld [vmem:[#allocation2 + $0x180] sm:$0xff]  ;;  %v19963_v15 = vpack.c.bf16 %v16574_v29, %v16573_v22  ;;  %v25761_v22 = vld [vmem:[#allocation55_spill] sm:$0xff] }
 0x5f7   : > { %19959 = vmatprep.subr.msk.bf16.mxu0 %vm23990_vm3, %v19957_v40  ;;  %v25762_v29 = vld [vmem:[#allocation57_spill] sm:$0xff] }
 0x5f9   : > { %19551 = vmatmul.mubr.msk.f32.gmra.mrb[66].mxu0 %vm10734_vm4, %v24444_v62 }
 0x5fa   : > { %19553 = vmatprep.mubr.msk.f32.mxu0 %vm10734_vm4, %v24448_v16 }
 0x5fd   : > { %19554 = vmatmul.mubr.msk.f32.gmra.mrb[68].mxu0 %vm10734_vm4, %v24452_v43 }
 0x5fe   : > { %19556 = vmatprep.mubr.msk.f32.mxu0 %vm10734_vm4, %v24456_v12 }
 0x601   : > { %19557 = vmatmul.mubr.msk.f32.gmra.mrb[70].mxu0 %vm10734_vm4, %v24460_v58 }
 0x602   : > { %19559 = vmatprep.mubr.msk.f32.mxu0 %vm10734_vm4, %v24464_v20 }
 0x605   : > { %19560 = vmatmul.mubr.msk.f32.gmra.mrb[72].mxu0 %vm10734_vm4, %v24468_v3 }
 0x606   : > { %19562 = vmatprep.mubr.msk.f32.mxu0 %vm10734_vm4, %v24472_v34 }
 0x609   : > { %19563 = vmatmul.mubr.msk.f32.gmra.mrb[74].mxu0 %vm10734_vm4, %v24476_v24 }
 0x60a   : > { %19565 = vmatprep.mubr.msk.f32.mxu0 %vm10734_vm4, %v24480_v42 }
 0x60d   : > { %19566 = vmatmul.mubr.msk.f32.gmra.mrb[76].mxu0 %vm10734_vm4, %v24484_v28 }
 0x60e   : > { %19568 = vmatprep.mubr.msk.f32.mxu0 %vm10734_vm4, %v24488_v26 }
 0x611   : > { %19569 = vmatmul.mubr.msk.f32.gmra.mrb[78].mxu0 %vm10734_vm4, %v24492_v44 }
 0x612   : > { %19571 = vmatprep.mubr.msk.f32.mxu0 %vm10734_vm4, %v24496_v19 }
 0x615   : > { %19572 = vmatmul.mubr.msk.f32.gmra.mrb[80].mxu0 %vm10734_vm4, %v24500_v48 }
 0x616   : > { %19574 = vmatprep.mubr.msk.f32.mxu0 %vm10734_vm4, %v24504_v7 }
 0x619   : > { %19575 = vmatmul.mubr.msk.f32.gmra.mrb[82].mxu0 %vm10734_vm4, %v24508_v60 }
 0x61a   : > { %19577 = vmatprep.mubr.msk.f32.mxu0 %vm10734_vm4, %v24512_v52 }
 0x61d   : > { %19578 = vmatmul.mubr.msk.f32.gmra.mrb[84].mxu0 %vm10734_vm4, %v24516_v2 }
 0x61e   : > { %19580 = vmatprep.mubr.msk.f32.mxu0 %vm10734_vm4, %v24520_v30 }
 0x621   : > { %19581 = vmatmul.mubr.msk.f32.gmra.mrb[86].mxu0 %vm10734_vm4, %v24524_v9 }
 0x622   : > { %19583 = vmatprep.mubr.msk.f32.mxu0 %vm10734_vm4, %v24528_v46 }
 0x625   : > { %19584 = vmatmul.mubr.msk.f32.gmra.mrb[88].mxu0 %vm10734_vm4, %v24532_v14 }
 0x626   : > { %19586 = vmatprep.mubr.msk.f32.mxu0 %vm10734_vm4, %v24536_v54 }
 0x629   : > { %19587 = vmatmul.mubr.msk.f32.gmra.mrb[90].mxu0 %vm10734_vm4, %v24540_v39 }
 0x62a   : > { %19589 = vmatprep.mubr.msk.f32.mxu0 %vm10734_vm4, %v24544_v59 }
 0x62d   : > { %19590 = vmatmul.mubr.msk.f32.gmra.mrb[92].mxu0 %vm10734_vm4, %v24548_v18 }
 0x62e   : > { %19592 = vmatprep.mubr.msk.f32.mxu0 %vm10734_vm4, %v24759_v61 }
 0x631   : > { %19593 = vmatmul.mubr.msk.f32.gmra.mrb[94].mxu0 %vm10734_vm4, %v24763_v38 }
 0x632   : > { %19599 = vmatprep.mubr.msk.f32.mxu0 %vm10734_vm4, %v24219_v50  ;;  %v25747_v50 = vld [vmem:[#allocation32_spill] sm:$0xff] }
 0x635   : > { %19600 = vmatmul.mubr.msk.f32.vlgmr.msra.gmra.mrb[64].mxu0 %vm10734_vm4, %v24226_v21  ;;  %v25748_v21 = vld [vmem:[#allocation33_spill] sm:$0xff] }
 0x636   : > { %19962 = vmatpush3.bf16.msk.msra.mxu0 %vm23990_vm3, %v19957_v40  ;;  %19602 = vmatprep.mubr.msk.f32.mxu0 %vm10734_vm4, %v24233_v31  ;;  %v25749_v31 = vld [vmem:[#allocation34_spill] sm:$0xff]  ;;  %v25760_v40 = vld [vmem:[#allocation53_spill] sm:$0xff] }
 0x637   : > { %19965 = vmatprep.subr.msk.bf16.mxu0 %vm23990_vm3, %v19963_v15 }
 0x639   : > { %19603 = vmatmul.mubr.msk.f32.gmra.mrb[66].mxu0 %vm10734_vm4, %v24240_v49  ;;  %v25750_v49 = vld [vmem:[#allocation35_spill] sm:$0xff] }
 0x63a   : > { %19605 = vmatprep.mubr.msk.f32.mxu0 %vm10734_vm4, %v24247_v27  ;;  %v25751_v27 = vld [vmem:[#allocation36_spill] sm:$0xff] }
 0x63d   : > { %19606 = vmatmul.mubr.msk.f32.gmra.mrb[68].mxu0 %vm10734_vm4, %v24254_v32  ;;  %v24837_v32 = vld [vmem:[#allocation2 + $0x181] sm:$0xff] }
 0x63e   : > { %19608 = vmatprep.mubr.msk.f32.mxu0 %vm10734_vm4, %v24261_v33  ;;  %v24841_v33 = vld [vmem:[#allocation2 + $0x189] sm:$0xff] }
 0x641   : > { %19609 = vmatmul.mubr.msk.f32.gmra.mrb[70].mxu0 %vm10734_vm4, %v24268_v11  ;;  %v16608_v11 = vld [vmem:[%s25253_s5 + $0x70] sm:$0xff] }
 0x642   : > { %19611 = vmatprep.mubr.msk.f32.mxu0 %vm10734_vm4, %v24275_v37  ;;  %v16609_v37 = vld [vmem:[%s25253_s5 + $0x78] sm:$0xf] }
 0x645   : > { %19612 = vmatmul.mubr.msk.f32.gmra.mrb[72].mxu0 %vm10734_vm4, %v24282_v35  ;;  %v19969_v35 = vpack.c.bf16 %v16609_v37, %v16608_v11  ;;  %v25764_v11 = vld [vmem:[#allocation60_spill] sm:$0xff]  ;;  %v25765_v37 = vld [vmem:[#allocation62_spill] sm:$0xff] }
 0x646   : > { %19614 = vmatprep.mubr.msk.f32.mxu0 %vm10734_vm4, %v24289_v55  ;;  %v25752_v55 = vld [vmem:[#allocation37_spill] sm:$0xff] }
 0x649   : > { %19615 = vmatmul.mubr.msk.f32.gmra.mrb[74].mxu0 %vm10734_vm4, %v24296_v1  ;;  %v25753_v1 = vld [vmem:[#allocation39_spill] sm:$0xff] }
 0x64a   : > { %19617 = vmatprep.mubr.msk.f32.mxu0 %vm10734_vm4, %v24303_v17  ;;  %v25754_v17 = vld [vmem:[#allocation41_spill] sm:$0xff] }
 0x64d   : > { %19618 = vmatmul.mubr.msk.f32.gmra.mrb[76].mxu0 %vm10734_vm4, %v24310_v10  ;;  %v25755_v10 = vld [vmem:[#allocation43_spill] sm:$0xff] }
 0x64e   : > { %19620 = vmatprep.mubr.msk.f32.mxu0 %vm10734_vm4, %v24317_v47  ;;  %v25756_v47 = vld [vmem:[#allocation45_spill] sm:$0xff] }
 0x651   : > { %19621 = vmatmul.mubr.msk.f32.gmra.mrb[78].mxu0 %vm10734_vm4, %v24324_v13  ;;  %v25757_v13 = vld [vmem:[#allocation47_spill] sm:$0xff] }
 0x652   : > { %19623 = vmatprep.mubr.msk.f32.mxu0 %vm10734_vm4, %v24331_v51 }
 0x655   : > { %19624 = vmatmul.mubr.msk.f32.gmra.mrb[80].mxu0 %vm10734_vm4, %v24338_v4 }
 0x656   : > { %19626 = vmatprep.mubr.msk.f32.mxu0 %vm10734_vm4, %v24345_v6 }
 0x659   : > { %19627 = vmatmul.mubr.msk.f32.gmra.mrb[82].mxu0 %vm10734_vm4, %v24352_v63 }
 0x65a   : > { %19629 = vmatprep.mubr.msk.f32.mxu0 %vm10734_vm4, %v24359_v8 }
 0x65d   : > { %19630 = vmatmul.mubr.msk.f32.gmra.mrb[84].mxu0 %vm10734_vm4, %v24366_v41 }
 0x65e   : > { %19632 = vmatprep.mubr.msk.f32.mxu0 %vm10734_vm4, %v24373_v53 }
 0x661   : > { %19633 = vmatmul.mubr.msk.f32.gmra.mrb[86].mxu0 %vm10734_vm4, %v24380_v25 }
 0x662   : > { %19635 = vmatprep.mubr.msk.f32.mxu0 %vm10734_vm4, %v24387_v5 }
 0x665   : > { %19636 = vmatmul.mubr.msk.f32.gmra.mrb[88].mxu0 %vm10734_vm4, %v25747_v50 }
 0x666   : > { %19638 = vmatprep.mubr.msk.f32.mxu0 %vm10734_vm4, %v25748_v21 }
 0x669   : > { %19639 = vmatmul.mubr.msk.f32.gmra.mrb[90].mxu0 %vm10734_vm4, %v25749_v31 }
 0x66a   : > { %19641 = vmatprep.mubr.msk.f32.mxu0 %vm10734_vm4, %v25750_v49 }
 0x66d   : > { %19642 = vmatmul.mubr.msk.f32.gmra.mrb[92].mxu0 %vm10734_vm4, %v25751_v27 }
 0x66e   : > { %19644 = vmatprep.mubr.msk.f32.mxu0 %vm10734_vm4, %v24837_v32 }
 0x671   : > { %19645 = vmatmul.mubr.msk.f32.gmra.mrb[94].mxu0 %vm10734_vm4, %v24841_v33 }
 0x672   : > { %19651 = vmatprep.mubr.msk.f32.mxu0 %vm10734_vm4, %v24562_v23  ;;  %v25759_v23 = vld [vmem:[#allocation51_spill] sm:$0xff] }
 0x675   : > { %19652 = vmatmul.mubr.msk.f32.vlgmr.msra.gmra.mrb[64].mxu0 %vm10734_vm4, %v24572_v57  ;;  %v25758_v57 = vld [vmem:[#allocation49_spill] sm:$0xff] }
 0x676   : > { %19968 = vmatpush3.bf16.msk.msra.mxu0 %vm23990_vm3, %v19963_v15  ;;  %19654 = vmatprep.mubr.msk.f32.mxu0 %vm10734_vm4, %v25752_v55  ;;  %v25763_v15 = vld [vmem:[#allocation59_spill] sm:$0xff] }
 0x677   : > { %19971 = vmatprep.subr.msk.bf16.mxu0 %vm23990_vm3, %v19969_v35 }
 0x679   : > { %19655 = vmatmul.mubr.msk.f32.gmra.mrb[66].mxu0 %vm10734_vm4, %v25753_v1 }
 0x67a   : > { %19657 = vmatprep.mubr.msk.f32.mxu0 %vm10734_vm4, %v25754_v17 }
 0x67d   : > { %19658 = vmatmul.mubr.msk.f32.gmra.mrb[68].mxu0 %vm10734_vm4, %v25755_v10 }
 0x67e   : > { %19660 = vmatprep.mubr.msk.f32.mxu0 %vm10734_vm4, %v25756_v47 }
 0x681   : > { %19661 = vmatmul.mubr.msk.f32.gmra.mrb[70].mxu0 %vm10734_vm4, %v25757_v13 }
 0x682   : > { %19663 = vmatprep.mubr.msk.f32.mxu0 %vm10734_vm4, %v25758_v57  ;;  %v25766_v57 = vld [vmem:[#allocation63_spill] sm:$0xff] }
 0x685   : > { %19664 = vmatmul.mubr.msk.f32.gmra.mrb[72].mxu0 %vm10734_vm4, %v25759_v23  ;;  %v25767_v23 = vld [vmem:[#allocation3_spill] sm:$0xff] }
 0x686   : > { %19666 = vmatprep.mubr.msk.f32.mxu0 %vm10734_vm4, %v25760_v40  ;;  %v25768_v40 = vld [vmem:[#allocation26_spill] sm:$0xff] }
 0x689   : > { %19667 = vmatmul.mubr.msk.f32.gmra.mrb[74].mxu0 %vm10734_vm4, %v25761_v22  ;;  %v25769_v22 = vld [vmem:[#allocation27_spill] sm:$0xff] }
 0x68a   : > { %19669 = vmatprep.mubr.msk.f32.mxu0 %vm10734_vm4, %v25762_v29  ;;  %v25770_v29 = vld [vmem:[#allocation28_spill] sm:$0xff] }
 0x68d   : > { %19670 = vmatmul.mubr.msk.f32.gmra.mrb[76].mxu0 %vm10734_vm4, %v25763_v15  ;;  %v25771_v15 = vld [vmem:[#allocation29_spill] sm:$0xff] }
 0x68e   : > { %19672 = vmatprep.mubr.msk.f32.mxu0 %vm10734_vm4, %v25764_v11  ;;  %v25772_v11 = vld [vmem:[#allocation30_spill] sm:$0xff] }
 0x691   : > { %19673 = vmatmul.mubr.msk.f32.gmra.mrb[78].mxu0 %vm10734_vm4, %v25765_v37  ;;  %v25773_v37 = vld [vmem:[#allocation31_spill] sm:$0xff] }
 0x692   : > { %19675 = vmatprep.mubr.msk.f32.mxu0 %vm10734_vm4, %v25766_v57  ;;  %v25774_v57 = vld [vmem:[#allocation5_spill] sm:$0xff] }
 0x695   : > { %19676 = vmatmul.mubr.msk.f32.gmra.mrb[80].mxu0 %vm10734_vm4, %v25767_v23  ;;  %v25775_v23 = vld [vmem:[#allocation42_spill] sm:$0xff] }
 0x696   : > { %19678 = vmatprep.mubr.msk.f32.mxu0 %vm10734_vm4, %v25768_v40  ;;  %v25776_v40 = vld [vmem:[#allocation6_spill] sm:$0xff] }
 0x699   : > { %19679 = vmatmul.mubr.msk.f32.gmra.mrb[82].mxu0 %vm10734_vm4, %v25769_v22  ;;  %v25777_v22 = vld [vmem:[#allocation44_spill] sm:$0xff] }
 0x69a   : > { %19681 = vmatprep.mubr.msk.f32.mxu0 %vm10734_vm4, %v25770_v29 }
 0x69d   : > { %19682 = vmatmul.mubr.msk.f32.gmra.mrb[84].mxu0 %vm10734_vm4, %v25771_v15 }
 0x69e   : > { %19684 = vmatprep.mubr.msk.f32.mxu0 %vm10734_vm4, %v25772_v11  ;;  %v24915_v11 = vld [vmem:[#allocation2 + $0x182] sm:$0xff] }
 0x6a1   : > { %19685 = vmatmul.mubr.msk.f32.gmra.mrb[86].mxu0 %vm10734_vm4, %v25773_v37 }
 0x6a2   : > { %19687 = vmatprep.mubr.msk.f32.mxu0 %vm10734_vm4, %v25774_v57  ;;  %v24919_v57 = vld [vmem:[#allocation2 + $0x18a] sm:$0xff] }
 0x6a5   : > { %19688 = vmatmul.mubr.msk.f32.gmra.mrb[88].mxu0 %vm10734_vm4, %v25775_v23 }
 0x6a6   : > { %19690 = vmatprep.mubr.msk.f32.mxu0 %vm10734_vm4, %v25776_v40  ;;  %v16643_v40 = vld [vmem:[%s25253_s5 + $0x80] sm:$0xff] }
 0x6a9   : > { %19691 = vmatmul.mubr.msk.f32.gmra.mrb[90].mxu0 %vm10734_vm4, %v25777_v22  ;;  %v16644_v22 = vld [vmem:[%s25253_s5 + $0x88] sm:$0xf] }
 0x6aa   : > { %19693 = vmatprep.mubr.msk.f32.mxu0 %vm10734_vm4, %v24680_v0 }
 0x6ad   : > { %19694 = vmatmul.mubr.msk.f32.gmra.mrb[92].mxu0 %vm10734_vm4, %v24684_v56  ;;  %v19975_v56 = vpack.c.bf16 %v16644_v22, %v16643_v40  ;;  %v13510_v40 = vld [vmem:[#allocation2 + $0xc9] sm:$0xff] }
 0x6ae   : > { %19696 = vmatprep.mubr.msk.f32.mxu0 %vm10734_vm4, %v24915_v11 }
 0x6b1   : > { %19697 = vmatmul.mubr.msk.f32.gmra.mrb[94].mxu0 %vm10734_vm4, %v24919_v57 }
 0x6b2   : > { %19703 = vmatprep.mubr.msk.f32.mxu0 %vm10734_vm4, %v24440_v45  ;;  %v13136_v45 = vld [vmem:[#allocation2 + $0x198] sm:$0xff] }
 0x6b5   : > { %19704 = vmatmul.mubr.msk.f32.vlgmr.msra.gmra.mrb[64].mxu0 %vm10734_vm4, %v24444_v62  ;;  %v13137_v62 = vld [vmem:[#allocation2 + $0x1a0] sm:$0xff] }
 0x6b6   : > { %19974 = vmatpush3.bf16.msk.msra.mxu0 %vm23990_vm3, %v19969_v35  ;;  %19706 = vmatprep.mubr.msk.f32.mxu0 %vm10734_vm4, %v24448_v16  ;;  %v13497_v16 = vld [vmem:[#allocation2 + $0x31] sm:$0xff]  ;;  %v13509_v35 = vld [vmem:[#allocation2 + $0xc1] sm:$0xff] }
 0x6b7   : > { %19977 = vmatprep.subr.msk.bf16.mxu0 %vm23990_vm3, %v19975_v56 }
 0x6b9   : > { %19707 = vmatmul.mubr.msk.f32.gmra.mrb[66].mxu0 %vm10734_vm4, %v24452_v43  ;;  %v14311_v43 = vld [vmem:[%s25254_s6] sm:$0xff] }
 0x6ba   : > { %19709 = vmatprep.mubr.msk.f32.mxu0 %vm10734_vm4, %v24456_v12  ;;  %v14312_v12 = vld [vmem:[%s25254_s6 + $0x8] sm:$0xff] }
 0x6bd   : > { %19710 = vmatmul.mubr.msk.f32.gmra.mrb[68].mxu0 %vm10734_vm4, %v24460_v58  ;;  %v14313_v58 = vld [vmem:[%s25254_s6 + $0x10] sm:$0xff] }
 0x6be   : > { %19712 = vmatprep.mubr.msk.f32.mxu0 %vm10734_vm4, %v24464_v20  ;;  %v19981_v20 = vpack.c.bf16 %v14312_v12, %v14311_v43 }
 0x6c0   : > { %19982 = vmatprep.subr.bf16.mxu1 %v19981_v20 }
 0x6c1   : > { %19713 = vmatmul.mubr.msk.f32.gmra.mrb[70].mxu0 %vm10734_vm4, %v24468_v3  ;;  %v14314_v3 = vld [vmem:[%s25254_s6 + $0x18] sm:$0xff]  ;;  %19984 = vmatpush3.bf16.msra.mxu1 %v19981_v20 }
 0x6c2   : > { %19715 = vmatprep.mubr.msk.f32.mxu0 %vm10734_vm4, %v24472_v34  ;;  %v19985_v34 = vpack.c.bf16 %v14314_v3, %v14313_v58 }
 0x6c4   : > { %19986 = vmatprep.subr.bf16.mxu1 %v19985_v34 }
 0x6c5   : > { %19716 = vmatmul.mubr.msk.f32.gmra.mrb[72].mxu0 %vm10734_vm4, %v24476_v24  ;;  %v14315_v24 = vld [vmem:[%s25254_s6 + $0x20] sm:$0xff]  ;;  %19988 = vmatpush3.bf16.msra.mxu1 %v19985_v34 }
 0x6c6   : > { %19718 = vmatprep.mubr.msk.f32.mxu0 %vm10734_vm4, %v24480_v42  ;;  %v14316_v42 = vld [vmem:[%s25254_s6 + $0x28] sm:$0xff] }
 0x6c9   : > { %19719 = vmatmul.mubr.msk.f32.gmra.mrb[74].mxu0 %vm10734_vm4, %v24484_v28  ;;  %v13498_v28 = vld [vmem:[#allocation2 + $0x39] sm:$0xff] }
 0x6ca   : > { %19721 = vmatprep.mubr.msk.f32.mxu0 %vm10734_vm4, %v24488_v26  ;;  %v13499_v26 = vld [vmem:[#allocation2 + $0x49] sm:$0xff] }
 0x6cd   : > { %19722 = vmatmul.mubr.msk.f32.gmra.mrb[76].mxu0 %vm10734_vm4, %v24492_v44  ;;  %v19989_v44 = vpack.c.bf16 %v14316_v42, %v14315_v24 }
 0x6ce   : > { %19724 = vmatprep.mubr.msk.f32.mxu0 %vm10734_vm4, %v24496_v19  ;;  %v14317_v19 = vld [vmem:[%s25254_s6 + $0x30] sm:$0xff] }
 0x6cf   : > { %19990 = vmatprep.subr.bf16.mxu1 %v19989_v44 }
 0x6d0   : > { %19992 = vmatpush3.bf16.msra.mxu1 %v19989_v44 }
 0x6d1   : > { %19725 = vmatmul.mubr.msk.f32.gmra.mrb[78].mxu0 %vm10734_vm4, %v24500_v48  ;;  %v14318_v48 = vld [vmem:[%s25254_s6 + $0x38] sm:$0xff] }
 0x6d2   : > { %19727 = vmatprep.mubr.msk.f32.mxu0 %vm10734_vm4, %v24504_v7  ;;  %v13500_v7 = vld [vmem:[#allocation2 + $0x51] sm:$0xff]  ;;  %v19993_v36 = vpack.c.bf16 %v14318_v48, %v14317_v19 }
 0x6d4   : > { %19994 = vmatprep.subr.bf16.mxu1 %v19993_v36 }
 0x6d5   : > { %19728 = vmatmul.mubr.msk.f32.gmra.mrb[80].mxu0 %vm10734_vm4, %v24508_v60  ;;  %v13501_v60 = vld [vmem:[#allocation2 + $0x61] sm:$0xff]  ;;  %19996 = vmatpush3.bf16.msra.mxu1 %v19993_v36 }
 0x6d6   : > { %19730 = vmatprep.mubr.msk.f32.mxu0 %vm10734_vm4, %v24512_v52  ;;  %v14319_v52 = vld [vmem:[%s25254_s6 + $0x40] sm:$0xff] }
 0x6d9   : > { %19731 = vmatmul.mubr.msk.f32.gmra.mrb[82].mxu0 %vm10734_vm4, %v24516_v2  ;;  %v14320_v2 = vld [vmem:[%s25254_s6 + $0x48] sm:$0xff] }
 0x6da   : > { %19733 = vmatprep.mubr.msk.f32.mxu0 %vm10734_vm4, %v24520_v30  ;;  %v13502_v30 = vld [vmem:[#allocation2 + $0x69] sm:$0xff] }
 0x6dd   : > { %19734 = vmatmul.mubr.msk.f32.gmra.mrb[84].mxu0 %vm10734_vm4, %v24524_v9  ;;  %v13503_v9 = vld [vmem:[#allocation2 + $0x79] sm:$0xff] }
 0x6de   : > { %19736 = vmatprep.mubr.msk.f32.mxu0 %vm10734_vm4, %v24528_v46  ;;  %v19997_v46 = vpack.c.bf16 %v14320_v2, %v14319_v52 }
 0x6e0   : > { %19998 = vmatprep.subr.bf16.mxu1 %v19997_v46 }
 0x6e1   : > { %19737 = vmatmul.mubr.msk.f32.gmra.mrb[86].mxu0 %vm10734_vm4, %v24532_v14  ;;  %v14321_v14 = vld [vmem:[%s25254_s6 + $0x50] sm:$0xff]  ;;  %20000 = vmatpush3.bf16.msra.mxu1 %v19997_v46 }
 0x6e2   : > { %19739 = vmatprep.mubr.msk.f32.mxu0 %vm10734_vm4, %v24536_v54  ;;  %v14322_v54 = vld [vmem:[%s25254_s6 + $0x58] sm:$0xff] }
 0x6e5   : > { %19740 = vmatmul.mubr.msk.f32.gmra.mrb[88].mxu0 %vm10734_vm4, %v24540_v39  ;;  %v13504_v39 = vld [vmem:[#allocation2 + $0x81] sm:$0xff] }
 0x6e6   : > { %19742 = vmatprep.mubr.msk.f32.mxu0 %vm10734_vm4, %v24544_v59  ;;  %v13505_v59 = vld [vmem:[#allocation2 + $0x91] sm:$0xff] }
 0x6e9   : > { %19743 = vmatmul.mubr.msk.f32.gmra.mrb[90].mxu0 %vm10734_vm4, %v24548_v18  ;;  %v20001_v18 = vpack.c.bf16 %v14322_v54, %v14321_v14 }
 0x6ea   : > { %19745 = vmatprep.mubr.msk.f32.mxu0 %vm10734_vm4, %v24759_v61  ;;  %v13507_v61 = vld [vmem:[#allocation2 + $0xa9] sm:$0xff] }
 0x6eb   : > { %20002 = vmatprep.subr.bf16.mxu1 %v20001_v18 }
 0x6ec   : > { %20004 = vmatpush3.bf16.msra.mxu1 %v20001_v18 }
 0x6ed   : > { %19746 = vmatmul.mubr.msk.f32.gmra.mrb[92].mxu0 %vm10734_vm4, %v24763_v38  ;;  %v13508_v38 = vld [vmem:[#allocation2 + $0xb1] sm:$0xff] }
 0x6ee   : > { %19748 = vmatprep.mubr.msk.f32.mxu0 %vm10734_vm4, %v13136_v45 }
 0x6f1   : > { %19749 = vmatmul.mubr.msk.f32.gmra.mrb[94].mxu0 %vm10734_vm4, %v13137_v62 }
 0x6f2   : > { %19755 = vmatprep.mubr.msk.f32.mxu0 %vm10734_vm4, %v13497_v16 }
 0x6f5   : > { %19756 = vmatmul.mubr.msk.f32.vlgmr.msra.gmra.mrb[64].mxu0 %vm10734_vm4, %v13498_v28 }
 0x6f6   : > { %19980 = vmatpush3.bf16.msk.msra.mxu0 %vm23990_vm3, %v19975_v56  ;;  %19758 = vmatprep.mubr.msk.f32.mxu0 %vm10734_vm4, %v13499_v26  ;;  %v13506_v56 = vld [vmem:[#allocation2 + $0x99] sm:$0xff] }
 0x6f9   : > { %19759 = vmatmul.mubr.msk.f32.gmra.mrb[66].mxu0 %vm10734_vm4, %v13500_v7 }
 0x6fa   : > { %19761 = vmatprep.mubr.msk.f32.mxu0 %vm10734_vm4, %v13501_v60 }
 0x6fd   : > { %19762 = vmatmul.mubr.msk.f32.gmra.mrb[68].mxu0 %vm10734_vm4, %v13502_v30 }
 0x6fe   : > { %19764 = vmatprep.mubr.msk.f32.mxu0 %vm10734_vm4, %v13503_v9 }
 0x701   : > { %19765 = vmatmul.mubr.msk.f32.gmra.mrb[70].mxu0 %vm10734_vm4, %v13504_v39 }
 0x702   : > { %19767 = vmatprep.mubr.msk.f32.mxu0 %vm10734_vm4, %v13505_v59 }
 0x705   : > { %19768 = vmatmul.mubr.msk.f32.gmra.mrb[72].mxu0 %vm10734_vm4, %v13506_v56 }
 0x706   : > { %19770 = vmatprep.mubr.msk.f32.mxu0 %vm10734_vm4, %v13507_v61 }
 0x709   : > { %19771 = vmatmul.mubr.msk.f32.gmra.mrb[74].mxu0 %vm10734_vm4, %v13508_v38 }
 0x70a   : > { %19773 = vmatprep.mubr.msk.f32.mxu0 %vm10734_vm4, %v13509_v35 }
 0x70d   : > { %19774 = vmatmul.mubr.msk.f32.gmra.mrb[76].mxu0 %vm10734_vm4, %v13510_v40 }
 0x70e   : > { %19776 = vmatprep.mubr.msk.f32.mxu0 %vm10734_vm4, %v24331_v51  ;;  %v13527_v51 = vld [vmem:[#allocation2 + $0x199] sm:$0xff] }
 0x711   : > { %19777 = vmatmul.mubr.msk.f32.gmra.mrb[78].mxu0 %vm10734_vm4, %v24338_v4  ;;  %v13528_v4 = vld [vmem:[#allocation2 + $0x1a1] sm:$0xff] }
 0x712   : > { %19779 = vmatprep.mubr.msk.f32.mxu0 %vm10734_vm4, %v24345_v6  ;;  %v25778_v6 = vld [vmem:[#allocation49_spill] sm:$0xff] }
 0x715   : > { %19780 = vmatmul.mubr.msk.f32.gmra.mrb[80].mxu0 %vm10734_vm4, %v24352_v63  ;;  %v25779_v63 = vld [vmem:[#allocation51_spill] sm:$0xff] }
 0x716   : > { %19782 = vmatprep.mubr.msk.f32.mxu0 %vm10734_vm4, %v24359_v8  ;;  %v25780_v8 = vld [vmem:[#allocation53_spill] sm:$0xff] }
 0x719   : > { %19783 = vmatmul.mubr.msk.f32.gmra.mrb[82].mxu0 %vm10734_vm4, %v24366_v41  ;;  %v25781_v41 = vld [vmem:[#allocation55_spill] sm:$0xff] }
 0x71a   : > { %19785 = vmatprep.mubr.msk.f32.mxu0 %vm10734_vm4, %v24373_v53  ;;  %v25782_v53 = vld [vmem:[#allocation57_spill] sm:$0xff] }
 0x71d   : > { %19786 = vmatmul.mubr.msk.f32.gmra.mrb[84].mxu0 %vm10734_vm4, %v24380_v25  ;;  %v25783_v25 = vld [vmem:[#allocation59_spill] sm:$0xff] }
 0x71e   : > { %19788 = vmatprep.mubr.msk.f32.mxu0 %vm10734_vm4, %v24387_v5  ;;  %v25784_v5 = vld [vmem:[#allocation60_spill] sm:$0xff] }
 0x721   : > { %19789 = vmatmul.mubr.msk.f32.gmra.mrb[86].mxu0 %vm10734_vm4, %v25747_v50  ;;  %v25785_v50 = vld [vmem:[#allocation62_spill] sm:$0xff] }
 0x722   : > { %19791 = vmatprep.mubr.msk.f32.mxu0 %vm10734_vm4, %v25748_v21  ;;  %v25786_v21 = vld [vmem:[#allocation63_spill] sm:$0xff] }
 0x725   : > { %19792 = vmatmul.mubr.msk.f32.gmra.mrb[88].mxu0 %vm10734_vm4, %v25749_v31  ;;  %v25787_v31 = vld [vmem:[#allocation3_spill] sm:$0xff] }
 0x726   : > { %19794 = vmatprep.mubr.msk.f32.mxu0 %vm10734_vm4, %v25750_v49  ;;  %v25788_v49 = vld [vmem:[#allocation26_spill] sm:$0xff] }
 0x729   : > { %19795 = vmatmul.mubr.msk.f32.gmra.mrb[90].mxu0 %vm10734_vm4, %v25751_v27  ;;  %v25789_v27 = vld [vmem:[#allocation27_spill] sm:$0xff] }
 0x72a   : > { %19797 = vmatprep.mubr.msk.f32.mxu0 %vm10734_vm4, %v24837_v32  ;;  %v25790_v32 = vld [vmem:[#allocation30_spill] sm:$0xff] }
 0x72d   : > { %19798 = vmatmul.mubr.msk.f32.gmra.mrb[92].mxu0 %vm10734_vm4, %v24841_v33  ;;  %v25791_v33 = vld [vmem:[#allocation5_spill] sm:$0xff] }
 0x72e   : > { %19800 = vmatprep.mubr.msk.f32.mxu0 %vm10734_vm4, %v13527_v51 }
 0x731   : > { %19801 = vmatmul.mubr.msk.f32.gmra.mrb[94].mxu0 %vm10734_vm4, %v13528_v4 }
 0x732   : > { %19807 = vmatprep.mubr.msk.f32.mxu0 %vm10734_vm4, %v25752_v55  ;;  %v25792_v55 = vld [vmem:[#allocation6_spill] sm:$0xff] }
 0x735   : > { %19808 = vmatmul.mubr.msk.f32.vlgmr.msra.gmra.mrb[64].mxu0 %vm10734_vm4, %v25753_v1  ;;  %v25793_v1 = vld [vmem:[#allocation44_spill] sm:$0xff] }
 0x736   : > { %19810 = vmatprep.mubr.msk.f32.mxu0 %vm10734_vm4, %v25754_v17  ;;  %v25794_v17 = vld [vmem:[#allocation7_spill] sm:$0xff] }
 0x739   : > { %19811 = vmatmul.mubr.msk.f32.gmra.mrb[66].mxu0 %vm10734_vm4, %v25755_v10  ;;  %v13918_v10 = vld [vmem:[#allocation2 + $0x19a] sm:$0xff] }
 0x73a   : > { %19813 = vmatprep.mubr.msk.f32.mxu0 %vm10734_vm4, %v25756_v47  ;;  %v13919_v47 = vld [vmem:[#allocation2 + $0x1a2] sm:$0xff] }
 0x73d   : > { %19814 = vmatmul.mubr.msk.f32.gmra.mrb[68].mxu0 %vm10734_vm4, %v25757_v13 }
 0x73e   : > { %19816 = vmatprep.mubr.msk.f32.mxu0 %vm10734_vm4, %v25778_v6 }
 0x741   : > { %19817 = vmatmul.mubr.msk.f32.gmra.mrb[70].mxu0 %vm10734_vm4, %v25779_v63 }
 0x742   : > { %19819 = vmatprep.mubr.msk.f32.mxu0 %vm10734_vm4, %v25780_v8 }
 0x745   : > { %19820 = vmatmul.mubr.msk.f32.gmra.mrb[72].mxu0 %vm10734_vm4, %v25781_v41 }
 0x746   : > { %19822 = vmatprep.mubr.msk.f32.mxu0 %vm10734_vm4, %v25782_v53 }
 0x749   : > { %19823 = vmatmul.mubr.msk.f32.gmra.mrb[74].mxu0 %vm10734_vm4, %v25783_v25 }
 0x74a   : > { %19825 = vmatprep.mubr.msk.f32.mxu0 %vm10734_vm4, %v25784_v5 }
 0x74d   : > { %19826 = vmatmul.mubr.msk.f32.gmra.mrb[76].mxu0 %vm10734_vm4, %v25785_v50 }
 0x74e   : > { %19828 = vmatprep.mubr.msk.f32.mxu0 %vm10734_vm4, %v25786_v21 }
 0x751   : > { %19829 = vmatmul.mubr.msk.f32.gmra.mrb[78].mxu0 %vm10734_vm4, %v25787_v31 }
 0x752   : > { %19831 = vmatprep.mubr.msk.f32.mxu0 %vm10734_vm4, %v25788_v49 }
 0x755   : > { %19832 = vmatmul.mubr.msk.f32.gmra.mrb[80].mxu0 %vm10734_vm4, %v25789_v27 }
 0x756   : > { %19834 = vmatprep.mubr.msk.f32.mxu0 %vm10734_vm4, %v25770_v29 }
 0x759   : > { %19835 = vmatmul.mubr.msk.f32.gmra.mrb[82].mxu0 %vm10734_vm4, %v25771_v15 }
 0x75a   : > { %19837 = vmatprep.mubr.msk.f32.mxu0 %vm10734_vm4, %v25790_v32 }
 0x75d   : > { %19838 = vmatmul.mubr.msk.f32.gmra.mrb[84].mxu0 %vm10734_vm4, %v25773_v37 }
 0x75e   : > { %19840 = vmatprep.mubr.msk.f32.mxu0 %vm10734_vm4, %v25791_v33 }
 0x761   : > { %19841 = vmatmul.mubr.msk.f32.gmra.mrb[86].mxu0 %vm10734_vm4, %v25775_v23 }
 0x762   : > { %19843 = vmatprep.mubr.msk.f32.mxu0 %vm10734_vm4, %v25792_v55 }
 0x765   : > { %19844 = vmatmul.mubr.msk.f32.gmra.mrb[88].mxu0 %vm10734_vm4, %v25793_v1 }
 0x766   : > { %19846 = vmatprep.mubr.msk.f32.mxu0 %vm10734_vm4, %v24680_v0 }
 0x769   : > { %19847 = vmatmul.mubr.msk.f32.gmra.mrb[90].mxu0 %vm10734_vm4, %v25794_v17 }
 0x76a   : > { %19849 = vmatprep.mubr.msk.f32.mxu0 %vm10734_vm4, %v24915_v11 }
 0x76d   : > { %19850 = vmatmul.mubr.msk.f32.gmra.mrb[92].mxu0 %vm10734_vm4, %v24919_v57 }
 0x76e   : > { %19852 = vmatprep.mubr.msk.f32.mxu0 %vm10734_vm4, %v13918_v10 }
 0x771   : > { %19853 = vmatmul.mubr.msk.f32.gmra.mrb[94].mxu0 %vm10734_vm4, %v13919_v47 }
 0x808   : > { %v19809_v13 = vpop.f32.mrb[64].mxu0 }
 0x809   : > { %v14088_v23 = vpop.f32.mrb[65].mxu0  ;;  %v14280_v0 = vmax.f32 %v19809_v13, 0.0 }
 0x80a   : > { %v14279_v22 = vmax.f32 %v14088_v23, 0.0 }
 0x80c   : > { %v19812_v29 = vpop.f32.mrb[66].mxu0  ;;  %19879 = vmatprep.mubr.msk.f32.mxu1 %vm14323_vm6, %v14279_v22 }
 0x80d   : > { %v14098_v15 = vpop.f32.mrb[67].mxu0  ;;  %19880 = vmatmul.mubr.msk.f32.vlgmr.msra.gmra.mrb[64].mxu1 %vm14323_vm6, %v14280_v0  ;;  %v14282_v37 = vmax.f32 %v19812_v29, 0.0 }
 0x80e   : > { %v14281_v11 = vmax.f32 %v14098_v15, 0.0 }
 0x810   : > { %v19815_v45 = vpop.f32.mrb[68].mxu0  ;;  %19882 = vmatprep.mubr.msk.f32.mxu1 %vm14323_vm6, %v14281_v11 }
 0x811   : > { %v14108_v57 = vpop.f32.mrb[69].mxu0  ;;  %19883 = vmatmul.mubr.msk.f32.gmra.mrb[66].mxu1 %vm14323_vm6, %v14282_v37  ;;  %v14284_v16 = vmax.f32 %v19815_v45, 0.0 }
 0x812   : > { %v14283_v62 = vmax.f32 %v14108_v57, 0.0 }
 0x814   : > { %v19818_v43 = vpop.f32.mrb[70].mxu0  ;;  %19885 = vmatprep.mubr.msk.f32.mxu1 %vm14323_vm6, %v14283_v62 }
 0x815   : > { %v14118_v12 = vpop.f32.mrb[71].mxu0  ;;  %19886 = vmatmul.mubr.msk.f32.gmra.mrb[68].mxu1 %vm14323_vm6, %v14284_v16  ;;  %v14286_v20 = vmax.f32 %v19818_v43, 0.0 }
 0x816   : > { %v14285_v58 = vmax.f32 %v14118_v12, 0.0 }
 0x818   : > { %v19821_v3 = vpop.f32.mrb[72].mxu0  ;;  %19888 = vmatprep.mubr.msk.f32.mxu1 %vm14323_vm6, %v14285_v58 }
 0x819   : > { %v14128_v34 = vpop.f32.mrb[73].mxu0  ;;  %19889 = vmatmul.mubr.msk.f32.gmra.mrb[70].mxu1 %vm14323_vm6, %v14286_v20  ;;  %v14288_v42 = vmax.f32 %v19821_v3, 0.0 }
 0x81a   : > { %v14287_v24 = vmax.f32 %v14128_v34, 0.0 }
 0x81c   : > { %v19824_v28 = vpop.f32.mrb[74].mxu0  ;;  %19891 = vmatprep.mubr.msk.f32.mxu1 %vm14323_vm6, %v14287_v24 }
 0x81d   : > { %v14138_v26 = vpop.f32.mrb[75].mxu0  ;;  %19892 = vmatmul.mubr.msk.f32.gmra.mrb[72].mxu1 %vm14323_vm6, %v14288_v42  ;;  %v14290_v19 = vmax.f32 %v19824_v28, 0.0 }
 0x81e   : > { %v14289_v44 = vmax.f32 %v14138_v26, 0.0 }
 0x820   : > { %v19827_v48 = vpop.f32.mrb[76].mxu0  ;;  %19894 = vmatprep.mubr.msk.f32.mxu1 %vm14323_vm6, %v14289_v44 }
 0x821   : > { %v14148_v7 = vpop.f32.mrb[77].mxu0  ;;  %19895 = vmatmul.mubr.msk.f32.gmra.mrb[74].mxu1 %vm14323_vm6, %v14290_v19  ;;  %v14292_v36 = vmax.f32 %v19827_v48, 0.0 }
 0x822   : > { %v14291_v60 = vmax.f32 %v14148_v7, 0.0 }
 0x824   : > { %v19830_v52 = vpop.f32.mrb[78].mxu0  ;;  %19897 = vmatprep.mubr.msk.f32.mxu1 %vm14323_vm6, %v14291_v60 }
 0x825   : > { %v14158_v2 = vpop.f32.mrb[79].mxu0  ;;  %19898 = vmatmul.mubr.msk.f32.gmra.mrb[76].mxu1 %vm14323_vm6, %v14292_v36  ;;  %v14294_v9 = vmax.f32 %v19830_v52, 0.0 }
 0x826   : > { %v14293_v30 = vmax.f32 %v14158_v2, 0.0 }
 0x828   : > { %v19833_v46 = vpop.f32.mrb[80].mxu0  ;;  %19900 = vmatprep.mubr.msk.f32.mxu1 %vm14323_vm6, %v14293_v30 }
 0x829   : > { %v14168_v14 = vpop.f32.mrb[81].mxu0  ;;  %19901 = vmatmul.mubr.msk.f32.gmra.mrb[78].mxu1 %vm14323_vm6, %v14294_v9  ;;  %v14296_v39 = vmax.f32 %v19833_v46, 0.0 }
 0x82a   : > { %v14295_v54 = vmax.f32 %v14168_v14, 0.0 }
 0x82c   : > { %v19836_v59 = vpop.f32.mrb[82].mxu0  ;;  %19903 = vmatprep.mubr.msk.f32.mxu1 %vm14323_vm6, %v14295_v54 }
 0x82d   : > { %v14178_v18 = vpop.f32.mrb[83].mxu0  ;;  %19904 = vmatmul.mubr.msk.f32.gmra.mrb[80].mxu1 %vm14323_vm6, %v14296_v39  ;;  %v14298_v61 = vmax.f32 %v19836_v59, 0.0 }
 0x82e   : > { %v14297_v56 = vmax.f32 %v14178_v18, 0.0 }
 0x830   : > { %v19839_v38 = vpop.f32.mrb[84].mxu0  ;;  %19906 = vmatprep.mubr.msk.f32.mxu1 %vm14323_vm6, %v14297_v56 }
 0x831   : > { %v14188_v35 = vpop.f32.mrb[85].mxu0  ;;  %19907 = vmatmul.mubr.msk.f32.gmra.mrb[82].mxu1 %vm14323_vm6, %v14298_v61  ;;  %v14300_v51 = vmax.f32 %v19839_v38, 0.0 }
 0x832   : > { %v14299_v40 = vmax.f32 %v14188_v35, 0.0 }
 0x834   : > { %v19842_v4 = vpop.f32.mrb[86].mxu0  ;;  %19909 = vmatprep.mubr.msk.f32.mxu1 %vm14323_vm6, %v14299_v40 }
 0x835   : > { %v14198_v6 = vpop.f32.mrb[87].mxu0  ;;  %19910 = vmatmul.mubr.msk.f32.gmra.mrb[84].mxu1 %vm14323_vm6, %v14300_v51  ;;  %v14302_v8 = vmax.f32 %v19842_v4, 0.0 }
 0x836   : > { %v14301_v63 = vmax.f32 %v14198_v6, 0.0 }
 0x838   : > { %v19845_v41 = vpop.f32.mrb[88].mxu0  ;;  %19912 = vmatprep.mubr.msk.f32.mxu1 %vm14323_vm6, %v14301_v63 }
 0x839   : > { %v14208_v53 = vpop.f32.mrb[89].mxu0  ;;  %19913 = vmatmul.mubr.msk.f32.gmra.mrb[86].mxu1 %vm14323_vm6, %v14302_v8  ;;  %v14304_v5 = vmax.f32 %v19845_v41, 0.0 }
 0x83a   : > { %v14303_v25 = vmax.f32 %v14208_v53, 0.0 }
 0x83c   : > { %v19848_v50 = vpop.f32.mrb[90].mxu0  ;;  %19915 = vmatprep.mubr.msk.f32.mxu1 %vm14323_vm6, %v14303_v25 }
 0x83d   : > { %v14218_v21 = vpop.f32.mrb[91].mxu0  ;;  %19916 = vmatmul.mubr.msk.f32.gmra.mrb[88].mxu1 %vm14323_vm6, %v14304_v5  ;;  %v14306_v49 = vmax.f32 %v19848_v50, 0.0 }
 0x83e   : > { %v14305_v31 = vmax.f32 %v14218_v21, 0.0 }
 0x840   : > { %v19851_v27 = vpop.f32.mrb[92].mxu0  ;;  %19918 = vmatprep.mubr.msk.f32.mxu1 %vm14323_vm6, %v14305_v31 }
 0x841   : > { %v14228_v32 = vpop.f32.mrb[93].mxu0  ;;  %19919 = vmatmul.mubr.msk.f32.gmra.mrb[90].mxu1 %vm14323_vm6, %v14306_v49  ;;  %v14308_v55 = vmax.f32 %v19851_v27, 0.0 }
 0x842   : > { %v14307_v33 = vmax.f32 %v14228_v32, 0.0 }
 0x844   : > { %v19854_v1 = vpop.f32.mrb[94].mxu0  ;;  %19921 = vmatprep.mubr.msk.f32.mxu1 %vm14323_vm6, %v14307_v33 }
 0x845   : > { %v14238_v17 = vpop.f32.mrb[95].mxu0  ;;  %19922 = vmatmul.mubr.msk.f32.gmra.mrb[92].mxu1 %vm14323_vm6, %v14308_v55  ;;  %v14310_v47 = vmax.f32 %v19854_v1, 0.0 }
 0x846   : > { %v14309_v10 = vmax.f32 %v14238_v17, 0.0 }
 0x848   : > { %19924 = vmatprep.mubr.msk.f32.mxu1 %vm14323_vm6, %v14309_v10 }
 0x849   : > { %19925 = vmatmul.mubr.msk.f32.gmra.mrb[94].mxu1 %vm14323_vm6, %v14310_v47 }
 0x8e0   : > { %v19881_v13 = vpop.f32.mrb[64].mxu1 }
 0x8e1   : > { %14647 = vst.msk [vmem:[%s25179_s23 + $0x8] sm:$0xff] %vm14645_vm7, %v19881_v13  ;;  %v14486_v23 = vpop.f32.mrb[65].mxu1 }
 0x8e2   : > { %14646 = vst.msk [vmem:[%s25179_s23] sm:$0xff] %vm14645_vm7, %v14486_v23 }
 0x8e4   : > { %v19884_v22 = vpop.f32.mrb[66].mxu1 }
 0x8e5   : > { %14649 = vst.msk [vmem:[%s25179_s23 + $0x18] sm:$0xff] %vm14645_vm7, %v19884_v22  ;;  %v14496_v0 = vpop.f32.mrb[67].mxu1 }
 0x8e6   : > { %14648 = vst.msk [vmem:[%s25179_s23 + $0x10] sm:$0xff] %vm14645_vm7, %v14496_v0 }
 0x8e8   : > { %v19887_v29 = vpop.f32.mrb[68].mxu1 }
 0x8e9   : > { %14651 = vst.msk [vmem:[%s25179_s23 + $0x28] sm:$0xff] %vm14645_vm7, %v19887_v29  ;;  %v14506_v15 = vpop.f32.mrb[69].mxu1 }
 0x8ea   : > { %14650 = vst.msk [vmem:[%s25179_s23 + $0x20] sm:$0xff] %vm14645_vm7, %v14506_v15 }
 0x8ec   : > { %v19890_v11 = vpop.f32.mrb[70].mxu1 }
 0x8ed   : > { %14653 = vst.msk [vmem:[%s25179_s23 + $0x38] sm:$0xff] %vm14645_vm7, %v19890_v11  ;;  %v14516_v37 = vpop.f32.mrb[71].mxu1 }
 0x8ee   : > { %14652 = vst.msk [vmem:[%s25179_s23 + $0x30] sm:$0xff] %vm14645_vm7, %v14516_v37 }
 0x8f0   : > { %v19893_v45 = vpop.f32.mrb[72].mxu1 }
 0x8f1   : > { %14655 = vst.msk [vmem:[%s25179_s23 + $0x48] sm:$0xff] %vm14645_vm7, %v19893_v45  ;;  %v14526_v57 = vpop.f32.mrb[73].mxu1 }
 0x8f2   : > { %14654 = vst.msk [vmem:[%s25179_s23 + $0x40] sm:$0xff] %vm14645_vm7, %v14526_v57 }
 0x8f4   : > { %v19896_v62 = vpop.f32.mrb[74].mxu1 }
 0x8f5   : > { %14657 = vst.msk [vmem:[%s25179_s23 + $0x58] sm:$0xff] %vm14645_vm7, %v19896_v62  ;;  %v14536_v16 = vpop.f32.mrb[75].mxu1 }
 0x8f6   : > { %14656 = vst.msk [vmem:[%s25179_s23 + $0x50] sm:$0xff] %vm14645_vm7, %v14536_v16 }
 0x8f8   : > { %v19899_v43 = vpop.f32.mrb[76].mxu1 }
 0x8f9   : > { %14659 = vst.msk [vmem:[%s25179_s23 + $0x68] sm:$0xff] %vm14645_vm7, %v19899_v43  ;;  %v14546_v12 = vpop.f32.mrb[77].mxu1 }
 0x8fa   : > { %14658 = vst.msk [vmem:[%s25179_s23 + $0x60] sm:$0xff] %vm14645_vm7, %v14546_v12 }
 0x8fc   : > { %v19902_v58 = vpop.f32.mrb[78].mxu1 }
 0x8fd   : > { %14661 = vst.msk [vmem:[%s25179_s23 + $0x78] sm:$0xff] %vm14645_vm7, %v19902_v58  ;;  %v14556_v20 = vpop.f32.mrb[79].mxu1 }
 0x8fe   : > { %14660 = vst.msk [vmem:[%s25179_s23 + $0x70] sm:$0xff] %vm14645_vm7, %v14556_v20 }
 0x900   : > { %v19905_v3 = vpop.f32.mrb[80].mxu1 }
 0x901   : > { %14663 = vst.msk [vmem:[%s25179_s23 + $0x88] sm:$0xff] %vm14645_vm7, %v19905_v3  ;;  %v14566_v34 = vpop.f32.mrb[81].mxu1 }
 0x902   : > { %14662 = vst.msk [vmem:[%s25179_s23 + $0x80] sm:$0xff] %vm14645_vm7, %v14566_v34 }
 0x904   : > { %v19908_v24 = vpop.f32.mrb[82].mxu1 }
 0x905   : > { %14665 = vst.msk [vmem:[%s25179_s23 + $0x98] sm:$0xff] %vm14645_vm7, %v19908_v24  ;;  %v14576_v42 = vpop.f32.mrb[83].mxu1 }
 0x906   : > { %14664 = vst.msk [vmem:[%s25179_s23 + $0x90] sm:$0xff] %vm14645_vm7, %v14576_v42 }
 0x908   : > { %v19911_v28 = vpop.f32.mrb[84].mxu1 }
 0x909   : > { %14667 = vst.msk [vmem:[%s25179_s23 + $0xa8] sm:$0xff] %vm14645_vm7, %v19911_v28  ;;  %v14586_v26 = vpop.f32.mrb[85].mxu1 }
 0x90a   : > { %14666 = vst.msk [vmem:[%s25179_s23 + $0xa0] sm:$0xff] %vm14645_vm7, %v14586_v26 }
 0x90c   : > { %v19914_v44 = vpop.f32.mrb[86].mxu1 }
 0x90d   : > { %14669 = vst.msk [vmem:[%s25179_s23 + $0xb8] sm:$0xff] %vm14645_vm7, %v19914_v44  ;;  %v14596_v19 = vpop.f32.mrb[87].mxu1 }
 0x90e   : > { %14668 = vst.msk [vmem:[%s25179_s23 + $0xb0] sm:$0xff] %vm14645_vm7, %v14596_v19 }
 0x910   : > { %v19917_v48 = vpop.f32.mrb[88].mxu1 }
 0x911   : > { %14671 = vst.msk [vmem:[%s25179_s23 + $0xc8] sm:$0xff] %vm14645_vm7, %v19917_v48  ;;  %v14606_v7 = vpop.f32.mrb[89].mxu1 }
 0x912   : > { %14670 = vst.msk [vmem:[%s25179_s23 + $0xc0] sm:$0xff] %vm14645_vm7, %v14606_v7 }
 0x914   : > { %v19920_v60 = vpop.f32.mrb[90].mxu1 }
 0x915   : > { %14673 = vst.msk [vmem:[%s25179_s23 + $0xd8] sm:$0xff] %vm14645_vm7, %v19920_v60  ;;  %v14616_v36 = vpop.f32.mrb[91].mxu1 }
 0x916   : > { %14672 = vst.msk [vmem:[%s25179_s23 + $0xd0] sm:$0xff] %vm14645_vm7, %v14616_v36 }
 0x918   : > { %v19923_v52 = vpop.f32.mrb[92].mxu1 }
 0x919   : > { %14675 = vst.msk [vmem:[%s25179_s23 + $0xe8] sm:$0xff] %vm14645_vm7, %v19923_v52  ;;  %v14626_v2 = vpop.f32.mrb[93].mxu1 }
 0x91a   : > { %14674 = vst.msk [vmem:[%s25179_s23 + $0xe0] sm:$0xff] %vm14645_vm7, %v14626_v2 }
 0x91c   : > { %v19926_v30 = vpop.f32.mrb[94].mxu1 }
 0x91d   : > { %14677 = vst.msk [vmem:[%s25179_s23 + $0xf8] sm:$0xff] %vm14645_vm7, %v19926_v30  ;;  %v14636_v9 = vpop.f32.mrb[95].mxu1 }
 0x91e   : > { %14676 = vst.msk [vmem:[%s25179_s23 + $0xf0] sm:$0xff] %vm14645_vm7, %v14636_v9 }
 0x91f PF: > { %s17_s24 = sadd.s32 1, %s21087_s24  }
 0x920   : > { %p14_p4 = scmp.ge.s32.totalorder %s17_s24, 4  }
 0x922   :  { %16 = sbr.rel (!%p14_p4) target bundleno = 1 (0x1), region = 118 }

</bundles_post_ra>
